<compile_context>
chip_gen: v5e
topology: v5e:2x2
jax: 0.10.0
libtpu: 0.0.40
codegen_flags: <defaults>
</compile_context>

<pallas_src>
import functools
import numpy as np

import jax
import jax.numpy as jnp
from jax.experimental import pallas as pl
from jax.experimental.pallas import tpu as pltpu

EPS = 1e-5
LANES = 128

# Small-but-consistent config (DenseNet hyper-params are constructor arguments).
GROWTH = 8
BLOCK_CONFIG = (2, 2)
INIT_FEATURES = 16
BN_SIZE = 2
NUM_CLASSES = 10


# ---------------------------------------------------------------------------
# BlockSpec helpers
# ---------------------------------------------------------------------------

def _sample_spec(shape):
    """Block = one batch sample, full spatial/channel extent."""
    rest = tuple(shape[1:])
    nrest = len(rest)
    return pl.BlockSpec((1,) + rest, lambda n, _r=nrest: (n,) + (0,) * _r)


def _const_spec(arr):
    """Full-array block, same block every grid step (weights / BN params)."""
    nd = arr.ndim
    return pl.BlockSpec(arr.shape, lambda n, _nd=nd: (0,) * _nd)


_PARALLEL = pltpu.CompilerParams(dimension_semantics=("parallel",))


# ---------------------------------------------------------------------------
# Kernel 1: conv0 + BN + ReLU + 3x3/s2 maxpool, fully fused
# ---------------------------------------------------------------------------

def _make_conv0_pool_kernel(HO, WO):
    PH, PW = HO // 2, WO // 2

    def kernel(s00, s01, s10, s11, w0a_ref, w0b_ref, sh0_ref, sel_ref,
               o_ref, pbuf_ref):
        # s_pq: (1, HO+3, WO, 32|24) bf16 widened parity slabs (kj folded into C).
        row_slabs = ((s00, s01), (s10, s11))
        ka = w0a_ref.shape[1]
        kb = w0b_ref.shape[1]
        acc = jnp.zeros((HO * WO, LANES), jnp.float32)
        for ki in range(7):                      # 14 accumulating dots (not 49)
            par, r = ki % 2, ki // 2
            wa = row_slabs[par][0][:, r:r + HO, :, :].reshape(HO * WO, ka)
            wb = row_slabs[par][1][:, r:r + HO, :, :].reshape(HO * WO, kb)
            acc = acc + jnp.dot(wa, w0a_ref[ki], preferred_element_type=jnp.float32)
            acc = acc + jnp.dot(wb, w0b_ref[ki], preferred_element_type=jnp.float32)
        # BN scale is folded into the conv weights; only the shift remains.
        y = jnp.maximum(acc + sh0_ref[...], 0.0)
        # maxpool 3x3 s2 p1: zero-padded scratch (ReLU>=0 so 0-pad == -inf pad),
        # sliding 3x3 max, then stride-2 subsample via a 0/1 selection matmul
        # (keeps every load/store lane-dense, no strided vector ops needed).
        pbuf_ref[...] = jnp.zeros_like(pbuf_ref)
        pbuf_ref[:, 1:HO + 1, 1:WO + 1, :] = (
            y.reshape(1, HO, WO, LANES).astype(jnp.bfloat16))
        pb = pbuf_ref[...]
        rm = jnp.maximum(jnp.maximum(pb[:, 0:HO, :, :], pb[:, 1:HO + 1, :, :]),
                         pb[:, 2:HO + 2, :, :])
        cm = jnp.maximum(jnp.maximum(rm[:, :, 0:WO, :], rm[:, :, 1:WO + 1, :]),
                         rm[:, :, 2:WO + 2, :])
        pool = jnp.dot(sel_ref[...], cm.reshape(HO * WO, LANES),
                       preferred_element_type=jnp.float32)
        o_ref[...] = pool.astype(jnp.bfloat16).reshape(1, PH, PW, LANES)

    return kernel


def _conv0_pool_ref(slabs, w0a, w0b, sh0, HO, WO):
    N = slabs[0].shape[0]
    sl = ((slabs[0], slabs[1]), (slabs[2], slabs[3]))
    ka, kb = w0a.shape[1], w0b.shape[1]
    acc = jnp.zeros((N * HO * WO, LANES), jnp.float32)
    for ki in range(7):
        par, r = ki % 2, ki // 2
        wa = sl[par][0][:, r:r + HO, :, :].reshape(N * HO * WO, ka)
        wb = sl[par][1][:, r:r + HO, :, :].reshape(N * HO * WO, kb)
        acc = acc + jnp.dot(wa, w0a[ki], preferred_element_type=jnp.float32)
        acc = acc + jnp.dot(wb, w0b[ki], preferred_element_type=jnp.float32)
    y = jnp.maximum(acc + sh0, 0.0).astype(jnp.bfloat16).reshape(N, HO, WO, LANES)
    yp = jnp.pad(y, ((0, 0), (1, 1), (1, 1), (0, 0)))
    rm = jnp.maximum(jnp.maximum(yp[:, 0:HO, :, :], yp[:, 1:HO + 1, :, :]),
                     yp[:, 2:HO + 2, :, :])
    cm = jnp.maximum(jnp.maximum(rm[:, :, 0:WO, :], rm[:, :, 1:WO + 1, :]),
                     rm[:, :, 2:WO + 2, :])
    return cm[:, ::2, ::2, :]


def conv0_bn_relu_pool(slabs, w0a, w0b, sh0, sel, HO, WO, use_pallas):
    N = slabs[0].shape[0]
    PH, PW = HO // 2, WO // 2
    if not use_pallas:
        return _conv0_pool_ref(slabs, w0a, w0b, sh0, HO, WO)
    return pl.pallas_call(
        _make_conv0_pool_kernel(HO, WO),
        grid=(N,),
        out_shape=jax.ShapeDtypeStruct((N, PH, PW, LANES), jnp.bfloat16),
        in_specs=[_sample_spec(s.shape) for s in slabs] +
                 [_const_spec(w0a), _const_spec(w0b), _const_spec(sh0),
                  _const_spec(sel)],
        out_specs=_sample_spec((N, PH, PW, LANES)),
        scratch_shapes=[pltpu.VMEM((1, HO + 2, WO + 2, LANES), jnp.bfloat16)],
        compiler_params=_PARALLEL,
    )(*slabs, w0a, w0b, sh0, sel)


# ---------------------------------------------------------------------------
# Kernel 2/3: one whole dense block (+ transition OR classifier head) fused
# ---------------------------------------------------------------------------

def _make_dense_block_kernel(H, W, num_layers, tail):
    HW = H * W

    def kernel(*refs):
        x_ref = refs[0]
        idx = 1
        layer_refs = []
        for _ in range(num_layers):
            layer_refs.append(refs[idx:idx + 5])
            idx += 5
        tail_refs = refs[idx:idx + 4]
        idx += 4
        o_ref, cbuf_ref, ypad_ref = refs[idx], refs[idx + 1], refs[idx + 2]

        # Channel buffer (128 lanes): valid channels grow in place, no concats.
        cbuf_ref[...] = x_ref[...]
        # Zero the halo'd conv scratch EVERY step: with "parallel" semantics the
        # grid may be split across cores, so a program_id==0-only init is unsafe.
        ypad_ref[...] = jnp.zeros_like(ypad_ref)

        for (sc1_ref, sh1_ref, w1_ref, sh2_ref, w2_ref) in layer_refs:
            # BN1 + ReLU -> 1x1 conv (BN2 scale folded into w1, sh2 = BN2 shift)
            xb = cbuf_ref[...].astype(jnp.float32).reshape(HW, LANES)
            xr = jnp.maximum(xb * sc1_ref[...] + sh1_ref[...], 0.0)
            y = jnp.dot(xr.astype(jnp.bfloat16), w1_ref[...],
                        preferred_element_type=jnp.float32) + sh2_ref[...]
            y = jnp.maximum(y, 0.0).astype(jnp.bfloat16)
            # 3x3 conv (pad 1) via bf16 padded scratch + 9 accumulating dots.
            ypad_ref[:, 1:H + 1, 1:W + 1, :] = y.reshape(1, H, W, LANES)
            acc = jnp.zeros((HW, LANES), jnp.float32)
            for k in range(9):
                ki, kj = divmod(k, 3)
                win = ypad_ref[:, ki:ki + H, kj:kj + W, :]
                acc = acc + jnp.dot(win.reshape(HW, LANES), w2_ref[k],
                                    preferred_element_type=jnp.float32)
            # w2's output columns are pre-placed at this layer's channel offset,
            # so the DenseNet concat is a plain (lane-dense) add into the buffer.
            cbuf_ref[...] = cbuf_ref[...] + acc.reshape(1, H, W, LANES).astype(
                jnp.bfloat16)

        feats = cbuf_ref[...].astype(jnp.float32).reshape(HW, LANES)
        if tail == "transition":
            sct_ref, sht_ref, pmat_ref, wt_ref = tail_refs
            # BN + ReLU -> 2x2 avg-pool (as a matmul) -> 1x1 conv (pool/conv commute)
            yb = jnp.maximum(feats * sct_ref[...] + sht_ref[...], 0.0)
            pooled = jnp.dot(pmat_ref[...], yb.astype(jnp.bfloat16),
                             preferred_element_type=jnp.float32)
            out = jnp.dot(pooled.astype(jnp.bfloat16), wt_ref[...],
                          preferred_element_type=jnp.float32)
            o_ref[...] = out.astype(jnp.bfloat16).reshape(1, H // 2, W // 2, LANES)
        else:
            scf_ref, shf_ref, wc_ref, bc_ref = tail_refs
            # final BN + ReLU + adaptive_avg_pool2d((1,1)) + classifier
            yb = jnp.maximum(feats * scf_ref[...] + shf_ref[...], 0.0)
            gap = jnp.mean(yb, axis=0, keepdims=True)            # (1, 128)
            logits = jnp.dot(gap.astype(jnp.bfloat16), wc_ref[...],
                             preferred_element_type=jnp.float32) + bc_ref[...]
            o_ref[...] = logits.reshape(1, 1, LANES)

    return kernel


def _dense_block_ref(x, layer_params, tail_params, tail):
    N, H, W, _ = x.shape
    HW = H * W
    cbuf = x
    for (sc1, sh1, w1, sh2, w2) in layer_params:
        xb = cbuf.astype(jnp.float32).reshape(N * HW, LANES)
        xr = jnp.maximum(xb * sc1 + sh1, 0.0)
        y = jnp.dot(xr.astype(jnp.bfloat16), w1,
                    preferred_element_type=jnp.float32) + sh2
        y = jnp.maximum(y, 0.0).astype(jnp.bfloat16).reshape(N, H, W, LANES)
        yp = jnp.pad(y, ((0, 0), (1, 1), (1, 1), (0, 0)))
        acc = jnp.zeros((N * HW, LANES), jnp.float32)
        for k in range(9):
            ki, kj = divmod(k, 3)
            win = yp[:, ki:ki + H, kj:kj + W, :].reshape(N * HW, LANES)
            acc = acc + jnp.dot(win, w2[k], preferred_element_type=jnp.float32)
        cbuf = cbuf + acc.reshape(N, H, W, LANES).astype(jnp.bfloat16)
    feats = cbuf.astype(jnp.float32).reshape(N, HW, LANES)
    if tail == "transition":
        sct, sht, pmat, wt = tail_params
        yb = jnp.maximum(feats * sct + sht, 0.0)
        pooled = jnp.einsum("ph,nhc->npc", pmat, yb.astype(jnp.bfloat16),
                            preferred_element_type=jnp.float32)
        out = jnp.dot(pooled.astype(jnp.bfloat16).reshape(N * (HW // 4), LANES),
                      wt, preferred_element_type=jnp.float32)
        return out.astype(jnp.bfloat16).reshape(N, H // 2, W // 2, LANES)
    scf, shf, wc, bc = tail_params
    yb = jnp.maximum(feats * scf + shf, 0.0)
    gap = jnp.mean(yb, axis=1)
    logits = jnp.dot(gap.astype(jnp.bfloat16), wc,
                     preferred_element_type=jnp.float32) + bc
    return logits.reshape(N, 1, LANES)


def dense_block(x, layer_params, tail_params, tail, use_pallas):
    N, H, W, _ = x.shape
    num_layers = len(layer_params)
    if not use_pallas:
        return _dense_block_ref(x, layer_params, tail_params, tail)
    flat = [a for lp in layer_params for a in lp] + list(tail_params)
    if tail == "transition":
        out_shape = jax.ShapeDtypeStruct((N, H // 2, W // 2, LANES), jnp.bfloat16)
        out_spec = _sample_spec((N, H // 2, W // 2, LANES))
    else:
        out_shape = jax.ShapeDtypeStruct((N, 1, LANES), jnp.float32)
        out_spec = pl.BlockSpec((1, 1, LANES), lambda n: (n, 0, 0))
    return pl.pallas_call(
        _make_dense_block_kernel(H, W, num_layers, tail),
        grid=(N,),
        out_shape=out_shape,
        in_specs=[_sample_spec(x.shape)] + [_const_spec(a) for a in flat],
        out_specs=out_spec,
        scratch_shapes=[pltpu.VMEM((1, H, W, LANES), jnp.bfloat16),
                        pltpu.VMEM((1, H + 2, W + 2, LANES), jnp.bfloat16)],
        compiler_params=_PARALLEL,
    )(x, *flat)


# ---------------------------------------------------------------------------
# Parameter prep (BN eval-mode folding, PyTorch layouts -> padded kernel layouts)
# ---------------------------------------------------------------------------

def _bn_fold(gamma, beta, mean, var):
    scale = gamma / jnp.sqrt(var + EPS)
    shift = beta - mean * scale
    return scale, shift


def _pad_lanes(v):
    return jnp.pad(v, (0, LANES - v.shape[0])).reshape(1, LANES).astype(jnp.float32)


def _pad2(m):
    return jnp.pad(m, ((0, LANES - m.shape[0]), (0, LANES - m.shape[1])))


def _prep_conv0(params):
    w = params["conv0"]                                     # (C0, 3, 7, 7)
    sc, sh = _bn_fold(**params["norm0"])                    # (C0,)
    wt = jnp.transpose(w, (2, 3, 1, 0)) * sc.reshape(1, 1, 1, -1)   # BN scale folded
    wt = jnp.pad(wt, ((0, 0), (0, 0), (0, 8 - wt.shape[2]),
                      (0, LANES - wt.shape[3])))            # cin->8, cout->128
    w0a = wt[:, 0::2].reshape(7, 4 * 8, LANES).astype(jnp.bfloat16)   # kj even
    w0b = wt[:, 1::2].reshape(7, 3 * 8, LANES).astype(jnp.bfloat16)   # kj odd
    return w0a, w0b, _pad_lanes(sh)


def _prep_dense_layer(lyr, cin):
    sc1, sh1 = _bn_fold(**lyr["bn1"])                       # (cin,)
    sc2, sh2 = _bn_fold(**lyr["bn2"])                       # (C1,)
    w1 = lyr["conv1"][:, :, 0, 0].T * sc2.reshape(1, -1)    # (cin, C1), BN2 folded
    w1 = _pad2(w1).astype(jnp.bfloat16)
    w2t = jnp.transpose(lyr["conv2"], (2, 3, 1, 0)).reshape(9, -1, GROWTH)
    c1 = w2t.shape[1]
    w2 = jnp.zeros((9, LANES, LANES), jnp.float32)
    w2 = w2.at[:, 0:c1, cin:cin + GROWTH].set(w2t).astype(jnp.bfloat16)
    return (_pad_lanes(sc1), _pad_lanes(sh1), w1, _pad_lanes(sh2), w2)


def _prep_transition(tr, H, W):
    sct, sht = _bn_fold(**tr["bn"])
    wt = _pad2(tr["conv"][:, :, 0, 0].T).astype(jnp.bfloat16)
    pmat = np.zeros((H * W // 4, H * W), np.float32)        # 2x2 avg-pool matrix
    for oh in range(H // 2):
        for ow in range(W // 2):
            for dh in range(2):
                for dw in range(2):
                    pmat[oh * (W // 2) + ow, (2 * oh + dh) * W + 2 * ow + dw] = 0.25
    return (_pad_lanes(sct), _pad_lanes(sht), jnp.asarray(pmat, jnp.bfloat16), wt)


def _prep_head(params):
    scf, shf = _bn_fold(**params["norm_final"])
    wc = _pad2(params["classifier_w"].T).astype(jnp.bfloat16)
    bc = _pad_lanes(params["classifier_b"])
    return (_pad_lanes(scf), _pad_lanes(shf), wc, bc)


# ---------------------------------------------------------------------------
# Parameters (deterministic synthetic init, shapes match the PyTorch module)
# ---------------------------------------------------------------------------

def _kaiming(key, shape):
    fan_in = shape[1] * shape[2] * shape[3]
    return jax.random.normal(key, shape, jnp.float32) * jnp.sqrt(2.0 / fan_in)


def _bn_params(c):
    return dict(gamma=jnp.ones((c,), jnp.float32), beta=jnp.zeros((c,), jnp.float32),
                mean=jnp.zeros((c,), jnp.float32), var=jnp.ones((c,), jnp.float32))


def init_params(key):
    keys = iter(jax.random.split(key, 128))
    params = {"conv0": _kaiming(next(keys), (INIT_FEATURES, 3, 7, 7)),
              "norm0": _bn_params(INIT_FEATURES)}
    c = INIT_FEATURES
    blocks = []
    for i, nl in enumerate(BLOCK_CONFIG):
        layers = []
        for j in range(nl):
            cin = c + j * GROWTH
            inter = BN_SIZE * GROWTH
            layers.append(dict(
                bn1=_bn_params(cin),
                conv1=_kaiming(next(keys), (inter, cin, 1, 1)),
                bn2=_bn_params(inter),
                conv2=_kaiming(next(keys), (GROWTH, inter, 3, 3))))
        c = c + nl * GROWTH
        block = dict(layers=layers)
        if i != len(BLOCK_CONFIG) - 1:
            block["trans"] = dict(bn=_bn_params(c),
                                  conv=_kaiming(next(keys), (c // 2, c, 1, 1)))
            c = c // 2
        blocks.append(block)
    params["blocks"] = blocks
    params["norm_final"] = _bn_params(c)
    bound = float(1.0 / (c ** 0.5))
    params["classifier_w"] = jax.random.uniform(next(keys), (NUM_CLASSES, c),
                                                jnp.float32, -bound, bound)
    params["classifier_b"] = jnp.zeros((NUM_CLASSES,), jnp.float32)
    return params


# ---------------------------------------------------------------------------
# Forward pass (use_pallas=False runs identical math in plain jnp for checking)
# ---------------------------------------------------------------------------

def forward(params, x_nchw, use_pallas=True):
    x = jnp.transpose(x_nchw, (0, 2, 3, 1)).astype(jnp.float32)   # NCHW -> NHWC
    N, H, W, _ = x.shape
    assert H % 2 == 0 and W % 2 == 0
    HO = (H + 6 - 7) // 2 + 1
    WO = (W + 6 - 7) // 2 + 1

    # conv0 prep: pad spatially (3) + channels 3->8, bf16, parity slabs with the
    # kj taps pre-folded into the channel (K) dim (cheap XLA slices, done once).
    xpad = jnp.pad(x, ((0, 0), (3, 3), (3, 3), (0, 8 - 3))).astype(jnp.bfloat16)
    slabs = []
    for p in range(2):
        for q in range(2):
            s = xpad[:, p::2, q::2, :]
            ncols = 4 if q == 0 else 3
            slabs.append(jnp.concatenate(
                [s[:, :, c0:c0 + WO, :] for c0 in range(ncols)], axis=-1))
    w0a, w0b, sh0 = _prep_conv0(params)
    PH, PW = HO // 2, WO // 2
    sel = np.zeros((PH * PW, HO * WO), np.float32)           # stride-2 subsample
    for oh in range(PH):
        for ow in range(PW):
            sel[oh * PW + ow, (2 * oh) * WO + 2 * ow] = 1.0
    sel = jnp.asarray(sel, jnp.bfloat16)

    x = conv0_bn_relu_pool(slabs, w0a, w0b, sh0, sel, HO, WO, use_pallas)

    cin0 = INIT_FEATURES
    n_blocks = len(params["blocks"])
    for bi, block in enumerate(params["blocks"]):
        Hb, Wb = x.shape[1], x.shape[2]
        layer_params = []
        cin = cin0
        for lyr in block["layers"]:
            layer_params.append(_prep_dense_layer(lyr, cin))
            cin += GROWTH
        if bi != n_blocks - 1:
            tail = "transition"
            tail_params = _prep_transition(block["trans"], Hb, Wb)
            cin0 = cin // 2
        else:
            tail = "classifier"
            tail_params = _prep_head(params)
        x = dense_block(x, layer_params, tail_params, tail, use_pallas)

    return x[:, 0, :NUM_CLASSES]


if __name__ == "__main__":
    key = jax.random.PRNGKey(0)
    pkey, xkey = jax.random.split(key)
    params = init_params(pkey)
    x = jax.random.normal(xkey, (2, 3, 32, 32), jnp.float32)

    fwd = jax.jit(functools.partial(forward, use_pallas=True))
    ref = jax.jit(functools.partial(forward, use_pallas=False))

    out = jax.block_until_ready(fwd(params, x))
    out_ref = jax.block_until_ready(ref(params, x))

    assert out.shape == (2, NUM_CLASSES), out.shape
    np.testing.assert_allclose(np.asarray(out), np.asarray(out_ref),
                               rtol=1e-2, atol=1e-2)
    print("KERNEL_OK")
</pallas_src>

<mosaic_0001>
module attributes {stable_mosaic.version = 11 : i64} {
  func.func @kernel(%arg0: i32, %arg1: memref<1x19x16x32xbf16, #tpu.memory_space<vmem>>, %arg2: memref<1x19x16x24xbf16, #tpu.memory_space<vmem>>, %arg3: memref<1x19x16x32xbf16, #tpu.memory_space<vmem>>, %arg4: memref<1x19x16x24xbf16, #tpu.memory_space<vmem>>, %arg5: memref<7x32x128xbf16, #tpu.memory_space<vmem>>, %arg6: memref<7x24x128xbf16, #tpu.memory_space<vmem>>, %arg7: memref<1x128xf32, #tpu.memory_space<vmem>>, %arg8: memref<64x256xbf16, #tpu.memory_space<vmem>>, %arg9: memref<1x8x8x128xbf16, #tpu.memory_space<vmem>>, %arg10: memref<1x18x18x128xbf16, #tpu.memory_space<vmem>>) attributes {dimension_semantics = [#tpu.dimension_semantics<parallel>], iteration_bounds = array<i64: 2>, scalar_prefetch = 0 : i64, scratch_operands = 1 : i64, tpu.core_type = #tpu.core_type<tc>, window_params = [{transform_indices = @transform_0, window_bounds = array<i64: 1, 19, 16, 32>}, {transform_indices = @transform_1, window_bounds = array<i64: 1, 19, 16, 24>}, {transform_indices = @transform_2, window_bounds = array<i64: 1, 19, 16, 32>}, {transform_indices = @transform_3, window_bounds = array<i64: 1, 19, 16, 24>}, {pipeline_mode = #tpu.pipeline_mode<synchronous>, transform_indices = @transform_4, window_bounds = array<i64: 7, 32, 128>}, {pipeline_mode = #tpu.pipeline_mode<synchronous>, transform_indices = @transform_5, window_bounds = array<i64: 7, 24, 128>}, {pipeline_mode = #tpu.pipeline_mode<synchronous>, transform_indices = @transform_6, window_bounds = array<i64: 1, 128>}, {pipeline_mode = #tpu.pipeline_mode<synchronous>, transform_indices = @transform_7, window_bounds = array<i64: 64, 256>}, {transform_indices = @transform_8, window_bounds = array<i64: 1, 8, 8, 128>}]} {
    %cst = arith.constant 0.000000e+00 : f32
    %0 = vector.broadcast %cst : f32 to vector<256x128xf32>
    %c0 = arith.constant 0 : index
    %c0_0 = arith.constant 0 : index
    %c0_1 = arith.constant 0 : index
    %c0_2 = arith.constant 0 : index
    %1 = vector.load %arg1[%c0, %c0_0, %c0_1, %c0_2] : memref<1x19x16x32xbf16, #tpu.memory_space<vmem>>, vector<1x16x16x32xbf16>
    %2 = vector.shape_cast %1 : vector<1x16x16x32xbf16> to vector<256x32xbf16>
    %c0_3 = arith.constant 0 : index
    %c0_4 = arith.constant 0 : index
    %c0_5 = arith.constant 0 : index
    %c0_6 = arith.constant 0 : index
    %3 = vector.load %arg2[%c0_3, %c0_4, %c0_5, %c0_6] : memref<1x19x16x24xbf16, #tpu.memory_space<vmem>>, vector<1x16x16x24xbf16>
    %4 = vector.shape_cast %3 : vector<1x16x16x24xbf16> to vector<256x24xbf16>
    %c0_7 = arith.constant 0 : index
    %c0_8 = arith.constant 0 : index
    %c0_9 = arith.constant 0 : index
    %5 = vector.load %arg5[%c0_7, %c0_8, %c0_9] : memref<7x32x128xbf16, #tpu.memory_space<vmem>>, vector<1x32x128xbf16>
    %6 = vector.shape_cast %5 : vector<1x32x128xbf16> to vector<32x128xbf16>
    %cst_10 = arith.constant dense<0.000000e+00> : vector<256x128xf32>
    %7 = tpu.matmul %2, %6, %cst_10 {dimension_numbers = #tpu.dot_dimension_numbers<[1], [0], [0], [1], [0, 0, 1, 1], [], []>} : vector<256x32xbf16>, vector<32x128xbf16>, vector<256x128xf32> -> vector<256x128xf32>
    %8 = arith.addf %0, %7 : vector<256x128xf32>
    %c0_11 = arith.constant 0 : index
    %c0_12 = arith.constant 0 : index
    %c0_13 = arith.constant 0 : index
    %9 = vector.load %arg6[%c0_11, %c0_12, %c0_13] : memref<7x24x128xbf16, #tpu.memory_space<vmem>>, vector<1x24x128xbf16>
    %10 = vector.shape_cast %9 : vector<1x24x128xbf16> to vector<24x128xbf16>
    %cst_14 = arith.constant dense<0.000000e+00> : vector<256x128xf32>
    %11 = tpu.matmul %4, %10, %cst_14 {dimension_numbers = #tpu.dot_dimension_numbers<[1], [0], [0], [1], [0, 0, 1, 1], [], []>} : vector<256x24xbf16>, vector<24x128xbf16>, vector<256x128xf32> -> vector<256x128xf32>
    %12 = arith.addf %8, %11 : vector<256x128xf32>
    %c0_15 = arith.constant 0 : index
    %c0_16 = arith.constant 0 : index
    %c0_17 = arith.constant 0 : index
    %c0_18 = arith.constant 0 : index
    %13 = vector.load %arg3[%c0_15, %c0_16, %c0_17, %c0_18] : memref<1x19x16x32xbf16, #tpu.memory_space<vmem>>, vector<1x16x16x32xbf16>
    %14 = vector.shape_cast %13 : vector<1x16x16x32xbf16> to vector<256x32xbf16>
    %c0_19 = arith.constant 0 : index
    %c0_20 = arith.constant 0 : index
    %c0_21 = arith.constant 0 : index
    %c0_22 = arith.constant 0 : index
    %15 = vector.load %arg4[%c0_19, %c0_20, %c0_21, %c0_22] : memref<1x19x16x24xbf16, #tpu.memory_space<vmem>>, vector<1x16x16x24xbf16>
    %16 = vector.shape_cast %15 : vector<1x16x16x24xbf16> to vector<256x24xbf16>
    %c1 = arith.constant 1 : index
    %c0_23 = arith.constant 0 : index
    %c0_24 = arith.constant 0 : index
    %17 = vector.load %arg5[%c1, %c0_23, %c0_24] : memref<7x32x128xbf16, #tpu.memory_space<vmem>>, vector<1x32x128xbf16>
    %18 = vector.shape_cast %17 : vector<1x32x128xbf16> to vector<32x128xbf16>
    %cst_25 = arith.constant dense<0.000000e+00> : vector<256x128xf32>
    %19 = tpu.matmul %14, %18, %cst_25 {dimension_numbers = #tpu.dot_dimension_numbers<[1], [0], [0], [1], [0, 0, 1, 1], [], []>} : vector<256x32xbf16>, vector<32x128xbf16>, vector<256x128xf32> -> vector<256x128xf32>
    %20 = arith.addf %12, %19 : vector<256x128xf32>
    %c1_26 = arith.constant 1 : index
    %c0_27 = arith.constant 0 : index
    %c0_28 = arith.constant 0 : index
    %21 = vector.load %arg6[%c1_26, %c0_27, %c0_28] : memref<7x24x128xbf16, #tpu.memory_space<vmem>>, vector<1x24x128xbf16>
    %22 = vector.shape_cast %21 : vector<1x24x128xbf16> to vector<24x128xbf16>
    %cst_29 = arith.constant dense<0.000000e+00> : vector<256x128xf32>
    %23 = tpu.matmul %16, %22, %cst_29 {dimension_numbers = #tpu.dot_dimension_numbers<[1], [0], [0], [1], [0, 0, 1, 1], [], []>} : vector<256x24xbf16>, vector<24x128xbf16>, vector<256x128xf32> -> vector<256x128xf32>
    %24 = arith.addf %20, %23 : vector<256x128xf32>
    %c0_30 = arith.constant 0 : index
    %c1_31 = arith.constant 1 : index
    %c0_32 = arith.constant 0 : index
    %c0_33 = arith.constant 0 : index
    %25 = vector.load %arg1[%c0_30, %c1_31, %c0_32, %c0_33] : memref<1x19x16x32xbf16, #tpu.memory_space<vmem>>, vector<1x16x16x32xbf16>
    %26 = vector.shape_cast %25 : vector<1x16x16x32xbf16> to vector<256x32xbf16>
    %c0_34 = arith.constant 0 : index
    %c1_35 = arith.constant 1 : index
    %c0_36 = arith.constant 0 : index
    %c0_37 = arith.constant 0 : index
    %27 = vector.load %arg2[%c0_34, %c1_35, %c0_36, %c0_37] : memref<1x19x16x24xbf16, #tpu.memory_space<vmem>>, vector<1x16x16x24xbf16>
    %28 = vector.shape_cast %27 : vector<1x16x16x24xbf16> to vector<256x24xbf16>
    %c2 = arith.constant 2 : index
    %c0_38 = arith.constant 0 : index
    %c0_39 = arith.constant 0 : index
    %29 = vector.load %arg5[%c2, %c0_38, %c0_39] : memref<7x32x128xbf16, #tpu.memory_space<vmem>>, vector<1x32x128xbf16>
    %30 = vector.shape_cast %29 : vector<1x32x128xbf16> to vector<32x128xbf16>
    %cst_40 = arith.constant dense<0.000000e+00> : vector<256x128xf32>
    %31 = tpu.matmul %26, %30, %cst_40 {dimension_numbers = #tpu.dot_dimension_numbers<[1], [0], [0], [1], [0, 0, 1, 1], [], []>} : vector<256x32xbf16>, vector<32x128xbf16>, vector<256x128xf32> -> vector<256x128xf32>
    %32 = arith.addf %24, %31 : vector<256x128xf32>
    %c2_41 = arith.constant 2 : index
    %c0_42 = arith.constant 0 : index
    %c0_43 = arith.constant 0 : index
    %33 = vector.load %arg6[%c2_41, %c0_42, %c0_43] : memref<7x24x128xbf16, #tpu.memory_space<vmem>>, vector<1x24x128xbf16>
    %34 = vector.shape_cast %33 : vector<1x24x128xbf16> to vector<24x128xbf16>
    %cst_44 = arith.constant dense<0.000000e+00> : vector<256x128xf32>
    %35 = tpu.matmul %28, %34, %cst_44 {dimension_numbers = #tpu.dot_dimension_numbers<[1], [0], [0], [1], [0, 0, 1, 1], [], []>} : vector<256x24xbf16>, vector<24x128xbf16>, vector<256x128xf32> -> vector<256x128xf32>
    %36 = arith.addf %32, %35 : vector<256x128xf32>
    %c0_45 = arith.constant 0 : index
    %c1_46 = arith.constant 1 : index
    %c0_47 = arith.constant 0 : index
    %c0_48 = arith.constant 0 : index
    %37 = vector.load %arg3[%c0_45, %c1_46, %c0_47, %c0_48] : memref<1x19x16x32xbf16, #tpu.memory_space<vmem>>, vector<1x16x16x32xbf16>
    %38 = vector.shape_cast %37 : vector<1x16x16x32xbf16> to vector<256x32xbf16>
    %c0_49 = arith.constant 0 : index
    %c1_50 = arith.constant 1 : index
    %c0_51 = arith.constant 0 : index
    %c0_52 = arith.constant 0 : index
    %39 = vector.load %arg4[%c0_49, %c1_50, %c0_51, %c0_52] : memref<1x19x16x24xbf16, #tpu.memory_space<vmem>>, vector<1x16x16x24xbf16>
    %40 = vector.shape_cast %39 : vector<1x16x16x24xbf16> to vector<256x24xbf16>
    %c3 = arith.constant 3 : index
    %c0_53 = arith.constant 0 : index
    %c0_54 = arith.constant 0 : index
    %41 = vector.load %arg5[%c3, %c0_53, %c0_54] : memref<7x32x128xbf16, #tpu.memory_space<vmem>>, vector<1x32x128xbf16>
    %42 = vector.shape_cast %41 : vector<1x32x128xbf16> to vector<32x128xbf16>
    %cst_55 = arith.constant dense<0.000000e+00> : vector<256x128xf32>
    %43 = tpu.matmul %38, %42, %cst_55 {dimension_numbers = #tpu.dot_dimension_numbers<[1], [0], [0], [1], [0, 0, 1, 1], [], []>} : vector<256x32xbf16>, vector<32x128xbf16>, vector<256x128xf32> -> vector<256x128xf32>
    %44 = arith.addf %36, %43 : vector<256x128xf32>
    %c3_56 = arith.constant 3 : index
    %c0_57 = arith.constant 0 : index
    %c0_58 = arith.constant 0 : index
    %45 = vector.load %arg6[%c3_56, %c0_57, %c0_58] : memref<7x24x128xbf16, #tpu.memory_space<vmem>>, vector<1x24x128xbf16>
    %46 = vector.shape_cast %45 : vector<1x24x128xbf16> to vector<24x128xbf16>
    %cst_59 = arith.constant dense<0.000000e+00> : vector<256x128xf32>
    %47 = tpu.matmul %40, %46, %cst_59 {dimension_numbers = #tpu.dot_dimension_numbers<[1], [0], [0], [1], [0, 0, 1, 1], [], []>} : vector<256x24xbf16>, vector<24x128xbf16>, vector<256x128xf32> -> vector<256x128xf32>
    %48 = arith.addf %44, %47 : vector<256x128xf32>
    %c0_60 = arith.constant 0 : index
    %c2_61 = arith.constant 2 : index
    %c0_62 = arith.constant 0 : index
    %c0_63 = arith.constant 0 : index
    %49 = vector.load %arg1[%c0_60, %c2_61, %c0_62, %c0_63] : memref<1x19x16x32xbf16, #tpu.memory_space<vmem>>, vector<1x16x16x32xbf16>
    %50 = vector.shape_cast %49 : vector<1x16x16x32xbf16> to vector<256x32xbf16>
    %c0_64 = arith.constant 0 : index
    %c2_65 = arith.constant 2 : index
    %c0_66 = arith.constant 0 : index
    %c0_67 = arith.constant 0 : index
    %51 = vector.load %arg2[%c0_64, %c2_65, %c0_66, %c0_67] : memref<1x19x16x24xbf16, #tpu.memory_space<vmem>>, vector<1x16x16x24xbf16>
    %52 = vector.shape_cast %51 : vector<1x16x16x24xbf16> to vector<256x24xbf16>
    %c4 = arith.constant 4 : index
    %c0_68 = arith.constant 0 : index
    %c0_69 = arith.constant 0 : index
    %53 = vector.load %arg5[%c4, %c0_68, %c0_69] : memref<7x32x128xbf16, #tpu.memory_space<vmem>>, vector<1x32x128xbf16>
    %54 = vector.shape_cast %53 : vector<1x32x128xbf16> to vector<32x128xbf16>
    %cst_70 = arith.constant dense<0.000000e+00> : vector<256x128xf32>
    %55 = tpu.matmul %50, %54, %cst_70 {dimension_numbers = #tpu.dot_dimension_numbers<[1], [0], [0], [1], [0, 0, 1, 1], [], []>} : vector<256x32xbf16>, vector<32x128xbf16>, vector<256x128xf32> -> vector<256x128xf32>
    %56 = arith.addf %48, %55 : vector<256x128xf32>
    %c4_71 = arith.constant 4 : index
    %c0_72 = arith.constant 0 : index
    %c0_73 = arith.constant 0 : index
    %57 = vector.load %arg6[%c4_71, %c0_72, %c0_73] : memref<7x24x128xbf16, #tpu.memory_space<vmem>>, vector<1x24x128xbf16>
    %58 = vector.shape_cast %57 : vector<1x24x128xbf16> to vector<24x128xbf16>
    %cst_74 = arith.constant dense<0.000000e+00> : vector<256x128xf32>
    %59 = tpu.matmul %52, %58, %cst_74 {dimension_numbers = #tpu.dot_dimension_numbers<[1], [0], [0], [1], [0, 0, 1, 1], [], []>} : vector<256x24xbf16>, vector<24x128xbf16>, vector<256x128xf32> -> vector<256x128xf32>
    %60 = arith.addf %56, %59 : vector<256x128xf32>
    %c0_75 = arith.constant 0 : index
    %c2_76 = arith.constant 2 : index
    %c0_77 = arith.constant 0 : index
    %c0_78 = arith.constant 0 : index
    %61 = vector.load %arg3[%c0_75, %c2_76, %c0_77, %c0_78] : memref<1x19x16x32xbf16, #tpu.memory_space<vmem>>, vector<1x16x16x32xbf16>
    %62 = vector.shape_cast %61 : vector<1x16x16x32xbf16> to vector<256x32xbf16>
    %c0_79 = arith.constant 0 : index
    %c2_80 = arith.constant 2 : index
    %c0_81 = arith.constant 0 : index
    %c0_82 = arith.constant 0 : index
    %63 = vector.load %arg4[%c0_79, %c2_80, %c0_81, %c0_82] : memref<1x19x16x24xbf16, #tpu.memory_space<vmem>>, vector<1x16x16x24xbf16>
    %64 = vector.shape_cast %63 : vector<1x16x16x24xbf16> to vector<256x24xbf16>
    %c5 = arith.constant 5 : index
    %c0_83 = arith.constant 0 : index
    %c0_84 = arith.constant 0 : index
    %65 = vector.load %arg5[%c5, %c0_83, %c0_84] : memref<7x32x128xbf16, #tpu.memory_space<vmem>>, vector<1x32x128xbf16>
    %66 = vector.shape_cast %65 : vector<1x32x128xbf16> to vector<32x128xbf16>
    %cst_85 = arith.constant dense<0.000000e+00> : vector<256x128xf32>
    %67 = tpu.matmul %62, %66, %cst_85 {dimension_numbers = #tpu.dot_dimension_numbers<[1], [0], [0], [1], [0, 0, 1, 1], [], []>} : vector<256x32xbf16>, vector<32x128xbf16>, vector<256x128xf32> -> vector<256x128xf32>
    %68 = arith.addf %60, %67 : vector<256x128xf32>
    %c5_86 = arith.constant 5 : index
    %c0_87 = arith.constant 0 : index
    %c0_88 = arith.constant 0 : index
    %69 = vector.load %arg6[%c5_86, %c0_87, %c0_88] : memref<7x24x128xbf16, #tpu.memory_space<vmem>>, vector<1x24x128xbf16>
    %70 = vector.shape_cast %69 : vector<1x24x128xbf16> to vector<24x128xbf16>
    %cst_89 = arith.constant dense<0.000000e+00> : vector<256x128xf32>
    %71 = tpu.matmul %64, %70, %cst_89 {dimension_numbers = #tpu.dot_dimension_numbers<[1], [0], [0], [1], [0, 0, 1, 1], [], []>} : vector<256x24xbf16>, vector<24x128xbf16>, vector<256x128xf32> -> vector<256x128xf32>
    %72 = arith.addf %68, %71 : vector<256x128xf32>
    %c0_90 = arith.constant 0 : index
    %c3_91 = arith.constant 3 : index
    %c0_92 = arith.constant 0 : index
    %c0_93 = arith.constant 0 : index
    %73 = vector.load %arg1[%c0_90, %c3_91, %c0_92, %c0_93] : memref<1x19x16x32xbf16, #tpu.memory_space<vmem>>, vector<1x16x16x32xbf16>
    %74 = vector.shape_cast %73 : vector<1x16x16x32xbf16> to vector<256x32xbf16>
    %c0_94 = arith.constant 0 : index
    %c3_95 = arith.constant 3 : index
    %c0_96 = arith.constant 0 : index
    %c0_97 = arith.constant 0 : index
    %75 = vector.load %arg2[%c0_94, %c3_95, %c0_96, %c0_97] : memref<1x19x16x24xbf16, #tpu.memory_space<vmem>>, vector<1x16x16x24xbf16>
    %76 = vector.shape_cast %75 : vector<1x16x16x24xbf16> to vector<256x24xbf16>
    %c6 = arith.constant 6 : index
    %c0_98 = arith.constant 0 : index
    %c0_99 = arith.constant 0 : index
    %77 = vector.load %arg5[%c6, %c0_98, %c0_99] : memref<7x32x128xbf16, #tpu.memory_space<vmem>>, vector<1x32x128xbf16>
    %78 = vector.shape_cast %77 : vector<1x32x128xbf16> to vector<32x128xbf16>
    %cst_100 = arith.constant dense<0.000000e+00> : vector<256x128xf32>
    %79 = tpu.matmul %74, %78, %cst_100 {dimension_numbers = #tpu.dot_dimension_numbers<[1], [0], [0], [1], [0, 0, 1, 1], [], []>} : vector<256x32xbf16>, vector<32x128xbf16>, vector<256x128xf32> -> vector<256x128xf32>
    %80 = arith.addf %72, %79 : vector<256x128xf32>
    %c6_101 = arith.constant 6 : index
    %c0_102 = arith.constant 0 : index
    %c0_103 = arith.constant 0 : index
    %81 = vector.load %arg6[%c6_101, %c0_102, %c0_103] : memref<7x24x128xbf16, #tpu.memory_space<vmem>>, vector<1x24x128xbf16>
    %82 = vector.shape_cast %81 : vector<1x24x128xbf16> to vector<24x128xbf16>
    %cst_104 = arith.constant dense<0.000000e+00> : vector<256x128xf32>
    %83 = tpu.matmul %76, %82, %cst_104 {dimension_numbers = #tpu.dot_dimension_numbers<[1], [0], [0], [1], [0, 0, 1, 1], [], []>} : vector<256x24xbf16>, vector<24x128xbf16>, vector<256x128xf32> -> vector<256x128xf32>
    %84 = arith.addf %80, %83 : vector<256x128xf32>
    %c0_105 = arith.constant 0 : index
    %c0_106 = arith.constant 0 : index
    %85 = vector.load %arg7[%c0_105, %c0_106] : memref<1x128xf32, #tpu.memory_space<vmem>>, vector<1x128xf32>
    %86 = vector.broadcast %85 : vector<1x128xf32> to vector<256x128xf32>
    %87 = arith.addf %84, %86 : vector<256x128xf32>
    %cst_107 = arith.constant 0.000000e+00 : f32
    %88 = vector.broadcast %cst_107 : f32 to vector<256x128xf32>
    %89 = arith.maximumf %87, %88 : vector<256x128xf32>
    %cst_108 = arith.constant 0.000000e+00 : bf16
    %90 = vector.broadcast %cst_108 : bf16 to vector<1x18x18x128xbf16>
    %c0_109 = arith.constant 0 : index
    %c0_110 = arith.constant 0 : index
    %c0_111 = arith.constant 0 : index
    %c0_112 = arith.constant 0 : index
    %91 = vector.load %arg10[%c0_109, %c0_110, %c0_111, %c0_112] : memref<1x18x18x128xbf16, #tpu.memory_space<vmem>>, vector<1x18x18x128xbf16>
    tpu.vector_store %arg10[%c0_109, %c0_110, %c0_111, %c0_112], %90 {strides = array<i32>} : memref<1x18x18x128xbf16, #tpu.memory_space<vmem>>, vector<1x18x18x128xbf16>,
    %92 = vector.shape_cast %89 : vector<256x128xf32> to vector<1x16x16x128xf32>
    %93 = arith.truncf %92 : vector<1x16x16x128xf32> to vector<1x16x16x128xbf16>
    %c0_113 = arith.constant 0 : index
    %c1_114 = arith.constant 1 : index
    %c1_115 = arith.constant 1 : index
    %c0_116 = arith.constant 0 : index
    %94 = vector.load %arg10[%c0_113, %c1_114, %c1_115, %c0_116] : memref<1x18x18x128xbf16, #tpu.memory_space<vmem>>, vector<1x16x16x128xbf16>
    tpu.vector_store %arg10[%c0_113, %c1_114, %c1_115, %c0_116], %93 {strides = array<i32>} : memref<1x18x18x128xbf16, #tpu.memory_space<vmem>>, vector<1x16x16x128xbf16>,
    %c0_117 = arith.constant 0 : index
    %c0_118 = arith.constant 0 : index
    %c0_119 = arith.constant 0 : index
    %c0_120 = arith.constant 0 : index
    %95 = vector.load %arg10[%c0_117, %c0_118, %c0_119, %c0_120] : memref<1x18x18x128xbf16, #tpu.memory_space<vmem>>, vector<1x18x18x128xbf16>
    %96 = vector.extract_strided_slice %95 {offsets = [0, 0, 0, 0], sizes = [1, 16, 18, 128], strides = [1, 1, 1, 1]} : vector<1x18x18x128xbf16> to vector<1x16x18x128xbf16>
    %97 = vector.extract_strided_slice %95 {offsets = [0, 1, 0, 0], sizes = [1, 16, 18, 128], strides = [1, 1, 1, 1]} : vector<1x18x18x128xbf16> to vector<1x16x18x128xbf16>
    %98 = arith.maximumf %96, %97 : vector<1x16x18x128xbf16>
    %99 = vector.extract_strided_slice %95 {offsets = [0, 2, 0, 0], sizes = [1, 16, 18, 128], strides = [1, 1, 1, 1]} : vector<1x18x18x128xbf16> to vector<1x16x18x128xbf16>
    %100 = arith.maximumf %98, %99 : vector<1x16x18x128xbf16>
    %101 = vector.extract_strided_slice %100 {offsets = [0, 0, 0, 0], sizes = [1, 16, 16, 128], strides = [1, 1, 1, 1]} : vector<1x16x18x128xbf16> to vector<1x16x16x128xbf16>
    %102 = vector.extract_strided_slice %100 {offsets = [0, 0, 1, 0], sizes = [1, 16, 16, 128], strides = [1, 1, 1, 1]} : vector<1x16x18x128xbf16> to vector<1x16x16x128xbf16>
    %103 = arith.maximumf %101, %102 : vector<1x16x16x128xbf16>
    %104 = vector.extract_strided_slice %100 {offsets = [0, 0, 2, 0], sizes = [1, 16, 16, 128], strides = [1, 1, 1, 1]} : vector<1x16x18x128xbf16> to vector<1x16x16x128xbf16>
    %105 = arith.maximumf %103, %104 : vector<1x16x16x128xbf16>
    %c0_121 = arith.constant 0 : index
    %c0_122 = arith.constant 0 : index
    %106 = vector.load %arg8[%c0_121, %c0_122] : memref<64x256xbf16, #tpu.memory_space<vmem>>, vector<64x256xbf16>
    %107 = vector.shape_cast %105 : vector<1x16x16x128xbf16> to vector<256x128xbf16>
    %cst_123 = arith.constant dense<0.000000e+00> : vector<64x128xf32>
    %108 = tpu.matmul %106, %107, %cst_123 {dimension_numbers = #tpu.dot_dimension_numbers<[1], [0], [0], [1], [0, 0, 1, 1], [], []>} : vector<64x256xbf16>, vector<256x128xbf16>, vector<64x128xf32> -> vector<64x128xf32>
    %109 = arith.truncf %108 : vector<64x128xf32> to vector<64x128xbf16>
    %110 = vector.shape_cast %109 : vector<64x128xbf16> to vector<1x8x8x128xbf16>
    %c0_124 = arith.constant 0 : index
    %c0_125 = arith.constant 0 : index
    %c0_126 = arith.constant 0 : index
    %c0_127 = arith.constant 0 : index
    %111 = vector.load %arg9[%c0_124, %c0_125, %c0_126, %c0_127] : memref<1x8x8x128xbf16, #tpu.memory_space<vmem>>, vector<1x8x8x128xbf16>
    tpu.vector_store %arg9[%c0_124, %c0_125, %c0_126, %c0_127], %110 {strides = array<i32>} : memref<1x8x8x128xbf16, #tpu.memory_space<vmem>>, vector<1x8x8x128xbf16>,
    return
  }
  func.func @transform_0(%arg0: i32) -> (i32, i32, i32, i32) {
    %c0_i32 = arith.constant 0 : i32
    %c0_i32_0 = arith.constant 0 : i32
    %c0_i32_1 = arith.constant 0 : i32
    %c0_i32_2 = arith.constant 0 : i32
    return %arg0, %c0_i32, %c0_i32_0, %c0_i32_1 : i32, i32, i32, i32
  }
  func.func @transform_1(%arg0: i32) -> (i32, i32, i32, i32) {
    %c0_i32 = arith.constant 0 : i32
    %c0_i32_0 = arith.constant 0 : i32
    %c0_i32_1 = arith.constant 0 : i32
    %c0_i32_2 = arith.constant 0 : i32
    return %arg0, %c0_i32, %c0_i32_0, %c0_i32_1 : i32, i32, i32, i32
  }
  func.func @transform_2(%arg0: i32) -> (i32, i32, i32, i32) {
    %c0_i32 = arith.constant 0 : i32
    %c0_i32_0 = arith.constant 0 : i32
    %c0_i32_1 = arith.constant 0 : i32
    %c0_i32_2 = arith.constant 0 : i32
    return %arg0, %c0_i32, %c0_i32_0, %c0_i32_1 : i32, i32, i32, i32
  }
  func.func @transform_3(%arg0: i32) -> (i32, i32, i32, i32) {
    %c0_i32 = arith.constant 0 : i32
    %c0_i32_0 = arith.constant 0 : i32
    %c0_i32_1 = arith.constant 0 : i32
    %c0_i32_2 = arith.constant 0 : i32
    return %arg0, %c0_i32, %c0_i32_0, %c0_i32_1 : i32, i32, i32, i32
  }
  func.func @transform_4(%arg0: i32) -> (i32, i32, i32) {
    %c0_i32 = arith.constant 0 : i32
    %c0_i32_0 = arith.constant 0 : i32
    %c0_i32_1 = arith.constant 0 : i32
    %c0_i32_2 = arith.constant 0 : i32
    return %c0_i32, %c0_i32_0, %c0_i32_1 : i32, i32, i32
  }
  func.func @transform_5(%arg0: i32) -> (i32, i32, i32) {
    %c0_i32 = arith.constant 0 : i32
    %c0_i32_0 = arith.constant 0 : i32
    %c0_i32_1 = arith.constant 0 : i32
    %c0_i32_2 = arith.constant 0 : i32
    return %c0_i32, %c0_i32_0, %c0_i32_1 : i32, i32, i32
  }
  func.func @transform_6(%arg0: i32) -> (i32, i32) {
    %c0_i32 = arith.constant 0 : i32
    %c0_i32_0 = arith.constant 0 : i32
    %c0_i32_1 = arith.constant 0 : i32
    return %c0_i32, %c0_i32_0 : i32, i32
  }
  func.func @transform_7(%arg0: i32) -> (i32, i32) {
    %c0_i32 = arith.constant 0 : i32
    %c0_i32_0 = arith.constant 0 : i32
    %c0_i32_1 = arith.constant 0 : i32
    return %c0_i32, %c0_i32_0 : i32, i32
  }
  func.func @transform_8(%arg0: i32) -> (i32, i32, i32, i32) {
    %c0_i32 = arith.constant 0 : i32
    %c0_i32_0 = arith.constant 0 : i32
    %c0_i32_1 = arith.constant 0 : i32
    %c0_i32_2 = arith.constant 0 : i32
    return %arg0, %c0_i32, %c0_i32_0, %c0_i32_1 : i32, i32, i32, i32
  }
}

module attributes {stable_mosaic.version = 11 : i64} {
  func.func @kernel(%arg0: i32, %arg1: memref<1x8x8x128xbf16, #tpu.memory_space<vmem>>, %arg2: memref<1x128xf32, #tpu.memory_space<vmem>>, %arg3: memref<1x128xf32, #tpu.memory_space<vmem>>, %arg4: memref<128x128xbf16, #tpu.memory_space<vmem>>, %arg5: memref<1x128xf32, #tpu.memory_space<vmem>>, %arg6: memref<9x128x128xbf16, #tpu.memory_space<vmem>>, %arg7: memref<1x128xf32, #tpu.memory_space<vmem>>, %arg8: memref<1x128xf32, #tpu.memory_space<vmem>>, %arg9: memref<128x128xbf16, #tpu.memory_space<vmem>>, %arg10: memref<1x128xf32, #tpu.memory_space<vmem>>, %arg11: memref<9x128x128xbf16, #tpu.memory_space<vmem>>, %arg12: memref<1x128xf32, #tpu.memory_space<vmem>>, %arg13: memref<1x128xf32, #tpu.memory_space<vmem>>, %arg14: memref<16x64xbf16, #tpu.memory_space<vmem>>, %arg15: memref<128x128xbf16, #tpu.memory_space<vmem>>, %arg16: memref<1x4x4x128xbf16, #tpu.memory_space<vmem>>, %arg17: memref<1x8x8x128xbf16, #tpu.memory_space<vmem>>, %arg18: memref<1x10x10x128xbf16, #tpu.memory_space<vmem>>) attributes {dimension_semantics = [#tpu.dimension_semantics<parallel>], iteration_bounds = array<i64: 2>, scalar_prefetch = 0 : i64, scratch_operands = 2 : i64, tpu.core_type = #tpu.core_type<tc>, window_params = [{transform_indices = @transform_0, window_bounds = array<i64: 1, 8, 8, 128>}, {pipeline_mode = #tpu.pipeline_mode<synchronous>, transform_indices = @transform_1, window_bounds = array<i64: 1, 128>}, {pipeline_mode = #tpu.pipeline_mode<synchronous>, transform_indices = @transform_2, window_bounds = array<i64: 1, 128>}, {pipeline_mode = #tpu.pipeline_mode<synchronous>, transform_indices = @transform_3, window_bounds = array<i64: 128, 128>}, {pipeline_mode = #tpu.pipeline_mode<synchronous>, transform_indices = @transform_4, window_bounds = array<i64: 1, 128>}, {pipeline_mode = #tpu.pipeline_mode<synchronous>, transform_indices = @transform_5, window_bounds = array<i64: 9, 128, 128>}, {pipeline_mode = #tpu.pipeline_mode<synchronous>, transform_indices = @transform_6, window_bounds = array<i64: 1, 128>}, {pipeline_mode = #tpu.pipeline_mode<synchronous>, transform_indices = @transform_7, window_bounds = array<i64: 1, 128>}, {pipeline_mode = #tpu.pipeline_mode<synchronous>, transform_indices = @transform_8, window_bounds = array<i64: 128, 128>}, {pipeline_mode = #tpu.pipeline_mode<synchronous>, transform_indices = @transform_9, window_bounds = array<i64: 1, 128>}, {pipeline_mode = #tpu.pipeline_mode<synchronous>, transform_indices = @transform_10, window_bounds = array<i64: 9, 128, 128>}, {pipeline_mode = #tpu.pipeline_mode<synchronous>, transform_indices = @transform_11, window_bounds = array<i64: 1, 128>}, {pipeline_mode = #tpu.pipeline_mode<synchronous>, transform_indices = @transform_12, window_bounds = array<i64: 1, 128>}, {pipeline_mode = #tpu.pipeline_mode<synchronous>, transform_indices = @transform_13, window_bounds = array<i64: 16, 64>}, {pipeline_mode = #tpu.pipeline_mode<synchronous>, transform_indices = @transform_14, window_bounds = array<i64: 128, 128>}, {transform_indices = @transform_15, window_bounds = array<i64: 1, 4, 4, 128>}]} {
    %c0 = arith.constant 0 : index
    %c0_0 = arith.constant 0 : index
    %c0_1 = arith.constant 0 : index
    %c0_2 = arith.constant 0 : index
    %0 = vector.load %arg1[%c0, %c0_0, %c0_1, %c0_2] : memref<1x8x8x128xbf16, #tpu.memory_space<vmem>>, vector<1x8x8x128xbf16>
    %c0_3 = arith.constant 0 : index
    %c0_4 = arith.constant 0 : index
    %c0_5 = arith.constant 0 : index
    %c0_6 = arith.constant 0 : index
    %1 = vector.load %arg17[%c0_3, %c0_4, %c0_5, %c0_6] : memref<1x8x8x128xbf16, #tpu.memory_space<vmem>>, vector<1x8x8x128xbf16>
    tpu.vector_store %arg17[%c0_3, %c0_4, %c0_5, %c0_6], %0 {strides = array<i32>} : memref<1x8x8x128xbf16, #tpu.memory_space<vmem>>, vector<1x8x8x128xbf16>,
    %cst = arith.constant 0.000000e+00 : bf16
    %2 = vector.broadcast %cst : bf16 to vector<1x10x10x128xbf16>
    %c0_7 = arith.constant 0 : index
    %c0_8 = arith.constant 0 : index
    %c0_9 = arith.constant 0 : index
    %c0_10 = arith.constant 0 : index
    %3 = vector.load %arg18[%c0_7, %c0_8, %c0_9, %c0_10] : memref<1x10x10x128xbf16, #tpu.memory_space<vmem>>, vector<1x10x10x128xbf16>
    tpu.vector_store %arg18[%c0_7, %c0_8, %c0_9, %c0_10], %2 {strides = array<i32>} : memref<1x10x10x128xbf16, #tpu.memory_space<vmem>>, vector<1x10x10x128xbf16>,
    %c0_11 = arith.constant 0 : index
    %c0_12 = arith.constant 0 : index
    %c0_13 = arith.constant 0 : index
    %c0_14 = arith.constant 0 : index
    %4 = vector.load %arg17[%c0_11, %c0_12, %c0_13, %c0_14] : memref<1x8x8x128xbf16, #tpu.memory_space<vmem>>, vector<1x8x8x128xbf16>
    %5 = arith.extf %4 : vector<1x8x8x128xbf16> to vector<1x8x8x128xf32>
    %6 = vector.shape_cast %5 : vector<1x8x8x128xf32> to vector<64x128xf32>
    %c0_15 = arith.constant 0 : index
    %c0_16 = arith.constant 0 : index
    %7 = vector.load %arg2[%c0_15, %c0_16] : memref<1x128xf32, #tpu.memory_space<vmem>>, vector<1x128xf32>
    %8 = vector.broadcast %7 : vector<1x128xf32> to vector<64x128xf32>
    %9 = arith.mulf %6, %8 : vector<64x128xf32>
    %c0_17 = arith.constant 0 : index
    %c0_18 = arith.constant 0 : index
    %10 = vector.load %arg3[%c0_17, %c0_18] : memref<1x128xf32, #tpu.memory_space<vmem>>, vector<1x128xf32>
    %11 = vector.broadcast %10 : vector<1x128xf32> to vector<64x128xf32>
    %12 = arith.addf %9, %11 : vector<64x128xf32>
    %cst_19 = arith.constant 0.000000e+00 : f32
    %13 = vector.broadcast %cst_19 : f32 to vector<64x128xf32>
    %14 = arith.maximumf %12, %13 : vector<64x128xf32>
    %15 = arith.truncf %14 : vector<64x128xf32> to vector<64x128xbf16>
    %c0_20 = arith.constant 0 : index
    %c0_21 = arith.constant 0 : index
    %16 = vector.load %arg4[%c0_20, %c0_21] : memref<128x128xbf16, #tpu.memory_space<vmem>>, vector<128x128xbf16>
    %cst_22 = arith.constant dense<0.000000e+00> : vector<64x128xf32>
    %17 = tpu.matmul %15, %16, %cst_22 {dimension_numbers = #tpu.dot_dimension_numbers<[1], [0], [0], [1], [0, 0, 1, 1], [], []>} : vector<64x128xbf16>, vector<128x128xbf16>, vector<64x128xf32> -> vector<64x128xf32>
    %c0_23 = arith.constant 0 : index
    %c0_24 = arith.constant 0 : index
    %18 = vector.load %arg5[%c0_23, %c0_24] : memref<1x128xf32, #tpu.memory_space<vmem>>, vector<1x128xf32>
    %19 = vector.broadcast %18 : vector<1x128xf32> to vector<64x128xf32>
    %20 = arith.addf %17, %19 : vector<64x128xf32>
    %cst_25 = arith.constant 0.000000e+00 : f32
    %21 = vector.broadcast %cst_25 : f32 to vector<64x128xf32>
    %22 = arith.maximumf %20, %21 : vector<64x128xf32>
    %23 = arith.truncf %22 : vector<64x128xf32> to vector<64x128xbf16>
    %24 = vector.shape_cast %23 : vector<64x128xbf16> to vector<1x8x8x128xbf16>
    %c0_26 = arith.constant 0 : index
    %c1 = arith.constant 1 : index
    %c1_27 = arith.constant 1 : index
    %c0_28 = arith.constant 0 : index
    %25 = vector.load %arg18[%c0_26, %c1, %c1_27, %c0_28] : memref<1x10x10x128xbf16, #tpu.memory_space<vmem>>, vector<1x8x8x128xbf16>
    tpu.vector_store %arg18[%c0_26, %c1, %c1_27, %c0_28], %24 {strides = array<i32>} : memref<1x10x10x128xbf16, #tpu.memory_space<vmem>>, vector<1x8x8x128xbf16>,
    %cst_29 = arith.constant 0.000000e+00 : f32
    %26 = vector.broadcast %cst_29 : f32 to vector<64x128xf32>
    %c0_30 = arith.constant 0 : index
    %c0_31 = arith.constant 0 : index
    %c0_32 = arith.constant 0 : index
    %c0_33 = arith.constant 0 : index
    %27 = vector.load %arg18[%c0_30, %c0_31, %c0_32, %c0_33] : memref<1x10x10x128xbf16, #tpu.memory_space<vmem>>, vector<1x8x8x128xbf16>
    %28 = vector.shape_cast %27 : vector<1x8x8x128xbf16> to vector<64x128xbf16>
    %c0_34 = arith.constant 0 : index
    %c0_35 = arith.constant 0 : index
    %c0_36 = arith.constant 0 : index
    %29 = vector.load %arg6[%c0_34, %c0_35, %c0_36] : memref<9x128x128xbf16, #tpu.memory_space<vmem>>, vector<1x128x128xbf16>
    %30 = vector.shape_cast %29 : vector<1x128x128xbf16> to vector<128x128xbf16>
    %cst_37 = arith.constant dense<0.000000e+00> : vector<64x128xf32>
    %31 = tpu.matmul %28, %30, %cst_37 {dimension_numbers = #tpu.dot_dimension_numbers<[1], [0], [0], [1], [0, 0, 1, 1], [], []>} : vector<64x128xbf16>, vector<128x128xbf16>, vector<64x128xf32> -> vector<64x128xf32>
    %32 = arith.addf %26, %31 : vector<64x128xf32>
    %c0_38 = arith.constant 0 : index
    %c0_39 = arith.constant 0 : index
    %c1_40 = arith.constant 1 : index
    %c0_41 = arith.constant 0 : index
    %33 = vector.load %arg18[%c0_38, %c0_39, %c1_40, %c0_41] : memref<1x10x10x128xbf16, #tpu.memory_space<vmem>>, vector<1x8x8x128xbf16>
    %34 = vector.shape_cast %33 : vector<1x8x8x128xbf16> to vector<64x128xbf16>
    %c1_42 = arith.constant 1 : index
    %c0_43 = arith.constant 0 : index
    %c0_44 = arith.constant 0 : index
    %35 = vector.load %arg6[%c1_42, %c0_43, %c0_44] : memref<9x128x128xbf16, #tpu.memory_space<vmem>>, vector<1x128x128xbf16>
    %36 = vector.shape_cast %35 : vector<1x128x128xbf16> to vector<128x128xbf16>
    %cst_45 = arith.constant dense<0.000000e+00> : vector<64x128xf32>
    %37 = tpu.matmul %34, %36, %cst_45 {dimension_numbers = #tpu.dot_dimension_numbers<[1], [0], [0], [1], [0, 0, 1, 1], [], []>} : vector<64x128xbf16>, vector<128x128xbf16>, vector<64x128xf32> -> vector<64x128xf32>
    %38 = arith.addf %32, %37 : vector<64x128xf32>
    %c0_46 = arith.constant 0 : index
    %c0_47 = arith.constant 0 : index
    %c2 = arith.constant 2 : index
    %c0_48 = arith.constant 0 : index
    %39 = vector.load %arg18[%c0_46, %c0_47, %c2, %c0_48] : memref<1x10x10x128xbf16, #tpu.memory_space<vmem>>, vector<1x8x8x128xbf16>
    %40 = vector.shape_cast %39 : vector<1x8x8x128xbf16> to vector<64x128xbf16>
    %c2_49 = arith.constant 2 : index
    %c0_50 = arith.constant 0 : index
    %c0_51 = arith.constant 0 : index
    %41 = vector.load %arg6[%c2_49, %c0_50, %c0_51] : memref<9x128x128xbf16, #tpu.memory_space<vmem>>, vector<1x128x128xbf16>
    %42 = vector.shape_cast %41 : vector<1x128x128xbf16> to vector<128x128xbf16>
    %cst_52 = arith.constant dense<0.000000e+00> : vector<64x128xf32>
    %43 = tpu.matmul %40, %42, %cst_52 {dimension_numbers = #tpu.dot_dimension_numbers<[1], [0], [0], [1], [0, 0, 1, 1], [], []>} : vector<64x128xbf16>, vector<128x128xbf16>, vector<64x128xf32> -> vector<64x128xf32>
    %44 = arith.addf %38, %43 : vector<64x128xf32>
    %c0_53 = arith.constant 0 : index
    %c1_54 = arith.constant 1 : index
    %c0_55 = arith.constant 0 : index
    %c0_56 = arith.constant 0 : index
    %45 = vector.load %arg18[%c0_53, %c1_54, %c0_55, %c0_56] : memref<1x10x10x128xbf16, #tpu.memory_space<vmem>>, vector<1x8x8x128xbf16>
    %46 = vector.shape_cast %45 : vector<1x8x8x128xbf16> to vector<64x128xbf16>
    %c3 = arith.constant 3 : index
    %c0_57 = arith.constant 0 : index
    %c0_58 = arith.constant 0 : index
    %47 = vector.load %arg6[%c3, %c0_57, %c0_58] : memref<9x128x128xbf16, #tpu.memory_space<vmem>>, vector<1x128x128xbf16>
    %48 = vector.shape_cast %47 : vector<1x128x128xbf16> to vector<128x128xbf16>
    %cst_59 = arith.constant dense<0.000000e+00> : vector<64x128xf32>
    %49 = tpu.matmul %46, %48, %cst_59 {dimension_numbers = #tpu.dot_dimension_numbers<[1], [0], [0], [1], [0, 0, 1, 1], [], []>} : vector<64x128xbf16>, vector<128x128xbf16>, vector<64x128xf32> -> vector<64x128xf32>
    %50 = arith.addf %44, %49 : vector<64x128xf32>
    %c0_60 = arith.constant 0 : index
    %c1_61 = arith.constant 1 : index
    %c1_62 = arith.constant 1 : index
    %c0_63 = arith.constant 0 : index
    %51 = vector.load %arg18[%c0_60, %c1_61, %c1_62, %c0_63] : memref<1x10x10x128xbf16, #tpu.memory_space<vmem>>, vector<1x8x8x128xbf16>
    %52 = vector.shape_cast %51 : vector<1x8x8x128xbf16> to vector<64x128xbf16>
    %c4 = arith.constant 4 : index
    %c0_64 = arith.constant 0 : index
    %c0_65 = arith.constant 0 : index
    %53 = vector.load %arg6[%c4, %c0_64, %c0_65] : memref<9x128x128xbf16, #tpu.memory_space<vmem>>, vector<1x128x128xbf16>
    %54 = vector.shape_cast %53 : vector<1x128x128xbf16> to vector<128x128xbf16>
    %cst_66 = arith.constant dense<0.000000e+00> : vector<64x128xf32>
    %55 = tpu.matmul %52, %54, %cst_66 {dimension_numbers = #tpu.dot_dimension_numbers<[1], [0], [0], [1], [0, 0, 1, 1], [], []>} : vector<64x128xbf16>, vector<128x128xbf16>, vector<64x128xf32> -> vector<64x128xf32>
    %56 = arith.addf %50, %55 : vector<64x128xf32>
    %c0_67 = arith.constant 0 : index
    %c1_68 = arith.constant 1 : index
    %c2_69 = arith.constant 2 : index
    %c0_70 = arith.constant 0 : index
    %57 = vector.load %arg18[%c0_67, %c1_68, %c2_69, %c0_70] : memref<1x10x10x128xbf16, #tpu.memory_space<vmem>>, vector<1x8x8x128xbf16>
    %58 = vector.shape_cast %57 : vector<1x8x8x128xbf16> to vector<64x128xbf16>
    %c5 = arith.constant 5 : index
    %c0_71 = arith.constant 0 : index
    %c0_72 = arith.constant 0 : index
    %59 = vector.load %arg6[%c5, %c0_71, %c0_72] : memref<9x128x128xbf16, #tpu.memory_space<vmem>>, vector<1x128x128xbf16>
    %60 = vector.shape_cast %59 : vector<1x128x128xbf16> to vector<128x128xbf16>
    %cst_73 = arith.constant dense<0.000000e+00> : vector<64x128xf32>
    %61 = tpu.matmul %58, %60, %cst_73 {dimension_numbers = #tpu.dot_dimension_numbers<[1], [0], [0], [1], [0, 0, 1, 1], [], []>} : vector<64x128xbf16>, vector<128x128xbf16>, vector<64x128xf32> -> vector<64x128xf32>
    %62 = arith.addf %56, %61 : vector<64x128xf32>
    %c0_74 = arith.constant 0 : index
    %c2_75 = arith.constant 2 : index
    %c0_76 = arith.constant 0 : index
    %c0_77 = arith.constant 0 : index
    %63 = vector.load %arg18[%c0_74, %c2_75, %c0_76, %c0_77] : memref<1x10x10x128xbf16, #tpu.memory_space<vmem>>, vector<1x8x8x128xbf16>
    %64 = vector.shape_cast %63 : vector<1x8x8x128xbf16> to vector<64x128xbf16>
    %c6 = arith.constant 6 : index
    %c0_78 = arith.constant 0 : index
    %c0_79 = arith.constant 0 : index
    %65 = vector.load %arg6[%c6, %c0_78, %c0_79] : memref<9x128x128xbf16, #tpu.memory_space<vmem>>, vector<1x128x128xbf16>
    %66 = vector.shape_cast %65 : vector<1x128x128xbf16> to vector<128x128xbf16>
    %cst_80 = arith.constant dense<0.000000e+00> : vector<64x128xf32>
    %67 = tpu.matmul %64, %66, %cst_80 {dimension_numbers = #tpu.dot_dimension_numbers<[1], [0], [0], [1], [0, 0, 1, 1], [], []>} : vector<64x128xbf16>, vector<128x128xbf16>, vector<64x128xf32> -> vector<64x128xf32>
    %68 = arith.addf %62, %67 : vector<64x128xf32>
    %c0_81 = arith.constant 0 : index
    %c2_82 = arith.constant 2 : index
    %c1_83 = arith.constant 1 : index
    %c0_84 = arith.constant 0 : index
    %69 = vector.load %arg18[%c0_81, %c2_82, %c1_83, %c0_84] : memref<1x10x10x128xbf16, #tpu.memory_space<vmem>>, vector<1x8x8x128xbf16>
    %70 = vector.shape_cast %69 : vector<1x8x8x128xbf16> to vector<64x128xbf16>
    %c7 = arith.constant 7 : index
    %c0_85 = arith.constant 0 : index
    %c0_86 = arith.constant 0 : index
    %71 = vector.load %arg6[%c7, %c0_85, %c0_86] : memref<9x128x128xbf16, #tpu.memory_space<vmem>>, vector<1x128x128xbf16>
    %72 = vector.shape_cast %71 : vector<1x128x128xbf16> to vector<128x128xbf16>
    %cst_87 = arith.constant dense<0.000000e+00> : vector<64x128xf32>
    %73 = tpu.matmul %70, %72, %cst_87 {dimension_numbers = #tpu.dot_dimension_numbers<[1], [0], [0], [1], [0, 0, 1, 1], [], []>} : vector<64x128xbf16>, vector<128x128xbf16>, vector<64x128xf32> -> vector<64x128xf32>
    %74 = arith.addf %68, %73 : vector<64x128xf32>
    %c0_88 = arith.constant 0 : index
    %c2_89 = arith.constant 2 : index
    %c2_90 = arith.constant 2 : index
    %c0_91 = arith.constant 0 : index
    %75 = vector.load %arg18[%c0_88, %c2_89, %c2_90, %c0_91] : memref<1x10x10x128xbf16, #tpu.memory_space<vmem>>, vector<1x8x8x128xbf16>
    %76 = vector.shape_cast %75 : vector<1x8x8x128xbf16> to vector<64x128xbf16>
    %c8 = arith.constant 8 : index
    %c0_92 = arith.constant 0 : index
    %c0_93 = arith.constant 0 : index
    %77 = vector.load %arg6[%c8, %c0_92, %c0_93] : memref<9x128x128xbf16, #tpu.memory_space<vmem>>, vector<1x128x128xbf16>
    %78 = vector.shape_cast %77 : vector<1x128x128xbf16> to vector<128x128xbf16>
    %cst_94 = arith.constant dense<0.000000e+00> : vector<64x128xf32>
    %79 = tpu.matmul %76, %78, %cst_94 {dimension_numbers = #tpu.dot_dimension_numbers<[1], [0], [0], [1], [0, 0, 1, 1], [], []>} : vector<64x128xbf16>, vector<128x128xbf16>, vector<64x128xf32> -> vector<64x128xf32>
    %80 = arith.addf %74, %79 : vector<64x128xf32>
    %c0_95 = arith.constant 0 : index
    %c0_96 = arith.constant 0 : index
    %c0_97 = arith.constant 0 : index
    %c0_98 = arith.constant 0 : index
    %81 = vector.load %arg17[%c0_95, %c0_96, %c0_97, %c0_98] : memref<1x8x8x128xbf16, #tpu.memory_space<vmem>>, vector<1x8x8x128xbf16>
    %82 = vector.shape_cast %80 : vector<64x128xf32> to vector<1x8x8x128xf32>
    %83 = arith.truncf %82 : vector<1x8x8x128xf32> to vector<1x8x8x128xbf16>
    %84 = arith.addf %81, %83 : vector<1x8x8x128xbf16>
    %c0_99 = arith.constant 0 : index
    %c0_100 = arith.constant 0 : index
    %c0_101 = arith.constant 0 : index
    %c0_102 = arith.constant 0 : index
    %85 = vector.load %arg17[%c0_99, %c0_100, %c0_101, %c0_102] : memref<1x8x8x128xbf16, #tpu.memory_space<vmem>>, vector<1x8x8x128xbf16>
    tpu.vector_store %arg17[%c0_99, %c0_100, %c0_101, %c0_102], %84 {strides = array<i32>} : memref<1x8x8x128xbf16, #tpu.memory_space<vmem>>, vector<1x8x8x128xbf16>,
    %c0_103 = arith.constant 0 : index
    %c0_104 = arith.constant 0 : index
    %c0_105 = arith.constant 0 : index
    %c0_106 = arith.constant 0 : index
    %86 = vector.load %arg17[%c0_103, %c0_104, %c0_105, %c0_106] : memref<1x8x8x128xbf16, #tpu.memory_space<vmem>>, vector<1x8x8x128xbf16>
    %87 = arith.extf %86 : vector<1x8x8x128xbf16> to vector<1x8x8x128xf32>
    %88 = vector.shape_cast %87 : vector<1x8x8x128xf32> to vector<64x128xf32>
    %c0_107 = arith.constant 0 : index
    %c0_108 = arith.constant 0 : index
    %89 = vector.load %arg7[%c0_107, %c0_108] : memref<1x128xf32, #tpu.memory_space<vmem>>, vector<1x128xf32>
    %90 = vector.broadcast %89 : vector<1x128xf32> to vector<64x128xf32>
    %91 = arith.mulf %88, %90 : vector<64x128xf32>
    %c0_109 = arith.constant 0 : index
    %c0_110 = arith.constant 0 : index
    %92 = vector.load %arg8[%c0_109, %c0_110] : memref<1x128xf32, #tpu.memory_space<vmem>>, vector<1x128xf32>
    %93 = vector.broadcast %92 : vector<1x128xf32> to vector<64x128xf32>
    %94 = arith.addf %91, %93 : vector<64x128xf32>
    %cst_111 = arith.constant 0.000000e+00 : f32
    %95 = vector.broadcast %cst_111 : f32 to vector<64x128xf32>
    %96 = arith.maximumf %94, %95 : vector<64x128xf32>
    %97 = arith.truncf %96 : vector<64x128xf32> to vector<64x128xbf16>
    %c0_112 = arith.constant 0 : index
    %c0_113 = arith.constant 0 : index
    %98 = vector.load %arg9[%c0_112, %c0_113] : memref<128x128xbf16, #tpu.memory_space<vmem>>, vector<128x128xbf16>
    %cst_114 = arith.constant dense<0.000000e+00> : vector<64x128xf32>
    %99 = tpu.matmul %97, %98, %cst_114 {dimension_numbers = #tpu.dot_dimension_numbers<[1], [0], [0], [1], [0, 0, 1, 1], [], []>} : vector<64x128xbf16>, vector<128x128xbf16>, vector<64x128xf32> -> vector<64x128xf32>
    %c0_115 = arith.constant 0 : index
    %c0_116 = arith.constant 0 : index
    %100 = vector.load %arg10[%c0_115, %c0_116] : memref<1x128xf32, #tpu.memory_space<vmem>>, vector<1x128xf32>
    %101 = vector.broadcast %100 : vector<1x128xf32> to vector<64x128xf32>
    %102 = arith.addf %99, %101 : vector<64x128xf32>
    %cst_117 = arith.constant 0.000000e+00 : f32
    %103 = vector.broadcast %cst_117 : f32 to vector<64x128xf32>
    %104 = arith.maximumf %102, %103 : vector<64x128xf32>
    %105 = arith.truncf %104 : vector<64x128xf32> to vector<64x128xbf16>
    %106 = vector.shape_cast %105 : vector<64x128xbf16> to vector<1x8x8x128xbf16>
    %c0_118 = arith.constant 0 : index
    %c1_119 = arith.constant 1 : index
    %c1_120 = arith.constant 1 : index
    %c0_121 = arith.constant 0 : index
    %107 = vector.load %arg18[%c0_118, %c1_119, %c1_120, %c0_121] : memref<1x10x10x128xbf16, #tpu.memory_space<vmem>>, vector<1x8x8x128xbf16>
    tpu.vector_store %arg18[%c0_118, %c1_119, %c1_120, %c0_121], %106 {strides = array<i32>} : memref<1x10x10x128xbf16, #tpu.memory_space<vmem>>, vector<1x8x8x128xbf16>,
    %cst_122 = arith.constant 0.000000e+00 : f32
    %108 = vector.broadcast %cst_122 : f32 to vector<64x128xf32>
    %c0_123 = arith.constant 0 : index
    %c0_124 = arith.constant 0 : index
    %c0_125 = arith.constant 0 : index
    %c0_126 = arith.constant 0 : index
    %109 = vector.load %arg18[%c0_123, %c0_124, %c0_125, %c0_126] : memref<1x10x10x128xbf16, #tpu.memory_space<vmem>>, vector<1x8x8x128xbf16>
    %110 = vector.shape_cast %109 : vector<1x8x8x128xbf16> to vector<64x128xbf16>
    %c0_127 = arith.constant 0 : index
    %c0_128 = arith.constant 0 : index
    %c0_129 = arith.constant 0 : index
    %111 = vector.load %arg11[%c0_127, %c0_128, %c0_129] : memref<9x128x128xbf16, #tpu.memory_space<vmem>>, vector<1x128x128xbf16>
    %112 = vector.shape_cast %111 : vector<1x128x128xbf16> to vector<128x128xbf16>
    %cst_130 = arith.constant dense<0.000000e+00> : vector<64x128xf32>
    %113 = tpu.matmul %110, %112, %cst_130 {dimension_numbers = #tpu.dot_dimension_numbers<[1], [0], [0], [1], [0, 0, 1, 1], [], []>} : vector<64x128xbf16>, vector<128x128xbf16>, vector<64x128xf32> -> vector<64x128xf32>
    %114 = arith.addf %108, %113 : vector<64x128xf32>
    %c0_131 = arith.constant 0 : index
    %c0_132 = arith.constant 0 : index
    %c1_133 = arith.constant 1 : index
    %c0_134 = arith.constant 0 : index
    %115 = vector.load %arg18[%c0_131, %c0_132, %c1_133, %c0_134] : memref<1x10x10x128xbf16, #tpu.memory_space<vmem>>, vector<1x8x8x128xbf16>
    %116 = vector.shape_cast %115 : vector<1x8x8x128xbf16> to vector<64x128xbf16>
    %c1_135 = arith.constant 1 : index
    %c0_136 = arith.constant 0 : index
    %c0_137 = arith.constant 0 : index
    %117 = vector.load %arg11[%c1_135, %c0_136, %c0_137] : memref<9x128x128xbf16, #tpu.memory_space<vmem>>, vector<1x128x128xbf16>
    %118 = vector.shape_cast %117 : vector<1x128x128xbf16> to vector<128x128xbf16>
    %cst_138 = arith.constant dense<0.000000e+00> : vector<64x128xf32>
    %119 = tpu.matmul %116, %118, %cst_138 {dimension_numbers = #tpu.dot_dimension_numbers<[1], [0], [0], [1], [0, 0, 1, 1], [], []>} : vector<64x128xbf16>, vector<128x128xbf16>, vector<64x128xf32> -> vector<64x128xf32>
    %120 = arith.addf %114, %119 : vector<64x128xf32>
    %c0_139 = arith.constant 0 : index
    %c0_140 = arith.constant 0 : index
    %c2_141 = arith.constant 2 : index
    %c0_142 = arith.constant 0 : index
    %121 = vector.load %arg18[%c0_139, %c0_140, %c2_141, %c0_142] : memref<1x10x10x128xbf16, #tpu.memory_space<vmem>>, vector<1x8x8x128xbf16>
    %122 = vector.shape_cast %121 : vector<1x8x8x128xbf16> to vector<64x128xbf16>
    %c2_143 = arith.constant 2 : index
    %c0_144 = arith.constant 0 : index
    %c0_145 = arith.constant 0 : index
    %123 = vector.load %arg11[%c2_143, %c0_144, %c0_145] : memref<9x128x128xbf16, #tpu.memory_space<vmem>>, vector<1x128x128xbf16>
    %124 = vector.shape_cast %123 : vector<1x128x128xbf16> to vector<128x128xbf16>
    %cst_146 = arith.constant dense<0.000000e+00> : vector<64x128xf32>
    %125 = tpu.matmul %122, %124, %cst_146 {dimension_numbers = #tpu.dot_dimension_numbers<[1], [0], [0], [1], [0, 0, 1, 1], [], []>} : vector<64x128xbf16>, vector<128x128xbf16>, vector<64x128xf32> -> vector<64x128xf32>
    %126 = arith.addf %120, %125 : vector<64x128xf32>
    %c0_147 = arith.constant 0 : index
    %c1_148 = arith.constant 1 : index
    %c0_149 = arith.constant 0 : index
    %c0_150 = arith.constant 0 : index
    %127 = vector.load %arg18[%c0_147, %c1_148, %c0_149, %c0_150] : memref<1x10x10x128xbf16, #tpu.memory_space<vmem>>, vector<1x8x8x128xbf16>
    %128 = vector.shape_cast %127 : vector<1x8x8x128xbf16> to vector<64x128xbf16>
    %c3_151 = arith.constant 3 : index
    %c0_152 = arith.constant 0 : index
    %c0_153 = arith.constant 0 : index
    %129 = vector.load %arg11[%c3_151, %c0_152, %c0_153] : memref<9x128x128xbf16, #tpu.memory_space<vmem>>, vector<1x128x128xbf16>
    %130 = vector.shape_cast %129 : vector<1x128x128xbf16> to vector<128x128xbf16>
    %cst_154 = arith.constant dense<0.000000e+00> : vector<64x128xf32>
    %131 = tpu.matmul %128, %130, %cst_154 {dimension_numbers = #tpu.dot_dimension_numbers<[1], [0], [0], [1], [0, 0, 1, 1], [], []>} : vector<64x128xbf16>, vector<128x128xbf16>, vector<64x128xf32> -> vector<64x128xf32>
    %132 = arith.addf %126, %131 : vector<64x128xf32>
    %c0_155 = arith.constant 0 : index
    %c1_156 = arith.constant 1 : index
    %c1_157 = arith.constant 1 : index
    %c0_158 = arith.constant 0 : index
    %133 = vector.load %arg18[%c0_155, %c1_156, %c1_157, %c0_158] : memref<1x10x10x128xbf16, #tpu.memory_space<vmem>>, vector<1x8x8x128xbf16>
    %134 = vector.shape_cast %133 : vector<1x8x8x128xbf16> to vector<64x128xbf16>
    %c4_159 = arith.constant 4 : index
    %c0_160 = arith.constant 0 : index
    %c0_161 = arith.constant 0 : index
    %135 = vector.load %arg11[%c4_159, %c0_160, %c0_161] : memref<9x128x128xbf16, #tpu.memory_space<vmem>>, vector<1x128x128xbf16>
    %136 = vector.shape_cast %135 : vector<1x128x128xbf16> to vector<128x128xbf16>
    %cst_162 = arith.constant dense<0.000000e+00> : vector<64x128xf32>
    %137 = tpu.matmul %134, %136, %cst_162 {dimension_numbers = #tpu.dot_dimension_numbers<[1], [0], [0], [1], [0, 0, 1, 1], [], []>} : vector<64x128xbf16>, vector<128x128xbf16>, vector<64x128xf32> -> vector<64x128xf32>
    %138 = arith.addf %132, %137 : vector<64x128xf32>
    %c0_163 = arith.constant 0 : index
    %c1_164 = arith.constant 1 : index
    %c2_165 = arith.constant 2 : index
    %c0_166 = arith.constant 0 : index
    %139 = vector.load %arg18[%c0_163, %c1_164, %c2_165, %c0_166] : memref<1x10x10x128xbf16, #tpu.memory_space<vmem>>, vector<1x8x8x128xbf16>
    %140 = vector.shape_cast %139 : vector<1x8x8x128xbf16> to vector<64x128xbf16>
    %c5_167 = arith.constant 5 : index
    %c0_168 = arith.constant 0 : index
    %c0_169 = arith.constant 0 : index
    %141 = vector.load %arg11[%c5_167, %c0_168, %c0_169] : memref<9x128x128xbf16, #tpu.memory_space<vmem>>, vector<1x128x128xbf16>
    %142 = vector.shape_cast %141 : vector<1x128x128xbf16> to vector<128x128xbf16>
    %cst_170 = arith.constant dense<0.000000e+00> : vector<64x128xf32>
    %143 = tpu.matmul %140, %142, %cst_170 {dimension_numbers = #tpu.dot_dimension_numbers<[1], [0], [0], [1], [0, 0, 1, 1], [], []>} : vector<64x128xbf16>, vector<128x128xbf16>, vector<64x128xf32> -> vector<64x128xf32>
    %144 = arith.addf %138, %143 : vector<64x128xf32>
    %c0_171 = arith.constant 0 : index
    %c2_172 = arith.constant 2 : index
    %c0_173 = arith.constant 0 : index
    %c0_174 = arith.constant 0 : index
    %145 = vector.load %arg18[%c0_171, %c2_172, %c0_173, %c0_174] : memref<1x10x10x128xbf16, #tpu.memory_space<vmem>>, vector<1x8x8x128xbf16>
    %146 = vector.shape_cast %145 : vector<1x8x8x128xbf16> to vector<64x128xbf16>
    %c6_175 = arith.constant 6 : index
    %c0_176 = arith.constant 0 : index
    %c0_177 = arith.constant 0 : index
    %147 = vector.load %arg11[%c6_175, %c0_176, %c0_177] : memref<9x128x128xbf16, #tpu.memory_space<vmem>>, vector<1x128x128xbf16>
    %148 = vector.shape_cast %147 : vector<1x128x128xbf16> to vector<128x128xbf16>
    %cst_178 = arith.constant dense<0.000000e+00> : vector<64x128xf32>
    %149 = tpu.matmul %146, %148, %cst_178 {dimension_numbers = #tpu.dot_dimension_numbers<[1], [0], [0], [1], [0, 0, 1, 1], [], []>} : vector<64x128xbf16>, vector<128x128xbf16>, vector<64x128xf32> -> vector<64x128xf32>
    %150 = arith.addf %144, %149 : vector<64x128xf32>
    %c0_179 = arith.constant 0 : index
    %c2_180 = arith.constant 2 : index
    %c1_181 = arith.constant 1 : index
    %c0_182 = arith.constant 0 : index
    %151 = vector.load %arg18[%c0_179, %c2_180, %c1_181, %c0_182] : memref<1x10x10x128xbf16, #tpu.memory_space<vmem>>, vector<1x8x8x128xbf16>
    %152 = vector.shape_cast %151 : vector<1x8x8x128xbf16> to vector<64x128xbf16>
    %c7_183 = arith.constant 7 : index
    %c0_184 = arith.constant 0 : index
    %c0_185 = arith.constant 0 : index
    %153 = vector.load %arg11[%c7_183, %c0_184, %c0_185] : memref<9x128x128xbf16, #tpu.memory_space<vmem>>, vector<1x128x128xbf16>
    %154 = vector.shape_cast %153 : vector<1x128x128xbf16> to vector<128x128xbf16>
    %cst_186 = arith.constant dense<0.000000e+00> : vector<64x128xf32>
    %155 = tpu.matmul %152, %154, %cst_186 {dimension_numbers = #tpu.dot_dimension_numbers<[1], [0], [0], [1], [0, 0, 1, 1], [], []>} : vector<64x128xbf16>, vector<128x128xbf16>, vector<64x128xf32> -> vector<64x128xf32>
    %156 = arith.addf %150, %155 : vector<64x128xf32>
    %c0_187 = arith.constant 0 : index
    %c2_188 = arith.constant 2 : index
    %c2_189 = arith.constant 2 : index
    %c0_190 = arith.constant 0 : index
    %157 = vector.load %arg18[%c0_187, %c2_188, %c2_189, %c0_190] : memref<1x10x10x128xbf16, #tpu.memory_space<vmem>>, vector<1x8x8x128xbf16>
    %158 = vector.shape_cast %157 : vector<1x8x8x128xbf16> to vector<64x128xbf16>
    %c8_191 = arith.constant 8 : index
    %c0_192 = arith.constant 0 : index
    %c0_193 = arith.constant 0 : index
    %159 = vector.load %arg11[%c8_191, %c0_192, %c0_193] : memref<9x128x128xbf16, #tpu.memory_space<vmem>>, vector<1x128x128xbf16>
    %160 = vector.shape_cast %159 : vector<1x128x128xbf16> to vector<128x128xbf16>
    %cst_194 = arith.constant dense<0.000000e+00> : vector<64x128xf32>
    %161 = tpu.matmul %158, %160, %cst_194 {dimension_numbers = #tpu.dot_dimension_numbers<[1], [0], [0], [1], [0, 0, 1, 1], [], []>} : vector<64x128xbf16>, vector<128x128xbf16>, vector<64x128xf32> -> vector<64x128xf32>
    %162 = arith.addf %156, %161 : vector<64x128xf32>
    %c0_195 = arith.constant 0 : index
    %c0_196 = arith.constant 0 : index
    %c0_197 = arith.constant 0 : index
    %c0_198 = arith.constant 0 : index
    %163 = vector.load %arg17[%c0_195, %c0_196, %c0_197, %c0_198] : memref<1x8x8x128xbf16, #tpu.memory_space<vmem>>, vector<1x8x8x128xbf16>
    %164 = vector.shape_cast %162 : vector<64x128xf32> to vector<1x8x8x128xf32>
    %165 = arith.truncf %164 : vector<1x8x8x128xf32> to vector<1x8x8x128xbf16>
    %166 = arith.addf %163, %165 : vector<1x8x8x128xbf16>
    %c0_199 = arith.constant 0 : index
    %c0_200 = arith.constant 0 : index
    %c0_201 = arith.constant 0 : index
    %c0_202 = arith.constant 0 : index
    %167 = vector.load %arg17[%c0_199, %c0_200, %c0_201, %c0_202] : memref<1x8x8x128xbf16, #tpu.memory_space<vmem>>, vector<1x8x8x128xbf16>
    tpu.vector_store %arg17[%c0_199, %c0_200, %c0_201, %c0_202], %166 {strides = array<i32>} : memref<1x8x8x128xbf16, #tpu.memory_space<vmem>>, vector<1x8x8x128xbf16>,
    %c0_203 = arith.constant 0 : index
    %c0_204 = arith.constant 0 : index
    %c0_205 = arith.constant 0 : index
    %c0_206 = arith.constant 0 : index
    %168 = vector.load %arg17[%c0_203, %c0_204, %c0_205, %c0_206] : memref<1x8x8x128xbf16, #tpu.memory_space<vmem>>, vector<1x8x8x128xbf16>
    %169 = arith.extf %168 : vector<1x8x8x128xbf16> to vector<1x8x8x128xf32>
    %170 = vector.shape_cast %169 : vector<1x8x8x128xf32> to vector<64x128xf32>
    %c0_207 = arith.constant 0 : index
    %c0_208 = arith.constant 0 : index
    %171 = vector.load %arg12[%c0_207, %c0_208] : memref<1x128xf32, #tpu.memory_space<vmem>>, vector<1x128xf32>
    %172 = vector.broadcast %171 : vector<1x128xf32> to vector<64x128xf32>
    %173 = arith.mulf %170, %172 : vector<64x128xf32>
    %c0_209 = arith.constant 0 : index
    %c0_210 = arith.constant 0 : index
    %174 = vector.load %arg13[%c0_209, %c0_210] : memref<1x128xf32, #tpu.memory_space<vmem>>, vector<1x128xf32>
    %175 = vector.broadcast %174 : vector<1x128xf32> to vector<64x128xf32>
    %176 = arith.addf %173, %175 : vector<64x128xf32>
    %cst_211 = arith.constant 0.000000e+00 : f32
    %177 = vector.broadcast %cst_211 : f32 to vector<64x128xf32>
    %178 = arith.maximumf %176, %177 : vector<64x128xf32>
    %c0_212 = arith.constant 0 : index
    %c0_213 = arith.constant 0 : index
    %179 = vector.load %arg14[%c0_212, %c0_213] : memref<16x64xbf16, #tpu.memory_space<vmem>>, vector<16x64xbf16>
    %180 = arith.truncf %178 : vector<64x128xf32> to vector<64x128xbf16>
    %cst_214 = arith.constant dense<0.000000e+00> : vector<16x128xf32>
    %181 = tpu.matmul %179, %180, %cst_214 {dimension_numbers = #tpu.dot_dimension_numbers<[1], [0], [0], [1], [0, 0, 1, 1], [], []>} : vector<16x64xbf16>, vector<64x128xbf16>, vector<16x128xf32> -> vector<16x128xf32>
    %182 = arith.truncf %181 : vector<16x128xf32> to vector<16x128xbf16>
    %c0_215 = arith.constant 0 : index
    %c0_216 = arith.constant 0 : index
    %183 = vector.load %arg15[%c0_215, %c0_216] : memref<128x128xbf16, #tpu.memory_space<vmem>>, vector<128x128xbf16>
    %cst_217 = arith.constant dense<0.000000e+00> : vector<16x128xf32>
    %184 = tpu.matmul %182, %183, %cst_217 {dimension_numbers = #tpu.dot_dimension_numbers<[1], [0], [0], [1], [0, 0, 1, 1], [], []>} : vector<16x128xbf16>, vector<128x128xbf16>, vector<16x128xf32> -> vector<16x128xf32>
    %185 = arith.truncf %184 : vector<16x128xf32> to vector<16x128xbf16>
    %186 = vector.shape_cast %185 : vector<16x128xbf16> to vector<1x4x4x128xbf16>
    %c0_218 = arith.constant 0 : index
    %c0_219 = arith.constant 0 : index
    %c0_220 = arith.constant 0 : index
    %c0_221 = arith.constant 0 : index
    %187 = vector.load %arg16[%c0_218, %c0_219, %c0_220, %c0_221] : memref<1x4x4x128xbf16, #tpu.memory_space<vmem>>, vector<1x4x4x128xbf16>
    tpu.vector_store %arg16[%c0_218, %c0_219, %c0_220, %c0_221], %186 {strides = array<i32>} : memref<1x4x4x128xbf16, #tpu.memory_space<vmem>>, vector<1x4x4x128xbf16>,
    return
  }
  func.func @transform_0(%arg0: i32) -> (i32, i32, i32, i32) {
    %c0_i32 = arith.constant 0 : i32
    %c0_i32_0 = arith.constant 0 : i32
    %c0_i32_1 = arith.constant 0 : i32
    %c0_i32_2 = arith.constant 0 : i32
    return %arg0, %c0_i32, %c0_i32_0, %c0_i32_1 : i32, i32, i32, i32
  }
  func.func @transform_1(%arg0: i32) -> (i32, i32) {
    %c0_i32 = arith.constant 0 : i32
    %c0_i32_0 = arith.constant 0 : i32
    %c0_i32_1 = arith.constant 0 : i32
    return %c0_i32, %c0_i32_0 : i32, i32
  }
  func.func @transform_2(%arg0: i32) -> (i32, i32) {
    %c0_i32 = arith.constant 0 : i32
    %c0_i32_0 = arith.constant 0 : i32
    %c0_i32_1 = arith.constant 0 : i32
    return %c0_i32, %c0_i32_0 : i32, i32
  }
  func.func @transform_3(%arg0: i32) -> (i32, i32) {
    %c0_i32 = arith.constant 0 : i32
    %c0_i32_0 = arith.constant 0 : i32
    %c0_i32_1 = arith.constant 0 : i32
    return %c0_i32, %c0_i32_0 : i32, i32
  }
  func.func @transform_4(%arg0: i32) -> (i32, i32) {
    %c0_i32 = arith.constant 0 : i32
    %c0_i32_0 = arith.constant 0 : i32
    %c0_i32_1 = arith.constant 0 : i32
    return %c0_i32, %c0_i32_0 : i32, i32
  }
  func.func @transform_5(%arg0: i32) -> (i32, i32, i32) {
    %c0_i32 = arith.constant 0 : i32
    %c0_i32_0 = arith.constant 0 : i32
    %c0_i32_1 = arith.constant 0 : i32
    %c0_i32_2 = arith.constant 0 : i32
    return %c0_i32, %c0_i32_0, %c0_i32_1 : i32, i32, i32
  }
  func.func @transform_6(%arg0: i32) -> (i32, i32) {
    %c0_i32 = arith.constant 0 : i32
    %c0_i32_0 = arith.constant 0 : i32
    %c0_i32_1 = arith.constant 0 : i32
    return %c0_i32, %c0_i32_0 : i32, i32
  }
  func.func @transform_7(%arg0: i32) -> (i32, i32) {
    %c0_i32 = arith.constant 0 : i32
    %c0_i32_0 = arith.constant 0 : i32
    %c0_i32_1 = arith.constant 0 : i32
    return %c0_i32, %c0_i32_0 : i32, i32
  }
  func.func @transform_8(%arg0: i32) -> (i32, i32) {
    %c0_i32 = arith.constant 0 : i32
    %c0_i32_0 = arith.constant 0 : i32
    %c0_i32_1 = arith.constant 0 : i32
    return %c0_i32, %c0_i32_0 : i32, i32
  }
  func.func @transform_9(%arg0: i32) -> (i32, i32) {
    %c0_i32 = arith.constant 0 : i32
    %c0_i32_0 = arith.constant 0 : i32
    %c0_i32_1 = arith.constant 0 : i32
    return %c0_i32, %c0_i32_0 : i32, i32
  }
  func.func @transform_10(%arg0: i32) -> (i32, i32, i32) {
    %c0_i32 = arith.constant 0 : i32
    %c0_i32_0 = arith.constant 0 : i32
    %c0_i32_1 = arith.constant 0 : i32
    %c0_i32_2 = arith.constant 0 : i32
    return %c0_i32, %c0_i32_0, %c0_i32_1 : i32, i32, i32
  }
  func.func @transform_11(%arg0: i32) -> (i32, i32) {
    %c0_i32 = arith.constant 0 : i32
    %c0_i32_0 = arith.constant 0 : i32
    %c0_i32_1 = arith.constant 0 : i32
    return %c0_i32, %c0_i32_0 : i32, i32
  }
  func.func @transform_12(%arg0: i32) -> (i32, i32) {
    %c0_i32 = arith.constant 0 : i32
    %c0_i32_0 = arith.constant 0 : i32
    %c0_i32_1 = arith.constant 0 : i32
    return %c0_i32, %c0_i32_0 : i32, i32
  }
  func.func @transform_13(%arg0: i32) -> (i32, i32) {
    %c0_i32 = arith.constant 0 : i32
    %c0_i32_0 = arith.constant 0 : i32
    %c0_i32_1 = arith.constant 0 : i32
    return %c0_i32, %c0_i32_0 : i32, i32
  }
  func.func @transform_14(%arg0: i32) -> (i32, i32) {
    %c0_i32 = arith.constant 0 : i32
    %c0_i32_0 = arith.constant 0 : i32
    %c0_i32_1 = arith.constant 0 : i32
    return %c0_i32, %c0_i32_0 : i32, i32
  }
  func.func @transform_15(%arg0: i32) -> (i32, i32, i32, i32) {
    %c0_i32 = arith.constant 0 : i32
    %c0_i32_0 = arith.constant 0 : i32
    %c0_i32_1 = arith.constant 0 : i32
    %c0_i32_2 = arith.constant 0 : i32
    return %arg0, %c0_i32, %c0_i32_0, %c0_i32_1 : i32, i32, i32, i32
  }
}

module attributes {stable_mosaic.version = 11 : i64} {
  func.func @kernel(%arg0: i32, %arg1: memref<1x4x4x128xbf16, #tpu.memory_space<vmem>>, %arg2: memref<1x128xf32, #tpu.memory_space<vmem>>, %arg3: memref<1x128xf32, #tpu.memory_space<vmem>>, %arg4: memref<128x128xbf16, #tpu.memory_space<vmem>>, %arg5: memref<1x128xf32, #tpu.memory_space<vmem>>, %arg6: memref<9x128x128xbf16, #tpu.memory_space<vmem>>, %arg7: memref<1x128xf32, #tpu.memory_space<vmem>>, %arg8: memref<1x128xf32, #tpu.memory_space<vmem>>, %arg9: memref<128x128xbf16, #tpu.memory_space<vmem>>, %arg10: memref<1x128xf32, #tpu.memory_space<vmem>>, %arg11: memref<9x128x128xbf16, #tpu.memory_space<vmem>>, %arg12: memref<1x128xf32, #tpu.memory_space<vmem>>, %arg13: memref<1x128xf32, #tpu.memory_space<vmem>>, %arg14: memref<128x128xbf16, #tpu.memory_space<vmem>>, %arg15: memref<1x128xf32, #tpu.memory_space<vmem>>, %arg16: memref<1x1x128xf32, #tpu.memory_space<vmem>>, %arg17: memref<1x4x4x128xbf16, #tpu.memory_space<vmem>>, %arg18: memref<1x6x6x128xbf16, #tpu.memory_space<vmem>>) attributes {dimension_semantics = [#tpu.dimension_semantics<parallel>], iteration_bounds = array<i64: 2>, scalar_prefetch = 0 : i64, scratch_operands = 2 : i64, tpu.core_type = #tpu.core_type<tc>, window_params = [{transform_indices = @transform_0, window_bounds = array<i64: 1, 4, 4, 128>}, {pipeline_mode = #tpu.pipeline_mode<synchronous>, transform_indices = @transform_1, window_bounds = array<i64: 1, 128>}, {pipeline_mode = #tpu.pipeline_mode<synchronous>, transform_indices = @transform_2, window_bounds = array<i64: 1, 128>}, {pipeline_mode = #tpu.pipeline_mode<synchronous>, transform_indices = @transform_3, window_bounds = array<i64: 128, 128>}, {pipeline_mode = #tpu.pipeline_mode<synchronous>, transform_indices = @transform_4, window_bounds = array<i64: 1, 128>}, {pipeline_mode = #tpu.pipeline_mode<synchronous>, transform_indices = @transform_5, window_bounds = array<i64: 9, 128, 128>}, {pipeline_mode = #tpu.pipeline_mode<synchronous>, transform_indices = @transform_6, window_bounds = array<i64: 1, 128>}, {pipeline_mode = #tpu.pipeline_mode<synchronous>, transform_indices = @transform_7, window_bounds = array<i64: 1, 128>}, {pipeline_mode = #tpu.pipeline_mode<synchronous>, transform_indices = @transform_8, window_bounds = array<i64: 128, 128>}, {pipeline_mode = #tpu.pipeline_mode<synchronous>, transform_indices = @transform_9, window_bounds = array<i64: 1, 128>}, {pipeline_mode = #tpu.pipeline_mode<synchronous>, transform_indices = @transform_10, window_bounds = array<i64: 9, 128, 128>}, {pipeline_mode = #tpu.pipeline_mode<synchronous>, transform_indices = @transform_11, window_bounds = array<i64: 1, 128>}, {pipeline_mode = #tpu.pipeline_mode<synchronous>, transform_indices = @transform_12, window_bounds = array<i64: 1, 128>}, {pipeline_mode = #tpu.pipeline_mode<synchronous>, transform_indices = @transform_13, window_bounds = array<i64: 128, 128>}, {pipeline_mode = #tpu.pipeline_mode<synchronous>, transform_indices = @transform_14, window_bounds = array<i64: 1, 128>}, {transform_indices = @transform_15, window_bounds = array<i64: 1, 1, 128>}]} {
    %c0 = arith.constant 0 : index
    %c0_0 = arith.constant 0 : index
    %c0_1 = arith.constant 0 : index
    %c0_2 = arith.constant 0 : index
    %0 = vector.load %arg1[%c0, %c0_0, %c0_1, %c0_2] : memref<1x4x4x128xbf16, #tpu.memory_space<vmem>>, vector<1x4x4x128xbf16>
    %c0_3 = arith.constant 0 : index
    %c0_4 = arith.constant 0 : index
    %c0_5 = arith.constant 0 : index
    %c0_6 = arith.constant 0 : index
    %1 = vector.load %arg17[%c0_3, %c0_4, %c0_5, %c0_6] : memref<1x4x4x128xbf16, #tpu.memory_space<vmem>>, vector<1x4x4x128xbf16>
    tpu.vector_store %arg17[%c0_3, %c0_4, %c0_5, %c0_6], %0 {strides = array<i32>} : memref<1x4x4x128xbf16, #tpu.memory_space<vmem>>, vector<1x4x4x128xbf16>,
    %cst = arith.constant 0.000000e+00 : bf16
    %2 = vector.broadcast %cst : bf16 to vector<1x6x6x128xbf16>
    %c0_7 = arith.constant 0 : index
    %c0_8 = arith.constant 0 : index
    %c0_9 = arith.constant 0 : index
    %c0_10 = arith.constant 0 : index
    %3 = vector.load %arg18[%c0_7, %c0_8, %c0_9, %c0_10] : memref<1x6x6x128xbf16, #tpu.memory_space<vmem>>, vector<1x6x6x128xbf16>
    tpu.vector_store %arg18[%c0_7, %c0_8, %c0_9, %c0_10], %2 {strides = array<i32>} : memref<1x6x6x128xbf16, #tpu.memory_space<vmem>>, vector<1x6x6x128xbf16>,
    %c0_11 = arith.constant 0 : index
    %c0_12 = arith.constant 0 : index
    %c0_13 = arith.constant 0 : index
    %c0_14 = arith.constant 0 : index
    %4 = vector.load %arg17[%c0_11, %c0_12, %c0_13, %c0_14] : memref<1x4x4x128xbf16, #tpu.memory_space<vmem>>, vector<1x4x4x128xbf16>
    %5 = arith.extf %4 : vector<1x4x4x128xbf16> to vector<1x4x4x128xf32>
    %6 = vector.shape_cast %5 : vector<1x4x4x128xf32> to vector<16x128xf32>
    %c0_15 = arith.constant 0 : index
    %c0_16 = arith.constant 0 : index
    %7 = vector.load %arg2[%c0_15, %c0_16] : memref<1x128xf32, #tpu.memory_space<vmem>>, vector<1x128xf32>
    %8 = vector.broadcast %7 : vector<1x128xf32> to vector<16x128xf32>
    %9 = arith.mulf %6, %8 : vector<16x128xf32>
    %c0_17 = arith.constant 0 : index
    %c0_18 = arith.constant 0 : index
    %10 = vector.load %arg3[%c0_17, %c0_18] : memref<1x128xf32, #tpu.memory_space<vmem>>, vector<1x128xf32>
    %11 = vector.broadcast %10 : vector<1x128xf32> to vector<16x128xf32>
    %12 = arith.addf %9, %11 : vector<16x128xf32>
    %cst_19 = arith.constant 0.000000e+00 : f32
    %13 = vector.broadcast %cst_19 : f32 to vector<16x128xf32>
    %14 = arith.maximumf %12, %13 : vector<16x128xf32>
    %15 = arith.truncf %14 : vector<16x128xf32> to vector<16x128xbf16>
    %c0_20 = arith.constant 0 : index
    %c0_21 = arith.constant 0 : index
    %16 = vector.load %arg4[%c0_20, %c0_21] : memref<128x128xbf16, #tpu.memory_space<vmem>>, vector<128x128xbf16>
    %cst_22 = arith.constant dense<0.000000e+00> : vector<16x128xf32>
    %17 = tpu.matmul %15, %16, %cst_22 {dimension_numbers = #tpu.dot_dimension_numbers<[1], [0], [0], [1], [0, 0, 1, 1], [], []>} : vector<16x128xbf16>, vector<128x128xbf16>, vector<16x128xf32> -> vector<16x128xf32>
    %c0_23 = arith.constant 0 : index
    %c0_24 = arith.constant 0 : index
    %18 = vector.load %arg5[%c0_23, %c0_24] : memref<1x128xf32, #tpu.memory_space<vmem>>, vector<1x128xf32>
    %19 = vector.broadcast %18 : vector<1x128xf32> to vector<16x128xf32>
    %20 = arith.addf %17, %19 : vector<16x128xf32>
    %cst_25 = arith.constant 0.000000e+00 : f32
    %21 = vector.broadcast %cst_25 : f32 to vector<16x128xf32>
    %22 = arith.maximumf %20, %21 : vector<16x128xf32>
    %23 = arith.truncf %22 : vector<16x128xf32> to vector<16x128xbf16>
    %24 = vector.shape_cast %23 : vector<16x128xbf16> to vector<1x4x4x128xbf16>
    %c0_26 = arith.constant 0 : index
    %c1 = arith.constant 1 : index
    %c1_27 = arith.constant 1 : index
    %c0_28 = arith.constant 0 : index
    %25 = vector.load %arg18[%c0_26, %c1, %c1_27, %c0_28] : memref<1x6x6x128xbf16, #tpu.memory_space<vmem>>, vector<1x4x4x128xbf16>
    tpu.vector_store %arg18[%c0_26, %c1, %c1_27, %c0_28], %24 {strides = array<i32>} : memref<1x6x6x128xbf16, #tpu.memory_space<vmem>>, vector<1x4x4x128xbf16>,
    %cst_29 = arith.constant 0.000000e+00 : f32
    %26 = vector.broadcast %cst_29 : f32 to vector<16x128xf32>
    %c0_30 = arith.constant 0 : index
    %c0_31 = arith.constant 0 : index
    %c0_32 = arith.constant 0 : index
    %c0_33 = arith.constant 0 : index
    %27 = vector.load %arg18[%c0_30, %c0_31, %c0_32, %c0_33] : memref<1x6x6x128xbf16, #tpu.memory_space<vmem>>, vector<1x4x4x128xbf16>
    %28 = vector.shape_cast %27 : vector<1x4x4x128xbf16> to vector<16x128xbf16>
    %c0_34 = arith.constant 0 : index
    %c0_35 = arith.constant 0 : index
    %c0_36 = arith.constant 0 : index
    %29 = vector.load %arg6[%c0_34, %c0_35, %c0_36] : memref<9x128x128xbf16, #tpu.memory_space<vmem>>, vector<1x128x128xbf16>
    %30 = vector.shape_cast %29 : vector<1x128x128xbf16> to vector<128x128xbf16>
    %cst_37 = arith.constant dense<0.000000e+00> : vector<16x128xf32>
    %31 = tpu.matmul %28, %30, %cst_37 {dimension_numbers = #tpu.dot_dimension_numbers<[1], [0], [0], [1], [0, 0, 1, 1], [], []>} : vector<16x128xbf16>, vector<128x128xbf16>, vector<16x128xf32> -> vector<16x128xf32>
    %32 = arith.addf %26, %31 : vector<16x128xf32>
    %c0_38 = arith.constant 0 : index
    %c0_39 = arith.constant 0 : index
    %c1_40 = arith.constant 1 : index
    %c0_41 = arith.constant 0 : index
    %33 = vector.load %arg18[%c0_38, %c0_39, %c1_40, %c0_41] : memref<1x6x6x128xbf16, #tpu.memory_space<vmem>>, vector<1x4x4x128xbf16>
    %34 = vector.shape_cast %33 : vector<1x4x4x128xbf16> to vector<16x128xbf16>
    %c1_42 = arith.constant 1 : index
    %c0_43 = arith.constant 0 : index
    %c0_44 = arith.constant 0 : index
    %35 = vector.load %arg6[%c1_42, %c0_43, %c0_44] : memref<9x128x128xbf16, #tpu.memory_space<vmem>>, vector<1x128x128xbf16>
    %36 = vector.shape_cast %35 : vector<1x128x128xbf16> to vector<128x128xbf16>
    %cst_45 = arith.constant dense<0.000000e+00> : vector<16x128xf32>
    %37 = tpu.matmul %34, %36, %cst_45 {dimension_numbers = #tpu.dot_dimension_numbers<[1], [0], [0], [1], [0, 0, 1, 1], [], []>} : vector<16x128xbf16>, vector<128x128xbf16>, vector<16x128xf32> -> vector<16x128xf32>
    %38 = arith.addf %32, %37 : vector<16x128xf32>
    %c0_46 = arith.constant 0 : index
    %c0_47 = arith.constant 0 : index
    %c2 = arith.constant 2 : index
    %c0_48 = arith.constant 0 : index
    %39 = vector.load %arg18[%c0_46, %c0_47, %c2, %c0_48] : memref<1x6x6x128xbf16, #tpu.memory_space<vmem>>, vector<1x4x4x128xbf16>
    %40 = vector.shape_cast %39 : vector<1x4x4x128xbf16> to vector<16x128xbf16>
    %c2_49 = arith.constant 2 : index
    %c0_50 = arith.constant 0 : index
    %c0_51 = arith.constant 0 : index
    %41 = vector.load %arg6[%c2_49, %c0_50, %c0_51] : memref<9x128x128xbf16, #tpu.memory_space<vmem>>, vector<1x128x128xbf16>
    %42 = vector.shape_cast %41 : vector<1x128x128xbf16> to vector<128x128xbf16>
    %cst_52 = arith.constant dense<0.000000e+00> : vector<16x128xf32>
    %43 = tpu.matmul %40, %42, %cst_52 {dimension_numbers = #tpu.dot_dimension_numbers<[1], [0], [0], [1], [0, 0, 1, 1], [], []>} : vector<16x128xbf16>, vector<128x128xbf16>, vector<16x128xf32> -> vector<16x128xf32>
    %44 = arith.addf %38, %43 : vector<16x128xf32>
    %c0_53 = arith.constant 0 : index
    %c1_54 = arith.constant 1 : index
    %c0_55 = arith.constant 0 : index
    %c0_56 = arith.constant 0 : index
    %45 = vector.load %arg18[%c0_53, %c1_54, %c0_55, %c0_56] : memref<1x6x6x128xbf16, #tpu.memory_space<vmem>>, vector<1x4x4x128xbf16>
    %46 = vector.shape_cast %45 : vector<1x4x4x128xbf16> to vector<16x128xbf16>
    %c3 = arith.constant 3 : index
    %c0_57 = arith.constant 0 : index
    %c0_58 = arith.constant 0 : index
    %47 = vector.load %arg6[%c3, %c0_57, %c0_58] : memref<9x128x128xbf16, #tpu.memory_space<vmem>>, vector<1x128x128xbf16>
    %48 = vector.shape_cast %47 : vector<1x128x128xbf16> to vector<128x128xbf16>
    %cst_59 = arith.constant dense<0.000000e+00> : vector<16x128xf32>
    %49 = tpu.matmul %46, %48, %cst_59 {dimension_numbers = #tpu.dot_dimension_numbers<[1], [0], [0], [1], [0, 0, 1, 1], [], []>} : vector<16x128xbf16>, vector<128x128xbf16>, vector<16x128xf32> -> vector<16x128xf32>
    %50 = arith.addf %44, %49 : vector<16x128xf32>
    %c0_60 = arith.constant 0 : index
    %c1_61 = arith.constant 1 : index
    %c1_62 = arith.constant 1 : index
    %c0_63 = arith.constant 0 : index
    %51 = vector.load %arg18[%c0_60, %c1_61, %c1_62, %c0_63] : memref<1x6x6x128xbf16, #tpu.memory_space<vmem>>, vector<1x4x4x128xbf16>
    %52 = vector.shape_cast %51 : vector<1x4x4x128xbf16> to vector<16x128xbf16>
    %c4 = arith.constant 4 : index
    %c0_64 = arith.constant 0 : index
    %c0_65 = arith.constant 0 : index
    %53 = vector.load %arg6[%c4, %c0_64, %c0_65] : memref<9x128x128xbf16, #tpu.memory_space<vmem>>, vector<1x128x128xbf16>
    %54 = vector.shape_cast %53 : vector<1x128x128xbf16> to vector<128x128xbf16>
    %cst_66 = arith.constant dense<0.000000e+00> : vector<16x128xf32>
    %55 = tpu.matmul %52, %54, %cst_66 {dimension_numbers = #tpu.dot_dimension_numbers<[1], [0], [0], [1], [0, 0, 1, 1], [], []>} : vector<16x128xbf16>, vector<128x128xbf16>, vector<16x128xf32> -> vector<16x128xf32>
    %56 = arith.addf %50, %55 : vector<16x128xf32>
    %c0_67 = arith.constant 0 : index
    %c1_68 = arith.constant 1 : index
    %c2_69 = arith.constant 2 : index
    %c0_70 = arith.constant 0 : index
    %57 = vector.load %arg18[%c0_67, %c1_68, %c2_69, %c0_70] : memref<1x6x6x128xbf16, #tpu.memory_space<vmem>>, vector<1x4x4x128xbf16>
    %58 = vector.shape_cast %57 : vector<1x4x4x128xbf16> to vector<16x128xbf16>
    %c5 = arith.constant 5 : index
    %c0_71 = arith.constant 0 : index
    %c0_72 = arith.constant 0 : index
    %59 = vector.load %arg6[%c5, %c0_71, %c0_72] : memref<9x128x128xbf16, #tpu.memory_space<vmem>>, vector<1x128x128xbf16>
    %60 = vector.shape_cast %59 : vector<1x128x128xbf16> to vector<128x128xbf16>
    %cst_73 = arith.constant dense<0.000000e+00> : vector<16x128xf32>
    %61 = tpu.matmul %58, %60, %cst_73 {dimension_numbers = #tpu.dot_dimension_numbers<[1], [0], [0], [1], [0, 0, 1, 1], [], []>} : vector<16x128xbf16>, vector<128x128xbf16>, vector<16x128xf32> -> vector<16x128xf32>
    %62 = arith.addf %56, %61 : vector<16x128xf32>
    %c0_74 = arith.constant 0 : index
    %c2_75 = arith.constant 2 : index
    %c0_76 = arith.constant 0 : index
    %c0_77 = arith.constant 0 : index
    %63 = vector.load %arg18[%c0_74, %c2_75, %c0_76, %c0_77] : memref<1x6x6x128xbf16, #tpu.memory_space<vmem>>, vector<1x4x4x128xbf16>
    %64 = vector.shape_cast %63 : vector<1x4x4x128xbf16> to vector<16x128xbf16>
    %c6 = arith.constant 6 : index
    %c0_78 = arith.constant 0 : index
    %c0_79 = arith.constant 0 : index
    %65 = vector.load %arg6[%c6, %c0_78, %c0_79] : memref<9x128x128xbf16, #tpu.memory_space<vmem>>, vector<1x128x128xbf16>
    %66 = vector.shape_cast %65 : vector<1x128x128xbf16> to vector<128x128xbf16>
    %cst_80 = arith.constant dense<0.000000e+00> : vector<16x128xf32>
    %67 = tpu.matmul %64, %66, %cst_80 {dimension_numbers = #tpu.dot_dimension_numbers<[1], [0], [0], [1], [0, 0, 1, 1], [], []>} : vector<16x128xbf16>, vector<128x128xbf16>, vector<16x128xf32> -> vector<16x128xf32>
    %68 = arith.addf %62, %67 : vector<16x128xf32>
    %c0_81 = arith.constant 0 : index
    %c2_82 = arith.constant 2 : index
    %c1_83 = arith.constant 1 : index
    %c0_84 = arith.constant 0 : index
    %69 = vector.load %arg18[%c0_81, %c2_82, %c1_83, %c0_84] : memref<1x6x6x128xbf16, #tpu.memory_space<vmem>>, vector<1x4x4x128xbf16>
    %70 = vector.shape_cast %69 : vector<1x4x4x128xbf16> to vector<16x128xbf16>
    %c7 = arith.constant 7 : index
    %c0_85 = arith.constant 0 : index
    %c0_86 = arith.constant 0 : index
    %71 = vector.load %arg6[%c7, %c0_85, %c0_86] : memref<9x128x128xbf16, #tpu.memory_space<vmem>>, vector<1x128x128xbf16>
    %72 = vector.shape_cast %71 : vector<1x128x128xbf16> to vector<128x128xbf16>
    %cst_87 = arith.constant dense<0.000000e+00> : vector<16x128xf32>
    %73 = tpu.matmul %70, %72, %cst_87 {dimension_numbers = #tpu.dot_dimension_numbers<[1], [0], [0], [1], [0, 0, 1, 1], [], []>} : vector<16x128xbf16>, vector<128x128xbf16>, vector<16x128xf32> -> vector<16x128xf32>
    %74 = arith.addf %68, %73 : vector<16x128xf32>
    %c0_88 = arith.constant 0 : index
    %c2_89 = arith.constant 2 : index
    %c2_90 = arith.constant 2 : index
    %c0_91 = arith.constant 0 : index
    %75 = vector.load %arg18[%c0_88, %c2_89, %c2_90, %c0_91] : memref<1x6x6x128xbf16, #tpu.memory_space<vmem>>, vector<1x4x4x128xbf16>
    %76 = vector.shape_cast %75 : vector<1x4x4x128xbf16> to vector<16x128xbf16>
    %c8 = arith.constant 8 : index
    %c0_92 = arith.constant 0 : index
    %c0_93 = arith.constant 0 : index
    %77 = vector.load %arg6[%c8, %c0_92, %c0_93] : memref<9x128x128xbf16, #tpu.memory_space<vmem>>, vector<1x128x128xbf16>
    %78 = vector.shape_cast %77 : vector<1x128x128xbf16> to vector<128x128xbf16>
    %cst_94 = arith.constant dense<0.000000e+00> : vector<16x128xf32>
    %79 = tpu.matmul %76, %78, %cst_94 {dimension_numbers = #tpu.dot_dimension_numbers<[1], [0], [0], [1], [0, 0, 1, 1], [], []>} : vector<16x128xbf16>, vector<128x128xbf16>, vector<16x128xf32> -> vector<16x128xf32>
    %80 = arith.addf %74, %79 : vector<16x128xf32>
    %c0_95 = arith.constant 0 : index
    %c0_96 = arith.constant 0 : index
    %c0_97 = arith.constant 0 : index
    %c0_98 = arith.constant 0 : index
    %81 = vector.load %arg17[%c0_95, %c0_96, %c0_97, %c0_98] : memref<1x4x4x128xbf16, #tpu.memory_space<vmem>>, vector<1x4x4x128xbf16>
    %82 = vector.shape_cast %80 : vector<16x128xf32> to vector<1x4x4x128xf32>
    %83 = arith.truncf %82 : vector<1x4x4x128xf32> to vector<1x4x4x128xbf16>
    %84 = arith.addf %81, %83 : vector<1x4x4x128xbf16>
    %c0_99 = arith.constant 0 : index
    %c0_100 = arith.constant 0 : index
    %c0_101 = arith.constant 0 : index
    %c0_102 = arith.constant 0 : index
    %85 = vector.load %arg17[%c0_99, %c0_100, %c0_101, %c0_102] : memref<1x4x4x128xbf16, #tpu.memory_space<vmem>>, vector<1x4x4x128xbf16>
    tpu.vector_store %arg17[%c0_99, %c0_100, %c0_101, %c0_102], %84 {strides = array<i32>} : memref<1x4x4x128xbf16, #tpu.memory_space<vmem>>, vector<1x4x4x128xbf16>,
    %c0_103 = arith.constant 0 : index
    %c0_104 = arith.constant 0 : index
    %c0_105 = arith.constant 0 : index
    %c0_106 = arith.constant 0 : index
    %86 = vector.load %arg17[%c0_103, %c0_104, %c0_105, %c0_106] : memref<1x4x4x128xbf16, #tpu.memory_space<vmem>>, vector<1x4x4x128xbf16>
    %87 = arith.extf %86 : vector<1x4x4x128xbf16> to vector<1x4x4x128xf32>
    %88 = vector.shape_cast %87 : vector<1x4x4x128xf32> to vector<16x128xf32>
    %c0_107 = arith.constant 0 : index
    %c0_108 = arith.constant 0 : index
    %89 = vector.load %arg7[%c0_107, %c0_108] : memref<1x128xf32, #tpu.memory_space<vmem>>, vector<1x128xf32>
    %90 = vector.broadcast %89 : vector<1x128xf32> to vector<16x128xf32>
    %91 = arith.mulf %88, %90 : vector<16x128xf32>
    %c0_109 = arith.constant 0 : index
    %c0_110 = arith.constant 0 : index
    %92 = vector.load %arg8[%c0_109, %c0_110] : memref<1x128xf32, #tpu.memory_space<vmem>>, vector<1x128xf32>
    %93 = vector.broadcast %92 : vector<1x128xf32> to vector<16x128xf32>
    %94 = arith.addf %91, %93 : vector<16x128xf32>
    %cst_111 = arith.constant 0.000000e+00 : f32
    %95 = vector.broadcast %cst_111 : f32 to vector<16x128xf32>
    %96 = arith.maximumf %94, %95 : vector<16x128xf32>
    %97 = arith.truncf %96 : vector<16x128xf32> to vector<16x128xbf16>
    %c0_112 = arith.constant 0 : index
    %c0_113 = arith.constant 0 : index
    %98 = vector.load %arg9[%c0_112, %c0_113] : memref<128x128xbf16, #tpu.memory_space<vmem>>, vector<128x128xbf16>
    %cst_114 = arith.constant dense<0.000000e+00> : vector<16x128xf32>
    %99 = tpu.matmul %97, %98, %cst_114 {dimension_numbers = #tpu.dot_dimension_numbers<[1], [0], [0], [1], [0, 0, 1, 1], [], []>} : vector<16x128xbf16>, vector<128x128xbf16>, vector<16x128xf32> -> vector<16x128xf32>
    %c0_115 = arith.constant 0 : index
    %c0_116 = arith.constant 0 : index
    %100 = vector.load %arg10[%c0_115, %c0_116] : memref<1x128xf32, #tpu.memory_space<vmem>>, vector<1x128xf32>
    %101 = vector.broadcast %100 : vector<1x128xf32> to vector<16x128xf32>
    %102 = arith.addf %99, %101 : vector<16x128xf32>
    %cst_117 = arith.constant 0.000000e+00 : f32
    %103 = vector.broadcast %cst_117 : f32 to vector<16x128xf32>
    %104 = arith.maximumf %102, %103 : vector<16x128xf32>
    %105 = arith.truncf %104 : vector<16x128xf32> to vector<16x128xbf16>
    %106 = vector.shape_cast %105 : vector<16x128xbf16> to vector<1x4x4x128xbf16>
    %c0_118 = arith.constant 0 : index
    %c1_119 = arith.constant 1 : index
    %c1_120 = arith.constant 1 : index
    %c0_121 = arith.constant 0 : index
    %107 = vector.load %arg18[%c0_118, %c1_119, %c1_120, %c0_121] : memref<1x6x6x128xbf16, #tpu.memory_space<vmem>>, vector<1x4x4x128xbf16>
    tpu.vector_store %arg18[%c0_118, %c1_119, %c1_120, %c0_121], %106 {strides = array<i32>} : memref<1x6x6x128xbf16, #tpu.memory_space<vmem>>, vector<1x4x4x128xbf16>,
    %cst_122 = arith.constant 0.000000e+00 : f32
    %108 = vector.broadcast %cst_122 : f32 to vector<16x128xf32>
    %c0_123 = arith.constant 0 : index
    %c0_124 = arith.constant 0 : index
    %c0_125 = arith.constant 0 : index
    %c0_126 = arith.constant 0 : index
    %109 = vector.load %arg18[%c0_123, %c0_124, %c0_125, %c0_126] : memref<1x6x6x128xbf16, #tpu.memory_space<vmem>>, vector<1x4x4x128xbf16>
    %110 = vector.shape_cast %109 : vector<1x4x4x128xbf16> to vector<16x128xbf16>
    %c0_127 = arith.constant 0 : index
    %c0_128 = arith.constant 0 : index
    %c0_129 = arith.constant 0 : index
    %111 = vector.load %arg11[%c0_127, %c0_128, %c0_129] : memref<9x128x128xbf16, #tpu.memory_space<vmem>>, vector<1x128x128xbf16>
    %112 = vector.shape_cast %111 : vector<1x128x128xbf16> to vector<128x128xbf16>
    %cst_130 = arith.constant dense<0.000000e+00> : vector<16x128xf32>
    %113 = tpu.matmul %110, %112, %cst_130 {dimension_numbers = #tpu.dot_dimension_numbers<[1], [0], [0], [1], [0, 0, 1, 1], [], []>} : vector<16x128xbf16>, vector<128x128xbf16>, vector<16x128xf32> -> vector<16x128xf32>
    %114 = arith.addf %108, %113 : vector<16x128xf32>
    %c0_131 = arith.constant 0 : index
    %c0_132 = arith.constant 0 : index
    %c1_133 = arith.constant 1 : index
    %c0_134 = arith.constant 0 : index
    %115 = vector.load %arg18[%c0_131, %c0_132, %c1_133, %c0_134] : memref<1x6x6x128xbf16, #tpu.memory_space<vmem>>, vector<1x4x4x128xbf16>
    %116 = vector.shape_cast %115 : vector<1x4x4x128xbf16> to vector<16x128xbf16>
    %c1_135 = arith.constant 1 : index
    %c0_136 = arith.constant 0 : index
    %c0_137 = arith.constant 0 : index
    %117 = vector.load %arg11[%c1_135, %c0_136, %c0_137] : memref<9x128x128xbf16, #tpu.memory_space<vmem>>, vector<1x128x128xbf16>
    %118 = vector.shape_cast %117 : vector<1x128x128xbf16> to vector<128x128xbf16>
    %cst_138 = arith.constant dense<0.000000e+00> : vector<16x128xf32>
    %119 = tpu.matmul %116, %118, %cst_138 {dimension_numbers = #tpu.dot_dimension_numbers<[1], [0], [0], [1], [0, 0, 1, 1], [], []>} : vector<16x128xbf16>, vector<128x128xbf16>, vector<16x128xf32> -> vector<16x128xf32>
    %120 = arith.addf %114, %119 : vector<16x128xf32>
    %c0_139 = arith.constant 0 : index
    %c0_140 = arith.constant 0 : index
    %c2_141 = arith.constant 2 : index
    %c0_142 = arith.constant 0 : index
    %121 = vector.load %arg18[%c0_139, %c0_140, %c2_141, %c0_142] : memref<1x6x6x128xbf16, #tpu.memory_space<vmem>>, vector<1x4x4x128xbf16>
    %122 = vector.shape_cast %121 : vector<1x4x4x128xbf16> to vector<16x128xbf16>
    %c2_143 = arith.constant 2 : index
    %c0_144 = arith.constant 0 : index
    %c0_145 = arith.constant 0 : index
    %123 = vector.load %arg11[%c2_143, %c0_144, %c0_145] : memref<9x128x128xbf16, #tpu.memory_space<vmem>>, vector<1x128x128xbf16>
    %124 = vector.shape_cast %123 : vector<1x128x128xbf16> to vector<128x128xbf16>
    %cst_146 = arith.constant dense<0.000000e+00> : vector<16x128xf32>
    %125 = tpu.matmul %122, %124, %cst_146 {dimension_numbers = #tpu.dot_dimension_numbers<[1], [0], [0], [1], [0, 0, 1, 1], [], []>} : vector<16x128xbf16>, vector<128x128xbf16>, vector<16x128xf32> -> vector<16x128xf32>
    %126 = arith.addf %120, %125 : vector<16x128xf32>
    %c0_147 = arith.constant 0 : index
    %c1_148 = arith.constant 1 : index
    %c0_149 = arith.constant 0 : index
    %c0_150 = arith.constant 0 : index
    %127 = vector.load %arg18[%c0_147, %c1_148, %c0_149, %c0_150] : memref<1x6x6x128xbf16, #tpu.memory_space<vmem>>, vector<1x4x4x128xbf16>
    %128 = vector.shape_cast %127 : vector<1x4x4x128xbf16> to vector<16x128xbf16>
    %c3_151 = arith.constant 3 : index
    %c0_152 = arith.constant 0 : index
    %c0_153 = arith.constant 0 : index
    %129 = vector.load %arg11[%c3_151, %c0_152, %c0_153] : memref<9x128x128xbf16, #tpu.memory_space<vmem>>, vector<1x128x128xbf16>
    %130 = vector.shape_cast %129 : vector<1x128x128xbf16> to vector<128x128xbf16>
    %cst_154 = arith.constant dense<0.000000e+00> : vector<16x128xf32>
    %131 = tpu.matmul %128, %130, %cst_154 {dimension_numbers = #tpu.dot_dimension_numbers<[1], [0], [0], [1], [0, 0, 1, 1], [], []>} : vector<16x128xbf16>, vector<128x128xbf16>, vector<16x128xf32> -> vector<16x128xf32>
    %132 = arith.addf %126, %131 : vector<16x128xf32>
    %c0_155 = arith.constant 0 : index
    %c1_156 = arith.constant 1 : index
    %c1_157 = arith.constant 1 : index
    %c0_158 = arith.constant 0 : index
    %133 = vector.load %arg18[%c0_155, %c1_156, %c1_157, %c0_158] : memref<1x6x6x128xbf16, #tpu.memory_space<vmem>>, vector<1x4x4x128xbf16>
    %134 = vector.shape_cast %133 : vector<1x4x4x128xbf16> to vector<16x128xbf16>
    %c4_159 = arith.constant 4 : index
    %c0_160 = arith.constant 0 : index
    %c0_161 = arith.constant 0 : index
    %135 = vector.load %arg11[%c4_159, %c0_160, %c0_161] : memref<9x128x128xbf16, #tpu.memory_space<vmem>>, vector<1x128x128xbf16>
    %136 = vector.shape_cast %135 : vector<1x128x128xbf16> to vector<128x128xbf16>
    %cst_162 = arith.constant dense<0.000000e+00> : vector<16x128xf32>
    %137 = tpu.matmul %134, %136, %cst_162 {dimension_numbers = #tpu.dot_dimension_numbers<[1], [0], [0], [1], [0, 0, 1, 1], [], []>} : vector<16x128xbf16>, vector<128x128xbf16>, vector<16x128xf32> -> vector<16x128xf32>
    %138 = arith.addf %132, %137 : vector<16x128xf32>
    %c0_163 = arith.constant 0 : index
    %c1_164 = arith.constant 1 : index
    %c2_165 = arith.constant 2 : index
    %c0_166 = arith.constant 0 : index
    %139 = vector.load %arg18[%c0_163, %c1_164, %c2_165, %c0_166] : memref<1x6x6x128xbf16, #tpu.memory_space<vmem>>, vector<1x4x4x128xbf16>
    %140 = vector.shape_cast %139 : vector<1x4x4x128xbf16> to vector<16x128xbf16>
    %c5_167 = arith.constant 5 : index
    %c0_168 = arith.constant 0 : index
    %c0_169 = arith.constant 0 : index
    %141 = vector.load %arg11[%c5_167, %c0_168, %c0_169] : memref<9x128x128xbf16, #tpu.memory_space<vmem>>, vector<1x128x128xbf16>
    %142 = vector.shape_cast %141 : vector<1x128x128xbf16> to vector<128x128xbf16>
    %cst_170 = arith.constant dense<0.000000e+00> : vector<16x128xf32>
    %143 = tpu.matmul %140, %142, %cst_170 {dimension_numbers = #tpu.dot_dimension_numbers<[1], [0], [0], [1], [0, 0, 1, 1], [], []>} : vector<16x128xbf16>, vector<128x128xbf16>, vector<16x128xf32> -> vector<16x128xf32>
    %144 = arith.addf %138, %143 : vector<16x128xf32>
    %c0_171 = arith.constant 0 : index
    %c2_172 = arith.constant 2 : index
    %c0_173 = arith.constant 0 : index
    %c0_174 = arith.constant 0 : index
    %145 = vector.load %arg18[%c0_171, %c2_172, %c0_173, %c0_174] : memref<1x6x6x128xbf16, #tpu.memory_space<vmem>>, vector<1x4x4x128xbf16>
    %146 = vector.shape_cast %145 : vector<1x4x4x128xbf16> to vector<16x128xbf16>
    %c6_175 = arith.constant 6 : index
    %c0_176 = arith.constant 0 : index
    %c0_177 = arith.constant 0 : index
    %147 = vector.load %arg11[%c6_175, %c0_176, %c0_177] : memref<9x128x128xbf16, #tpu.memory_space<vmem>>, vector<1x128x128xbf16>
    %148 = vector.shape_cast %147 : vector<1x128x128xbf16> to vector<128x128xbf16>
    %cst_178 = arith.constant dense<0.000000e+00> : vector<16x128xf32>
    %149 = tpu.matmul %146, %148, %cst_178 {dimension_numbers = #tpu.dot_dimension_numbers<[1], [0], [0], [1], [0, 0, 1, 1], [], []>} : vector<16x128xbf16>, vector<128x128xbf16>, vector<16x128xf32> -> vector<16x128xf32>
    %150 = arith.addf %144, %149 : vector<16x128xf32>
    %c0_179 = arith.constant 0 : index
    %c2_180 = arith.constant 2 : index
    %c1_181 = arith.constant 1 : index
    %c0_182 = arith.constant 0 : index
    %151 = vector.load %arg18[%c0_179, %c2_180, %c1_181, %c0_182] : memref<1x6x6x128xbf16, #tpu.memory_space<vmem>>, vector<1x4x4x128xbf16>
    %152 = vector.shape_cast %151 : vector<1x4x4x128xbf16> to vector<16x128xbf16>
    %c7_183 = arith.constant 7 : index
    %c0_184 = arith.constant 0 : index
    %c0_185 = arith.constant 0 : index
    %153 = vector.load %arg11[%c7_183, %c0_184, %c0_185] : memref<9x128x128xbf16, #tpu.memory_space<vmem>>, vector<1x128x128xbf16>
    %154 = vector.shape_cast %153 : vector<1x128x128xbf16> to vector<128x128xbf16>
    %cst_186 = arith.constant dense<0.000000e+00> : vector<16x128xf32>
    %155 = tpu.matmul %152, %154, %cst_186 {dimension_numbers = #tpu.dot_dimension_numbers<[1], [0], [0], [1], [0, 0, 1, 1], [], []>} : vector<16x128xbf16>, vector<128x128xbf16>, vector<16x128xf32> -> vector<16x128xf32>
    %156 = arith.addf %150, %155 : vector<16x128xf32>
    %c0_187 = arith.constant 0 : index
    %c2_188 = arith.constant 2 : index
    %c2_189 = arith.constant 2 : index
    %c0_190 = arith.constant 0 : index
    %157 = vector.load %arg18[%c0_187, %c2_188, %c2_189, %c0_190] : memref<1x6x6x128xbf16, #tpu.memory_space<vmem>>, vector<1x4x4x128xbf16>
    %158 = vector.shape_cast %157 : vector<1x4x4x128xbf16> to vector<16x128xbf16>
    %c8_191 = arith.constant 8 : index
    %c0_192 = arith.constant 0 : index
    %c0_193 = arith.constant 0 : index
    %159 = vector.load %arg11[%c8_191, %c0_192, %c0_193] : memref<9x128x128xbf16, #tpu.memory_space<vmem>>, vector<1x128x128xbf16>
    %160 = vector.shape_cast %159 : vector<1x128x128xbf16> to vector<128x128xbf16>
    %cst_194 = arith.constant dense<0.000000e+00> : vector<16x128xf32>
    %161 = tpu.matmul %158, %160, %cst_194 {dimension_numbers = #tpu.dot_dimension_numbers<[1], [0], [0], [1], [0, 0, 1, 1], [], []>} : vector<16x128xbf16>, vector<128x128xbf16>, vector<16x128xf32> -> vector<16x128xf32>
    %162 = arith.addf %156, %161 : vector<16x128xf32>
    %c0_195 = arith.constant 0 : index
    %c0_196 = arith.constant 0 : index
    %c0_197 = arith.constant 0 : index
    %c0_198 = arith.constant 0 : index
    %163 = vector.load %arg17[%c0_195, %c0_196, %c0_197, %c0_198] : memref<1x4x4x128xbf16, #tpu.memory_space<vmem>>, vector<1x4x4x128xbf16>
    %164 = vector.shape_cast %162 : vector<16x128xf32> to vector<1x4x4x128xf32>
    %165 = arith.truncf %164 : vector<1x4x4x128xf32> to vector<1x4x4x128xbf16>
    %166 = arith.addf %163, %165 : vector<1x4x4x128xbf16>
    %c0_199 = arith.constant 0 : index
    %c0_200 = arith.constant 0 : index
    %c0_201 = arith.constant 0 : index
    %c0_202 = arith.constant 0 : index
    %167 = vector.load %arg17[%c0_199, %c0_200, %c0_201, %c0_202] : memref<1x4x4x128xbf16, #tpu.memory_space<vmem>>, vector<1x4x4x128xbf16>
    tpu.vector_store %arg17[%c0_199, %c0_200, %c0_201, %c0_202], %166 {strides = array<i32>} : memref<1x4x4x128xbf16, #tpu.memory_space<vmem>>, vector<1x4x4x128xbf16>,
    %c0_203 = arith.constant 0 : index
    %c0_204 = arith.constant 0 : index
    %c0_205 = arith.constant 0 : index
    %c0_206 = arith.constant 0 : index
    %168 = vector.load %arg17[%c0_203, %c0_204, %c0_205, %c0_206] : memref<1x4x4x128xbf16, #tpu.memory_space<vmem>>, vector<1x4x4x128xbf16>
    %169 = arith.extf %168 : vector<1x4x4x128xbf16> to vector<1x4x4x128xf32>
    %170 = vector.shape_cast %169 : vector<1x4x4x128xf32> to vector<16x128xf32>
    %c0_207 = arith.constant 0 : index
    %c0_208 = arith.constant 0 : index
    %171 = vector.load %arg12[%c0_207, %c0_208] : memref<1x128xf32, #tpu.memory_space<vmem>>, vector<1x128xf32>
    %172 = vector.broadcast %171 : vector<1x128xf32> to vector<16x128xf32>
    %173 = arith.mulf %170, %172 : vector<16x128xf32>
    %c0_209 = arith.constant 0 : index
    %c0_210 = arith.constant 0 : index
    %174 = vector.load %arg13[%c0_209, %c0_210] : memref<1x128xf32, #tpu.memory_space<vmem>>, vector<1x128xf32>
    %175 = vector.broadcast %174 : vector<1x128xf32> to vector<16x128xf32>
    %176 = arith.addf %173, %175 : vector<16x128xf32>
    %cst_211 = arith.constant 0.000000e+00 : f32
    %177 = vector.broadcast %cst_211 : f32 to vector<16x128xf32>
    %178 = arith.maximumf %176, %177 : vector<16x128xf32>
    %cst_212 = arith.constant dense<0.000000e+00> : vector<128xf32>
    %179 = vector.multi_reduction <add>, %178, %cst_212 [0] : vector<16x128xf32> to vector<128xf32>
    %180 = vector.shape_cast %179 : vector<128xf32> to vector<1x128xf32>
    %cst_213 = arith.constant 1.600000e+01 : f32
    %181 = vector.broadcast %cst_213 : f32 to vector<1x128xf32>
    %182 = arith.divf %180, %181 : vector<1x128xf32>
    %183 = arith.truncf %182 : vector<1x128xf32> to vector<1x128xbf16>
    %c0_214 = arith.constant 0 : index
    %c0_215 = arith.constant 0 : index
    %184 = vector.load %arg14[%c0_214, %c0_215] : memref<128x128xbf16, #tpu.memory_space<vmem>>, vector<128x128xbf16>
    %cst_216 = arith.constant dense<0.000000e+00> : vector<1x128xf32>
    %185 = tpu.matmul %183, %184, %cst_216 {dimension_numbers = #tpu.dot_dimension_numbers<[1], [0], [0], [1], [0, 0, 1, 1], [], []>} : vector<1x128xbf16>, vector<128x128xbf16>, vector<1x128xf32> -> vector<1x128xf32>
    %c0_217 = arith.constant 0 : index
    %c0_218 = arith.constant 0 : index
    %186 = vector.load %arg15[%c0_217, %c0_218] : memref<1x128xf32, #tpu.memory_space<vmem>>, vector<1x128xf32>
    %187 = arith.addf %185, %186 : vector<1x128xf32>
    %188 = vector.shape_cast %187 : vector<1x128xf32> to vector<1x1x128xf32>
    %c0_219 = arith.constant 0 : index
    %c0_220 = arith.constant 0 : index
    %c0_221 = arith.constant 0 : index
    %189 = vector.load %arg16[%c0_219, %c0_220, %c0_221] : memref<1x1x128xf32, #tpu.memory_space<vmem>>, vector<1x1x128xf32>
    tpu.vector_store %arg16[%c0_219, %c0_220, %c0_221], %188 {strides = array<i32>} : memref<1x1x128xf32, #tpu.memory_space<vmem>>, vector<1x1x128xf32>,
    return
  }
  func.func @transform_0(%arg0: i32) -> (i32, i32, i32, i32) {
    %c0_i32 = arith.constant 0 : i32
    %c0_i32_0 = arith.constant 0 : i32
    %c0_i32_1 = arith.constant 0 : i32
    %c0_i32_2 = arith.constant 0 : i32
    return %arg0, %c0_i32, %c0_i32_0, %c0_i32_1 : i32, i32, i32, i32
  }
  func.func @transform_1(%arg0: i32) -> (i32, i32) {
    %c0_i32 = arith.constant 0 : i32
    %c0_i32_0 = arith.constant 0 : i32
    %c0_i32_1 = arith.constant 0 : i32
    return %c0_i32, %c0_i32_0 : i32, i32
  }
  func.func @transform_2(%arg0: i32) -> (i32, i32) {
    %c0_i32 = arith.constant 0 : i32
    %c0_i32_0 = arith.constant 0 : i32
    %c0_i32_1 = arith.constant 0 : i32
    return %c0_i32, %c0_i32_0 : i32, i32
  }
  func.func @transform_3(%arg0: i32) -> (i32, i32) {
    %c0_i32 = arith.constant 0 : i32
    %c0_i32_0 = arith.constant 0 : i32
    %c0_i32_1 = arith.constant 0 : i32
    return %c0_i32, %c0_i32_0 : i32, i32
  }
  func.func @transform_4(%arg0: i32) -> (i32, i32) {
    %c0_i32 = arith.constant 0 : i32
    %c0_i32_0 = arith.constant 0 : i32
    %c0_i32_1 = arith.constant 0 : i32
    return %c0_i32, %c0_i32_0 : i32, i32
  }
  func.func @transform_5(%arg0: i32) -> (i32, i32, i32) {
    %c0_i32 = arith.constant 0 : i32
    %c0_i32_0 = arith.constant 0 : i32
    %c0_i32_1 = arith.constant 0 : i32
    %c0_i32_2 = arith.constant 0 : i32
    return %c0_i32, %c0_i32_0, %c0_i32_1 : i32, i32, i32
  }
  func.func @transform_6(%arg0: i32) -> (i32, i32) {
    %c0_i32 = arith.constant 0 : i32
    %c0_i32_0 = arith.constant 0 : i32
    %c0_i32_1 = arith.constant 0 : i32
    return %c0_i32, %c0_i32_0 : i32, i32
  }
  func.func @transform_7(%arg0: i32) -> (i32, i32) {
    %c0_i32 = arith.constant 0 : i32
    %c0_i32_0 = arith.constant 0 : i32
    %c0_i32_1 = arith.constant 0 : i32
    return %c0_i32, %c0_i32_0 : i32, i32
  }
  func.func @transform_8(%arg0: i32) -> (i32, i32) {
    %c0_i32 = arith.constant 0 : i32
    %c0_i32_0 = arith.constant 0 : i32
    %c0_i32_1 = arith.constant 0 : i32
    return %c0_i32, %c0_i32_0 : i32, i32
  }
  func.func @transform_9(%arg0: i32) -> (i32, i32) {
    %c0_i32 = arith.constant 0 : i32
    %c0_i32_0 = arith.constant 0 : i32
    %c0_i32_1 = arith.constant 0 : i32
    return %c0_i32, %c0_i32_0 : i32, i32
  }
  func.func @transform_10(%arg0: i32) -> (i32, i32, i32) {
    %c0_i32 = arith.constant 0 : i32
    %c0_i32_0 = arith.constant 0 : i32
    %c0_i32_1 = arith.constant 0 : i32
    %c0_i32_2 = arith.constant 0 : i32
    return %c0_i32, %c0_i32_0, %c0_i32_1 : i32, i32, i32
  }
  func.func @transform_11(%arg0: i32) -> (i32, i32) {
    %c0_i32 = arith.constant 0 : i32
    %c0_i32_0 = arith.constant 0 : i32
    %c0_i32_1 = arith.constant 0 : i32
    return %c0_i32, %c0_i32_0 : i32, i32
  }
  func.func @transform_12(%arg0: i32) -> (i32, i32) {
    %c0_i32 = arith.constant 0 : i32
    %c0_i32_0 = arith.constant 0 : i32
    %c0_i32_1 = arith.constant 0 : i32
    return %c0_i32, %c0_i32_0 : i32, i32
  }
  func.func @transform_13(%arg0: i32) -> (i32, i32) {
    %c0_i32 = arith.constant 0 : i32
    %c0_i32_0 = arith.constant 0 : i32
    %c0_i32_1 = arith.constant 0 : i32
    return %c0_i32, %c0_i32_0 : i32, i32
  }
  func.func @transform_14(%arg0: i32) -> (i32, i32) {
    %c0_i32 = arith.constant 0 : i32
    %c0_i32_0 = arith.constant 0 : i32
    %c0_i32_1 = arith.constant 0 : i32
    return %c0_i32, %c0_i32_0 : i32, i32
  }
  func.func @transform_15(%arg0: i32) -> (i32, i32, i32) {
    %c0_i32 = arith.constant 0 : i32
    %c0_i32_0 = arith.constant 0 : i32
    %c0_i32_1 = arith.constant 0 : i32
    return %arg0, %c0_i32, %c0_i32_0 : i32, i32, i32
  }
}

</mosaic_0001>

<bundles_post_ra>
// kernel: forward.4
= control target key start
LH: loop header
LB: loop body
LE: loop exit
PB: predicated region body
PF: predicated region fallthrough
CT: control target
= control target key end

     0   :  { %s6287_s18 = smov 0   ;;  %s7476_s0 = inlined_call_operand.vmem [shape: bf16[2,8,8,128], index: 0, kind: input, shape index: {}]   ;;  %s7477_s1 = inlined_call_operand.vmem [shape: f32[1,128], index: 1, kind: input, shape index: {}]   ;;  %s7478_s2 = inlined_call_operand.vmem [shape: f32[1,128], index: 2, kind: input, shape index: {}]   ;;  %s7479_s3 = inlined_call_operand.vmem [shape: bf16[128,128], index: 3, kind: input, shape index: {}]   ;;  %s7480_s4 = inlined_call_operand.vmem [shape: f32[1,128], index: 4, kind: input, shape index: {}]   ;;  %s7481_s5 = inlined_call_operand.vmem [shape: bf16[9,128,128], index: 5, kind: input, shape index: {}]   ;;  %s7482_s6 = inlined_call_operand.vmem [shape: f32[1,128], index: 6, kind: input, shape index: {}]   ;;  %s7483_s7 = inlined_call_operand.vmem [shape: f32[1,128], index: 7, kind: input, shape index: {}]   ;;  %s7484_s8 = inlined_call_operand.vmem [shape: bf16[128,128], index: 8, kind: input, shape index: {}]   ;;  %s7485_s9 = inlined_call_operand.vmem [shape: f32[1,128], index: 9, kind: input, shape index: {}]   ;;  %s7486_s10 = inlined_call_operand.vmem [shape: bf16[9,128,128], index: 10, kind: input, shape index: {}]   ;;  %s7487_s11 = inlined_call_operand.vmem [shape: f32[1,128], index: 11, kind: input, shape index: {}]   ;;  %s7488_s12 = inlined_call_operand.vmem [shape: f32[1,128], index: 12, kind: input, shape index: {}]   ;;  %s7489_s13 = inlined_call_operand.vmem [shape: bf16[16,64], index: 13, kind: input, shape index: {}]   ;;  %s7490_s14 = inlined_call_operand.vmem [shape: bf16[128,128], index: 14, kind: input, shape index: {}]   ;;  %s7491_s15 = inlined_call_operand.vmem [shape: bf16[2,4,4,128], index: 15, kind: output, shape index: {}]  }
   0x1 LB: > { %s4757_s19 = sadd.s32 4294967295, %s6204_s18   ;;  %p4761_p0 = scmp.ge.s32.totalorder %s6204_s18, 1  ;;  %s6204_s18 = sphi %s6287_s18, %s25_s18  }
   0x2   : > { %p437_p1 = scmp.lt.s32.totalorder %s6204_s18, 3 }
   0x4   : > { %p438_p2 = pnand %p4761_p0, %p437_p1 }
   0x5   : > { %p485_p3 = scmp.lt.s32.totalorder (!%p438_p2), %s4757_s19, 1 }
   0x6   : > { %441 = sbr.rel (%p438_p2) target bundleno = 1288 (0x508), region = 80 }
   0xb   : > { %v5854_v0 = vld [vmem:[%s7479_s3 + $0x38] sm:$0xff]  ;;  %v5853_v1 = vld [vmem:[%s7479_s3 + $0x30] sm:$0xff]  ;;  %s7501_s19 = smov (!%p485_p3, %s4757_s19), 1  ;;  %v5852_v2 = vld [vmem:[%s7479_s3 + $0x28] sm:$0xff]  ;;  %v6206_v41 = vmov 0   ;;  %vm778_vm0 = vcmask 1043456  }
   0xc   : > { %652 = vmatpush.bf16.msra.mxu0 %v5854_v0  ;;  %s5845_s26 = sshll.u32 %s7501_s19, 5  ;;  %v5851_v5 = vld [vmem:[%s7479_s3 + $0x20] sm:$0xff]  ;;  %v5850_v7 = vld [vmem:[%s7479_s3 + $0x18] sm:$0xff]  ;;  %v5849_v15 = vld [vmem:[%s7479_s3 + $0x10] sm:$0xff]  ;;  %514 = vst [vmem:[#allocation3 + $0x8] sm:$0xf] %v6206_v41 }
   0xd   : > { %s6310_s29 = scalar_lea.vmem %s7476_s0, %s5845_s26  ;;  %v6320_v6 = vld [vmem:[%s7477_s1] ss:$0 sm:$0xff]  ;;  %v5848_v18 = vld [vmem:[%s7479_s3 + $0x8] sm:$0xff]  ;;  %v5866_v39 = vld [vmem:[%s7481_s5 + $0x38] sm:$0xff]  ;;  %515 = vst [vmem:[#allocation3 + $0xc] sm:$0x1] %v6206_v41 }
   0xe   : > { %v496_v3 = vld [vmem:[%s6310_s29] sm:$0xff]   ;;  %v498_v4 = vld [vmem:[%s6310_s29 + $0x8] sm:$0xff]   ;;  %v500_v9 = vld [vmem:[%s6310_s29 + $0x10] sm:$0xff]   ;;  %1161 = vmatpush.bf16.msra.mxu2 %v5866_v39  ;;  %512 = vst [vmem:[#allocation3] sm:$0xf] %v6206_v41  ;;  %vm784_vm2 = vcmask 1040384  }
   0xf   : > { %504 = vst [vmem:[#allocation2] sm:$0xff] %v496_v3   ;;  %v6331_v14 = vld [vmem:[%s7478_s2] ss:$0 sm:$0xff]  ;;  %v502_v26 = vld [vmem:[%s6310_s29 + $0x18] sm:$0xff]   ;;  %v5865_v42 = vld [vmem:[%s7481_s5 + $0x30] sm:$0xff]  ;;  %vm1214_vm6 = vcmask 1042432  }
  0x10   : > { %653 = vmatpush.bf16.msra.mxu0 %v5853_v1  ;;  %506 = vst [vmem:[#allocation2 + $0x8] sm:$0xff] %v498_v4   ;;  %v5847_v21 = vld [vmem:[%s7479_s3] sm:$0xff]  ;;  %v5882_v40 = vld [vmem:[%s7481_s5 + $0xb8] sm:$0xff]  ;;  %v5864_v58 = vld [vmem:[%s7481_s5 + $0x28] sm:$0xff]  ;;  %vm779_vm1 = vsmask.f32 7938 }
  0x11   : > { %508 = vst [vmem:[#allocation2 + $0x10] sm:$0xff] %v500_v9   ;;  %1330 = vmatpush.bf16.msra.mxu3 %v5882_v40  ;;  %v5894_v59 = vld [vmem:[%s7481_s5 + $0xf8] sm:$0xff]  ;;  %v5881_v60 = vld [vmem:[%s7481_s5 + $0xb0] sm:$0xff]  ;;  %v5863_v62 = vld [vmem:[%s7481_s5 + $0x20] sm:$0xff]  ;;  %vm785_vm3 = vsmask.f32 256 }
  0x12   : > { %510 = vst [vmem:[#allocation2 + $0x18] sm:$0xff] %v502_v26   ;;  %1162 = vmatpush.bf16.msra.mxu2 %v5865_v42  ;;  %v5874_v61 = vld [vmem:[%s7481_s5 + $0x78] sm:$0xff]  ;;  %v5893_v63 = vld [vmem:[%s7481_s5 + $0xf0] sm:$0xff]  ;;  %v5880_v0 = vld [vmem:[%s7481_s5 + $0xa8] sm:$0xff]  ;;  %vm1215_vm7 = vcmask 1046532   ;;  %vm4577_vm12 = vcmask 523264  }
  0x13   : > { %513 = vst [vmem:[#allocation3 + $0x4] sm:$0x1] %v6206_v41  ;;  %1060 = vmatpush.bf16.msra.mxu1 %v5874_v61  ;;  %v5873_v1 = vld [vmem:[%s7481_s5 + $0x70] sm:$0xff]  ;;  %v5892_v3 = vld [vmem:[%s7481_s5 + $0xe8] sm:$0xff]  ;;  %v5879_v4 = vld [vmem:[%s7481_s5 + $0xa0] sm:$0xff]  ;;  %s5846_s27 = sshll.u32 %s7501_s19, 3 }
  0x14   : > { %654 = vmatpush.bf16.msra.mxu0 %v5852_v2  ;;  %516 = vst [vmem:[#allocation3 + $0x10] sm:$0xf] %v6206_v41  ;;  %v5862_v2 = vld [vmem:[%s7481_s5 + $0x18] sm:$0xff]  ;;  %v5871_v9 = vld [vmem:[%s7481_s5 + $0x60] sm:$0xff]  ;;  %vm6459_vm4 = vmand %vm778_vm0, %vm779_vm1  ;;  %vm864_vm9 = vsmask.f32 3328  ;;  %s494_s16 = scalar_lea.vmem %s7491_s15, %s5846_s27 }
  0x15   : > { %517 = vst [vmem:[#allocation3 + $0x14] sm:$0x1] %v6206_v41  ;;  %1331 = vmatpush.bf16.msra.mxu3 %v5881_v60  ;;  %vm6464_vm5 = vmand %vm784_vm2, %vm785_vm3  ;;  %vm865_vm10 = vsmask.f32 7440  ;;  %vm4680_vm13 = vcmask 1041408   ;;  %vm4684_vm14 = vcmask 1043458  }
  0x16   : > { %v6041_v8 = vld [vmem:[#allocation2] sm:$0xff]   ;;  %518 = vst [vmem:[#allocation3 + $0x18] sm:$0xf] %v6206_v41  ;;  %1163 = vmatpush.bf16.msra.mxu2 %v5864_v58  ;;  %vm6473_vm8 = vmor %vm1214_vm6, %vm1215_vm7 }
  0x17   : > { %v6042_v10 = vunpack.c.l.bf16 %v6041_v8  ;;  %v6043_v11 = vunpack.c.h.bf16 %v6041_v8  ;;  %v6160_v22 = vld [vmem:[#allocation2 + $0x8] sm:$0xff]   ;;  %519 = vst [vmem:[#allocation3 + $0x1c] sm:$0x1] %v6206_v41  ;;  %1061 = vmatpush.bf16.msra.mxu1 %v5873_v1  ;;  %v5878_v8 = vld [vmem:[%s7481_s5 + $0x98] sm:$0xff]  ;;  %vm6488_vm11 = vmor %vm864_vm9, %vm865_vm10 }
  0x18   : > { %655 = vmatpush.bf16.msra.mxu0 %v5851_v5  ;;  %v6046_v24 = vunpack.c.l.bf16 %v6160_v22  ;;  %v6047_v25 = vunpack.c.h.bf16 %v6160_v22  ;;  %v6161_v33 = vld [vmem:[#allocation2 + $0x10] sm:$0xff]   ;;  %520 = vst [vmem:[#allocation3 + $0x20] sm:$0xf] %v6206_v41  ;;  %v5872_v5 = vld [vmem:[%s7481_s5 + $0x68] sm:$0xff]  ;;  %v6453_v22 = vld [vmem:[%s7480_s4] ss:$0 sm:$0xff] }
  0x19   : > { %v552_v12 = vmul.f32 %v6320_v6, %v6042_v10  ;;  %v553_v13 = vmul.f32 %v6320_v6, %v6043_v11  ;;  %v6050_v35 = vunpack.c.l.bf16 %v6161_v33  ;;  %v6051_v36 = vunpack.c.h.bf16 %v6161_v33  ;;  %v6162_v47 = vld [vmem:[#allocation2 + $0x18] sm:$0xff]   ;;  %521 = vst [vmem:[#allocation3 + $0x24] sm:$0x1] %v6206_v41  ;;  %1332 = vmatpush.bf16.msra.mxu3 %v5880_v0  ;;  %v5860_v10 = vld [vmem:[%s7481_s5 + $0x8] sm:$0xff] }
  0x1a   : > { %v554_v27 = vmul.f32 %v6320_v6, %v6046_v24  ;;  %v555_v28 = vmul.f32 %v6320_v6, %v6047_v25  ;;  %522 = vst [vmem:[#allocation3 + $0x28] sm:$0xf] %v6206_v41  ;;  %v6054_v49 = vunpack.c.l.bf16 %v6162_v47  ;;  %v6055_v50 = vunpack.c.h.bf16 %v6162_v47  ;;  %1164 = vmatpush.bf16.msra.mxu2 %v5863_v62  ;;  %v5890_v11 = vld [vmem:[%s7481_s5 + $0xd8] sm:$0xff]  ;;  %v1190_v47 = vld [vmem:[#allocation3] sm:$0xe] }
  0x1b   : > { %v564_v16 = vadd.f32 %v6331_v14, %v552_v12  ;;  %v565_v17 = vadd.f32 %v6331_v14, %v553_v13  ;;  %v556_v37 = vmul.f32 %v6320_v6, %v6050_v35  ;;  %v557_v38 = vmul.f32 %v6320_v6, %v6051_v36  ;;  %523 = vst [vmem:[#allocation3 + $0x2c] sm:$0x1] %v6206_v41  ;;  %v5877_v12 = vld [vmem:[%s7481_s5 + $0x90] sm:$0xff]  ;;  %v5870_v13 = vld [vmem:[%s7481_s5 + $0x58] sm:$0xff]  ;;  %v781_v35 = vld [vmem:[#allocation3 + $0x8] sm:$0xf] }
  0x1c   : > { %656 = vmatpush.bf16.msra.mxu0 %v5850_v7  ;;  %v566_v29 = vadd.f32 %v6331_v14, %v554_v27  ;;  %v567_v30 = vadd.f32 %v6331_v14, %v555_v28  ;;  %524 = vst [vmem:[#allocation3 + $0x30] sm:$0xf] %v6206_v41  ;;  %v558_v51 = vmul.f32 %v6320_v6, %v6054_v49  ;;  %v5891_v7 = vld [vmem:[%s7481_s5 + $0xe0] sm:$0xff]  ;;  %v790_v58 = vld [vmem:[#allocation3 + $0x10] sm:$0xf] }
  0x1d   : > { %v572_v19 = vmax.f32 %v564_v16, 0.0  ;;  %v573_v20 = vmax.f32 %v565_v17, 0.0  ;;  %v568_v43 = vadd.f32 %v6331_v14, %v556_v37  ;;  %v569_v44 = vadd.f32 %v6331_v14, %v557_v38  ;;  %525 = vst [vmem:[#allocation3 + $0x34] sm:$0x1] %v6206_v41  ;;  %1333 = vmatpush.bf16.msra.mxu3 %v5879_v4  ;;  %1062 = vmatpush.bf16.msra.mxu1 %v5872_v5  ;;  %v5876_v16 = vld [vmem:[%s7481_s5 + $0x88] sm:$0xff]  ;;  %v5869_v17 = vld [vmem:[%s7481_s5 + $0x50] sm:$0xff] }
  0x1e   : > { %v574_v31 = vmax.f32 %v566_v29, 0.0  ;;  %v575_v32 = vmax.f32 %v567_v30, 0.0  ;;  %526 = vst [vmem:[#allocation3 + $0x38] sm:$0xf] %v6206_v41  ;;  %v559_v52 = vmul.f32 %v6320_v6, %v6055_v50  ;;  %v570_v53 = vadd.f32 %v6331_v14, %v558_v51  ;;  %1165 = vmatpush.bf16.msra.mxu2 %v5862_v2  ;;  %v5861_v6 = vld [vmem:[%s7481_s5 + $0x10] sm:$0xff] }
  0x1f   : > { %v580_v23 = vpack.c.bf16 %v573_v20, %v572_v19  ;;  %v576_v45 = vmax.f32 %v568_v43, 0.0  ;;  %v577_v46 = vmax.f32 %v569_v44, 0.0  ;;  %527 = vst [vmem:[#allocation3 + $0x3c] sm:$0x1] %v6206_v41  ;;  %v5875_v19 = vld [vmem:[%s7481_s5 + $0x80] sm:$0xff]  ;;  %v5868_v20 = vld [vmem:[%s7481_s5 + $0x48] sm:$0xff] }
  0x20   : > { %657 = vmatpush.bf16.msra.mxu0 %v5849_v15  ;;  %v581_v34 = vpack.c.bf16 %v575_v32, %v574_v31  ;;  %528 = vst [vmem:[#allocation3 + $0x40] sm:$0xf] %v6206_v41  ;;  %v571_v54 = vadd.f32 %v6331_v14, %v559_v52  ;;  %v578_v55 = vmax.f32 %v570_v53, 0.0  ;;  %v5859_v14 = vld [vmem:[%s7481_s5] sm:$0xff]  ;;  %v5889_v15 = vld [vmem:[%s7481_s5 + $0xd0] sm:$0xff]  ;;  %v4894_v50 = vrot.slane %v1190_v47, 9 }
  0x21   : > { %v582_v48 = vpack.c.bf16 %v577_v46, %v576_v45  ;;  %529 = vst [vmem:[#allocation3 + $0x44] sm:$0x1] %v6206_v41  ;;  %1334 = vmatpush.bf16.msra.mxu3 %v5878_v8  ;;  %1063 = vmatpush.bf16.msra.mxu1 %v5871_v9  ;;  %v787_v37 = vld [vmem:[#allocation3 + $0xc] sm:$0x1]  ;;  %v856_v46 = vld [vmem:[#allocation3 + $0x4] sm:$0x1] }
  0x22   : > { %530 = vst [vmem:[#allocation3 + $0x48] sm:$0xf] %v6206_v41  ;;  %v579_v56 = vmax.f32 %v571_v54, 0.0  ;;  %1166 = vmatpush.bf16.msra.mxu2 %v5861_v6  ;;  %v1219_v51 = vrot.slane %v856_v46, 5  ;;  %v877_v2 = vshll.u32 %v856_v46, 16 }
  0x23   : > { %531 = vst [vmem:[#allocation3 + $0x4c] sm:$0x1] %v6206_v41 }
  0x24   : > { %658 = vmatpush.bf16.msra.mxu0 %v5848_v18  ;;  %v583_v57 = vpack.c.bf16 %v579_v56, %v578_v55  ;;  %v5888_v18 = vld [vmem:[%s7481_s5 + $0xc8] sm:$0xff]  ;;  %v1220_v0 = vsel %vm6473_vm8, %v4894_v50, %v1219_v51 }
  0x25   : > { %1335 = vmatpush.bf16.msra.mxu3 %v5877_v12  ;;  %1064 = vmatpush.bf16.msra.mxu1 %v5870_v13 }
  0x26   : > { %1167 = vmatpush.bf16.msra.mxu2 %v5860_v10 }
  0x28   : > { %659 = vmatpush.bf16.msra.mxu0 %v5847_v21  ;;  %v5887_v21 = vld [vmem:[%s7481_s5 + $0xc0] sm:$0xff] }
  0x29   : > { %1336 = vmatpush.bf16.msra.mxu3 %v5876_v16  ;;  %1065 = vmatpush.bf16.msra.mxu1 %v5869_v17 }
  0x2a   : > { %1168 = vmatpush.bf16.msra.mxu2 %v5859_v14 }
  0x2b   : > { %660 = vmatmul.bf16.vlgmr.msra.gmra.mxu0 %v580_v23  ;;  %v5867_v23 = vld [vmem:[%s7481_s5 + $0x40] sm:$0xff] }
  0x2c   : > { %1464 = vmatpush.bf16.msrb.mxu0 %v5894_v59  ;;  %v793_v59 = vld [vmem:[#allocation3 + $0x14] sm:$0x1] }
  0x2d   : > { %1337 = vmatpush.bf16.msra.mxu3 %v5875_v19  ;;  %1066 = vmatpush.bf16.msra.mxu1 %v5868_v20 }
  0x30   : > { %1465 = vmatpush.bf16.msrb.mxu0 %v5893_v63  ;;  %v4848_v63 = vld [vmem:[#allocation3] sm:$0xf] }
  0x31   : > { %1067 = vmatpush.bf16.msra.mxu1 %v5867_v23 }
  0x34   : > { %1466 = vmatpush.bf16.msrb.mxu0 %v5892_v3 }
  0x38   : > { %1467 = vmatpush.bf16.msrb.mxu0 %v5891_v7 }
  0x3b   : > { %665 = vmatmul.bf16.gmra.mxu0 %v581_v34  ;;  %v832_v34 = vld [vmem:[#allocation3] sm:$0xf] }
  0x3c   : > { %1468 = vmatpush.bf16.msrb.mxu0 %v5890_v11  ;;  %v868_v41 = vshrl.u32 %v832_v34, 16  ;;  %v871_v42 = vshll.u32 %v832_v34, 16 }
  0x3e   : > { %v870_v52 = vrot.slane %v868_v41, 4  ;;  %v873_v53 = vrot.slane %v871_v42, 5 }
  0x40   : > { %1469 = vmatpush.bf16.msrb.mxu0 %v5889_v15  ;;  %v874_v1 = vor.u32 %v873_v53, %v870_v52  ;;  %v1266_v15 = vunpack.c.l.b16 %v1220_v0 }
  0x42   : > { %v875_v17 = vrot.slane %v874_v1, 4 }
  0x44   : > { %1470 = vmatpush.bf16.msrb.mxu0 %v5888_v18  ;;  %v879_v18 = vrot.slane %v877_v2, 5 }
  0x48   : > { %1471 = vmatpush.bf16.msrb.mxu0 %v5887_v21 }
  0x4b   : > { %670 = vmatmul.bf16.gmra.mxu0 %v582_v48 }
  0x5b   : > { %675 = vmatmul.bf16.gmra.mxu0 %v583_v57 }
  0xa8   : > { %v661_v24 = vpop.f32.mrf.mxu0 }
  0xa9   : > { %v662_v25 = vadd.f32 %v6453_v22, %v661_v24  ;;  %v796_v24 = vld [vmem:[#allocation3 + $0x18] sm:$0xf] }
  0xab   : > { %v681_v26 = vmax.f32 %v662_v25, 0.0  ;;  %v799_v25 = vld [vmem:[#allocation3 + $0x1c] sm:$0x1] }
  0xad   : > { %v689_v27 = vpack.c.bf16 %v681_v26, %v681_v26 }
  0xaf   : > { %v698_v28 = vshrl.u32 %v689_v27, 16  ;;  %v701_v31 = vshll.u32 %v689_v27, 16 }
  0xb0   : > { %v663_v29 = vpop.f32.mrf.mxu0 }
  0xb1   : > { %v700_v30 = vrot.slane %v698_v28, 7  ;;  %v664_v33 = vadd.f32 %v6453_v22, %v663_v29 }
  0xb3   : > { %v703_v38 = vor.u32 %v701_v31, %v700_v30  ;;  %v704_v39 = vrot.slane %v700_v30, 4  ;;  %v682_v40 = vmax.f32 %v664_v33, 0.0 }
  0xb5   : > { %v782_v43 = vsel %vm6459_vm4, %v703_v38, %v781_v35  ;;  %v788_v44 = vsel %vm6464_vm5, %v704_v39, %v787_v37  ;;  %v690_v45 = vpack.c.bf16 %v682_v40, %v682_v40  ;;  %v5910_v38 = vld [vmem:[%s7481_s5 + $0x178] sm:$0xff] }
  0xb6   : > { %783 = vst [vmem:[#allocation3 + $0x8] sm:$0xf] %v782_v43  ;;  %1884 = vmatpush.bf16.msrb.mxu2 %v5910_v38 }
  0xb7   : > { %789 = vst [vmem:[#allocation3 + $0xc] sm:$0x1] %v788_v44  ;;  %v706_v48 = vshrl.u32 %v690_v45, 16  ;;  %v709_v55 = vshll.u32 %v690_v45, 16  ;;  %v880_v44 = vsel %vm6488_vm11, %v875_v17, %v879_v18 }
  0xb8   : > { %v666_v49 = vpop.f32.mrf.mxu0  ;;  %v996_v53 = vunpack.c.l.b16 %v880_v44  ;;  %v5920_v44 = vld [vmem:[%s7481_s5 + $0x1a8] sm:$0xff] }
  0xb9   : > { %v708_v54 = vrot.slane %v706_v48, 7  ;;  %v667_v56 = vadd.f32 %v6453_v22, %v666_v49 }
  0xbb   : > { %v711_v60 = vor.u32 %v709_v55, %v708_v54  ;;  %v712_v61 = vrot.slane %v708_v54, 4  ;;  %v683_v62 = vmax.f32 %v667_v56, 0.0  ;;  %v5909_v55 = vld [vmem:[%s7481_s5 + $0x170] sm:$0xff] }
  0xbc   : > { %1885 = vmatpush.bf16.msrb.mxu2 %v5909_v55  ;;  %v5906_v55 = vld [vmem:[%s7481_s5 + $0x158] sm:$0xff] }
  0xbd   : > { %v791_v3 = vsel %vm6459_vm4, %v711_v60, %v790_v58  ;;  %v794_v4 = vsel %vm6464_vm5, %v712_v61, %v793_v59  ;;  %v691_v5 = vpack.c.bf16 %v683_v62, %v683_v62  ;;  %v5855_v6 = vld [vmem:[#allocation3 + $0x4] sm:$0xf0]  ;;  %v802_v59 = vld [vmem:[#allocation3 + $0x20] sm:$0xf]  ;;  %v5922_v62 = vld [vmem:[%s7481_s5 + $0x1b8] sm:$0xff] }
  0xbe   : > { %v1191_v7 = vld [vmem:[#allocation3 + $0x8] sm:$0xe]  ;;  %792 = vst [vmem:[#allocation3 + $0x10] sm:$0xf] %v791_v3  ;;  %v4849_v8 = vor.u32 %v5855_v6, %v4848_v63  ;;  %v857_v9 = vld [vmem:[#allocation3 + $0xc] sm:$0x1]  ;;  %2019 = vmatpush.bf16.msrb.mxu3 %v5922_v62 }
  0xbf   : > { %v4895_v10 = vrot.slane %v1191_v7, 9  ;;  %795 = vst [vmem:[#allocation3 + $0x14] sm:$0x1] %v794_v4  ;;  %v714_v11 = vshrl.u32 %v691_v5, 16  ;;  %v1223_v12 = vrot.slane %v857_v9, 5  ;;  %v717_v13 = vshll.u32 %v691_v5, 16 }
  0xc0   : > { %v668_v14 = vpop.f32.mrf.mxu0  ;;  %1169 = vmatmul.bf16.vlgmr.msra.gmra.mxu2 %v4849_v8  ;;  %v833_v16 = vld [vmem:[#allocation3 + $0x8] sm:$0xf]  ;;  %v891_v37 = vshll.u32 %v857_v9, 16  ;;  %v805_v63 = vld [vmem:[#allocation3 + $0x24] sm:$0x1] }
  0xc1   : > { %v716_v19 = vrot.slane %v714_v11, 7  ;;  %v669_v20 = vadd.f32 %v6453_v22, %v668_v14  ;;  %v1224_v21 = vsel %vm6473_vm8, %v4895_v10, %v1223_v12  ;;  %v882_v23 = vshrl.u32 %v833_v16, 16  ;;  %v4968_v42 = vld [vmem:[#allocation3 + $0x8] sm:$0xf]  ;;  %v5930_v12 = vld [vmem:[%s7481_s5 + $0x1f8] sm:$0xff] }
  0xc2   : > { %v1267_v26 = vunpack.c.l.b16 %v1224_v21  ;;  %v885_v28 = vshll.u32 %v833_v16, 16  ;;  %v893_v52 = vrot.slane %v891_v37, 5  ;;  %v5908_v11 = vld [vmem:[%s7481_s5 + $0x168] sm:$0xff]  ;;  %2265 = vmatpush.bf16.msra.mxu0 %v5930_v12  ;;  %v5902_v37 = vld [vmem:[%s7481_s5 + $0x138] sm:$0xff] }
  0xc3   : > { %v719_v29 = vor.u32 %v717_v13, %v716_v19  ;;  %v720_v30 = vrot.slane %v716_v19, 4  ;;  %v684_v31 = vmax.f32 %v669_v20, 0.0  ;;  %v884_v33 = vrot.slane %v882_v23, 4  ;;  %1886 = vmatpush.bf16.msrb.mxu2 %v5908_v11  ;;  %1710 = vmatpush.bf16.msrb.mxu1 %v5902_v37  ;;  %v5904_v37 = vld [vmem:[%s7481_s5 + $0x148] sm:$0xff] }
  0xc4   : > { %v1274_v34 = vpack.c.b16 %v1267_v26, %v1266_v15  ;;  %v887_v35 = vrot.slane %v885_v28, 5 }
  0xc5   : > { %v797_v39 = vsel %vm6459_vm4, %v719_v29, %v796_v24  ;;  %v800_v40 = vsel %vm6464_vm5, %v720_v30, %v799_v25  ;;  %v692_v41 = vpack.c.bf16 %v684_v31, %v684_v31  ;;  %v5883_v43 = vld [vmem:[#allocation3 + $0xc] sm:$0xf0]  ;;  %v808_v31 = vld [vmem:[#allocation3 + $0x28] sm:$0xf] }
  0xc6   : > { %798 = vst [vmem:[#allocation3 + $0x18] sm:$0xf] %v797_v39  ;;  %1338 = vmatmul.bf16.vlgmr.msra.gmra.mxu3 %v1274_v34  ;;  %v4969_v45 = vor.u32 %v5883_v43, %v4968_v42  ;;  %v888_v46 = vor.u32 %v887_v35, %v884_v33  ;;  %v1192_v47 = vld [vmem:[#allocation3 + $0x10] sm:$0xe]  ;;  %v6501_v49 = vld [vmem:[#allocation3 + $0x14] sm:$0x1] }
  0xc7   : > { %801 = vst [vmem:[#allocation3 + $0x1c] sm:$0x1] %v800_v40  ;;  %v722_v48 = vshrl.u32 %v692_v41, 16  ;;  %v834_v54 = vld [vmem:[#allocation3 + $0x10] sm:$0xf]  ;;  %v725_v58 = vshll.u32 %v692_v41, 16 }
  0xc8   : > { %v671_v50 = vpop.f32.mrf.mxu0  ;;  %1472 = vmatmul.bf16.vlgmr.msrb.gmra.mxu0 %v4969_v45  ;;  %v889_v51 = vrot.slane %v888_v46, 4  ;;  %v896_v61 = vshrl.u32 %v834_v54, 16  ;;  %v4896_v1 = vrot.slane %v1192_v47, 9  ;;  %v1227_v2 = vrot.slane %v6501_v49, 5  ;;  %v4852_v17 = vld [vmem:[#allocation3 + $0x10] sm:$0xf] }
  0xc9   : > { %v724_v56 = vrot.slane %v722_v48, 7  ;;  %v672_v60 = vadd.f32 %v6453_v22, %v671_v50  ;;  %v899_v3 = vshll.u32 %v834_v54, 16  ;;  %v905_v10 = vshll.u32 %v6501_v49, 16  ;;  %v5921_v25 = vld [vmem:[%s7481_s5 + $0x1b0] sm:$0xff]  ;;  %v5907_v42 = vld [vmem:[%s7481_s5 + $0x160] sm:$0xff] }
  0xca   : > { %v894_v0 = vsel %vm6488_vm11, %v889_v51, %v893_v52  ;;  %v898_v8 = vrot.slane %v896_v61, 4  ;;  %v1228_v28 = vsel %vm6473_vm8, %v4896_v1, %v1227_v2  ;;  %2020 = vmatpush.bf16.msrb.mxu3 %v5921_v25  ;;  %v5929_v43 = vld [vmem:[%s7481_s5 + $0x1f0] sm:$0xff]  ;;  %v811_v45 = vld [vmem:[#allocation3 + $0x2c] sm:$0x1]  ;;  %1887 = vmatpush.bf16.msrb.mxu2 %v5907_v42  ;;  %v5919_v61 = vld [vmem:[%s7481_s5 + $0x1a0] sm:$0xff] }
  0xcb   : > { %v727_v4 = vor.u32 %v725_v58, %v724_v56  ;;  %v728_v5 = vrot.slane %v724_v56, 4  ;;  %v685_v6 = vmax.f32 %v672_v60, 0.0  ;;  %v997_v7 = vunpack.c.l.b16 %v894_v0  ;;  %v5901_v50 = vld [vmem:[%s7481_s5 + $0x130] sm:$0xff]  ;;  %2266 = vmatpush.bf16.msra.mxu0 %v5929_v43  ;;  %v5928_v56 = vld [vmem:[%s7481_s5 + $0x1e8] sm:$0xff] }
  0xcc   : > { %v901_v9 = vrot.slane %v899_v3, 5  ;;  %v1268_v46 = vunpack.c.l.b16 %v1228_v28  ;;  %v907_v48 = vrot.slane %v905_v10, 5  ;;  %1711 = vmatpush.bf16.msrb.mxu1 %v5901_v50  ;;  %v5905_v10 = vld [vmem:[%s7481_s5 + $0x150] sm:$0xff] }
  0xcd   : > { %v803_v13 = vsel %vm6459_vm4, %v727_v4, %v802_v59  ;;  %v806_v14 = vsel %vm6464_vm5, %v728_v5, %v805_v63  ;;  %v693_v15 = vpack.c.bf16 %v685_v6, %v685_v6  ;;  %v1004_v16 = vpack.c.b16 %v997_v7, %v996_v53  ;;  %v5856_v18 = vld [vmem:[#allocation3 + $0x14] sm:$0xf0]  ;;  %v5900_v7 = vld [vmem:[%s7481_s5 + $0x128] sm:$0xff] }
  0xce   : > { %v1193_v19 = vld [vmem:[#allocation3 + $0x18] sm:$0xe]  ;;  %804 = vst [vmem:[#allocation3 + $0x20] sm:$0xf] %v803_v13  ;;  %v4853_v20 = vor.u32 %v5856_v18, %v4852_v17  ;;  %v6524_v21 = vld [vmem:[#allocation3 + $0x1c] sm:$0x1]  ;;  %v902_v24 = vor.u32 %v901_v9, %v898_v8  ;;  %2021 = vmatpush.bf16.msrb.mxu3 %v5920_v44  ;;  %1888 = vmatpush.bf16.msrb.mxu2 %v5906_v55 }
  0xcf   : > { %v4897_v23 = vrot.slane %v1193_v19, 9  ;;  %807 = vst [vmem:[#allocation3 + $0x24] sm:$0x1] %v806_v14  ;;  %v730_v26 = vshrl.u32 %v693_v15, 16  ;;  %1068 = vmatmul.bf16.vlgmr.msra.gmra.mxu1 %v1004_v16  ;;  %v1231_v29 = vrot.slane %v6524_v21, 5  ;;  %v733_v30 = vshll.u32 %v693_v15, 16  ;;  %2267 = vmatpush.bf16.msra.mxu0 %v5928_v56 }
  0xd0   : > { %v673_v33 = vpop.f32.mrf.mxu0  ;;  %1174 = vmatmul.bf16.gmra.mxu2 %v4853_v20  ;;  %v835_v34 = vld [vmem:[#allocation3 + $0x18] sm:$0xf]  ;;  %v903_v35 = vrot.slane %v902_v24, 4  ;;  %v919_v60 = vshll.u32 %v6524_v21, 16  ;;  %v5927_v16 = vld [vmem:[%s7481_s5 + $0x1e0] sm:$0xff]  ;;  %1712 = vmatpush.bf16.msrb.mxu1 %v5900_v7 }
  0xd1   : > { %v732_v38 = vrot.slane %v730_v26, 7  ;;  %v674_v39 = vadd.f32 %v6453_v22, %v673_v33  ;;  %v1232_v40 = vsel %vm6473_vm8, %v4897_v23, %v1231_v29  ;;  %v910_v41 = vshrl.u32 %v835_v34, 16  ;;  %v4972_v1 = vld [vmem:[#allocation3 + $0x18] sm:$0xf]  ;;  %v814_v20 = vld [vmem:[#allocation3 + $0x30] sm:$0xf] }
  0xd2   : > { %v1269_v47 = vunpack.c.l.b16 %v1232_v40  ;;  %v913_v49 = vshll.u32 %v835_v34, 16  ;;  %v908_v3 = vsel %vm6488_vm11, %v903_v35, %v907_v48  ;;  %v921_v13 = vrot.slane %v919_v60, 5  ;;  %2022 = vmatpush.bf16.msrb.mxu3 %v5919_v61  ;;  %v5918_v17 = vld [vmem:[%s7481_s5 + $0x198] sm:$0xff]  ;;  %v817_v24 = vld [vmem:[#allocation3 + $0x34] sm:$0x1]  ;;  %1889 = vmatpush.bf16.msrb.mxu2 %v5905_v10 }
  0xd3   : > { %v735_v51 = vor.u32 %v733_v30, %v732_v38  ;;  %v736_v52 = vrot.slane %v732_v38, 4  ;;  %v686_v53 = vmax.f32 %v674_v39, 0.0  ;;  %v912_v54 = vrot.slane %v910_v41, 4  ;;  %v5899_v30 = vld [vmem:[%s7481_s5 + $0x120] sm:$0xff]  ;;  %2268 = vmatpush.bf16.msra.mxu0 %v5927_v16  ;;  %v5926_v41 = vld [vmem:[%s7481_s5 + $0x1d8] sm:$0xff]  ;;  %v5917_v48 = vld [vmem:[%s7481_s5 + $0x190] sm:$0xff] }
  0xd4   : > { %v1275_v58 = vpack.c.b16 %v1269_v47, %v1268_v46  ;;  %v915_v59 = vrot.slane %v913_v49, 5  ;;  %v998_v14 = vunpack.c.l.b16 %v908_v3  ;;  %1713 = vmatpush.bf16.msrb.mxu1 %v5899_v30  ;;  %v5898_v61 = vld [vmem:[%s7481_s5 + $0x118] sm:$0xff] }
  0xd5   : > { %v809_v62 = vsel %vm6459_vm4, %v735_v51, %v808_v31  ;;  %v812_v63 = vsel %vm6464_vm5, %v736_v52, %v811_v45  ;;  %v694_v0 = vpack.c.bf16 %v686_v53, %v686_v53  ;;  %v5884_v2 = vld [vmem:[#allocation3 + $0x1c] sm:$0xf0] }
  0xd6   : > { %810 = vst [vmem:[#allocation3 + $0x28] sm:$0xf] %v809_v62  ;;  %1343 = vmatmul.bf16.gmra.mxu3 %v1275_v58  ;;  %v4973_v4 = vor.u32 %v5884_v2, %v4972_v1  ;;  %v916_v5 = vor.u32 %v915_v59, %v912_v54  ;;  %v1194_v6 = vld [vmem:[#allocation3 + $0x20] sm:$0xe]  ;;  %v6569_v9 = vld [vmem:[#allocation3 + $0x24] sm:$0x1]  ;;  %1890 = vmatpush.bf16.msrb.mxu2 %v5904_v37 }
  0xd7   : > { %813 = vst [vmem:[#allocation3 + $0x2c] sm:$0x1] %v812_v63  ;;  %v738_v8 = vshrl.u32 %v694_v0, 16  ;;  %v836_v15 = vld [vmem:[#allocation3 + $0x20] sm:$0xf]  ;;  %v741_v19 = vshll.u32 %v694_v0, 16  ;;  %2023 = vmatpush.bf16.msrb.mxu3 %v5918_v17  ;;  %2269 = vmatpush.bf16.msra.mxu0 %v5926_v41 }
  0xd8   : > { %v676_v11 = vpop.f32.mrf.mxu0  ;;  %1477 = vmatmul.bf16.gmra.mxu0 %v4973_v4  ;;  %v917_v12 = vrot.slane %v916_v5, 4  ;;  %v924_v23 = vshrl.u32 %v836_v15, 16  ;;  %v4898_v26 = vrot.slane %v1194_v6, 9  ;;  %v1235_v28 = vrot.slane %v6569_v9, 5  ;;  %v4856_v38 = vld [vmem:[#allocation3 + $0x20] sm:$0xf]  ;;  %1714 = vmatpush.bf16.msrb.mxu1 %v5898_v61 }
  0xd9   : > { %v740_v18 = vrot.slane %v738_v8, 7  ;;  %v677_v21 = vadd.f32 %v6453_v22, %v676_v11  ;;  %v927_v29 = vshll.u32 %v836_v15, 16  ;;  %v933_v60 = vshll.u32 %v6569_v9, 16  ;;  %v5903_v62 = vld [vmem:[%s7481_s5 + $0x140] sm:$0xff]  ;;  %v820_v0 = vld [vmem:[#allocation3 + $0x38] sm:$0xf] }
  0xda   : > { %v922_v25 = vsel %vm6488_vm11, %v917_v12, %v921_v13  ;;  %v926_v39 = vrot.slane %v924_v23, 4  ;;  %v1236_v54 = vsel %vm6473_vm8, %v4898_v26, %v1235_v28  ;;  %v5925_v4 = vld [vmem:[%s7481_s5 + $0x1d0] sm:$0xff]  ;;  %v5916_v5 = vld [vmem:[%s7481_s5 + $0x188] sm:$0xff]  ;;  %v823_v6 = vld [vmem:[#allocation3 + $0x3c] sm:$0x1]  ;;  %1891 = vmatpush.bf16.msrb.mxu2 %v5903_v62 }
  0xdb   : > { %v743_v31 = vor.u32 %v741_v19, %v740_v18  ;;  %v744_v33 = vrot.slane %v740_v18, 4  ;;  %v687_v34 = vmax.f32 %v677_v21, 0.0  ;;  %v999_v35 = vunpack.c.l.b16 %v922_v25  ;;  %2024 = vmatpush.bf16.msrb.mxu3 %v5917_v48  ;;  %2270 = vmatpush.bf16.msra.mxu0 %v5925_v4  ;;  %v5924_v25 = vld [vmem:[%s7481_s5 + $0x1c8] sm:$0xff]  ;;  %v5915_v26 = vld [vmem:[%s7481_s5 + $0x180] sm:$0xff]  ;;  %v6642_v37 = vld [vmem:[#allocation3 + $0x14] sm:$0x1] }
  0xdc   : > { %v929_v40 = vrot.slane %v927_v29, 5  ;;  %v1270_v7 = vunpack.c.l.b16 %v1236_v54  ;;  %v5923_v48 = vld [vmem:[%s7481_s5 + $0x1c0] sm:$0xff] }
  0xdd   : > { %v815_v42 = vsel %vm6459_vm4, %v743_v31, %v814_v20  ;;  %v818_v43 = vsel %vm6464_vm5, %v744_v33, %v817_v24  ;;  %v695_v44 = vpack.c.bf16 %v687_v34, %v687_v34  ;;  %v1005_v45 = vpack.c.b16 %v999_v35, %v998_v14  ;;  %v5857_v46 = vld [vmem:[#allocation3 + $0x24] sm:$0xf0]  ;;  %v5895_v54 = vld [vmem:[%s7481_s5 + $0x100] sm:$0xff] }
  0xde   : > { %v1195_v47 = vld [vmem:[#allocation3 + $0x28] sm:$0xe]  ;;  %816 = vst [vmem:[#allocation3 + $0x30] sm:$0xf] %v815_v42  ;;  %v4857_v49 = vor.u32 %v5857_v46, %v4856_v38  ;;  %v6600_v50 = vld [vmem:[#allocation3 + $0x2c] sm:$0x1]  ;;  %v930_v52 = vor.u32 %v929_v40, %v926_v39 }
  0xdf   : > { %v4899_v51 = vrot.slane %v1195_v47, 9  ;;  %819 = vst [vmem:[#allocation3 + $0x34] sm:$0x1] %v818_v43  ;;  %v746_v53 = vshrl.u32 %v695_v44, 16  ;;  %1073 = vmatmul.bf16.gmra.mxu1 %v1005_v45  ;;  %v1239_v55 = vrot.slane %v6600_v50, 5  ;;  %v749_v56 = vshll.u32 %v695_v44, 16  ;;  %2025 = vmatpush.bf16.msrb.mxu3 %v5916_v5 }
  0xe0   : > { %v678_v58 = vpop.f32.mrf.mxu0  ;;  %1179 = vmatmul.bf16.gmra.mxu2 %v4857_v49  ;;  %v837_v59 = vld [vmem:[#allocation3 + $0x28] sm:$0xf]  ;;  %v931_v9 = vrot.slane %v930_v52, 4  ;;  %v947_v18 = vshll.u32 %v6600_v50, 16  ;;  %v935_v24 = vrot.slane %v933_v60, 5  ;;  %2271 = vmatpush.bf16.msra.mxu0 %v5924_v25 }
  0xe1   : > { %v748_v63 = vrot.slane %v746_v53, 7  ;;  %v679_v1 = vadd.f32 %v6453_v22, %v678_v58  ;;  %v1240_v2 = vsel %vm6473_vm8, %v4899_v51, %v1239_v55  ;;  %v938_v3 = vshrl.u32 %v837_v59, 16  ;;  %v5897_v22 = vld [vmem:[%s7481_s5 + $0x110] sm:$0xff]  ;;  %v4976_v16 = vld [vmem:[#allocation3 + $0x28] sm:$0xf] }
  0xe2   : > { %v1271_v8 = vunpack.c.l.b16 %v1240_v2  ;;  %v941_v10 = vshll.u32 %v837_v59, 16  ;;  %1715 = vmatpush.bf16.msrb.mxu1 %v5897_v22  ;;  %v5896_v31 = vld [vmem:[%s7481_s5 + $0x108] sm:$0xff]  ;;  %v936_v34 = vsel %vm6488_vm11, %v931_v9, %v935_v24  ;;  %v6644_v38 = vld [vmem:[#allocation3 + $0x10] sm:$0xe]  ;;  %v826_v39 = vld [vmem:[#allocation3 + $0x40] sm:$0xf] }
  0xe3   : > { %v751_v11 = vor.u32 %v749_v56, %v748_v63  ;;  %v752_v12 = vrot.slane %v748_v63, 4  ;;  %v688_v13 = vmax.f32 %v679_v1, 0.0  ;;  %v940_v14 = vrot.slane %v938_v3, 4  ;;  %v2058_v43 = vld [vmem:[#allocation3 + $0x18] sm:$0xf]  ;;  %2026 = vmatpush.bf16.msrb.mxu3 %v5915_v26 }
  0xe4   : > { %v1276_v15 = vpack.c.b16 %v1271_v8, %v1270_v7  ;;  %v943_v17 = vrot.slane %v941_v10, 5  ;;  %v949_v41 = vrot.slane %v947_v18, 5  ;;  %v829_v49 = vld [vmem:[#allocation3 + $0x44] sm:$0x1]  ;;  %v1000_v51 = vunpack.c.l.b16 %v936_v34  ;;  %v2056_v60 = vld [vmem:[#allocation3 + $0x10] sm:$0xf]  ;;  %2272 = vmatpush.bf16.msra.mxu0 %v5923_v48 }
  0xe5   : > { %v821_v19 = vsel %vm6459_vm4, %v751_v11, %v820_v0  ;;  %v824_v20 = vsel %vm6464_vm5, %v752_v12, %v823_v6  ;;  %v696_v21 = vpack.c.bf16 %v688_v13, %v688_v13  ;;  %v5885_v23 = vld [vmem:[#allocation3 + $0x2c] sm:$0xf0]  ;;  %v5063_v63 = vrot.slane %v6644_v38, 9  ;;  %v6661_v11 = vld [vmem:[#allocation3 + $0xc] sm:$0x1] }
  0xe6   : > { %822 = vst [vmem:[#allocation3 + $0x38] sm:$0xf] %v821_v19  ;;  %1348 = vmatmul.bf16.gmra.mxu3 %v1276_v15  ;;  %v4977_v28 = vor.u32 %v5885_v23, %v4976_v16  ;;  %v944_v29 = vor.u32 %v943_v17, %v940_v14  ;;  %v1196_v30 = vld [vmem:[#allocation3 + $0x30] sm:$0xe]  ;;  %v6640_v35 = vld [vmem:[#allocation3 + $0x34] sm:$0x1]  ;;  %1716 = vmatpush.bf16.msrb.mxu1 %v5896_v31 }
  0xe7   : > { %825 = vst [vmem:[#allocation3 + $0x3c] sm:$0x1] %v824_v20  ;;  %v754_v33 = vshrl.u32 %v696_v21, 16  ;;  %v838_v42 = vld [vmem:[#allocation3 + $0x30] sm:$0xf]  ;;  %v757_v45 = vshll.u32 %v696_v21, 16 }
  0xe8   : > { %1482 = vmatmul.bf16.gmra.mxu0 %v4977_v28  ;;  %v945_v40 = vrot.slane %v944_v29, 4  ;;  %v952_v46 = vshrl.u32 %v838_v42, 16  ;;  %v955_v47 = vshll.u32 %v838_v42, 16  ;;  %v4900_v52 = vrot.slane %v1196_v30, 9  ;;  %v4860_v61 = vld [vmem:[#allocation3 + $0x30] sm:$0xf] }
  0xe9   : > { %v756_v44 = vrot.slane %v754_v33, 7  ;;  %v1243_v53 = vrot.slane %v6640_v35, 5  ;;  %v1777_v0 = vrot.slane %v6642_v37, 5  ;;  %v2087_v1 = vshrl.u32 %v2058_v43, 16  ;;  %v1747_v19 = vld [vmem:[#allocation3 + $0x8] sm:$0xe] }
  0xea   : > { %v950_v50 = vsel %vm6488_vm11, %v945_v40, %v949_v41  ;;  %v954_v59 = vrot.slane %v952_v46, 4  ;;  %v957_v62 = vrot.slane %v955_v47, 5  ;;  %v2090_v7 = vshll.u32 %v2058_v43, 16  ;;  %1717 = vmatpush.bf16.msrb.mxu1 %v5895_v54  ;;  %v1503_v38 = vld [vmem:[#allocation3 + $0x10] sm:$0xf] }
  0xeb   : > { %v759_v55 = vor.u32 %v757_v45, %v756_v44  ;;  %v760_v56 = vrot.slane %v756_v44, 4  ;;  %v1001_v58 = vunpack.c.l.b16 %v950_v50  ;;  %v2073_v12 = vshrl.u32 %v2056_v60, 16  ;;  %v6669_v41 = vld [vmem:[#allocation3 + $0x1c] sm:$0x1]  ;;  %v1501_v44 = vld [vmem:[#allocation3 + $0x8] sm:$0xf] }
  0xec   : > { %v958_v22 = vor.u32 %v957_v62, %v954_v59  ;;  %v1244_v13 = vsel %vm6473_vm8, %v4900_v52, %v1243_v53  ;;  %v961_v16 = vshll.u32 %v6640_v35, 16  ;;  %v2076_v20 = vshll.u32 %v2056_v60, 16  ;;  %v6675_v53 = vld [vmem:[#allocation3 + $0x14] sm:$0x1] }
  0xed   : > { %v827_v2 = vsel %vm6459_vm4, %v759_v55, %v826_v39  ;;  %v830_v3 = vsel %vm6464_vm5, %v760_v56, %v829_v49  ;;  %v1006_v4 = vpack.c.b16 %v1001_v58, %v1000_v51  ;;  %v5858_v5 = vld [vmem:[#allocation3 + $0x34] sm:$0xf0]  ;;  %v2089_v21 = vrot.slane %v2087_v1, 4 }
  0xee   : > { %v1197_v6 = vld [vmem:[#allocation3 + $0x38] sm:$0xe]  ;;  %828 = vst [vmem:[#allocation3 + $0x40] sm:$0xf] %v827_v2  ;;  %v4861_v8 = vor.u32 %v5858_v5, %v4860_v61  ;;  %v863_v9 = vld [vmem:[#allocation3 + $0x3c] sm:$0x1]  ;;  %v1272_v28 = vunpack.c.l.b16 %v1244_v13  ;;  %v1778_v49 = vsel %vm6473_vm8, %v5063_v63, %v1777_v0 }
  0xef   : > { %v4901_v10 = vrot.slane %v1197_v6, 9  ;;  %831 = vst [vmem:[#allocation3 + $0x44] sm:$0x1] %v830_v3  ;;  %1078 = vmatmul.bf16.gmra.mxu1 %v1006_v4  ;;  %v1247_v14 = vrot.slane %v863_v9, 5  ;;  %v839_v15 = vld [vmem:[#allocation3 + $0x38] sm:$0xf]  ;;  %v1821_v1 = vunpack.c.l.b16 %v1778_v49 }
  0xf0   : > { %1184 = vmatmul.bf16.gmra.mxu2 %v4861_v8  ;;  %v966_v17 = vshrl.u32 %v839_v15, 16  ;;  %v969_v18 = vshll.u32 %v839_v15, 16  ;;  %v959_v24 = vrot.slane %v958_v22, 4  ;;  %v975_v25 = vshll.u32 %v863_v9, 16  ;;  %v4980_v45 = vld [vmem:[#allocation3 + $0x38] sm:$0xf] }
  0xf1   : > { %v1248_v23 = vsel %vm6473_vm8, %v4901_v10, %v1247_v14  ;;  %v2092_v26 = vrot.slane %v2090_v7, 5  ;;  %v963_v33 = vrot.slane %v961_v16, 5  ;;  %v5062_v34 = vrot.slane %v1747_v19, 9  ;;  %v2062_v10 = vld [vmem:[#allocation3 + $0x28] sm:$0xf] }
  0xf2   : > { %v1273_v29 = vunpack.c.l.b16 %v1248_v23  ;;  %v968_v30 = vrot.slane %v966_v17, 4  ;;  %v971_v31 = vrot.slane %v969_v18, 5  ;;  %v1773_v35 = vrot.slane %v6661_v11, 5  ;;  %v2060_v15 = vld [vmem:[#allocation3 + $0x20] sm:$0xf] }
  0xf3   : > { %v2075_v42 = vrot.slane %v2073_v12, 4  ;;  %v2078_v43 = vrot.slane %v2076_v20, 5  ;;  %v964_v47 = vsel %vm6488_vm11, %v959_v24, %v963_v33  ;;  %v977_v48 = vrot.slane %v975_v25, 5  ;;  %v6685_v18 = vld [vmem:[#allocation3 + $0x24] sm:$0x1] }
  0xf4   : > { %v1277_v39 = vpack.c.b16 %v1273_v29, %v1272_v28  ;;  %v972_v40 = vor.u32 %v971_v31, %v968_v30  ;;  %v2093_v50 = vor.u32 %v2092_v26, %v2089_v21  ;;  %v1532_v54 = vshrl.u32 %v1503_v38, 16  ;;  %v1750_v19 = vld [vmem:[#allocation3 + $0x20] sm:$0xe]  ;;  %v6687_v24 = vld [vmem:[#allocation3 + $0x1c] sm:$0x1] }
  0xf5   : > { %v5886_v46 = vld [vmem:[#allocation3 + $0x3c] sm:$0xf0]  ;;  %v1535_v55 = vshll.u32 %v1503_v38, 16  ;;  %v1518_v56 = vshrl.u32 %v1501_v44, 16  ;;  %v1521_v58 = vshll.u32 %v1501_v44, 16  ;;  %v1774_v60 = vsel %vm6473_vm8, %v5062_v34, %v1773_v35 }
  0xf6   : > { %1353 = vmatmul.bf16.gmra.mxu3 %v1277_v39  ;;  %v4981_v51 = vor.u32 %v5886_v46, %v4980_v45  ;;  %v973_v52 = vrot.slane %v972_v40, 4  ;;  %v2079_v61 = vor.u32 %v2078_v43, %v2075_v42  ;;  %v2096_v62 = vshll.u32 %v6669_v41, 16  ;;  %v1749_v28 = vld [vmem:[#allocation3 + $0x18] sm:$0xe]  ;;  %v5136_v39 = vld [vmem:[#allocation3 + $0x10] sm:$0xf] }
  0xf7   : > { %v1002_v63 = vunpack.c.l.b16 %v964_v47  ;;  %v2082_v2 = vshll.u32 %v6675_v53, 16  ;;  %v2094_v3 = vrot.slane %v2093_v50, 4  ;;  %v1534_v4 = vrot.slane %v1532_v54, 4  ;;  %v5911_v31 = vld [vmem:[#allocation3 + $0x14] sm:$0xf0] }
  0xf8   : > { %1487 = vmatmul.bf16.gmra.mxu0 %v4981_v51  ;;  %v978_v59 = vsel %vm6488_vm11, %v973_v52, %v977_v48  ;;  %v1537_v5 = vrot.slane %v1535_v55, 5  ;;  %v1820_v7 = vunpack.c.l.b16 %v1774_v60  ;;  %v1520_v8 = vrot.slane %v1518_v56, 4  ;;  %v6697_v55 = vld [vmem:[#allocation3 + $0x2c] sm:$0x1]  ;;  %v1505_v56 = vld [vmem:[#allocation3 + $0x18] sm:$0xf] }
  0xf9   : > { %v1003_v0 = vunpack.c.l.b16 %v978_v59  ;;  %v1523_v9 = vrot.slane %v1521_v58, 5  ;;  %v2080_v22 = vrot.slane %v2079_v61, 4  ;;  %v2098_v12 = vrot.slane %v2096_v62, 5  ;;  %v6701_v59 = vld [vmem:[#allocation3 + $0x24] sm:$0x1] }
  0xfa   : > { %v1828_v13 = vpack.c.b16 %v1821_v1, %v1820_v7  ;;  %v2084_v14 = vrot.slane %v2082_v2, 5  ;;  %v1538_v17 = vor.u32 %v1537_v5, %v1534_v4  ;;  %v2115_v20 = vshrl.u32 %v2062_v10, 16 }
  0xfb   : > { %v1007_v6 = vpack.c.b16 %v1003_v0, %v1002_v63  ;;  %v2099_v16 = vsel %vm6488_vm11, %v2094_v3, %v2098_v12  ;;  %v2118_v21 = vshll.u32 %v2062_v10, 16  ;;  %v1524_v23 = vor.u32 %v1523_v9, %v1520_v8 }
  0xfc   : > { %v2085_v25 = vsel %vm6488_vm11, %v2080_v22, %v2084_v14  ;;  %v1541_v26 = vshll.u32 %v6642_v37, 16  ;;  %v2101_v29 = vshrl.u32 %v2060_v15, 16  ;;  %v2104_v30 = vshll.u32 %v2060_v15, 16  ;;  %v1507_v37 = vld [vmem:[#allocation3 + $0x20] sm:$0xf] }
  0xfd   : > { %v2202_v33 = vunpack.c.l.b16 %v2099_v16  ;;  %v1527_v34 = vshll.u32 %v6661_v11, 16  ;;  %v5065_v35 = vrot.slane %v1750_v19, 9  ;;  %v1785_v38 = vrot.slane %v6685_v18, 5 }
  0xfe   : > { %v1539_v40 = vrot.slane %v1538_v17, 4  ;;  %v2117_v42 = vrot.slane %v2115_v20, 4  ;;  %v2120_v43 = vrot.slane %v2118_v21, 5  ;;  %v2201_v44 = vunpack.c.l.b16 %v2085_v25 }
  0xff   : > { %1083 = vmatmul.bf16.gmra.mxu1 %v1007_v6  ;;  %v1525_v45 = vrot.slane %v1524_v23, 4  ;;  %v5064_v46 = vrot.slane %v1749_v28, 9  ;;  %v1781_v47 = vrot.slane %v6687_v24, 5  ;;  %v5137_v48 = vor.u32 %v5911_v31, %v5136_v39  ;;  %v1752_v23 = vld [vmem:[#allocation3 + $0x30] sm:$0xe] }
 0x100   : > { %1892 = vmatmul.bf16.vlgmr.msrb.gmra.mxu2 %v1828_v13  ;;  %v1543_v49 = vrot.slane %v1541_v26, 5  ;;  %v2103_v50 = vrot.slane %v2101_v29, 4  ;;  %v2106_v51 = vrot.slane %v2104_v30, 5  ;;  %v2209_v52 = vpack.c.b16 %v2202_v33, %v2201_v44  ;;  %v2066_v13 = vld [vmem:[#allocation3 + $0x38] sm:$0xf] }
 0x101   : > { %v1529_v54 = vrot.slane %v1527_v34, 5  ;;  %v1786_v11 = vsel %vm6473_vm8, %v5065_v35, %v1785_v38  ;;  %v2121_v60 = vor.u32 %v2120_v43, %v2117_v42  ;;  %v1560_v61 = vshrl.u32 %v1507_v37, 16  ;;  %v6711_v28 = vld [vmem:[#allocation3 + $0x34] sm:$0x1]  ;;  %v2064_v29 = vld [vmem:[#allocation3 + $0x30] sm:$0xf] }
 0x102   : > { %v1544_v58 = vsel %vm6488_vm11, %v1539_v40, %v1543_v49  ;;  %v1563_v62 = vshll.u32 %v1507_v37, 16  ;;  %v1782_v0 = vsel %vm6473_vm8, %v5064_v46, %v1781_v47  ;;  %v2107_v1 = vor.u32 %v2106_v51, %v2103_v50  ;;  %v5938_v34 = vld [vmem:[%s7481_s5 + $0x238] sm:$0xff]  ;;  %v5912_v35 = vld [vmem:[#allocation3 + $0x24] sm:$0xf0]  ;;  %v6720_v42 = vld [vmem:[#allocation3 + $0x2c] sm:$0x1] }
 0x103   : > { %v1530_v63 = vsel %vm6488_vm11, %v1525_v45, %v1529_v54  ;;  %v2124_v2 = vshll.u32 %v6697_v55, 16  ;;  %v1546_v3 = vshrl.u32 %v1505_v56, 16  ;;  %v1549_v4 = vshll.u32 %v1505_v56, 16  ;;  %v1751_v45 = vld [vmem:[#allocation3 + $0x28] sm:$0xe]  ;;  %2439 = vmatpush.bf16.msra.mxu1 %v5938_v34  ;;  %v5937_v37 = vld [vmem:[%s7481_s5 + $0x230] sm:$0xff] }
 0x104   : > { %v1647_v5 = vunpack.c.l.b16 %v1544_v58  ;;  %v1823_v6 = vunpack.c.l.b16 %v1786_v11  ;;  %v2110_v7 = vshll.u32 %v6701_v59, 16  ;;  %v2122_v8 = vrot.slane %v2121_v60, 4  ;;  %v1511_v11 = vld [vmem:[#allocation3 + $0x30] sm:$0xf]  ;;  %v2068_v34 = vld [vmem:[#allocation3 + $0x40] sm:$0xf] }
 0x105   : > { %v1562_v9 = vrot.slane %v1560_v61, 4  ;;  %v1565_v10 = vrot.slane %v1563_v62, 5  ;;  %v1646_v22 = vunpack.c.l.b16 %v1530_v63  ;;  %v1822_v12 = vunpack.c.l.b16 %v1782_v0  ;;  %v6727_v62 = vld [vmem:[#allocation3 + $0x3c] sm:$0x1] }
 0x106   : > { %2027 = vmatmul.bf16.vlgmr.msrb.gmra.mxu3 %v5137_v48  ;;  %v2108_v14 = vrot.slane %v2107_v1, 4  ;;  %v2126_v15 = vrot.slane %v2124_v2, 5  ;;  %v1548_v16 = vrot.slane %v1546_v3, 4  ;;  %v1551_v17 = vrot.slane %v1549_v4, 5  ;;  %v5140_v48 = vld [vmem:[#allocation3 + $0x20] sm:$0xf] }
 0x107   : > { %v1654_v19 = vpack.c.b16 %v1647_v5, %v1646_v22  ;;  %v1829_v20 = vpack.c.b16 %v1823_v6, %v1822_v12  ;;  %v2112_v21 = vrot.slane %v2110_v7, 5  ;;  %v1566_v26 = vor.u32 %v1565_v10, %v1562_v9  ;;  %v1509_v3 = vld [vmem:[#allocation3 + $0x28] sm:$0xf]  ;;  %2440 = vmatpush.bf16.msra.mxu1 %v5937_v37  ;;  %v6736_v9 = vld [vmem:[#allocation3 + $0x34] sm:$0x1] }
 0x108   : > { %2273 = vmatmul.bf16.vlgmr.msra.gmra.mxu0 %v2209_v52  ;;  %v2127_v25 = vsel %vm6488_vm11, %v2122_v8, %v2126_v15  ;;  %v2143_v30 = vshrl.u32 %v2066_v13, 16  ;;  %v2146_v31 = vshll.u32 %v2066_v13, 16  ;;  %v1555_v33 = vshll.u32 %v6687_v24, 16  ;;  %v5936_v4 = vld [vmem:[%s7481_s5 + $0x228] sm:$0xff] }
 0x109   : > { %v2113_v38 = vsel %vm6488_vm11, %v2108_v14, %v2112_v21  ;;  %v1552_v39 = vor.u32 %v1551_v17, %v1548_v16  ;;  %v1569_v40 = vshll.u32 %v6685_v18, 16  ;;  %v5067_v43 = vrot.slane %v1752_v23, 9 }
 0x10a   : > { %v2204_v44 = vunpack.c.l.b16 %v2127_v25  ;;  %v1793_v46 = vrot.slane %v6711_v28, 5  ;;  %v2129_v24 = vshrl.u32 %v2064_v29, 16  ;;  %v2132_v47 = vshll.u32 %v2064_v29, 16 }
 0x10b   : > { %v1567_v49 = vrot.slane %v1566_v26, 4  ;;  %v2145_v50 = vrot.slane %v2143_v30, 4  ;;  %v2148_v51 = vrot.slane %v2146_v31, 5  ;;  %v5141_v52 = vor.u32 %v5912_v35, %v5140_v48  ;;  %2441 = vmatpush.bf16.msra.mxu1 %v5936_v4  ;;  %v2070_v35 = vld [vmem:[#allocation3 + $0x48] sm:$0xf] }
 0x10c   : > { %v2203_v18 = vunpack.c.l.b16 %v2113_v38  ;;  %v1557_v54 = vrot.slane %v1555_v33, 5  ;;  %v1553_v56 = vrot.slane %v1552_v39, 4  ;;  %v1571_v58 = vrot.slane %v1569_v40, 5 }
 0x10d   : > { %v5066_v60 = vrot.slane %v1751_v45, 9  ;;  %v1789_v61 = vrot.slane %v6720_v42, 5  ;;  %v1794_v0 = vsel %vm6473_vm8, %v5067_v43, %v1793_v46  ;;  %v2131_v1 = vrot.slane %v2129_v24, 4  ;;  %v6749_v46 = vld [vmem:[#allocation3 + $0x44] sm:$0x1] }
 0x10e   : > { %v2210_v63 = vpack.c.b16 %v2204_v44, %v2203_v18  ;;  %v2134_v2 = vrot.slane %v2132_v47, 5  ;;  %v1572_v5 = vsel %vm6488_vm11, %v1567_v49, %v1571_v58  ;;  %v2149_v6 = vor.u32 %v2148_v51, %v2145_v50  ;;  %v1754_v24 = vld [vmem:[#allocation3 + $0x40] sm:$0xe]  ;;  %v5934_v50 = vld [vmem:[%s7481_s5 + $0x218] sm:$0xff]  ;;  %v5144_v18 = vld [vmem:[#allocation3 + $0x30] sm:$0xf] }
 0x10f   : > { %1718 = vmatmul.bf16.vlgmr.msrb.gmra.mxu1 %v1654_v19  ;;  %v1588_v7 = vshrl.u32 %v1511_v11, 16  ;;  %v1591_v8 = vshll.u32 %v1511_v11, 16  ;;  %v2152_v10 = vshll.u32 %v6727_v62, 16  ;;  %v1558_v22 = vsel %vm6488_vm11, %v1553_v56, %v1557_v54  ;;  %v5935_v19 = vld [vmem:[%s7481_s5 + $0x220] sm:$0xff]  ;;  %v5913_v54 = vld [vmem:[#allocation3 + $0x34] sm:$0xf0] }
 0x110   : > { %1897 = vmatmul.bf16.gmra.mxu2 %v1829_v20  ;;  %v1574_v12 = vshrl.u32 %v1509_v3, 16  ;;  %v1577_v13 = vshll.u32 %v1509_v3, 16  ;;  %v1649_v14 = vunpack.c.l.b16 %v1572_v5  ;;  %v1790_v15 = vsel %vm6473_vm8, %v5066_v60, %v1789_v61  ;;  %2442 = vmatpush.bf16.msra.mxu1 %v5935_v19  ;;  %v6758_v58 = vld [vmem:[#allocation3 + $0x3c] sm:$0x1]  ;;  %v5933_v60 = vld [vmem:[%s7481_s5 + $0x210] sm:$0xff] }
 0x111   : > { %v1825_v16 = vunpack.c.l.b16 %v1794_v0  ;;  %v2135_v17 = vor.u32 %v2134_v2, %v2131_v1  ;;  %v2138_v20 = vshll.u32 %v6736_v9, 16  ;;  %v2150_v21 = vrot.slane %v2149_v6, 4  ;;  %v1753_v0 = vld [vmem:[#allocation3 + $0x38] sm:$0xe]  ;;  %v1515_v6 = vld [vmem:[#allocation3 + $0x40] sm:$0xf] }
 0x112   : > { %v1590_v23 = vrot.slane %v1588_v7, 4  ;;  %v1593_v25 = vrot.slane %v1591_v8, 5  ;;  %v1648_v26 = vunpack.c.l.b16 %v1558_v22  ;;  %v2154_v29 = vrot.slane %v2152_v10, 5  ;;  %v6770_v19 = vld [vmem:[#allocation3 + $0x44] sm:$0x1] }
 0x113   : > { %v1824_v30 = vunpack.c.l.b16 %v1790_v15  ;;  %v1576_v31 = vrot.slane %v1574_v12, 4  ;;  %v1579_v33 = vrot.slane %v1577_v13, 5  ;;  %v2136_v39 = vrot.slane %v2135_v17, 4  ;;  %v5932_v15 = vld [vmem:[%s7481_s5 + $0x208] sm:$0xff] }
 0x114   : > { %v1655_v38 = vpack.c.b16 %v1649_v14, %v1648_v26  ;;  %v2140_v43 = vrot.slane %v2138_v20, 5  ;;  %v2155_v44 = vsel %vm6488_vm11, %v2150_v21, %v2154_v29  ;;  %v1594_v45 = vor.u32 %v1593_v25, %v1590_v23  ;;  %2443 = vmatpush.bf16.msra.mxu1 %v5934_v50  ;;  %v1513_v14 = vld [vmem:[#allocation3 + $0x38] sm:$0xf]  ;;  %v6772_v20 = vld [vmem:[#allocation3 + $0x4c] sm:$0x1] }
 0x115   : > { %v1830_v40 = vpack.c.b16 %v1825_v16, %v1824_v30  ;;  %v2157_v47 = vshrl.u32 %v2068_v34, 16  ;;  %v2160_v37 = vshll.u32 %v2068_v34, 16  ;;  %v2171_v48 = vshrl.u32 %v2070_v35, 16 }
 0x116   : > { %2032 = vmatmul.bf16.gmra.mxu3 %v5141_v52  ;;  %v2174_v49 = vshll.u32 %v2070_v35, 16  ;;  %v1580_v51 = vor.u32 %v1579_v33, %v1576_v31  ;;  %v1597_v52 = vshll.u32 %v6711_v28, 16  ;;  %v2141_v11 = vsel %vm6488_vm11, %v2136_v39, %v2140_v43 }
 0x117   : > { %v1583_v56 = vshll.u32 %v6720_v42, 16  ;;  %v2206_v61 = vunpack.c.l.b16 %v2155_v44  ;;  %v5069_v1 = vrot.slane %v1754_v24, 9  ;;  %v1801_v28 = vrot.slane %v6749_v46, 5 }
 0x118   : > { %2278 = vmatmul.bf16.gmra.mxu0 %v2210_v63  ;;  %v1595_v63 = vrot.slane %v1594_v45, 4  ;;  %v2159_v2 = vrot.slane %v2157_v47, 4  ;;  %v2162_v3 = vrot.slane %v2160_v37, 5  ;;  %v2173_v4 = vrot.slane %v2171_v48, 4  ;;  %2444 = vmatpush.bf16.msra.mxu1 %v5933_v60  ;;  %v5931_v60 = vld [vmem:[%s7481_s5 + $0x200] sm:$0xff] }
 0x119   : > { %v2176_v5 = vrot.slane %v2174_v49, 5  ;;  %v5145_v7 = vor.u32 %v5913_v54, %v5144_v18  ;;  %v2205_v42 = vunpack.c.l.b16 %v2141_v11  ;;  %v1581_v8 = vrot.slane %v1580_v51, 4 }
 0x11a   : > { %v1599_v10 = vrot.slane %v1597_v52, 5  ;;  %v1585_v22 = vrot.slane %v1583_v56, 5  ;;  %v5068_v12 = vrot.slane %v1753_v0, 9  ;;  %v1797_v13 = vrot.slane %v6758_v58, 5  ;;  %v5148_v0 = vld [vmem:[#allocation3 + $0x40] sm:$0xf] }
 0x11b   : > { %v2211_v16 = vpack.c.b16 %v2206_v61, %v2205_v42  ;;  %v1616_v21 = vshrl.u32 %v1515_v6, 16  ;;  %v1619_v23 = vshll.u32 %v1515_v6, 16  ;;  %v1802_v25 = vsel %vm6473_vm8, %v5069_v1, %v1801_v28  ;;  %v5914_v1 = vld [vmem:[#allocation3 + $0x44] sm:$0xf0] }
 0x11c   : > { %v1600_v17 = vsel %vm6488_vm11, %v1595_v63, %v1599_v10  ;;  %v2163_v26 = vor.u32 %v2162_v3, %v2159_v2  ;;  %v2177_v29 = vor.u32 %v2176_v5, %v2173_v4  ;;  %v2180_v30 = vshll.u32 %v6772_v20, 16  ;;  %2445 = vmatpush.bf16.msra.mxu1 %v5932_v15 }
 0x11d   : > { %v1586_v31 = vsel %vm6488_vm11, %v1581_v8, %v1585_v22  ;;  %v1602_v33 = vshrl.u32 %v1513_v14, 16  ;;  %v1605_v34 = vshll.u32 %v1513_v14, 16  ;;  %v1651_v35 = vunpack.c.l.b16 %v1600_v17  ;;  %v2303_v14 = vld [vmem:[#allocation3 + $0x18] sm:$0xe] }
 0x11e   : > { %v2166_v39 = vshll.u32 %v6770_v19, 16  ;;  %v1618_v43 = vrot.slane %v1616_v21, 4  ;;  %v1621_v44 = vrot.slane %v1619_v23, 5  ;;  %v1650_v45 = vunpack.c.l.b16 %v1586_v31 }
 0x11f   : > { %1723 = vmatmul.bf16.gmra.mxu1 %v1655_v38  ;;  %v1798_v38 = vsel %vm6473_vm8, %v5068_v12, %v1797_v13  ;;  %v2164_v24 = vrot.slane %v2163_v26, 4  ;;  %v2178_v47 = vrot.slane %v2177_v29, 4  ;;  %v2182_v37 = vrot.slane %v2180_v30, 5 }
 0x120   : > { %1902 = vmatmul.bf16.gmra.mxu2 %v1830_v40  ;;  %v1827_v40 = vunpack.c.l.b16 %v1802_v25  ;;  %v1826_v48 = vunpack.c.l.b16 %v1798_v38  ;;  %v1604_v49 = vrot.slane %v1602_v33, 4  ;;  %v1607_v50 = vrot.slane %v1605_v34, 5  ;;  %2446 = vmatpush.bf16.msra.mxu1 %v5931_v60 }
 0x121   : > { %v1656_v51 = vpack.c.b16 %v1651_v35, %v1650_v45  ;;  %v2168_v52 = vrot.slane %v2166_v39, 5  ;;  %v1622_v54 = vor.u32 %v1621_v44, %v1618_v43  ;;  %v2183_v56 = vsel %vm6488_vm11, %v2178_v47, %v2182_v37 }
 0x122   : > { %v1831_v18 = vpack.c.b16 %v1827_v40, %v1826_v48  ;;  %v1608_v61 = vor.u32 %v1607_v50, %v1604_v49  ;;  %v1625_v63 = vshll.u32 %v6749_v46, 16  ;;  %v2208_v2 = vunpack.c.l.b16 %v2183_v56 }
 0x123   : > { %v2169_v11 = vsel %vm6488_vm11, %v2164_v24, %v2168_v52  ;;  %v1611_v3 = vshll.u32 %v6758_v58, 16  ;;  %v1623_v4 = vrot.slane %v1622_v54, 4  ;;  %v5149_v5 = vor.u32 %v5914_v1, %v5148_v0  ;;  %v2302_v58 = vld [vmem:[#allocation3 + $0x10] sm:$0xe] }
 0x124   : > { %v2207_v28 = vunpack.c.l.b16 %v2169_v11  ;;  %v1609_v6 = vrot.slane %v1608_v61, 4  ;;  %v5231_v15 = vrot.slane %v2303_v14, 9  ;;  %v5230_v21 = vrot.slane %v2302_v58, 9  ;;  %v2307_v61 = vld [vmem:[#allocation3 + $0x38] sm:$0xe] }
 0x125   : > { %v1613_v8 = vrot.slane %v1611_v3, 5  ;;  %v2328_v23 = vrot.slane %v6675_v53, 5  ;;  %v2304_v53 = vld [vmem:[#allocation3 + $0x20] sm:$0xe]  ;;  %v2340_v44 = vrot.slane %v6697_v55, 5  ;;  %v2336_v37 = vrot.slane %v6701_v59, 5 }
 0x126   : > { %2037 = vmatmul.bf16.gmra.mxu3 %v5145_v7  ;;  %v1627_v7 = vrot.slane %v1625_v63, 5  ;;  %v2212_v42 = vpack.c.b16 %v2208_v2, %v2207_v28  ;;  %v5232_v47 = vrot.slane %v2304_v53, 9  ;;  %v2306_v59 = vld [vmem:[#allocation3 + $0x30] sm:$0xe]  ;;  %v5235_v0 = vrot.slane %v2307_v61, 9 }
 0x127   : > { %v1614_v46 = vsel %vm6488_vm11, %v1609_v6, %v1613_v8  ;;  %v2329_v26 = vsel %vm6473_vm8, %v5230_v21, %v2328_v23  ;;  %v2348_v1 = vrot.slane %v6727_v62, 5  ;;  %v5234_v2 = vrot.slane %v2306_v59, 9  ;;  %v2308_v14 = vld [vmem:[#allocation3 + $0x40] sm:$0xe] }
 0x128   : > { %2283 = vmatmul.bf16.gmra.mxu0 %v2211_v16  ;;  %v1628_v10 = vsel %vm6488_vm11, %v1623_v4, %v1627_v7  ;;  %v1652_v12 = vunpack.c.l.b16 %v1614_v46  ;;  %v2332_v16 = vrot.slane %v6669_v41, 5  ;;  %v2375_v33 = vunpack.c.l.b16 %v2329_v26  ;;  %v2305_v41 = vld [vmem:[#allocation3 + $0x28] sm:$0xe] }
 0x129   : > { %v1653_v22 = vunpack.c.l.b16 %v1628_v10  ;;  %v5233_v43 = vrot.slane %v2305_v41, 9  ;;  %v2337_v49 = vsel %vm6473_vm8, %v5232_v47, %v2336_v37  ;;  %v2344_v3 = vrot.slane %v6736_v9, 5  ;;  %v2309_v9 = vld [vmem:[#allocation3 + $0x48] sm:$0xe] }
 0x12a   : > { %v2333_v25 = vsel %vm6473_vm8, %v5231_v15, %v2332_v16  ;;  %v2377_v52 = vunpack.c.l.b16 %v2337_v49  ;;  %v5236_v16 = vrot.slane %v2308_v14, 9  ;;  %v5237_v21 = vrot.slane %v2309_v9, 9 }
 0x12b   : > { %v1657_v13 = vpack.c.b16 %v1653_v22, %v1652_v12  ;;  %v2376_v30 = vunpack.c.l.b16 %v2333_v25  ;;  %v2341_v48 = vsel %vm6473_vm8, %v5233_v43, %v2340_v44  ;;  %v2356_v23 = vrot.slane %v6772_v20, 5 }
 0x12d   : > { %v2383_v38 = vpack.c.b16 %v2376_v30, %v2375_v33  ;;  %v2357_v30 = vsel %vm6473_vm8, %v5237_v21, %v2356_v23 }
 0x12f   : > { %1728 = vmatmul.bf16.gmra.mxu1 %v1656_v51  ;;  %v2378_v51 = vunpack.c.l.b16 %v2341_v48 }
 0x130   : > { %1907 = vmatmul.bf16.gmra.mxu2 %v1831_v18 }
 0x131   : > { %v2384_v56 = vpack.c.b16 %v2378_v51, %v2377_v52 }
 0x136   : > { %2042 = vmatmul.bf16.gmra.mxu3 %v5149_v5  ;;  %v2349_v5 = vsel %vm6473_vm8, %v5235_v0, %v2348_v1  ;;  %v5946_v1 = vld [vmem:[%s7484_s8 + $0x38] sm:$0xff] }
 0x137   : > { %v2380_v8 = vunpack.c.l.b16 %v2349_v5  ;;  %2652 = vmatpush.bf16.msra.mxu2 %v5946_v1 }
 0x138   : > { %2288 = vmatmul.bf16.gmra.mxu0 %v2212_v42  ;;  %v2345_v42 = vsel %vm6473_vm8, %v5234_v2, %v2344_v3 }
 0x139   : > { %v2379_v46 = vunpack.c.l.b16 %v2345_v42 }
 0x13b   : > { %v2385_v12 = vpack.c.b16 %v2380_v8, %v2379_v46  ;;  %v5945_v46 = vld [vmem:[%s7484_s8 + $0x30] sm:$0xff] }
 0x13c   : > { %2653 = vmatpush.bf16.msra.mxu2 %v5945_v46 }
 0x13f   : > { %1733 = vmatmul.bf16.gmra.mxu1 %v1657_v13 }
 0x143   : > { %v1170_v17 = vpop.f32.mrf.mxu2 }
 0x145   : > { %v1473_v18 = vpop.f32.mrf.mxu0 }
 0x149   : > { %v1339_v29 = vpop.f32.mrf.mxu3 }
 0x14b   : > { %v6801_v31 = vpop.f32.mrf.mxu2 }
 0x14c   : > { %v1069_v34 = vpop.f32.mrf.mxu1 }
 0x14d   : > { %v1171_v35 = vadd.f32 %v1170_v17, %v1069_v34  ;;  %v6821_v4 = vpop.f32.mrf.mxu0  ;;  %v2352_v17 = vrot.slane %v6770_v19, 5  ;;  %v2382_v34 = vunpack.c.l.b16 %v2357_v30 }
 0x14f   : > { %v1359_v39 = vadd.f32 %v1339_v29, %v1171_v35  ;;  %2447 = vmatmul.bf16.vlgmr.msra.gmra.mxu1 %v2383_v38  ;;  %v2353_v29 = vsel %vm6473_vm8, %v5236_v16, %v2352_v17  ;;  %v5942_v17 = vld [vmem:[%s7484_s8 + $0x18] sm:$0xff] }
 0x150   : > { %v2381_v33 = vunpack.c.l.b16 %v2353_v29 }
 0x151   : > { %v6803_v40 = vpop.f32.mrf.mxu3  ;;  %v1493_v6 = vadd.f32 %v1473_v18, %v1359_v39 }
 0x152   : > { %v2386_v53 = vpack.c.b16 %v2382_v34, %v2381_v33 }
 0x153   : > { %v1175_v24 = vpop.f32.mrf.mxu2 }
 0x154   : > { %v6806_v45 = vpop.f32.mrf.mxu1 }
 0x155   : > { %v1478_v58 = vpop.f32.mrf.mxu0  ;;  %v1173_v42 = vadd.f32 %v6801_v31, %v6806_v45  ;;  %v5943_v45 = vld [vmem:[%s7484_s8 + $0x20] sm:$0xff] }
 0x159   : > { %v1344_v50 = vpop.f32.mrf.mxu3 }
 0x15b   : > { %v6813_v55 = vpop.f32.mrf.mxu2 }
 0x15c   : > { %v1074_v54 = vpop.f32.mrf.mxu1 }
 0x15d   : > { %v1176_v11 = vadd.f32 %v1175_v24, %v1074_v54  ;;  %v6839_v38 = vpop.f32.mrf.mxu0 }
 0x15f   : > { %v1361_v60 = vadd.f32 %v1344_v50, %v1176_v11  ;;  %2452 = vmatmul.bf16.gmra.mxu1 %v2384_v56 }
 0x161   : > { %v6815_v63 = vpop.f32.mrf.mxu3  ;;  %v1495_v35 = vadd.f32 %v1478_v58, %v1361_v60 }
 0x163   : > { %v1180_v7 = vpop.f32.mrf.mxu2 }
 0x164   : > { %v6818_v28 = vpop.f32.mrf.mxu1 }
 0x165   : > { %v1483_v44 = vpop.f32.mrf.mxu0  ;;  %v1178_v23 = vadd.f32 %v6813_v55, %v6818_v28 }
 0x169   : > { %v1349_v10 = vpop.f32.mrf.mxu3 }
 0x16b   : > { %v6827_v15 = vpop.f32.mrf.mxu2 }
 0x16c   : > { %v1079_v22 = vpop.f32.mrf.mxu1 }
 0x16d   : > { %v1181_v62 = vadd.f32 %v1180_v7, %v1079_v22  ;;  %v6843_v49 = vpop.f32.mrf.mxu0  ;;  %v1360_v22 = vadd.f32 %v6803_v40, %v1173_v42 }
 0x16f   : > { %v1363_v13 = vadd.f32 %v1349_v10, %v1181_v62  ;;  %2457 = vmatmul.bf16.gmra.mxu1 %v2385_v12  ;;  %v5944_v62 = vld [vmem:[%s7484_s8 + $0x28] sm:$0xff]  ;;  %v1494_v31 = vadd.f32 %v6821_v4, %v1360_v22 }
 0x170   : > { %2654 = vmatpush.bf16.msra.mxu2 %v5944_v62 }
 0x171   : > { %v6833_v26 = vpop.f32.mrf.mxu3  ;;  %v1497_v47 = vadd.f32 %v1483_v44, %v1363_v13 }
 0x173   : > { %v1185_v39 = vpop.f32.mrf.mxu2 }
 0x174   : > { %v6831_v25 = vpop.f32.mrf.mxu1  ;;  %2655 = vmatpush.bf16.msra.mxu2 %v5943_v45  ;;  %v6901_v45 = vld [vmem:[%s7483_s7] ss:$0 sm:$0xff] }
 0x175   : > { %v1488_v51 = vpop.f32.mrf.mxu0 }
 0x178   : > { %2656 = vmatpush.bf16.msra.mxu2 %v5942_v17 }
 0x179   : > { %v1354_v20 = vpop.f32.mrf.mxu3 }
 0x17b   : > { %v6845_v56 = vpop.f32.mrf.mxu2 }
 0x17c   : > { %v1084_v19 = vpop.f32.mrf.mxu1 }
 0x17d   : > { %v1186_v41 = vadd.f32 %v1185_v39, %v1084_v19  ;;  %v6851_v0 = vpop.f32.mrf.mxu0  ;;  %v1362_v39 = vadd.f32 %v6815_v63, %v1178_v23  ;;  %v5939_v63 = vld [vmem:[%s7484_s8] sm:$0xff] }
 0x17f   : > { %v1365_v43 = vadd.f32 %v1354_v20, %v1186_v41  ;;  %2462 = vmatmul.bf16.gmra.mxu1 %v2386_v53  ;;  %v5940_v41 = vld [vmem:[%s7484_s8 + $0x8] sm:$0xff]  ;;  %v1496_v20 = vadd.f32 %v6839_v38, %v1362_v39 }
 0x181   : > { %v1499_v52 = vadd.f32 %v1488_v51, %v1365_v43  ;;  %v6849_v59 = vpop.f32.mrf.mxu3  ;;  %v6057_v43 = vld [vmem:[#allocation2] sm:$0xff]  }
 0x182   : > { %v6058_v51 = vunpack.c.l.bf16 %v6057_v43 }
 0x183   : > { %v1893_v2 = vpop.f32.mrf.mxu2 }
 0x184   : > { %v6841_v24 = vpop.f32.mrf.mxu1 }
 0x189   : > { %v2028_v5 = vpop.f32.mrf.mxu3 }
 0x18b   : > { %v1895_v10 = vpop.f32.mrf.mxu2 }
 0x18c   : > { %v1719_v37 = vpop.f32.mrf.mxu1 }
 0x18d   : > { %v1739_v48 = vadd.f32 %v1719_v37, %v1493_v6  ;;  %v2274_v6 = vpop.f32.mrf.mxu0 }
 0x18f   : > { %v1913_v14 = vadd.f32 %v1893_v2, %v1739_v48 }
 0x191   : > { %v2030_v12 = vpop.f32.mrf.mxu3  ;;  %v2048_v40 = vadd.f32 %v2028_v5, %v1913_v14 }
 0x193   : > { %v1898_v16 = vpop.f32.mrf.mxu2  ;;  %v2294_v30 = vadd.f32 %v2274_v6, %v2048_v40 }
 0x194   : > { %v1721_v50 = vpop.f32.mrf.mxu1 }
 0x195   : > { %v2276_v9 = vpop.f32.mrf.mxu0  ;;  %v1740_v58 = vadd.f32 %v1721_v50, %v1494_v31 }
 0x197   : > { %v1914_v21 = vadd.f32 %v1895_v10, %v1740_v58 }
 0x199   : > { %v2033_v29 = vpop.f32.mrf.mxu3  ;;  %v2049_v33 = vadd.f32 %v2030_v12, %v1914_v21 }
 0x19b   : > { %v1900_v53 = vpop.f32.mrf.mxu2  ;;  %v2295_v28 = vadd.f32 %v2276_v9, %v2049_v33 }
 0x19c   : > { %v1724_v18 = vpop.f32.mrf.mxu1 }
 0x19d   : > { %v1741_v54 = vadd.f32 %v1724_v18, %v1495_v35  ;;  %v5941_v35 = vld [vmem:[%s7484_s8 + $0x10] sm:$0xff]  ;;  %v2279_v19 = vpop.f32.mrf.mxu0  ;;  %v6059_v18 = vunpack.c.h.bf16 %v6057_v43 }
 0x19e   : > { %2657 = vmatpush.bf16.msra.mxu2 %v5941_v35 }
 0x1a1   : > { %v2035_v50 = vpop.f32.mrf.mxu3 }
 0x1a2   : > { %2658 = vmatpush.bf16.msra.mxu2 %v5940_v41 }
 0x1a3   : > { %v1903_v42 = vpop.f32.mrf.mxu2 }
 0x1a4   : > { %v1726_v11 = vpop.f32.mrf.mxu1 }
 0x1a5   : > { %v1742_v48 = vadd.f32 %v1726_v11, %v1496_v20  ;;  %v2281_v5 = vpop.f32.mrf.mxu0  ;;  %v6896_v11 = vld [vmem:[%s7482_s6] ss:$0 sm:$0xff] }
 0x1a6   : > { %2659 = vmatpush.bf16.msra.mxu2 %v5939_v63 }
 0x1a7   : > { %v1916_v38 = vadd.f32 %v1900_v53, %v1742_v48 }
 0x1a9   : > { %v2051_v62 = vadd.f32 %v2035_v50, %v1916_v38 }
 0x1ab   : > { %v2297_v17 = vadd.f32 %v2281_v5, %v2051_v62  ;;  %v1905_v39 = vpop.f32.mrf.mxu2 }
 0x1ac   : > { %v1729_v60 = vpop.f32.mrf.mxu1 }
 0x1ad   : > { %v6847_v61 = vadd.f32 %v1729_v60, %v1497_v47  ;;  %v1915_v47 = vadd.f32 %v1898_v16, %v1741_v54  ;;  %v1183_v54 = vadd.f32 %v6827_v15, %v6831_v25  ;;  %v2038_v25 = vpop.f32.mrf.mxu3  ;;  %v6163_v16 = vld [vmem:[#allocation2 + $0x8] sm:$0xff]  }
 0x1ae   : > { %v6062_v41 = vunpack.c.l.bf16 %v6163_v16 }
 0x1af   : > { %v2050_v1 = vadd.f32 %v2033_v29, %v1915_v47  ;;  %v1364_v15 = vadd.f32 %v6833_v26, %v1183_v54  ;;  %v2284_v29 = vpop.f32.mrf.mxu0  ;;  %v1917_v33 = vadd.f32 %v1903_v42, %v6847_v61  ;;  %v1188_v61 = vadd.f32 %v6845_v56, %v6841_v24 }
 0x1b1   : > { %v2296_v22 = vadd.f32 %v2279_v19, %v2050_v1  ;;  %v2052_v43 = vadd.f32 %v2038_v25, %v1917_v33 }
 0x1b3   : > { %v1908_v5 = vpop.f32.mrf.mxu2 }
 0x1b4   : > { %v6856_v3 = vpop.f32.mrf.mxu1 }
 0x1b5   : > { %v2040_v47 = vpop.f32.mrf.mxu3 }
 0x1bc   : > { %v1734_v7 = vpop.f32.mrf.mxu1 }
 0x1bd   : > { %v6860_v8 = vadd.f32 %v1734_v7, %v1499_v52 }
 0x1bf   : > { %v1919_v62 = vadd.f32 %v1908_v5, %v6860_v8  ;;  %v5974_v8 = vld [vmem:[%s7486_s10 + $0xb8] sm:$0xff] }
 0x1c0   : > { %3317 = vmatpush.bf16.msrb.mxu1 %v5974_v8  ;;  %v5963_v8 = vld [vmem:[%s7486_s10 + $0x60] sm:$0xff] }
 0x1c4   : > { %v6869_v13 = vpop.f32.mrf.mxu1 }
 0x1cc   : > { %v2448_v4 = vpop.f32.mrf.mxu1 }
 0x1cd   : > { %v2468_v34 = vadd.f32 %v2448_v4, %v2294_v30  ;;  %v1498_v4 = vadd.f32 %v6843_v49, %v1364_v15 }
 0x1cf   : > { %v2484_v55 = vpack.c.bf16 %v2468_v34, %v2468_v34  ;;  %v1744_v19 = vadd.f32 %v6856_v3, %v1498_v4 }
 0x1d1   : > { %v2500_v52 = vunpack.c.l.bf16 %v2484_v55  ;;  %v6063_v55 = vunpack.c.h.bf16 %v6163_v16 }
 0x1d3   : > { %v2508_v6 = vadd.f32 %v6058_v51, %v2500_v52  ;;  %v2298_v51 = vadd.f32 %v2284_v29, %v2052_v43  ;;  %v2286_v52 = vpop.f32.mrf.mxu0  ;;  %v6165_v43 = vld [vmem:[#allocation2 + $0x18] sm:$0xff]  }
 0x1d4   : > { %v2450_v44 = vpop.f32.mrf.mxu1 }
 0x1d5   : > { %v2469_v37 = vadd.f32 %v2450_v44, %v2295_v28 }
 0x1d7   : > { %v2485_v60 = vpack.c.bf16 %v2469_v37, %v2469_v37  ;;  %v1918_v37 = vadd.f32 %v1905_v39, %v1744_v19 }
 0x1d9   : > { %v2501_v2 = vunpack.c.l.bf16 %v2485_v60  ;;  %v2053_v3 = vadd.f32 %v2040_v47, %v1918_v37 }
 0x1db   : > { %v2509_v7 = vadd.f32 %v6059_v18, %v2501_v2  ;;  %v1366_v2 = vadd.f32 %v6849_v59, %v1188_v61  ;;  %v2299_v42 = vadd.f32 %v2286_v52, %v2053_v3  ;;  %v6071_v3 = vunpack.c.h.bf16 %v6165_v43 }
 0x1dc   : > { %v2453_v10 = vpop.f32.mrf.mxu1 }
 0x1dd   : > { %v6075_v46 = vpack.c.bf16 %v2509_v7, %v2508_v6  ;;  %v2470_v12 = vadd.f32 %v2453_v10, %v2296_v22  ;;  %v6164_v7 = vld [vmem:[#allocation2 + $0x10] sm:$0xff]   ;;  %v2043_v10 = vpop.f32.mrf.mxu3 }
 0x1de   : > { %v6066_v15 = vunpack.c.l.bf16 %v6164_v7 }
 0x1df   : > { %6076 = vst [vmem:[#allocation2] sm:$0xff] %v6075_v46   ;;  %v6094_v14 = vunpack.c.l.bf16 %v6075_v46  ;;  %v6095_v31 = vunpack.c.h.bf16 %v6075_v46  ;;  %v2486_v40 = vpack.c.bf16 %v2470_v12, %v2470_v12  ;;  %v1500_v46 = vadd.f32 %v6851_v0, %v1366_v2  ;;  %v5958_v0 = vld [vmem:[%s7486_s10 + $0x38] sm:$0xff] }
 0x1e0   : > { %3151 = vmatpush.bf16.msrb.mxu0 %v5958_v0  ;;  %v6986_v0 = vld [vmem:[%s7485_s9] ss:$0 sm:$0xff] }
 0x1e1   : > { %v2552_v9 = vmul.f32 %v6896_v11, %v6094_v14  ;;  %v2553_v58 = vmul.f32 %v6896_v11, %v6095_v31  ;;  %v2502_v53 = vunpack.c.l.bf16 %v2486_v40  ;;  %v1746_v31 = vadd.f32 %v6869_v13, %v1500_v46  ;;  %v2289_v40 = vpop.f32.mrf.mxu0 }
 0x1e3   : > { %v2564_v21 = vadd.f32 %v6901_v45, %v2552_v9  ;;  %v2565_v23 = vadd.f32 %v6901_v45, %v2553_v58  ;;  %v2510_v49 = vadd.f32 %v6062_v41, %v2502_v53  ;;  %v6067_v9 = vunpack.c.h.bf16 %v6164_v7 }
 0x1e4   : > { %v2455_v30 = vpop.f32.mrf.mxu1 }
 0x1e5   : > { %v2471_v34 = vadd.f32 %v2455_v30, %v2297_v17  ;;  %v2572_v26 = vmax.f32 %v2564_v21, 0.0  ;;  %v2573_v35 = vmax.f32 %v2565_v23, 0.0  ;;  %v2054_v17 = vadd.f32 %v2043_v10, %v1919_v62  ;;  %v1910_v23 = vpop.f32.mrf.mxu2  ;;  %v5957_v30 = vld [vmem:[%s7486_s10 + $0x30] sm:$0xff]  ;;  %v5956_v62 = vld [vmem:[%s7486_s10 + $0x28] sm:$0xff] }
 0x1e6   : > { %v1920_v29 = vadd.f32 %v1910_v23, %v1746_v31  ;;  %3152 = vmatpush.bf16.msrb.mxu0 %v5957_v30  ;;  %v5972_v31 = vld [vmem:[%s7486_s10 + $0xa8] sm:$0xff] }
 0x1e7   : > { %v2487_v28 = vpack.c.bf16 %v2471_v34, %v2471_v34  ;;  %v2580_v20 = vpack.c.bf16 %v2573_v35, %v2572_v26  ;;  %v2300_v26 = vadd.f32 %v2289_v40, %v2054_v17  ;;  %v2045_v35 = vpop.f32.mrf.mxu3  ;;  %v5953_v40 = vld [vmem:[%s7486_s10 + $0x10] sm:$0xff]  ;;  %v5983_v17 = vld [vmem:[%s7486_s10 + $0xe0] sm:$0xff]  ;;  %v5952_v23 = vld [vmem:[%s7486_s10 + $0x8] sm:$0xff] }
 0x1e8   : > { %v2055_v39 = vadd.f32 %v2045_v35, %v1920_v29  ;;  %v5982_v29 = vld [vmem:[%s7486_s10 + $0xd8] sm:$0xff]  ;;  %v5968_v35 = vld [vmem:[%s7486_s10 + $0x88] sm:$0xff] }
 0x1e9   : > { %v2503_v44 = vunpack.c.l.bf16 %v2487_v28  ;;  %2660 = vmatmul.bf16.vlgmr.msra.gmra.mxu2 %v2580_v20  ;;  %v2291_v20 = vpop.f32.mrf.mxu0 }
 0x1ea   : > { %v2301_v47 = vadd.f32 %v2291_v20, %v2055_v39  ;;  %3153 = vmatpush.bf16.msrb.mxu0 %v5956_v62  ;;  %v5967_v20 = vld [vmem:[%s7486_s10 + $0x80] sm:$0xff] }
 0x1eb   : > { %v2511_v63 = vadd.f32 %v6063_v55, %v2503_v44 }
 0x1ec   : > { %v2458_v48 = vpop.f32.mrf.mxu1 }
 0x1ed   : > { %v6080_v50 = vpack.c.bf16 %v2511_v63, %v2510_v49  ;;  %v2472_v18 = vadd.f32 %v2458_v48, %v2298_v51  ;;  %v6070_v51 = vunpack.c.l.bf16 %v6165_v43 }
 0x1ef   : > { %6166 = vst [vmem:[#allocation2 + $0x8] sm:$0xff] %v6080_v50   ;;  %v6098_v60 = vunpack.c.l.bf16 %v6080_v50  ;;  %v6099_v1 = vunpack.c.h.bf16 %v6080_v50  ;;  %v2488_v54 = vpack.c.bf16 %v2472_v18, %v2472_v18 }
 0x1f1   : > { %v2554_v38 = vmul.f32 %v6896_v11, %v6098_v60  ;;  %v2555_v6 = vmul.f32 %v6896_v11, %v6099_v1  ;;  %v2504_v25 = vunpack.c.l.bf16 %v2488_v54 }
 0x1f3   : > { %v2566_v24 = vadd.f32 %v6901_v45, %v2554_v38  ;;  %v2567_v56 = vadd.f32 %v6901_v45, %v2555_v6  ;;  %v2512_v13 = vadd.f32 %v6066_v15, %v2504_v25  ;;  %v5965_v15 = vld [vmem:[%s7486_s10 + $0x70] sm:$0xff]  ;;  %v5954_v25 = vld [vmem:[%s7486_s10 + $0x18] sm:$0xff] }
 0x1f4   : > { %v2460_v22 = vpop.f32.mrf.mxu1 }
 0x1f5   : > { %v2473_v12 = vadd.f32 %v2460_v22, %v2299_v42  ;;  %v2574_v59 = vmax.f32 %v2566_v24, 0.0  ;;  %v2575_v14 = vmax.f32 %v2567_v56, 0.0 }
 0x1f7   : > { %v2489_v58 = vpack.c.bf16 %v2473_v12, %v2473_v12  ;;  %v2581_v16 = vpack.c.bf16 %v2575_v14, %v2574_v59  ;;  %v5986_v12 = vld [vmem:[%s7486_s10 + $0xf8] sm:$0xff]  ;;  %v5955_v59 = vld [vmem:[%s7486_s10 + $0x20] sm:$0xff]  ;;  %v5985_v14 = vld [vmem:[%s7486_s10 + $0xf0] sm:$0xff] }
 0x1f8   : > { %3451 = vmatpush.bf16.msrb.mxu2 %v5986_v12  ;;  %3154 = vmatpush.bf16.msrb.mxu0 %v5955_v59  ;;  %v2783_v59 = vld [vmem:[#allocation3 + $0x10] sm:$0xf] }
 0x1f9   : > { %v2505_v21 = vunpack.c.l.bf16 %v2489_v58  ;;  %2665 = vmatmul.bf16.gmra.mxu2 %v2581_v16  ;;  %v5971_v58 = vld [vmem:[%s7486_s10 + $0xa0] sm:$0xff]  ;;  %v5964_v16 = vld [vmem:[%s7486_s10 + $0x68] sm:$0xff] }
 0x1fb   : > { %v2513_v4 = vadd.f32 %v6067_v9, %v2505_v21  ;;  %v5984_v9 = vld [vmem:[%s7486_s10 + $0xe8] sm:$0xff]  ;;  %v5970_v21 = vld [vmem:[%s7486_s10 + $0x98] sm:$0xff] }
 0x1fc   : > { %v2463_v33 = vpop.f32.mrf.mxu1  ;;  %3452 = vmatpush.bf16.msrb.mxu2 %v5985_v14  ;;  %3155 = vmatpush.bf16.msrb.mxu0 %v5954_v25  ;;  %v2786_v14 = vld [vmem:[#allocation3 + $0x14] sm:$0x1] }
 0x1fd   : > { %v6085_v34 = vpack.c.bf16 %v2513_v4, %v2512_v13  ;;  %v2474_v19 = vadd.f32 %v2463_v33, %v2300_v26  ;;  %v5969_v4 = vld [vmem:[%s7486_s10 + $0x90] sm:$0xff]  ;;  %v5962_v33 = vld [vmem:[%s7486_s10 + $0x58] sm:$0xff] }
 0x1fe   : > { %v5981_v26 = vld [vmem:[%s7486_s10 + $0xd0] sm:$0xff] }
 0x1ff   : > { %6167 = vst [vmem:[#allocation2 + $0x10] sm:$0xff] %v6085_v34   ;;  %v6102_v41 = vunpack.c.l.bf16 %v6085_v34  ;;  %v6103_v53 = vunpack.c.h.bf16 %v6085_v34  ;;  %v2490_v44 = vpack.c.bf16 %v2474_v19, %v2474_v19  ;;  %v5951_v34 = vld [vmem:[%s7486_s10] sm:$0xff] }
 0x200   : > { %3453 = vmatpush.bf16.msrb.mxu2 %v5984_v9  ;;  %3156 = vmatpush.bf16.msrb.mxu0 %v5953_v40 }
 0x201   : > { %v2556_v55 = vmul.f32 %v6896_v11, %v6102_v41  ;;  %v2557_v28 = vmul.f32 %v6896_v11, %v6103_v53  ;;  %v2506_v52 = vunpack.c.l.bf16 %v2490_v44  ;;  %v5961_v53 = vld [vmem:[%s7486_s10 + $0x50] sm:$0xff] }
 0x203   : > { %v2568_v37 = vadd.f32 %v6901_v45, %v2556_v55  ;;  %v2569_v49 = vadd.f32 %v6901_v45, %v2557_v28  ;;  %v2514_v2 = vadd.f32 %v6070_v51, %v2506_v52  ;;  %v5980_v55 = vld [vmem:[%s7486_s10 + $0xc8] sm:$0xff] }
 0x204   : > { %v2465_v63 = vpop.f32.mrf.mxu1  ;;  %3454 = vmatpush.bf16.msrb.mxu2 %v5983_v17  ;;  %3157 = vmatpush.bf16.msrb.mxu0 %v5952_v23  ;;  %v2780_v51 = vld [vmem:[#allocation3 + $0xc] sm:$0x1] }
 0x205   : > { %v2475_v61 = vadd.f32 %v2465_v63, %v2301_v47  ;;  %v2576_v48 = vmax.f32 %v2568_v37, 0.0  ;;  %v2577_v50 = vmax.f32 %v2569_v49, 0.0  ;;  %v5960_v37 = vld [vmem:[%s7486_s10 + $0x48] sm:$0xff]  ;;  %v5979_v49 = vld [vmem:[%s7486_s10 + $0xc0] sm:$0xff] }
 0x207   : > { %v2491_v18 = vpack.c.bf16 %v2475_v61, %v2475_v61  ;;  %v2582_v60 = vpack.c.bf16 %v2577_v50, %v2576_v48  ;;  %v2777_v50 = vld [vmem:[#allocation3 + $0x8] sm:$0xf] }
 0x208   : > { %3455 = vmatpush.bf16.msrb.mxu2 %v5982_v29  ;;  %3158 = vmatpush.bf16.msrb.mxu0 %v5951_v34 }
 0x209   : > { %v2507_v1 = vunpack.c.l.bf16 %v2491_v18  ;;  %2670 = vmatmul.bf16.gmra.mxu2 %v2582_v60  ;;  %v2849_v60 = vld [vmem:[#allocation3 + $0x4] sm:$0x1] }
 0x20b   : > { %v2515_v5 = vadd.f32 %v6071_v3, %v2507_v1  ;;  %v3180_v1 = vld [vmem:[#allocation3] sm:$0xe] }
 0x20c   : > { %3456 = vmatpush.bf16.msrb.mxu2 %v5981_v26 }
 0x20d   : > { %v6090_v38 = vpack.c.bf16 %v2515_v5, %v2514_v2  ;;  %v5959_v5 = vld [vmem:[%s7486_s10 + $0x40] sm:$0xff] }
 0x20f   : > { %6168 = vst [vmem:[#allocation2 + $0x18] sm:$0xff] %v6090_v38   ;;  %v6106_v6 = vunpack.c.l.bf16 %v6090_v38  ;;  %v6107_v7 = vunpack.c.h.bf16 %v6090_v38 }
 0x210   : > { %3457 = vmatpush.bf16.msrb.mxu2 %v5980_v55 }
 0x211   : > { %v2558_v54 = vmul.f32 %v6896_v11, %v6106_v6  ;;  %v2559_v42 = vmul.f32 %v6896_v11, %v6107_v7  ;;  %v5973_v11 = vld [vmem:[%s7486_s10 + $0xb0] sm:$0xff]  ;;  %v5414_v7 = vrot.slane %v3180_v1, 9 }
 0x212   : > { %3318 = vmatpush.bf16.msrb.mxu1 %v5973_v11  ;;  %v5368_v11 = vld [vmem:[#allocation3] sm:$0xf] }
 0x213   : > { %v2570_v24 = vadd.f32 %v6901_v45, %v2558_v54  ;;  %v2571_v56 = vadd.f32 %v6901_v45, %v2559_v42  ;;  %v5966_v45 = vld [vmem:[%s7486_s10 + $0x78] sm:$0xff]  ;;  %v3206_v54 = vrot.slane %v2849_v60, 5  ;;  %v2825_v42 = vld [vmem:[#allocation3] sm:$0xf] }
 0x214   : > { %3050 = vmatpush.bf16.msra.mxu3 %v5966_v45  ;;  %3458 = vmatpush.bf16.msrb.mxu2 %v5979_v49  ;;  %v2789_v49 = vld [vmem:[#allocation3 + $0x18] sm:$0xf] }
 0x215   : > { %v2578_v10 = vmax.f32 %v2570_v24, 0.0  ;;  %v2579_v46 = vmax.f32 %v2571_v56, 0.0  ;;  %v3207_v17 = vsel %vm6473_vm8, %v5414_v7, %v3206_v54 }
 0x216   : > { %3319 = vmatpush.bf16.msrb.mxu1 %v5972_v31  ;;  %v3253_v34 = vunpack.c.l.b16 %v3207_v17 }
 0x217   : > { %v2583_v22 = vpack.c.bf16 %v2579_v46, %v2578_v10  ;;  %v2858_v10 = vshrl.u32 %v2825_v42, 16  ;;  %v2861_v46 = vshll.u32 %v2825_v42, 16 }
 0x218   : > { %3051 = vmatpush.bf16.msra.mxu3 %v5965_v15  ;;  %v2867_v15 = vshll.u32 %v2849_v60, 16 }
 0x219   : > { %2675 = vmatmul.bf16.gmra.mxu2 %v2583_v22  ;;  %v2860_v45 = vrot.slane %v2858_v10, 4  ;;  %v2863_v31 = vrot.slane %v2861_v46, 5 }
 0x21a   : > { %3320 = vmatpush.bf16.msrb.mxu1 %v5971_v58 }
 0x21b   : > { %v2864_v29 = vor.u32 %v2863_v31, %v2860_v45 }
 0x21c   : > { %3052 = vmatpush.bf16.msra.mxu3 %v5964_v16 }
 0x21e   : > { %3321 = vmatpush.bf16.msrb.mxu1 %v5970_v21 }
 0x220   : > { %3053 = vmatpush.bf16.msra.mxu3 %v5963_v8 }
 0x222   : > { %3322 = vmatpush.bf16.msrb.mxu1 %v5969_v4 }
 0x224   : > { %3054 = vmatpush.bf16.msra.mxu3 %v5962_v33 }
 0x226   : > { %3323 = vmatpush.bf16.msrb.mxu1 %v5968_v35  ;;  %v2865_v35 = vrot.slane %v2864_v29, 4 }
 0x228   : > { %3055 = vmatpush.bf16.msra.mxu3 %v5961_v53 }
 0x22a   : > { %3324 = vmatpush.bf16.msrb.mxu1 %v5967_v20 }
 0x22c   : > { %3056 = vmatpush.bf16.msra.mxu3 %v5960_v37 }
 0x230   : > { %3057 = vmatpush.bf16.msra.mxu3 %v5959_v5 }
 0x26c   : > { %v2661_v13 = vpop.f32.mrf.mxu2 }
 0x26d   : > { %v2662_v30 = vadd.f32 %v6986_v0, %v2661_v13 }
 0x26f   : > { %v2681_v39 = vmax.f32 %v2662_v30, 0.0 }
 0x271   : > { %v2689_v19 = vpack.c.bf16 %v2681_v39, %v2681_v39  ;;  %v2869_v39 = vrot.slane %v2867_v15, 5 }
 0x273   : > { %v2698_v41 = vshrl.u32 %v2689_v19, 16  ;;  %v2701_v44 = vshll.u32 %v2689_v19, 16  ;;  %v2870_v60 = vsel %vm6488_vm11, %v2865_v35, %v2869_v39 }
 0x274   : > { %v2663_v28 = vpop.f32.mrf.mxu2  ;;  %v2986_v10 = vunpack.c.l.b16 %v2870_v60 }
 0x275   : > { %v2700_v43 = vrot.slane %v2698_v41, 7  ;;  %v2664_v47 = vadd.f32 %v6986_v0, %v2663_v28 }
 0x277   : > { %v2703_v63 = vor.u32 %v2701_v44, %v2700_v43  ;;  %v2704_v61 = vrot.slane %v2700_v43, 4  ;;  %v2682_v48 = vmax.f32 %v2664_v47, 0.0 }
 0x279   : > { %v2778_v52 = vsel %vm6459_vm4, %v2703_v63, %v2777_v50  ;;  %v2781_v3 = vsel %vm6464_vm5, %v2704_v61, %v2780_v51  ;;  %v2690_v18 = vpack.c.bf16 %v2682_v48, %v2682_v48  ;;  %v2792_v63 = vld [vmem:[#allocation3 + $0x1c] sm:$0x1] }
 0x27a   : > { %2779 = vst [vmem:[#allocation3 + $0x8] sm:$0xf] %v2778_v52 }
 0x27b   : > { %2782 = vst [vmem:[#allocation3 + $0xc] sm:$0x1] %v2781_v3  ;;  %v2706_v2 = vshrl.u32 %v2690_v18, 16  ;;  %v2709_v38 = vshll.u32 %v2690_v18, 16 }
 0x27c   : > { %v2666_v6 = vpop.f32.mrf.mxu2 }
 0x27d   : > { %v2708_v24 = vrot.slane %v2706_v2, 7  ;;  %v2667_v56 = vadd.f32 %v6986_v0, %v2666_v6 }
 0x27f   : > { %v2711_v22 = vor.u32 %v2709_v38, %v2708_v24  ;;  %v2712_v62 = vrot.slane %v2708_v24, 4  ;;  %v2683_v12 = vmax.f32 %v2667_v56, 0.0 }
 0x281   : > { %v2784_v25 = vsel %vm6459_vm4, %v2711_v22, %v2783_v59  ;;  %v2787_v9 = vsel %vm6464_vm5, %v2712_v62, %v2786_v14  ;;  %v2691_v58 = vpack.c.bf16 %v2683_v12, %v2683_v12  ;;  %v5947_v16 = vld [vmem:[#allocation3 + $0x4] sm:$0xf0] }
 0x282   : > { %v3181_v40 = vld [vmem:[#allocation3 + $0x8] sm:$0xe]  ;;  %2788 = vst [vmem:[#allocation3 + $0x14] sm:$0x1] %v2787_v9  ;;  %v5369_v21 = vor.u32 %v5947_v16, %v5368_v11  ;;  %v2850_v8 = vld [vmem:[#allocation3 + $0xc] sm:$0x1] }
 0x283   : > { %v5415_v23 = vrot.slane %v3181_v40, 9  ;;  %2785 = vst [vmem:[#allocation3 + $0x10] sm:$0xf] %v2784_v25  ;;  %v2714_v13 = vshrl.u32 %v2691_v58, 16  ;;  %v3210_v4 = vrot.slane %v2850_v8, 5  ;;  %v2717_v30 = vshll.u32 %v2691_v58, 16 }
 0x284   : > { %v2668_v33 = vpop.f32.mrf.mxu2  ;;  %3159 = vmatmul.bf16.vlgmr.msrb.gmra.mxu0 %v5369_v21  ;;  %v2826_v26 = vld [vmem:[#allocation3 + $0x8] sm:$0xf]  ;;  %v2881_v50 = vshll.u32 %v2850_v8, 16  ;;  %v2795_v58 = vld [vmem:[#allocation3 + $0x20] sm:$0xf] }
 0x285   : > { %v2716_v19 = vrot.slane %v2714_v13, 7  ;;  %v2669_v41 = vadd.f32 %v6986_v0, %v2668_v33  ;;  %v3211_v53 = vsel %vm6473_vm8, %v5415_v23, %v3210_v4  ;;  %v2872_v55 = vshrl.u32 %v2826_v26, 16  ;;  %v5488_v18 = vld [vmem:[#allocation3 + $0x8] sm:$0xf]  ;;  %v2798_v16 = vld [vmem:[#allocation3 + $0x24] sm:$0x1] }
 0x286   : > { %v3254_v28 = vunpack.c.l.b16 %v3211_v53  ;;  %v2875_v20 = vshll.u32 %v2826_v26, 16  ;;  %v2883_v56 = vrot.slane %v2881_v50, 5 }
 0x287   : > { %v2719_v43 = vor.u32 %v2717_v30, %v2716_v19  ;;  %v2720_v44 = vrot.slane %v2716_v19, 4  ;;  %v2684_v47 = vmax.f32 %v2669_v41, 0.0  ;;  %v2874_v37 = vrot.slane %v2872_v55, 4  ;;  %v6002_v41 = vld [vmem:[%s7486_s10 + $0x178] sm:$0xff] }
 0x288   : > { %v3261_v61 = vpack.c.b16 %v3254_v28, %v3253_v34  ;;  %v2877_v48 = vrot.slane %v2875_v20, 5  ;;  %3871 = vmatpush.bf16.msra.mxu0 %v6002_v41  ;;  %v5999_v41 = vld [vmem:[%s7486_s10 + $0x160] sm:$0xff] }
 0x289   : > { %v2790_v51 = vsel %vm6459_vm4, %v2719_v43, %v2789_v49  ;;  %v2793_v52 = vsel %vm6464_vm5, %v2720_v44, %v2792_v63  ;;  %v2692_v3 = vpack.c.bf16 %v2684_v47, %v2684_v47  ;;  %v7052_v5 = vld [vmem:[#allocation3 + $0x14] sm:$0x1]  ;;  %v6014_v63 = vld [vmem:[%s7486_s10 + $0x1b8] sm:$0xff] }
 0x28a   : > { %2794 = vst [vmem:[#allocation3 + $0x1c] sm:$0x1] %v2793_v52  ;;  %3325 = vmatmul.bf16.vlgmr.msrb.gmra.mxu1 %v3261_v61  ;;  %v5975_v1 = vld [vmem:[#allocation3 + $0xc] sm:$0xf0]  ;;  %v2878_v2 = vor.u32 %v2877_v48, %v2874_v37  ;;  %v3214_v14 = vrot.slane %v7052_v5, 5  ;;  %v2895_v43 = vshll.u32 %v7052_v5, 16 }
 0x28b   : > { %2791 = vst [vmem:[#allocation3 + $0x18] sm:$0xf] %v2790_v51  ;;  %v2722_v38 = vshrl.u32 %v2692_v3, 16  ;;  %v5489_v6 = vor.u32 %v5975_v1, %v5488_v18  ;;  %v3182_v7 = vld [vmem:[#allocation3 + $0x10] sm:$0xe]  ;;  %v2725_v54 = vshll.u32 %v2692_v3, 16  ;;  %4005 = vmatpush.bf16.msra.mxu1 %v6014_v63 }
 0x28c   : > { %v2671_v42 = vpop.f32.mrf.mxu2  ;;  %v2879_v24 = vrot.slane %v2878_v2, 4  ;;  %v2827_v46 = vld [vmem:[#allocation3 + $0x10] sm:$0xf]  ;;  %v5416_v59 = vrot.slane %v3182_v7, 9  ;;  %v6022_v52 = vld [vmem:[%s7486_s10 + $0x1f8] sm:$0xff] }
 0x28d   : > { %v2724_v22 = vrot.slane %v2722_v38, 7  ;;  %v2672_v62 = vadd.f32 %v6986_v0, %v2671_v42  ;;  %3459 = vmatmul.bf16.vlgmr.msrb.gmra.mxu2 %v5489_v6  ;;  %v2886_v12 = vshrl.u32 %v2827_v46, 16  ;;  %v2889_v11 = vshll.u32 %v2827_v46, 16  ;;  %v5372_v13 = vld [vmem:[#allocation3 + $0x10] sm:$0xf]  ;;  %v5994_v3 = vld [vmem:[%s7486_s10 + $0x138] sm:$0xff] }
 0x28e   : > { %v2884_v45 = vsel %vm6488_vm11, %v2879_v24, %v2883_v56  ;;  %v3215_v39 = vsel %vm6473_vm8, %v5416_v59, %v3214_v14  ;;  %v6001_v51 = vld [vmem:[%s7486_s10 + $0x170] sm:$0xff]  ;;  %v2801_v1 = vld [vmem:[#allocation3 + $0x28] sm:$0xf]  ;;  %v2804_v2 = vld [vmem:[#allocation3 + $0x2c] sm:$0x1]  ;;  %v2897_v6 = vrot.slane %v2895_v43, 5  ;;  %4251 = vmatpush.bf16.msra.mxu2 %v6022_v52  ;;  %3697 = vmatpush.bf16.msrb.mxu3 %v5994_v3 }
 0x28f   : > { %v2727_v31 = vor.u32 %v2725_v54, %v2724_v22  ;;  %v2728_v15 = vrot.slane %v2724_v22, 4  ;;  %v2685_v25 = vmax.f32 %v2672_v62, 0.0  ;;  %v2987_v9 = vunpack.c.l.b16 %v2884_v45  ;;  %v6013_v24 = vld [vmem:[%s7486_s10 + $0x1b0] sm:$0xff]  ;;  %3872 = vmatpush.bf16.msra.mxu0 %v6001_v51  ;;  %v5998_v63 = vld [vmem:[%s7486_s10 + $0x158] sm:$0xff] }
 0x290   : > { %v2888_v40 = vrot.slane %v2886_v12, 4  ;;  %v2891_v17 = vrot.slane %v2889_v11, 5  ;;  %v3255_v48 = vunpack.c.l.b16 %v3215_v39  ;;  %v6021_v56 = vld [vmem:[%s7486_s10 + $0x1f0] sm:$0xff]  ;;  %v6000_v11 = vld [vmem:[%s7486_s10 + $0x168] sm:$0xff]  ;;  %4006 = vmatpush.bf16.msra.mxu1 %v6013_v24 }
 0x291   : > { %v2796_v21 = vsel %vm6459_vm4, %v2727_v31, %v2795_v58  ;;  %v2799_v8 = vsel %vm6464_vm5, %v2728_v15, %v2798_v16  ;;  %v2693_v23 = vpack.c.bf16 %v2685_v25, %v2685_v25  ;;  %v2994_v29 = vpack.c.b16 %v2987_v9, %v2986_v10  ;;  %v7062_v4 = vld [vmem:[#allocation3 + $0x1c] sm:$0x1]  ;;  %v5993_v45 = vld [vmem:[%s7486_s10 + $0x130] sm:$0xff]  ;;  %v6012_v16 = vld [vmem:[%s7486_s10 + $0x1a8] sm:$0xff] }
 0x292   : > { %2800 = vst [vmem:[#allocation3 + $0x24] sm:$0x1] %v2799_v8  ;;  %v5948_v30 = vld [vmem:[#allocation3 + $0x14] sm:$0xf0]  ;;  %v2892_v34 = vor.u32 %v2891_v17, %v2888_v40  ;;  %v3218_v28 = vrot.slane %v7062_v4, 5  ;;  %v2909_v42 = vshll.u32 %v7062_v4, 16  ;;  %4252 = vmatpush.bf16.msra.mxu2 %v6021_v56  ;;  %3698 = vmatpush.bf16.msrb.mxu3 %v5993_v45 }
 0x293   : > { %v3183_v33 = vld [vmem:[#allocation3 + $0x18] sm:$0xe]  ;;  %2797 = vst [vmem:[#allocation3 + $0x20] sm:$0xf] %v2796_v21  ;;  %v2730_v26 = vshrl.u32 %v2693_v23, 16  ;;  %3058 = vmatmul.bf16.vlgmr.msra.gmra.mxu3 %v2994_v29  ;;  %v5373_v35 = vor.u32 %v5948_v30, %v5372_v13  ;;  %v2733_v53 = vshll.u32 %v2693_v23, 16  ;;  %3873 = vmatpush.bf16.msra.mxu0 %v6000_v11 }
 0x294   : > { %v5417_v19 = vrot.slane %v3183_v33, 9  ;;  %v2673_v55 = vpop.f32.mrf.mxu2  ;;  %v2828_v20 = vld [vmem:[#allocation3 + $0x18] sm:$0xf]  ;;  %v2893_v50 = vrot.slane %v2892_v34, 4  ;;  %v2911_v8 = vrot.slane %v2909_v42, 5  ;;  %v6020_v29 = vld [vmem:[%s7486_s10 + $0x1e8] sm:$0xff]  ;;  %4007 = vmatpush.bf16.msra.mxu1 %v6012_v16 }
 0x295   : > { %v2732_v44 = vrot.slane %v2730_v26, 7  ;;  %v2674_v47 = vadd.f32 %v6986_v0, %v2673_v55  ;;  %3164 = vmatmul.bf16.gmra.mxu0 %v5373_v35  ;;  %v2900_v37 = vshrl.u32 %v2828_v20, 16  ;;  %v2903_v49 = vshll.u32 %v2828_v20, 16  ;;  %v5492_v12 = vld [vmem:[#allocation3 + $0x18] sm:$0xf]  ;;  %v5992_v34 = vld [vmem:[%s7486_s10 + $0x128] sm:$0xff] }
 0x296   : > { %v3219_v61 = vsel %vm6473_vm8, %v5417_v19, %v3218_v28  ;;  %v2898_v9 = vsel %vm6488_vm11, %v2893_v50, %v2897_v6  ;;  %v2807_v28 = vld [vmem:[#allocation3 + $0x30] sm:$0xf]  ;;  %v2810_v20 = vld [vmem:[#allocation3 + $0x34] sm:$0x1]  ;;  %4253 = vmatpush.bf16.msra.mxu2 %v6020_v29  ;;  %3699 = vmatpush.bf16.msrb.mxu3 %v5992_v34  ;;  %v2813_v16 = vld [vmem:[#allocation3 + $0x38] sm:$0xf] }
 0x297   : > { %v2735_v18 = vor.u32 %v2733_v53, %v2732_v44  ;;  %v2736_v60 = vrot.slane %v2732_v44, 4  ;;  %v2686_v5 = vmax.f32 %v2674_v47, 0.0  ;;  %v3256_v38 = vunpack.c.l.b16 %v3219_v61  ;;  %v6011_v61 = vld [vmem:[%s7486_s10 + $0x1a0] sm:$0xff]  ;;  %3874 = vmatpush.bf16.msra.mxu0 %v5999_v41  ;;  %v5989_v41 = vld [vmem:[%s7486_s10 + $0x110] sm:$0xff] }
 0x298   : > { %v2902_v7 = vrot.slane %v2900_v37, 4  ;;  %v2905_v54 = vrot.slane %v2903_v49, 5  ;;  %v2988_v35 = vunpack.c.l.b16 %v2898_v9  ;;  %4008 = vmatpush.bf16.msra.mxu1 %v6011_v61  ;;  %v5997_v9 = vld [vmem:[%s7486_s10 + $0x150] sm:$0xff]  ;;  %v6008_v61 = vld [vmem:[%s7486_s10 + $0x188] sm:$0xff] }
 0x299   : > { %v2802_v10 = vsel %vm6459_vm4, %v2735_v18, %v2801_v1  ;;  %v2805_v46 = vsel %vm6464_vm5, %v2736_v60, %v2804_v2  ;;  %v2694_v22 = vpack.c.bf16 %v2686_v5, %v2686_v5  ;;  %v3262_v62 = vpack.c.b16 %v3256_v38, %v3255_v48  ;;  %v7103_v31 = vld [vmem:[#allocation3 + $0x24] sm:$0x1] }
 0x29a   : > { %2806 = vst [vmem:[#allocation3 + $0x2c] sm:$0x1] %v2805_v46  ;;  %v5976_v59 = vld [vmem:[#allocation3 + $0x1c] sm:$0xf0]  ;;  %v2906_v14 = vor.u32 %v2905_v54, %v2902_v7  ;;  %v3222_v19 = vrot.slane %v7103_v31, 5  ;;  %v2923_v49 = vshll.u32 %v7103_v31, 16 }
 0x29b   : > { %2803 = vst [vmem:[#allocation3 + $0x28] sm:$0xf] %v2802_v10  ;;  %v2738_v15 = vshrl.u32 %v2694_v22, 16  ;;  %3330 = vmatmul.bf16.gmra.mxu1 %v3262_v62  ;;  %v5493_v25 = vor.u32 %v5976_v59, %v5492_v12  ;;  %v3184_v58 = vld [vmem:[#allocation3 + $0x20] sm:$0xe]  ;;  %v2741_v40 = vshll.u32 %v2694_v22, 16  ;;  %3875 = vmatpush.bf16.msra.mxu0 %v5998_v63 }
 0x29c   : > { %v2676_v17 = vpop.f32.mrf.mxu2  ;;  %v2907_v21 = vrot.slane %v2906_v14, 4  ;;  %v2829_v23 = vld [vmem:[#allocation3 + $0x20] sm:$0xf]  ;;  %v5418_v39 = vrot.slane %v3184_v58, 9  ;;  %v6010_v22 = vld [vmem:[%s7486_s10 + $0x198] sm:$0xff] }
 0x29d   : > { %v2740_v13 = vrot.slane %v2738_v15, 7  ;;  %v2677_v4 = vadd.f32 %v6986_v0, %v2676_v17  ;;  %3464 = vmatmul.bf16.gmra.mxu2 %v5493_v25  ;;  %v2914_v30 = vshrl.u32 %v2829_v23, 16  ;;  %v2917_v33 = vshll.u32 %v2829_v23, 16  ;;  %v6019_v48 = vld [vmem:[%s7486_s10 + $0x1e0] sm:$0xff]  ;;  %v6018_v62 = vld [vmem:[%s7486_s10 + $0x1d8] sm:$0xff]  ;;  %4009 = vmatpush.bf16.msra.mxu1 %v6010_v22 }
 0x29e   : > { %v2912_v26 = vsel %vm6488_vm11, %v2907_v21, %v2911_v8  ;;  %v5376_v18 = vld [vmem:[#allocation3 + $0x20] sm:$0xf]  ;;  %v3223_v7 = vsel %vm6473_vm8, %v5418_v39, %v3222_v19  ;;  %4254 = vmatpush.bf16.msra.mxu2 %v6019_v48  ;;  %v5990_v14 = vld [vmem:[%s7486_s10 + $0x118] sm:$0xff]  ;;  %v2925_v25 = vrot.slane %v2923_v49, 5  ;;  %v5996_v19 = vld [vmem:[%s7486_s10 + $0x148] sm:$0xff] }
 0x29f   : > { %v2743_v53 = vor.u32 %v2741_v40, %v2740_v13  ;;  %v2744_v55 = vrot.slane %v2740_v13, 4  ;;  %v2687_v43 = vmax.f32 %v2677_v4, 0.0  ;;  %v2989_v44 = vunpack.c.l.b16 %v2912_v26  ;;  %v5991_v1 = vld [vmem:[%s7486_s10 + $0x120] sm:$0xff]  ;;  %v2816_v40 = vld [vmem:[#allocation3 + $0x3c] sm:$0x1]  ;;  %v6009_v4 = vld [vmem:[%s7486_s10 + $0x190] sm:$0xff]  ;;  %3876 = vmatpush.bf16.msra.mxu0 %v5997_v9 }
 0x2a0   : > { %v2916_v47 = vrot.slane %v2914_v30, 4  ;;  %v2919_v37 = vrot.slane %v2917_v33, 5  ;;  %3700 = vmatpush.bf16.msrb.mxu3 %v5991_v1  ;;  %v3257_v15 = vunpack.c.l.b16 %v3223_v7  ;;  %v6017_v30 = vld [vmem:[%s7486_s10 + $0x1d0] sm:$0xff]  ;;  %v6016_v48 = vld [vmem:[%s7486_s10 + $0x1c8] sm:$0xff]  ;;  %v2822_v1 = vld [vmem:[#allocation3 + $0x44] sm:$0x1] }
 0x2a1   : > { %v2808_v50 = vsel %vm6459_vm4, %v2743_v53, %v2807_v28  ;;  %v2811_v51 = vsel %vm6464_vm5, %v2744_v55, %v2810_v20  ;;  %v2695_v52 = vpack.c.bf16 %v2687_v43, %v2687_v43  ;;  %v2995_v3 = vpack.c.b16 %v2989_v44, %v2988_v35  ;;  %v7137_v60 = vld [vmem:[#allocation3 + $0x2c] sm:$0x1]  ;;  %4010 = vmatpush.bf16.msra.mxu1 %v6009_v4  ;;  %v4042_v9 = vld [vmem:[#allocation3 + $0x10] sm:$0xf] }
 0x2a2   : > { %2812 = vst [vmem:[#allocation3 + $0x34] sm:$0x1] %v2811_v51  ;;  %v5949_v2 = vld [vmem:[#allocation3 + $0x24] sm:$0xf0]  ;;  %v3226_v56 = vrot.slane %v7137_v60, 5  ;;  %v2920_v46 = vor.u32 %v2919_v37, %v2916_v47  ;;  %v2937_v13 = vshll.u32 %v7137_v60, 16  ;;  %4255 = vmatpush.bf16.msra.mxu2 %v6018_v62 }
 0x2a3   : > { %v3185_v5 = vld [vmem:[#allocation3 + $0x28] sm:$0xe]  ;;  %2809 = vst [vmem:[#allocation3 + $0x30] sm:$0xf] %v2808_v50  ;;  %v2746_v38 = vshrl.u32 %v2695_v52, 16  ;;  %3063 = vmatmul.bf16.gmra.mxu3 %v2995_v3  ;;  %v5377_v6 = vor.u32 %v5949_v2, %v5376_v18  ;;  %v2749_v42 = vshll.u32 %v2695_v52, 16  ;;  %3877 = vmatpush.bf16.msra.mxu0 %v5996_v19 }
 0x2a4   : > { %v5419_v54 = vrot.slane %v3185_v5, 9  ;;  %v2678_v24 = vpop.f32.mrf.mxu2  ;;  %v2830_v10 = vld [vmem:[#allocation3 + $0x28] sm:$0xf]  ;;  %v2921_v8 = vrot.slane %v2920_v46, 4  ;;  %3701 = vmatpush.bf16.msrb.mxu3 %v5990_v14  ;;  %v2939_v49 = vrot.slane %v2937_v13, 5  ;;  %v4059_v4 = vshrl.u32 %v4042_v9, 16 }
 0x2a5   : > { %v2748_v12 = vrot.slane %v2746_v38, 7  ;;  %v2679_v11 = vadd.f32 %v6986_v0, %v2678_v24  ;;  %3169 = vmatmul.bf16.gmra.mxu0 %v5377_v6  ;;  %v2928_v45 = vshrl.u32 %v2830_v10, 16  ;;  %v2931_v59 = vshll.u32 %v2830_v10, 16  ;;  %v5496_v39 = vld [vmem:[#allocation3 + $0x28] sm:$0xf]  ;;  %v5995_v6 = vld [vmem:[%s7486_s10 + $0x140] sm:$0xff]  ;;  %4011 = vmatpush.bf16.msra.mxu1 %v6008_v61 }
 0x2a6   : > { %v3227_v31 = vsel %vm6473_vm8, %v5419_v54, %v3226_v56  ;;  %v2926_v47 = vsel %vm6488_vm11, %v2921_v8, %v2925_v25  ;;  %4256 = vmatpush.bf16.msra.mxu2 %v6017_v30  ;;  %v5988_v18 = vld [vmem:[%s7486_s10 + $0x108] sm:$0xff]  ;;  %v2819_v60 = vld [vmem:[#allocation3 + $0x40] sm:$0xf] }
 0x2a7   : > { %v2751_v58 = vor.u32 %v2749_v42, %v2748_v12  ;;  %v2752_v0 = vrot.slane %v2748_v12, 4  ;;  %v2688_v17 = vmax.f32 %v2679_v11, 0.0  ;;  %v3258_v21 = vunpack.c.l.b16 %v3227_v31  ;;  %v7196_v56 = vld [vmem:[#allocation3 + $0xc] sm:$0x1]  ;;  %v7198_v10 = vld [vmem:[#allocation3 + $0x8] sm:$0xe]  ;;  %3878 = vmatpush.bf16.msra.mxu0 %v5995_v6 }
 0x2a8   : > { %v2930_v23 = vrot.slane %v2928_v45, 4  ;;  %v2933_v29 = vrot.slane %v2931_v59, 5  ;;  %3702 = vmatpush.bf16.msrb.mxu3 %v5989_v41  ;;  %v2990_v42 = vunpack.c.l.b16 %v2926_v47  ;;  %v6007_v12 = vld [vmem:[%s7486_s10 + $0x180] sm:$0xff]  ;;  %v3760_v13 = vrot.slane %v7196_v56, 5  ;;  %v3488_v47 = vld [vmem:[#allocation3 + $0x8] sm:$0xf] }
 0x2a9   : > { %v2814_v33 = vsel %vm6459_vm4, %v2751_v58, %v2813_v16  ;;  %v2817_v34 = vsel %vm6464_vm5, %v2752_v0, %v2816_v40  ;;  %v2696_v26 = vpack.c.bf16 %v2688_v17, %v2688_v17  ;;  %v3263_v35 = vpack.c.b16 %v3258_v21, %v3257_v15  ;;  %v7177_v28 = vld [vmem:[#allocation3 + $0x34] sm:$0x1]  ;;  %v6015_v11 = vld [vmem:[%s7486_s10 + $0x1c0] sm:$0xff]  ;;  %v3735_v21 = vld [vmem:[#allocation3 + $0x10] sm:$0xe]  ;;  %4012 = vmatpush.bf16.msra.mxu1 %v6007_v12 }
 0x2aa   : > { %2818 = vst [vmem:[#allocation3 + $0x3c] sm:$0x1] %v2817_v34  ;;  %v5977_v53 = vld [vmem:[#allocation3 + $0x2c] sm:$0xf0]  ;;  %v2934_v55 = vor.u32 %v2933_v29, %v2930_v23  ;;  %v3230_v38 = vrot.slane %v7177_v28, 5  ;;  %4257 = vmatpush.bf16.msra.mxu2 %v6016_v48  ;;  %v5987_v25 = vld [vmem:[%s7486_s10 + $0x100] sm:$0xff] }
 0x2ab   : > { %2815 = vst [vmem:[#allocation3 + $0x38] sm:$0xf] %v2814_v33  ;;  %v2754_v20 = vshrl.u32 %v2696_v26, 16  ;;  %3335 = vmatmul.bf16.gmra.mxu1 %v3263_v35  ;;  %v5497_v43 = vor.u32 %v5977_v53, %v5496_v39  ;;  %v3186_v44 = vld [vmem:[#allocation3 + $0x30] sm:$0xe]  ;;  %v2757_v51 = vshll.u32 %v2696_v26, 16 }
 0x2ac   : > { %v2935_v37 = vrot.slane %v2934_v55, 4  ;;  %v2831_v63 = vld [vmem:[#allocation3 + $0x30] sm:$0xf]  ;;  %v5420_v5 = vrot.slane %v3186_v44, 9  ;;  %v7210_v15 = vld [vmem:[#allocation3 + $0x14] sm:$0x1]  ;;  %3703 = vmatpush.bf16.msrb.mxu3 %v5988_v18 }
 0x2ad   : > { %v2756_v50 = vrot.slane %v2754_v20, 7  ;;  %3469 = vmatmul.bf16.gmra.mxu2 %v5497_v43  ;;  %v2942_v52 = vshrl.u32 %v2831_v63, 16  ;;  %v2945_v3 = vshll.u32 %v2831_v63, 16  ;;  %v5380_v46 = vld [vmem:[#allocation3 + $0x30] sm:$0xf]  ;;  %v2951_v23 = vshll.u32 %v7177_v28, 16 }
 0x2ae   : > { %v2940_v2 = vsel %vm6488_vm11, %v2935_v37, %v2939_v49  ;;  %v3231_v32 = vsel %vm6473_vm8, %v5420_v5, %v3230_v38  ;;  %v5582_v29 = vrot.slane %v7198_v10, 9  ;;  %4258 = vmatpush.bf16.msra.mxu2 %v6015_v11  ;;  %v4044_v26 = vld [vmem:[#allocation3 + $0x18] sm:$0xf]  ;;  %v4062_v35 = vshll.u32 %v4042_v9, 16  ;;  %v7223_v44 = vld [vmem:[#allocation3 + $0x1c] sm:$0x1] }
 0x2af   : > { %v2759_v7 = vor.u32 %v2757_v51, %v2756_v50  ;;  %v2760_v54 = vrot.slane %v2756_v50, 4  ;;  %v2991_v24 = vunpack.c.l.b16 %v2940_v2  ;;  %v2944_v22 = vrot.slane %v2942_v52, 4  ;;  %v3490_v48 = vld [vmem:[#allocation3 + $0x10] sm:$0xf] }
 0x2b0   : > { %v2947_v62 = vrot.slane %v2945_v3, 5  ;;  %3704 = vmatpush.bf16.msrb.mxu3 %v5987_v25  ;;  %v3259_v39 = vunpack.c.l.b16 %v3231_v32  ;;  %v5583_v41 = vrot.slane %v3735_v21, 9  ;;  %v3764_v53 = vrot.slane %v7210_v15, 5 }
 0x2b1   : > { %v2820_v45 = vsel %vm6459_vm4, %v2759_v7, %v2819_v60  ;;  %v2823_v59 = vsel %vm6464_vm5, %v2760_v54, %v2822_v1  ;;  %v2996_v14 = vpack.c.b16 %v2991_v24, %v2990_v42  ;;  %v2856_v31 = vld [vmem:[#allocation3 + $0x3c] sm:$0x1]  ;;  %v2953_v63 = vrot.slane %v2951_v23, 5  ;;  %v7231_v42 = vld [vmem:[#allocation3 + $0x14] sm:$0x1] }
 0x2b2   : > { %2821 = vst [vmem:[#allocation3 + $0x40] sm:$0xf] %v2820_v45  ;;  %v5950_v58 = vld [vmem:[#allocation3 + $0x34] sm:$0xf0]  ;;  %v3234_v40 = vrot.slane %v2856_v31, 5  ;;  %v2948_v17 = vor.u32 %v2947_v62, %v2944_v22  ;;  %v2965_v43 = vshll.u32 %v2856_v31, 16  ;;  %v3761_v1 = vsel %vm6473_vm8, %v5582_v29, %v3760_v13 }
 0x2b3   : > { %v3187_v0 = vld [vmem:[#allocation3 + $0x38] sm:$0xe]  ;;  %2824 = vst [vmem:[#allocation3 + $0x44] sm:$0x1] %v2823_v59  ;;  %3068 = vmatmul.bf16.gmra.mxu3 %v2996_v14  ;;  %v5381_v36 = vor.u32 %v5950_v58, %v5380_v46  ;;  %v4073_v61 = vshrl.u32 %v4044_v26, 16  ;;  %v4061_v52 = vrot.slane %v4059_v4, 4  ;;  %v3765_v2 = vsel %vm6473_vm8, %v5583_v41, %v3764_v53 }
 0x2b4   : > { %v5421_v16 = vrot.slane %v3187_v0, 9  ;;  %v2832_v8 = vld [vmem:[#allocation3 + $0x38] sm:$0xf]  ;;  %v2949_v55 = vrot.slane %v2948_v17, 4  ;;  %v4064_v3 = vrot.slane %v4062_v35, 5  ;;  %v4076_v18 = vshll.u32 %v4044_v26, 16 }
 0x2b5   : > { %3174 = vmatmul.bf16.gmra.mxu0 %v5381_v36  ;;  %v2956_v33 = vshrl.u32 %v2832_v8, 16  ;;  %v2959_v34 = vshll.u32 %v2832_v8, 16  ;;  %v5500_v49 = vld [vmem:[#allocation3 + $0x38] sm:$0xf]  ;;  %v4075_v5 = vrot.slane %v4073_v61, 4  ;;  %v2967_v7 = vrot.slane %v2965_v43, 5 }
 0x2b6   : > { %v3235_v30 = vsel %vm6473_vm8, %v5421_v16, %v3234_v40  ;;  %v2954_v38 = vsel %vm6488_vm11, %v2949_v55, %v2953_v63  ;;  %v4078_v54 = vrot.slane %v4076_v18, 5  ;;  %v4082_v24 = vshll.u32 %v7223_v44, 16  ;;  %v4046_v17 = vld [vmem:[#allocation3 + $0x20] sm:$0xf]  ;;  %v6003_v13 = vld [vmem:[#allocation3 + $0x14] sm:$0xf0] }
 0x2b7   : > { %v3260_v19 = vunpack.c.l.b16 %v3235_v30  ;;  %v2958_v28 = vrot.slane %v2956_v33, 4  ;;  %v2961_v20 = vrot.slane %v2959_v34, 5  ;;  %v3505_v10 = vshrl.u32 %v3488_v47, 16  ;;  %v3737_v30 = vld [vmem:[#allocation3 + $0x20] sm:$0xe] }
 0x2b8   : > { %v3508_v46 = vshll.u32 %v3488_v47, 16  ;;  %v3519_v22 = vshrl.u32 %v3490_v48, 16  ;;  %v4065_v12 = vor.u32 %v4064_v3, %v4061_v52  ;;  %v4079_v11 = vor.u32 %v4078_v54, %v4075_v5  ;;  %v4048_v26 = vld [vmem:[#allocation3 + $0x28] sm:$0xf]  ;;  %v7241_v55 = vld [vmem:[#allocation3 + $0x24] sm:$0x1] }
 0x2b9   : > { %v3264_v37 = vpack.c.b16 %v3260_v19, %v3259_v39  ;;  %v5978_v50 = vld [vmem:[#allocation3 + $0x3c] sm:$0xf0]  ;;  %v2962_v51 = vor.u32 %v2961_v20, %v2958_v28  ;;  %v3522_v45 = vshll.u32 %v3490_v48, 16  ;;  %v2992_v59 = vunpack.c.l.b16 %v2954_v38  ;;  %v5656_v19 = vld [vmem:[#allocation3 + $0x10] sm:$0xf] }
 0x2ba   : > { %v5501_v60 = vor.u32 %v5978_v50, %v5500_v49  ;;  %v3808_v31 = vunpack.c.l.b16 %v3765_v2  ;;  %v4068_v25 = vshll.u32 %v7231_v42, 16  ;;  %v4080_v9 = vrot.slane %v4079_v11, 4  ;;  %v7245_v43 = vld [vmem:[#allocation3 + $0x1c] sm:$0x1]  ;;  %v3736_v47 = vld [vmem:[#allocation3 + $0x18] sm:$0xe] }
 0x2bb   : > { %3340 = vmatmul.bf16.gmra.mxu1 %v3264_v37  ;;  %v2963_v6 = vrot.slane %v2962_v51, 4  ;;  %v3521_v58 = vrot.slane %v3519_v22, 4  ;;  %v3524_v0 = vrot.slane %v3522_v45, 5  ;;  %v3807_v36 = vunpack.c.l.b16 %v3761_v1  ;;  %v3492_v48 = vld [vmem:[#allocation3 + $0x18] sm:$0xf] }
 0x2bc   : > { %v3507_v16 = vrot.slane %v3505_v10, 4  ;;  %v3510_v40 = vrot.slane %v3508_v46, 5  ;;  %v4066_v21 = vrot.slane %v4065_v12, 4  ;;  %v4084_v8 = vrot.slane %v4082_v24, 5  ;;  %v3494_v3 = vld [vmem:[#allocation3 + $0x20] sm:$0xf] }
 0x2bd   : > { %3474 = vmatmul.bf16.gmra.mxu2 %v5501_v60  ;;  %v2968_v62 = vsel %vm6488_vm11, %v2963_v6, %v2967_v7  ;;  %v3525_v23 = vor.u32 %v3524_v0, %v3521_v58  ;;  %v3815_v29 = vpack.c.b16 %v3808_v31, %v3807_v36  ;;  %v3528_v4 = vshll.u32 %v7210_v15, 16  ;;  %v7251_v7 = vld [vmem:[#allocation3 + $0x24] sm:$0x1]  ;;  %v7253_v24 = vld [vmem:[#allocation3 + $0x2c] sm:$0x1] }
 0x2be   : > { %v2993_v14 = vunpack.c.l.b16 %v2968_v62  ;;  %v4070_v33 = vrot.slane %v4068_v25, 5  ;;  %v4085_v34 = vsel %vm6488_vm11, %v4080_v9, %v4084_v8  ;;  %v4087_v35 = vshrl.u32 %v4046_v17, 16  ;;  %v7261_v0 = vld [vmem:[#allocation3 + $0x24] sm:$0xf0] }
 0x2bf   : > { %v4090_v39 = vshll.u32 %v4046_v17, 16  ;;  %v3511_v41 = vor.u32 %v3510_v40, %v3507_v16  ;;  %v3514_v53 = vshll.u32 %v7196_v56, 16  ;;  %v5657_v28 = vor.u32 %v6003_v13, %v5656_v19 }
 0x2c0   : > { %v2997_v32 = vpack.c.b16 %v2993_v14, %v2992_v59  ;;  %v4071_v15 = vsel %vm6488_vm11, %v4066_v21, %v4070_v33  ;;  %v3526_v20 = vrot.slane %v3525_v23, 4  ;;  %v4188_v37 = vunpack.c.l.b16 %v4085_v34  ;;  %v4050_v21 = vld [vmem:[#allocation3 + $0x30] sm:$0xf]  ;;  %v7265_v23 = vld [vmem:[#allocation3 + $0x20] sm:$0xf] }
 0x2c1   : > { %v3530_v49 = vrot.slane %v3528_v4, 5  ;;  %v5585_v63 = vrot.slane %v3737_v30, 9  ;;  %v4101_v61 = vshrl.u32 %v4048_v26, 16  ;;  %v3772_v50 = vrot.slane %v7241_v55, 5 }
 0x2c2   : > { %v4089_v51 = vrot.slane %v4087_v35, 4  ;;  %v4092_v56 = vrot.slane %v4090_v39, 5  ;;  %v4104_v52 = vshll.u32 %v4048_v26, 16  ;;  %v4187_v18 = vunpack.c.l.b16 %v4071_v15  ;;  %v3738_v26 = vld [vmem:[#allocation3 + $0x28] sm:$0xe] }
 0x2c3   : > { %3073 = vmatmul.bf16.gmra.mxu3 %v2997_v32  ;;  %v3512_v60 = vrot.slane %v3511_v41, 4  ;;  %v3516_v1 = vrot.slane %v3514_v53, 5  ;;  %v4103_v2 = vrot.slane %v4101_v61, 4  ;;  %v3531_v5 = vsel %vm6488_vm11, %v3526_v20, %v3530_v49  ;;  %v4052_v35 = vld [vmem:[#allocation3 + $0x38] sm:$0xf] }
 0x2c4   : > { %v5584_v38 = vrot.slane %v3736_v47, 9  ;;  %v3768_v6 = vrot.slane %v7245_v43, 5  ;;  %v4106_v54 = vrot.slane %v4104_v52, 5  ;;  %v3533_v10 = vshrl.u32 %v3492_v48, 16  ;;  %v7277_v61 = vld [vmem:[#allocation3 + $0x34] sm:$0x1] }
 0x2c5   : > { %3879 = vmatmul.bf16.vlgmr.msra.gmra.mxu0 %v3815_v29  ;;  %v3536_v46 = vshll.u32 %v3492_v48, 16  ;;  %v3547_v22 = vshrl.u32 %v3494_v3, 16  ;;  %v3550_v62 = vshll.u32 %v3494_v3, 16  ;;  %v4195_v12 = vpack.c.b16 %v4188_v37, %v4187_v18  ;;  %v7271_v37 = vld [vmem:[#allocation3 + $0x2c] sm:$0x1] }
 0x2c6   : > { %v3773_v11 = vsel %vm6473_vm8, %v5585_v63, %v3772_v50  ;;  %v4093_v45 = vor.u32 %v4092_v56, %v4089_v51  ;;  %v4107_v59 = vor.u32 %v4106_v54, %v4103_v2  ;;  %v3517_v14 = vsel %vm6488_vm11, %v3512_v60, %v3516_v1  ;;  %v3739_v48 = vld [vmem:[#allocation3 + $0x30] sm:$0xe]  ;;  %v6030_v56 = vld [vmem:[%s7486_s10 + $0x238] sm:$0xff] }
 0x2c7   : > { %v3549_v31 = vrot.slane %v3547_v22, 4  ;;  %v3552_v25 = vrot.slane %v3550_v62, 5  ;;  %v3634_v9 = vunpack.c.l.b16 %v3531_v5  ;;  %v3769_v58 = vsel %vm6473_vm8, %v5584_v38, %v3768_v6  ;;  %v3498_v18 = vld [vmem:[#allocation3 + $0x30] sm:$0xf]  ;;  %4425 = vmatpush.bf16.msra.mxu3 %v6030_v56  ;;  %v7286_v22 = vld [vmem:[#allocation3 + $0x3c] sm:$0x1] }
 0x2c8   : > { %v4096_v32 = vshll.u32 %v7251_v7, 16  ;;  %v4110_v36 = vshll.u32 %v7253_v24, 16  ;;  %v3810_v16 = vunpack.c.l.b16 %v3773_v11  ;;  %v3535_v40 = vrot.slane %v3533_v10, 4  ;;  %v6029_v6 = vld [vmem:[%s7486_s10 + $0x230] sm:$0xff] }
 0x2c9   : > { %v3538_v17 = vrot.slane %v3536_v46, 5  ;;  %v3633_v8 = vunpack.c.l.b16 %v3517_v14  ;;  %v4094_v29 = vrot.slane %v4093_v45, 4  ;;  %v4108_v13 = vrot.slane %v4107_v59, 4 }
 0x2ca   : > { %v3809_v4 = vunpack.c.l.b16 %v3769_v58  ;;  %v5661_v30 = vor.u32 %v7261_v0, %v7265_v23  ;;  %v3553_v33 = vor.u32 %v3552_v25, %v3549_v31  ;;  %v3556_v34 = vshll.u32 %v7241_v55, 16 }
 0x2cb   : > { %4013 = vmatmul.bf16.vlgmr.msra.gmra.mxu1 %v5657_v28  ;;  %v3641_v39 = vpack.c.b16 %v3634_v9, %v3633_v8  ;;  %v4098_v19 = vrot.slane %v4096_v32, 5  ;;  %v4112_v41 = vrot.slane %v4110_v36, 5  ;;  %v4115_v53 = vshrl.u32 %v4050_v21, 16  ;;  %v3496_v28 = vld [vmem:[#allocation3 + $0x28] sm:$0xf]  ;;  %4426 = vmatpush.bf16.msra.mxu3 %v6029_v6 }
 0x2cc   : > { %v3816_v15 = vpack.c.b16 %v3810_v16, %v3809_v4  ;;  %v3539_v20 = vor.u32 %v3538_v17, %v3535_v40  ;;  %v3542_v47 = vshll.u32 %v7245_v43, 16  ;;  %v4118_v49 = vshll.u32 %v4050_v21, 16  ;;  %v7289_v9 = vld [vmem:[#allocation3 + $0x34] sm:$0x1]  ;;  %v6028_v40 = vld [vmem:[%s7486_s10 + $0x228] sm:$0xff] }
 0x2cd   : > { %4259 = vmatmul.bf16.vlgmr.msra.gmra.mxu2 %v4195_v12  ;;  %v4099_v63 = vsel %vm6488_vm11, %v4094_v29, %v4098_v19  ;;  %v4113_v55 = vsel %vm6488_vm11, %v4108_v13, %v4112_v41  ;;  %v5586_v50 = vrot.slane %v3738_v26, 9  ;;  %v4129_v51 = vshrl.u32 %v4052_v35, 16  ;;  %v3740_v26 = vld [vmem:[#allocation3 + $0x38] sm:$0xe]  ;;  %v7306_v19 = vld [vmem:[#allocation3 + $0x44] sm:$0x1] }
 0x2ce   : > { %v3554_v43 = vrot.slane %v3553_v33, 4  ;;  %v3558_v52 = vrot.slane %v3556_v34, 5  ;;  %v4132_v3 = vshll.u32 %v4052_v35, 16  ;;  %v3561_v60 = vshrl.u32 %v3496_v28, 16  ;;  %v7302_v34 = vld [vmem:[#allocation3 + $0x3c] sm:$0x1] }
 0x2cf   : > { %v4117_v1 = vrot.slane %v4115_v53, 4  ;;  %v4120_v2 = vrot.slane %v4118_v49, 5  ;;  %v4131_v5 = vrot.slane %v4129_v51, 4  ;;  %v3564_v38 = vshll.u32 %v3496_v28, 16  ;;  %4427 = vmatpush.bf16.msra.mxu3 %v6028_v40  ;;  %v6005_v6 = vld [vmem:[#allocation3 + $0x34] sm:$0xf0] }
 0x2d0   : > { %v4190_v54 = vunpack.c.l.b16 %v4113_v55  ;;  %v3540_v10 = vrot.slane %v3539_v20, 4  ;;  %v3776_v46 = vrot.slane %v7271_v37, 5  ;;  %v4134_v62 = vrot.slane %v4132_v3, 5  ;;  %v6027_v20 = vld [vmem:[%s7486_s10 + $0x220] sm:$0xff] }
 0x2d1   : > { %v3563_v12 = vrot.slane %v3561_v60, 4  ;;  %v3566_v11 = vrot.slane %v3564_v38, 5  ;;  %v3575_v45 = vshrl.u32 %v3498_v18, 16  ;;  %v3578_v59 = vshll.u32 %v3498_v18, 16  ;;  %v4056_v60 = vld [vmem:[#allocation3 + $0x48] sm:$0xf] }
 0x2d2   : > { %v3544_v14 = vrot.slane %v3542_v47, 5  ;;  %v5587_v31 = vrot.slane %v3739_v48, 9  ;;  %v3780_v25 = vrot.slane %v7277_v61, 5  ;;  %v4135_v58 = vor.u32 %v4134_v62, %v4131_v5  ;;  %v4054_v48 = vld [vmem:[#allocation3 + $0x40] sm:$0xf] }
 0x2d3   : > { %3705 = vmatmul.bf16.vlgmr.msrb.gmra.mxu3 %v3641_v39  ;;  %v4189_v0 = vunpack.c.l.b16 %v4099_v63  ;;  %v3559_v32 = vsel %vm6488_vm11, %v3554_v43, %v3558_v52  ;;  %v4121_v36 = vor.u32 %v4120_v2, %v4117_v1  ;;  %v4138_v16 = vshll.u32 %v7286_v22, 16  ;;  %v4288_v62 = vld [vmem:[#allocation3 + $0x10] sm:$0xe] }
 0x2d4   : > { %v3545_v17 = vsel %vm6488_vm11, %v3540_v10, %v3544_v14  ;;  %v3777_v21 = vsel %vm6473_vm8, %v5586_v50, %v3776_v46  ;;  %v3577_v8 = vrot.slane %v3575_v45, 4  ;;  %v3580_v23 = vrot.slane %v3578_v59, 5  ;;  %4428 = vmatpush.bf16.msra.mxu3 %v6027_v20  ;;  %v6026_v14 = vld [vmem:[%s7486_s10 + $0x218] sm:$0xff] }
 0x2d5   : > { %3884 = vmatmul.bf16.gmra.mxu0 %v3816_v15  ;;  %v4196_v29 = vpack.c.b16 %v4190_v54, %v4189_v0  ;;  %v4124_v13 = vshll.u32 %v7289_v9, 16  ;;  %v4136_v4 = vrot.slane %v4135_v58, 4  ;;  %v3567_v33 = vor.u32 %v3566_v11, %v3563_v12  ;;  %v3741_v15 = vld [vmem:[#allocation3 + $0x40] sm:$0xe]  ;;  %v5664_v12 = vld [vmem:[#allocation3 + $0x30] sm:$0xf] }
 0x2d6   : > { %v3636_v35 = vunpack.c.l.b16 %v3559_v32  ;;  %v3781_v39 = vsel %vm6473_vm8, %v5587_v31, %v3780_v25  ;;  %v3811_v41 = vunpack.c.l.b16 %v3777_v21  ;;  %v4122_v53 = vrot.slane %v4121_v36, 4  ;;  %v7332_v0 = vld [vmem:[#allocation3 + $0x44] sm:$0x1]  ;;  %v4289_v32 = vld [vmem:[#allocation3 + $0x18] sm:$0xe]  ;;  %v6025_v21 = vld [vmem:[%s7486_s10 + $0x210] sm:$0xff] }
 0x2d7   : > { %v4140_v28 = vrot.slane %v4138_v16, 5  ;;  %v3635_v47 = vunpack.c.l.b16 %v3545_v17  ;;  %v3581_v49 = vor.u32 %v3580_v23, %v3577_v8  ;;  %v5588_v63 = vrot.slane %v3740_v26, 9  ;;  %v4290_v8 = vld [vmem:[#allocation3 + $0x20] sm:$0xe] }
 0x2d8   : > { %v3784_v55 = vrot.slane %v7302_v34, 5  ;;  %v3812_v50 = vunpack.c.l.b16 %v3781_v39  ;;  %v4126_v51 = vrot.slane %v4124_v13, 5  ;;  %v3568_v43 = vrot.slane %v3567_v33, 4  ;;  %4429 = vmatpush.bf16.msra.mxu3 %v6026_v14  ;;  %v3500_v33 = vld [vmem:[#allocation3 + $0x38] sm:$0xf] }
 0x2d9   : > { %v4141_v56 = vsel %vm6488_vm11, %v4136_v4, %v4140_v28  ;;  %v3642_v52 = vpack.c.b16 %v3636_v35, %v3635_v47  ;;  %v5589_v3 = vrot.slane %v3741_v15, 9  ;;  %v3788_v18 = vrot.slane %v7306_v19, 5  ;;  %v7340_v4 = vld [vmem:[#allocation3 + $0x4c] sm:$0x1]  ;;  %v3502_v28 = vld [vmem:[#allocation3 + $0x40] sm:$0xf] }
 0x2da   : > { %v4127_v1 = vsel %vm6488_vm11, %v4122_v53, %v4126_v51  ;;  %v4143_v5 = vshrl.u32 %v4054_v48, 16  ;;  %v4146_v38 = vshll.u32 %v4054_v48, 16  ;;  %v4192_v54 = vunpack.c.l.b16 %v4141_v56  ;;  %v4291_v48 = vld [vmem:[#allocation3 + $0x28] sm:$0xe] }
 0x2db   : > { %4018 = vmatmul.bf16.gmra.mxu1 %v5661_v30  ;;  %v3570_v30 = vshll.u32 %v7271_v37, 16  ;;  %v3584_v37 = vshll.u32 %v7277_v61, 16  ;;  %v3582_v10 = vrot.slane %v3581_v49, 4  ;;  %v7321_v46 = vsel %vm6473_vm8, %v5588_v63, %v3784_v55  ;;  %v6024_v55 = vld [vmem:[%s7486_s10 + $0x208] sm:$0xff] }
 0x2dc   : > { %v3817_v61 = vpack.c.b16 %v3812_v50, %v3811_v41  ;;  %v4157_v45 = vshrl.u32 %v4056_v60, 16  ;;  %v4160_v59 = vshll.u32 %v4056_v60, 16  ;;  %v4191_v31 = vunpack.c.l.b16 %v4127_v1  ;;  %4430 = vmatpush.bf16.msra.mxu3 %v6025_v21  ;;  %v4292_v60 = vld [vmem:[#allocation3 + $0x30] sm:$0xe] }
 0x2dd   : > { %4264 = vmatmul.bf16.gmra.mxu2 %v4196_v29  ;;  %v3572_v2 = vrot.slane %v3570_v30, 5  ;;  %v3586_v25 = vrot.slane %v3584_v37, 5  ;;  %v7330_v58 = vsel %vm6473_vm8, %v5589_v3, %v3788_v18  ;;  %v5665_v36 = vor.u32 %v6005_v6, %v5664_v12 }
 0x2de   : > { %v3813_v16 = vunpack.c.l.b16 %v7321_v46  ;;  %v4145_v40 = vrot.slane %v4143_v5, 4  ;;  %v4148_v17 = vrot.slane %v4146_v38, 5  ;;  %v4197_v23 = vpack.c.b16 %v4192_v54, %v4191_v31  ;;  %v6023_v54 = vld [vmem:[%s7486_s10 + $0x200] sm:$0xff] }
 0x2df   : > { %v3573_v11 = vsel %vm6488_vm11, %v3568_v43, %v3572_v2  ;;  %v3587_v29 = vsel %vm6488_vm11, %v3582_v10, %v3586_v25  ;;  %v5750_v26 = vrot.slane %v4288_v62, 9  ;;  %v3814_v35 = vunpack.c.l.b16 %v7330_v58  ;;  %v4293_v58 = vld [vmem:[#allocation3 + $0x38] sm:$0xe] }
 0x2e0   : > { %v3637_v13 = vunpack.c.l.b16 %v3573_v11  ;;  %v4152_v39 = vshll.u32 %v7332_v0, 16  ;;  %v4159_v41 = vrot.slane %v4157_v45, 4  ;;  %v4162_v53 = vrot.slane %v4160_v59, 5  ;;  %4431 = vmatpush.bf16.msra.mxu3 %v6024_v55 }
 0x2e1   : > { %v4166_v30 = vshll.u32 %v7340_v4, 16  ;;  %v4314_v15 = vrot.slane %v7231_v42, 5  ;;  %v5751_v20 = vrot.slane %v4289_v32, 9  ;;  %v4318_v47 = vrot.slane %v7223_v44, 5 }
 0x2e2   : > { %v4149_v49 = vor.u32 %v4148_v17, %v4145_v40  ;;  %v3589_v63 = vshrl.u32 %v3500_v33, 16  ;;  %v5752_v50 = vrot.slane %v4290_v8, 9  ;;  %v4322_v51 = vrot.slane %v7251_v7, 5 }
 0x2e3   : > { %3710 = vmatmul.bf16.gmra.mxu3 %v3642_v52  ;;  %v3603_v56 = vshrl.u32 %v3502_v28, 16  ;;  %v3606_v43 = vshll.u32 %v3502_v28, 16  ;;  %v4315_v52 = vsel %vm6473_vm8, %v5750_v26, %v4314_v15  ;;  %v4319_v42 = vsel %vm6473_vm8, %v5751_v20, %v4318_v47 }
 0x2e4   : > { %v4163_v44 = vor.u32 %v4162_v53, %v4159_v41  ;;  %v3592_v37 = vshll.u32 %v3500_v33, 16  ;;  %v4361_v3 = vunpack.c.l.b16 %v4315_v52  ;;  %v4362_v18 = vunpack.c.l.b16 %v4319_v42  ;;  %4432 = vmatpush.bf16.msra.mxu3 %v6023_v54 }
 0x2e5   : > { %3889 = vmatmul.bf16.gmra.mxu0 %v3817_v61  ;;  %v3638_v1 = vunpack.c.l.b16 %v3587_v29  ;;  %v4168_v2 = vrot.slane %v4166_v30, 5  ;;  %v4323_v5 = vsel %vm6473_vm8, %v5752_v50, %v4322_v51  ;;  %v5753_v7 = vrot.slane %v4291_v48, 9 }
 0x2e6   : > { %v4150_v38 = vrot.slane %v4149_v49, 4  ;;  %v3591_v6 = vrot.slane %v3589_v63, 4  ;;  %v4369_v10 = vpack.c.b16 %v4362_v18, %v4361_v3  ;;  %v4326_v62 = vrot.slane %v7253_v24, 5  ;;  %v4295_v49 = vld [vmem:[#allocation3 + $0x48] sm:$0xe] }
 0x2e7   : > { %v3605_v61 = vrot.slane %v3603_v56, 4  ;;  %v3608_v12 = vrot.slane %v3606_v43, 5  ;;  %v5754_v11 = vrot.slane %v4292_v60, 9  ;;  %v4330_v45 = vrot.slane %v7289_v9, 5 }
 0x2e8   : > { %v4164_v59 = vrot.slane %v4163_v44, 4  ;;  %v3594_v14 = vrot.slane %v3592_v37, 5  ;;  %v4327_v31 = vsel %vm6473_vm8, %v5753_v7, %v4326_v62  ;;  %v4363_v25 = vunpack.c.l.b16 %v4323_v5 }
 0x2e9   : > { %v4364_v32 = vunpack.c.l.b16 %v4327_v31  ;;  %v5755_v40 = vrot.slane %v4293_v58, 9  ;;  %v4334_v17 = vrot.slane %v7286_v22, 5  ;;  %v3643_v24 = vpack.c.b16 %v3638_v1, %v3637_v13  ;;  %v5668_v13 = vld [vmem:[#allocation3 + $0x40] sm:$0xf] }
 0x2ea   : > { %v3818_v21 = vpack.c.b16 %v3814_v35, %v3813_v16  ;;  %v4154_v9 = vrot.slane %v4152_v39, 5  ;;  %v3609_v8 = vor.u32 %v3608_v12, %v3605_v61  ;;  %v3595_v33 = vor.u32 %v3594_v14, %v3591_v6  ;;  %v6006_v35 = vld [vmem:[#allocation3 + $0x44] sm:$0xf0] }
 0x2eb   : > { %4023 = vmatmul.bf16.gmra.mxu1 %v5665_v36  ;;  %v4331_v36 = vsel %vm6473_vm8, %v5754_v11, %v4330_v45  ;;  %v4335_v29 = vsel %vm6473_vm8, %v5755_v40, %v4334_v17  ;;  %v3612_v26 = vshll.u32 %v7306_v19, 16  ;;  %v4169_v46 = vsel %vm6488_vm11, %v4164_v59, %v4168_v2  ;;  %v4294_v19 = vld [vmem:[#allocation3 + $0x40] sm:$0xe] }
 0x2ec   : > { %v4365_v41 = vunpack.c.l.b16 %v4331_v36  ;;  %v4366_v53 = vunpack.c.l.b16 %v4335_v29  ;;  %v4155_v22 = vsel %vm6488_vm11, %v4150_v38, %v4154_v9  ;;  %v3598_v39 = vshll.u32 %v7302_v34, 16 }
 0x2ed   : > { %4269 = vmatmul.bf16.gmra.mxu2 %v4197_v23  ;;  %v4370_v23 = vpack.c.b16 %v4364_v32, %v4363_v25  ;;  %v3610_v28 = vrot.slane %v3609_v8, 4  ;;  %v4193_v30 = vunpack.c.l.b16 %v4155_v22  ;;  %v4194_v15 = vunpack.c.l.b16 %v4169_v46 }
 0x2ee   : > { %v4371_v16 = vpack.c.b16 %v4366_v53, %v4365_v41  ;;  %v3596_v20 = vrot.slane %v3595_v33, 4  ;;  %v3614_v47 = vrot.slane %v3612_v26, 5  ;;  %v5756_v63 = vrot.slane %v4294_v19, 9 }
 0x2ef   : > { %v4338_v55 = vrot.slane %v7332_v0, 5  ;;  %v5757_v48 = vrot.slane %v4295_v49, 9  ;;  %v4342_v50 = vrot.slane %v7340_v4, 5  ;;  %v5669_v51 = vor.u32 %v6006_v35, %v5668_v13 }
 0x2f0   : > { %v3600_v56 = vrot.slane %v3598_v39, 5  ;;  %v3615_v43 = vsel %vm6488_vm11, %v3610_v28, %v3614_v47  ;;  %v4198_v42 = vpack.c.b16 %v4194_v15, %v4193_v30 }
 0x2f1   : > { %v4339_v34 = vsel %vm6473_vm8, %v5756_v63, %v4338_v55  ;;  %v4343_v52 = vsel %vm6473_vm8, %v5757_v48, %v4342_v50  ;;  %v3640_v4 = vunpack.c.l.b16 %v3615_v43 }
 0x2f2   : > { %v4367_v44 = vunpack.c.l.b16 %v4339_v34  ;;  %v4368_v37 = vunpack.c.l.b16 %v4343_v52  ;;  %v3601_v0 = vsel %vm6488_vm11, %v3596_v20, %v3600_v56 }
 0x2f3   : > { %3715 = vmatmul.bf16.gmra.mxu3 %v3643_v24  ;;  %v3639_v18 = vunpack.c.l.b16 %v3601_v0 }
 0x2f4   : > { %v4372_v3 = vpack.c.b16 %v4368_v37, %v4367_v44 }
 0x2f5   : > { %3894 = vmatmul.bf16.gmra.mxu0 %v3818_v21  ;;  %v3644_v60 = vpack.c.b16 %v3640_v4, %v3639_v18 }
 0x2fb   : > { %4028 = vmatmul.bf16.gmra.mxu1 %v5669_v51 }
 0x2fd   : > { %4274 = vmatmul.bf16.gmra.mxu2 %v4198_v42 }
 0x301   : > { %v3160_v1 = vpop.f32.mrf.mxu0 }
 0x303   : > { %3720 = vmatmul.bf16.gmra.mxu3 %v3644_v60 }
 0x307   : > { %v3326_v2 = vpop.f32.mrf.mxu1 }
 0x309   : > { %v3162_v5 = vpop.f32.mrf.mxu0 }
 0x30f   : > { %v3328_v7 = vpop.f32.mrf.mxu1 }
 0x310   : > { %v3460_v27 = vpop.f32.mrf.mxu2 }
 0x312   : > { %v3165_v54 = vpop.f32.mrf.mxu0 }
 0x313   : > { %4433 = vmatmul.bf16.vlgmr.msra.gmra.mxu3 %v4369_v10 }
 0x316   : > { %v3059_v57 = vpop.f32.mrf.mxu3 }
 0x317   : > { %v3161_v38 = vadd.f32 %v3160_v1, %v3059_v57 }
 0x318   : > { %v3331_v61 = vpop.f32.mrf.mxu1  ;;  %v3462_v31 = vpop.f32.mrf.mxu2 }
 0x319   : > { %v3346_v6 = vadd.f32 %v3326_v2, %v3161_v38 }
 0x31a   : > { %v3167_v45 = vpop.f32.mrf.mxu0 }
 0x31b   : > { %v3480_v10 = vadd.f32 %v3460_v27, %v3346_v6 }
 0x31e   : > { %v3061_v62 = vpop.f32.mrf.mxu3 }
 0x31f   : > { %v3163_v44 = vadd.f32 %v3162_v5, %v3061_v62 }
 0x320   : > { %v7387_v14 = vpop.f32.mrf.mxu1  ;;  %v3465_v17 = vpop.f32.mrf.mxu2 }
 0x321   : > { %v3347_v4 = vadd.f32 %v3328_v7, %v3163_v44 }
 0x322   : > { %v3170_v58 = vpop.f32.mrf.mxu0 }
 0x323   : > { %4438 = vmatmul.bf16.gmra.mxu3 %v4370_v23  ;;  %v3481_v1 = vadd.f32 %v3462_v31, %v3347_v4 }
 0x326   : > { %v3064_v12 = vpop.f32.mrf.mxu3 }
 0x327   : > { %v3166_v11 = vadd.f32 %v3165_v54, %v3064_v12 }
 0x328   : > { %v3336_v32 = vpop.f32.mrf.mxu1  ;;  %v3467_v23 = vpop.f32.mrf.mxu2 }
 0x329   : > { %v3348_v59 = vadd.f32 %v3331_v61, %v3166_v11 }
 0x32a   : > { %v7389_v21 = vpop.f32.mrf.mxu0 }
 0x32b   : > { %v3482_v29 = vadd.f32 %v3465_v17, %v3348_v59 }
 0x32e   : > { %v3066_v25 = vpop.f32.mrf.mxu3 }
 0x32f   : > { %v3168_v12 = vadd.f32 %v3167_v45, %v3066_v25 }
 0x330   : > { %v7391_v9 = vpop.f32.mrf.mxu1  ;;  %v3470_v46 = vpop.f32.mrf.mxu2 }
 0x332   : > { %v3175_v33 = vpop.f32.mrf.mxu0 }
 0x333   : > { %4443 = vmatmul.bf16.gmra.mxu3 %v4371_v16 }
 0x336   : > { %v3069_v36 = vpop.f32.mrf.mxu3 }
 0x337   : > { %v3171_v40 = vadd.f32 %v3170_v58, %v3069_v36  ;;  %v3349_v58 = vadd.f32 %v7387_v14, %v3168_v12 }
 0x338   : > { %v3341_v53 = vpop.f32.mrf.mxu1  ;;  %v7397_v35 = vpop.f32.mrf.mxu2 }
 0x339   : > { %v3350_v24 = vadd.f32 %v3336_v32, %v3171_v40  ;;  %v3483_v31 = vadd.f32 %v3467_v23, %v3349_v58 }
 0x33a   : > { %v7399_v63 = vpop.f32.mrf.mxu0 }
 0x33b   : > { %v3484_v13 = vadd.f32 %v3470_v46, %v3350_v24 }
 0x33e   : > { %v7393_v8 = vpop.f32.mrf.mxu3 }
 0x340   : > { %v3475_v15 = vpop.f32.mrf.mxu2  ;;  %v7403_v50 = vpop.f32.mrf.mxu1 }
 0x342   : > { %v3880_v56 = vpop.f32.mrf.mxu0 }
 0x343   : > { %4448 = vmatmul.bf16.gmra.mxu3 %v4372_v3 }
 0x346   : > { %v3074_v26 = vpop.f32.mrf.mxu3 }
 0x347   : > { %v3176_v41 = vadd.f32 %v3175_v33, %v3074_v26 }
 0x348   : > { %v7405_v51 = vpop.f32.mrf.mxu2  ;;  %v4014_v34 = vpop.f32.mrf.mxu1 }
 0x349   : > { %v3352_v22 = vadd.f32 %v3341_v53, %v3176_v41 }
 0x34a   : > { %v3882_v0 = vpop.f32.mrf.mxu0 }
 0x34b   : > { %v3486_v20 = vadd.f32 %v3475_v15, %v3352_v22  ;;  %v3173_v15 = vadd.f32 %v7389_v21, %v7393_v8  ;;  %v6172_v8 = vld [vmem:[#allocation2 + $0x8] sm:$0xff]  }
 0x34e   : > { %v7395_v16 = vpop.f32.mrf.mxu3 }
 0x350   : > { %v4260_v52 = vpop.f32.mrf.mxu2  ;;  %v4016_v3 = vpop.f32.mrf.mxu1 }
 0x352   : > { %v3885_v38 = vpop.f32.mrf.mxu0 }
 0x356   : > { %v3706_v39 = vpop.f32.mrf.mxu3 }
 0x357   : > { %v3726_v28 = vadd.f32 %v3706_v39, %v3480_v10 }
 0x358   : > { %v4262_v2 = vpop.f32.mrf.mxu2  ;;  %v4019_v61 = vpop.f32.mrf.mxu1 }
 0x359   : > { %v3900_v60 = vadd.f32 %v3880_v56, %v3726_v28 }
 0x35a   : > { %v3887_v7 = vpop.f32.mrf.mxu0 }
 0x35b   : > { %v4034_v6 = vadd.f32 %v4014_v34, %v3900_v60 }
 0x35d   : > { %v4280_v11 = vadd.f32 %v4260_v52, %v4034_v6 }
 0x35e   : > { %v3708_v30 = vpop.f32.mrf.mxu3 }
 0x35f   : > { %v3727_v57 = vadd.f32 %v3708_v30, %v3481_v1 }
 0x360   : > { %v4265_v62 = vpop.f32.mrf.mxu2  ;;  %v4021_v24 = vpop.f32.mrf.mxu1 }
 0x361   : > { %v3901_v54 = vadd.f32 %v3882_v0, %v3727_v57  ;;  %v6115_v57 = vunpack.c.h.bf16 %v6172_v8 }
 0x362   : > { %v3890_v28 = vpop.f32.mrf.mxu0 }
 0x363   : > { %v4035_v5 = vadd.f32 %v4016_v3, %v3901_v54 }
 0x365   : > { %v4281_v32 = vadd.f32 %v4262_v2, %v4035_v5  ;;  %v6114_v2 = vunpack.c.l.bf16 %v6172_v8 }
 0x366   : > { %v3711_v47 = vpop.f32.mrf.mxu3 }
 0x367   : > { %v3728_v19 = vadd.f32 %v3711_v47, %v3482_v29  ;;  %v6109_v29 = vld [vmem:[#allocation2] sm:$0xff]  }
 0x368   : > { %v6110_v53 = vunpack.c.l.bf16 %v6109_v29  ;;  %v6111_v45 = vunpack.c.h.bf16 %v6109_v29  ;;  %v4267_v46 = vpop.f32.mrf.mxu2 }
 0x369   : > { %v3902_v40 = vadd.f32 %v3885_v38, %v3728_v19 }
 0x36a   : > { %v3892_v21 = vpop.f32.mrf.mxu0 }
 0x36b   : > { %v4036_v22 = vadd.f32 %v4019_v61, %v3902_v40 }
 0x36e   : > { %v3713_v49 = vpop.f32.mrf.mxu3 }
 0x36f   : > { %v3729_v33 = vadd.f32 %v3713_v49, %v3483_v31  ;;  %v4024_v49 = vpop.f32.mrf.mxu1 }
 0x370   : > { %v4270_v52 = vpop.f32.mrf.mxu2 }
 0x376   : > { %v3716_v55 = vpop.f32.mrf.mxu3 }
 0x377   : > { %v7401_v48 = vadd.f32 %v3716_v55, %v3484_v13  ;;  %v3903_v13 = vadd.f32 %v3887_v7, %v3729_v33  ;;  %v3351_v55 = vadd.f32 %v7391_v9, %v3173_v15  ;;  %v4026_v9 = vpop.f32.mrf.mxu1 }
 0x379   : > { %v4037_v19 = vadd.f32 %v4021_v24, %v3903_v13  ;;  %v3904_v44 = vadd.f32 %v3890_v28, %v7401_v48  ;;  %v3485_v0 = vadd.f32 %v7397_v35, %v3351_v55  ;;  %v3178_v48 = vadd.f32 %v7399_v63, %v7395_v16  ;;  %v6173_v63 = vld [vmem:[#allocation2 + $0x10] sm:$0xff]  }
 0x37b   : > { %v4283_v34 = vadd.f32 %v4267_v46, %v4037_v19  ;;  %v4038_v6 = vadd.f32 %v4024_v49, %v3904_v44  ;;  %v3353_v58 = vadd.f32 %v7403_v50, %v3178_v48  ;;  %v6174_v19 = vld [vmem:[#allocation2 + $0x18] sm:$0xff]   ;;  %v6038_v44 = vld [vmem:[%s7490_s14 + $0x30] sm:$0xff] }
 0x37d   : > { %v3487_v31 = vadd.f32 %v7405_v51, %v3353_v58 }
 0x37e   : > { %v7407_v43 = vpop.f32.mrf.mxu3 }
 0x37f   : > { %v3731_v3 = vadd.f32 %v7407_v43, %v3485_v0 }
 0x381   : > { %v3905_v54 = vadd.f32 %v3892_v21, %v3731_v3 }
 0x383   : > { %v4039_v5 = vadd.f32 %v4026_v9, %v3905_v54 }
 0x386   : > { %v3721_v42 = vpop.f32.mrf.mxu3 }
 0x387   : > { %v7409_v37 = vadd.f32 %v3721_v42, %v3486_v20  ;;  %v4282_v20 = vadd.f32 %v4265_v62, %v4036_v22  ;;  %v3895_v62 = vpop.f32.mrf.mxu0 }
 0x389   : > { %v3906_v40 = vadd.f32 %v3895_v62, %v7409_v37 }
 0x38e   : > { %v7411_v18 = vpop.f32.mrf.mxu3 }
 0x38f   : > { %v3897_v50 = vpop.f32.mrf.mxu0 }
 0x396   : > { %v4434_v27 = vpop.f32.mrf.mxu3 }
 0x397   : > { %v4454_v59 = vadd.f32 %v4434_v27, %v4280_v11  ;;  %v4284_v11 = vadd.f32 %v4270_v52, %v4038_v6  ;;  %v6123_v52 = vunpack.c.h.bf16 %v6174_v19 }
 0x399   : > { %v4470_v10 = vpack.c.bf16 %v4454_v59, %v4454_v59  ;;  %v4272_v59 = vpop.f32.mrf.mxu2 }
 0x39b   : > { %v4486_v26 = vunpack.c.l.bf16 %v4470_v10  ;;  %v4285_v10 = vadd.f32 %v4272_v59, %v4039_v5 }
 0x39d   : > { %v4494_v39 = vadd.f32 %v6110_v53, %v4486_v26  ;;  %v6118_v26 = vunpack.c.l.bf16 %v6173_v63 }
 0x39e   : > { %v4436_v36 = vpop.f32.mrf.mxu3 }
 0x39f   : > { %v4455_v17 = vadd.f32 %v4436_v36, %v4281_v32  ;;  %v4029_v32 = vpop.f32.mrf.mxu1 }
 0x3a1   : > { %v4471_v41 = vpack.c.bf16 %v4455_v17, %v4455_v17  ;;  %v3733_v17 = vadd.f32 %v7411_v18, %v3487_v31  ;;  %v4275_v33 = vpop.f32.mrf.mxu2 }
 0x3a3   : > { %v4487_v25 = vunpack.c.l.bf16 %v4471_v41  ;;  %v6119_v41 = vunpack.c.h.bf16 %v6173_v63 }
 0x3a5   : > { %v4495_v14 = vadd.f32 %v6111_v45, %v4487_v25  ;;  %v4040_v45 = vadd.f32 %v4029_v32, %v3906_v40  ;;  %v3907_v25 = vadd.f32 %v3897_v50, %v3733_v17 }
 0x3a6   : > { %v4439_v30 = vpop.f32.mrf.mxu3 }
 0x3a7   : > { %v7416_v23 = vpack.c.bf16 %v4495_v14, %v4494_v39  ;;  %v4456_v47 = vadd.f32 %v4439_v30, %v4282_v20  ;;  %v4286_v37 = vadd.f32 %v4275_v33, %v4040_v45  ;;  %v4031_v14 = vpop.f32.mrf.mxu1 }
 0x3a8   : > { %v4041_v28 = vadd.f32 %v4031_v14, %v3907_v25 }
 0x3a9   : > { %6128 = vst [vmem:[#allocation2] sm:$0xff] %v7416_v23   ;;  %v4472_v56 = vpack.c.bf16 %v4456_v47, %v4456_v47  ;;  %v4277_v30 = vpop.f32.mrf.mxu2  ;;  %v6147_v59 = vunpack.c.h.bf16 %v7416_v23 }
 0x3aa   : > { %v4287_v15 = vadd.f32 %v4277_v30, %v4041_v28 }
 0x3ab   : > { %v4488_v60 = vunpack.c.l.bf16 %v4472_v56  ;;  %v6039_v56 = vld [vmem:[%s7490_s14 + $0x38] sm:$0xff] }
 0x3ac   : > { %4660 = vmatpush.bf16.msrb.mxu1 %v6039_v56 }
 0x3ad   : > { %v4496_v61 = vadd.f32 %v6114_v2, %v4488_v60  ;;  %v6196_v60 = vld [vmem:[%s7487_s11] ss:$0 sm:$0xff] }
 0x3ae   : > { %v4441_v42 = vpop.f32.mrf.mxu3 }
 0x3af   : > { %v4457_v4 = vadd.f32 %v4441_v42, %v4283_v34  ;;  %v6122_v34 = vunpack.c.l.bf16 %v6174_v19 }
 0x3b0   : > { %4661 = vmatpush.bf16.msrb.mxu1 %v6038_v44 }
 0x3b1   : > { %v4473_v1 = vpack.c.bf16 %v4457_v4, %v4457_v4 }
 0x3b3   : > { %v4489_v38 = vunpack.c.l.bf16 %v4473_v1 }
 0x3b5   : > { %v4497_v27 = vadd.f32 %v6115_v57, %v4489_v38  ;;  %v6037_v57 = vld [vmem:[%s7490_s14 + $0x28] sm:$0xff] }
 0x3b6   : > { %v4444_v12 = vpop.f32.mrf.mxu3  ;;  %4662 = vmatpush.bf16.msrb.mxu1 %v6037_v57 }
 0x3b7   : > { %v7425_v35 = vpack.c.bf16 %v4497_v27, %v4496_v61  ;;  %v4458_v43 = vadd.f32 %v4444_v12, %v4284_v11  ;;  %v6197_v12 = vld [vmem:[%s7488_s12] ss:$0 sm:$0xff] }
 0x3b9   : > { %6175 = vst [vmem:[#allocation2 + $0x8] sm:$0xff] %v7425_v35   ;;  %v4474_v7 = vpack.c.bf16 %v4458_v43, %v4458_v43  ;;  %v6150_v1 = vunpack.c.l.bf16 %v7425_v35  ;;  %v6151_v2 = vunpack.c.h.bf16 %v7425_v35  ;;  %v6146_v35 = vunpack.c.l.bf16 %v7416_v23  ;;  %v6036_v43 = vld [vmem:[%s7490_s14 + $0x20] sm:$0xff] }
 0x3ba   : > { %4663 = vmatpush.bf16.msrb.mxu1 %v6036_v43 }
 0x3bb   : > { %v4490_v24 = vunpack.c.l.bf16 %v4474_v7  ;;  %v4540_v48 = vmul.f32 %v6196_v60, %v6150_v1  ;;  %v4541_v11 = vmul.f32 %v6196_v60, %v6151_v2  ;;  %v4538_v31 = vmul.f32 %v6196_v60, %v6146_v35 }
 0x3bd   : > { %v4498_v22 = vadd.f32 %v6118_v26, %v4490_v24  ;;  %v4553_v40 = vadd.f32 %v6197_v12, %v4541_v11  ;;  %v4539_v24 = vmul.f32 %v6196_v60, %v6147_v59 }
 0x3be   : > { %v4446_v36 = vpop.f32.mrf.mxu3 }
 0x3bf   : > { %v4459_v16 = vadd.f32 %v4446_v36, %v4285_v10  ;;  %v4552_v36 = vadd.f32 %v6197_v12, %v4540_v48  ;;  %v4561_v26 = vmax.f32 %v4553_v40, 0.0 }
 0x3c1   : > { %v4475_v29 = vpack.c.bf16 %v4459_v16, %v4459_v16  ;;  %v6035_v16 = vld [vmem:[%s7490_s14 + $0x18] sm:$0xff] }
 0x3c2   : > { %4664 = vmatpush.bf16.msrb.mxu1 %v6035_v16 }
 0x3c3   : > { %v4491_v53 = vunpack.c.l.bf16 %v4475_v29  ;;  %v4560_v29 = vmax.f32 %v4552_v36, 0.0 }
 0x3c5   : > { %v4499_v46 = vadd.f32 %v6119_v41, %v4491_v53  ;;  %v4550_v41 = vadd.f32 %v6197_v12, %v4538_v31  ;;  %v4551_v53 = vadd.f32 %v6197_v12, %v4539_v24  ;;  %v4569_v45 = vpack.c.bf16 %v4561_v26, %v4560_v29 }
 0x3c6   : > { %v4449_v13 = vpop.f32.mrf.mxu3 }
 0x3c7   : > { %v6137_v39 = vpack.c.bf16 %v4499_v46, %v4498_v22  ;;  %v4460_v51 = vadd.f32 %v4449_v13, %v4286_v37  ;;  %v4558_v50 = vmax.f32 %v4550_v41, 0.0  ;;  %v4559_v25 = vmax.f32 %v4551_v53, 0.0  ;;  %v6031_v46 = vld [vmem:[%s7489_s13] sm:$0xff]  ;;  %v6034_v13 = vld [vmem:[%s7490_s14 + $0x10] sm:$0xff] }
 0x3c8   : > { %4665 = vmatpush.bf16.msrb.mxu1 %v6034_v13  ;;  %v6032_v37 = vld [vmem:[%s7490_s14] sm:$0xff] }
 0x3c9   : > { %6176 = vst [vmem:[#allocation2 + $0x10] sm:$0xff] %v6137_v39   ;;  %v4476_v18 = vpack.c.bf16 %v4460_v51, %v4460_v51  ;;  %v6154_v21 = vunpack.c.l.bf16 %v6137_v39  ;;  %v6155_v8 = vunpack.c.h.bf16 %v6137_v39  ;;  %v4568_v22 = vpack.c.bf16 %v4559_v25, %v4558_v50  ;;  %v6033_v39 = vld [vmem:[%s7490_s14 + $0x8] sm:$0xff] }
 0x3cb   : > { %v4492_v49 = vunpack.c.l.bf16 %v4476_v18  ;;  %v4542_v9 = vmul.f32 %v6196_v60, %v6154_v21  ;;  %v4543_v54 = vmul.f32 %v6196_v60, %v6155_v8 }
 0x3cc   : > { %4666 = vmatpush.bf16.msrb.mxu1 %v6033_v39 }
 0x3cd   : > { %v4500_v0 = vadd.f32 %v6122_v34, %v4492_v49  ;;  %v4554_v58 = vadd.f32 %v6197_v12, %v4542_v9  ;;  %v4555_v7 = vadd.f32 %v6197_v12, %v4543_v54 }
 0x3ce   : > { %v4451_v20 = vpop.f32.mrf.mxu3 }
 0x3cf   : > { %v4461_v47 = vadd.f32 %v4451_v20, %v4287_v15  ;;  %v4562_v63 = vmax.f32 %v4554_v58, 0.0  ;;  %v4563_v17 = vmax.f32 %v4555_v7, 0.0 }
 0x3d0   : > { %4667 = vmatpush.bf16.msrb.mxu1 %v6032_v37 }
 0x3d1   : > { %v4477_v55 = vpack.c.bf16 %v4461_v47, %v4461_v47  ;;  %v4570_v33 = vpack.c.bf16 %v4563_v17, %v4562_v63 }
 0x3d3   : > { %v4493_v42 = vunpack.c.l.bf16 %v4477_v55 }
 0x3d5   : > { %v4501_v4 = vadd.f32 %v6123_v52, %v4493_v42 }
 0x3d7   : > { %v6142_v3 = vpack.c.bf16 %v4501_v4, %v4500_v0 }
 0x3d9   : > { %6177 = vst [vmem:[#allocation2 + $0x18] sm:$0xff] %v6142_v3   ;;  %v6158_v38 = vunpack.c.l.bf16 %v6142_v3  ;;  %v6159_v6 = vunpack.c.h.bf16 %v6142_v3 }
 0x3db   : > { %v4544_v61 = vmul.f32 %v6196_v60, %v6158_v38  ;;  %v4545_v27 = vmul.f32 %v6196_v60, %v6159_v6 }
 0x3dd   : > { %v4556_v5 = vadd.f32 %v6197_v12, %v4544_v61  ;;  %v4557_v62 = vadd.f32 %v6197_v12, %v4545_v27 }
 0x3df   : > { %v4564_v10 = vmax.f32 %v4556_v5, 0.0  ;;  %v4565_v32 = vmax.f32 %v4557_v62, 0.0 }
 0x3e1   : > { %v4571_v23 = vpack.c.bf16 %v4565_v32, %v4564_v10 }
 0x3e3   : > { %4585 = vmatpush.bf16.msrb.mxu0 %v4571_v23 }
 0x3e7   : > { %4586 = vmatpush.bf16.msrb.mxu0 %v4570_v33 }
 0x3eb   : > { %4587 = vmatpush.bf16.msrb.mxu0 %v4569_v45 }
 0x3ef   : > { %4588 = vmatpush.bf16.msrb.mxu0 %v4568_v22 }
 0x3f2   : > { %5810 = vmatmul.msk.bf16.vlgmr.msrb.gmra.mxu0 %vm4577_vm12, %v6031_v46 }
 0x46f   : > { %v4590_v14 = vpop.f32.mrf.mxu0 }
 0x477   : > { %v4592_v51 = vpop.f32.mrf.mxu0 }
 0x478   : > { %v4595_v28 = vpack.c.bf16 %v4592_v51, %v4590_v14 }
 0x47a   : > { %4668 = vmatmul.bf16.vlgmr.msrb.gmra.mxu1 %v4595_v28 }
 0x4f7   : > { %v4669_v30 = vpop.f32.mrf.mxu1 }
 0x4f8   : > { %v4674_v18 = vpack.c.bf16 %v4669_v30, %v4669_v30 }
 0x4fa   : > { %v4678_v15 = vrot.slane %v4674_v18, 2 }
 0x4fc   : > { %v4683_v20 = vsel %vm4680_vm13, %v4674_v18, %v4678_v15  ;;  %v4685_v47 = vsel %vm4684_vm14, %v4674_v18, %v4678_v15 }
 0x4fd   : > { %v4687_v19 = vrot.slane %v4685_v47, 2  ;;  %4698 = vst [vmem:[%s494_s16] sm:$0x3] %v4683_v20 }
 0x4ff   : > { %4699 = vst [vmem:[%s494_s16 + $0x2] sm:$0x3] %v4687_v19  ;;  %v4671_v49 = vpop.f32.mrf.mxu1 }
 0x500   : > { %v4675_v55 = vpack.c.bf16 %v4671_v49, %v4671_v49 }
 0x502   : > { %v4679_v56 = vrot.slane %v4675_v55, 2 }
 0x504   : > { %v4690_v34 = vsel %vm4680_vm13, %v4675_v55, %v4679_v56  ;;  %v4691_v52 = vsel %vm4684_vm14, %v4675_v55, %v4679_v56 }
 0x505   : > { %v4693_v42 = vrot.slane %v4691_v52, 2  ;;  %4700 = vst [vmem:[%s494_s16 + $0x4] sm:$0x3] %v4690_v34 }
 0x507   : > { %4701 = vst [vmem:[%s494_s16 + $0x6] sm:$0x3] %v4693_v42 }
 0x508 PF: > { %s25_s18 = sadd.s32 1, %s6204_s18  }
 0x509   : > { %p22_p4 = scmp.ge.s32.totalorder %s25_s18, 4  }
 0x50b   :  { %24 = sbr.rel (!%p22_p4) target bundleno = 1 (0x1), region = 128 }

// kernel: forward.5
= control target key start
LH: loop header
LB: loop body
LE: loop exit
PB: predicated region body
PF: predicated region fallthrough
CT: control target
= control target key end

     0   :  { %s6011_s0 = inlined_call_operand.vmem [shape: bf16[2,4,4,128], index: 0, kind: input, shape index: {}]   ;;  %s6012_s1 = inlined_call_operand.vmem [shape: f32[1,128], index: 1, kind: input, shape index: {}]   ;;  %s6013_s2 = inlined_call_operand.vmem [shape: f32[1,128], index: 2, kind: input, shape index: {}]   ;;  %s6014_s3 = inlined_call_operand.vmem [shape: bf16[128,128], index: 3, kind: input, shape index: {}]   ;;  %s6015_s4 = inlined_call_operand.vmem [shape: f32[1,128], index: 4, kind: input, shape index: {}]   ;;  %s6016_s5 = inlined_call_operand.vmem [shape: bf16[9,128,128], index: 5, kind: input, shape index: {}]   ;;  %s6017_s6 = inlined_call_operand.vmem [shape: f32[1,128], index: 6, kind: input, shape index: {}]   ;;  %s6018_s7 = inlined_call_operand.vmem [shape: f32[1,128], index: 7, kind: input, shape index: {}]   ;;  %s6019_s8 = inlined_call_operand.vmem [shape: bf16[128,128], index: 8, kind: input, shape index: {}]   ;;  %s6020_s9 = inlined_call_operand.vmem [shape: f32[1,128], index: 9, kind: input, shape index: {}]   ;;  %s6021_s10 = inlined_call_operand.vmem [shape: bf16[9,128,128], index: 10, kind: input, shape index: {}]   ;;  %s6022_s11 = inlined_call_operand.vmem [shape: f32[1,128], index: 11, kind: input, shape index: {}]   ;;  %s6023_s12 = inlined_call_operand.vmem [shape: f32[1,128], index: 12, kind: input, shape index: {}]   ;;  %s6024_s13 = inlined_call_operand.vmem [shape: bf16[128,128], index: 13, kind: input, shape index: {}]   ;;  %s6025_s14 = inlined_call_operand.vmem [shape: f32[1,128], index: 14, kind: input, shape index: {}]   ;;  %s6026_s15 = inlined_call_operand.hbm [shape: f32[2,1,128], index: 15, kind: output, shape index: {}]  }
   0x1   :  { %6031 = sst [smem:[#allocation11_spill]] %s6011_s0 }
   0x2   :  { %6032 = sst [smem:[#allocation12_spill]] %s6012_s1 }
   0x3   :  { %20 = vsyncpa [#allocation5], 0 }
   0x4   :  { %22 = vsyncpa [#allocation5 + $0x1], 0  ;;  %s5132_s18 = smov 0   ;;  %s5134_s19 = smov 0  }
   0x5   :  { %s5136_s20 = smov 0   ;;  %s5138_s21 = smov 0  }
   0x6 LB: > { %6033 = sst [smem:[#allocation7_spill]] %s5044_s20  ;;  %s5153_s22 = sadd.s32 4294967295, %s5048_s21   ;;  %s5048_s21 = sphi %s5138_s21, %s6050_s21   ;;  %s5044_s20 = sphi %s5136_s20, %s6052_s20   ;;  %s5040_s19 = sphi %s5134_s19, %s6054_s19   ;;  %s5036_s18 = sphi %s5132_s18, %s6053_s18  }
   0x7   : > { %s3782_s23 = sadd.s32 4294967294, %s5048_s21   ;;  %s5157_s24 = sadd.s32 1, %s5048_s21  }
   0x8   : > { %6034 = sst [smem:[#allocation8_spill]] %s5157_s24  ;;  %s355_s25 = sadd.s32 1, %s5044_s20 }
   0x9   : > { %s352_s26 = ssub.s32 %s5048_s21, %s5157_s24  ;;  %p365_p0 = scmp.ne.s32.totalorder %s5044_s20, %s5040_s19 }
   0xa   : > { %p353_p1 = scmp.eq.s32.totalorder %s352_s26, 0  ;;  %p366_p2 = scmp.eq.s32.totalorder %s5153_s22, 1 }
   0xb   : > { %p371_p3 = scmp.ne.s32.totalorder %s5040_s19, %s5036_s18  ;;  %p372_p4 = scmp.eq.s32.totalorder %s3782_s23, 1 }
   0xc   : > { %s5168_s27 = scalar_select %p353_p1, %s5044_s20, %s355_s25  }
   0xd   : > { %p5170_p5 = por %p366_p2, %p365_p0  ;;  %p5174_p6 = por %p372_p4, %p371_p3 }
   0xe   : > { %6035 = sst [smem:[#allocation9_spill]] %s5168_s27  ;;  %p3785_p7 = scmp.ge.s32.totalorder %s5048_s21, 1 }
   0xf   : > { %s6037_s29 = scalar_select %p5174_p6, 1, 0 }
  0x10   : > { %p440_p8 = scmp.lt.s32.totalorder %s5048_s21, 3 }
  0x11   : > { %6038 = sst [smem:[#allocation10_spill]] %s6037_s29 }
  0x12   : > { %p441_p9 = pnand %p3785_p7, %p440_p8 }
  0x13   : > { %p487_p10 = scmp.lt.s32.totalorder (!%p441_p9), %s5153_s22, 1  ;;  %s6039_s0 = sld [smem:[#allocation11_spill]] (!%p441_p9) }
  0x14   : > { %444 = sbr.rel (%p441_p9) target bundleno = 1113 (0x459), region = 80  ;;  %s6040_s1 = sld [smem:[#allocation12_spill]] (!%p441_p9) }
  0x15   : > { %s3723_s30 = scalar_lea.hbm (!%p441_p9), %s6026_s15, %s5153_s22 }
  0x16   : > { %s3727_s27 = sshll.u32 (!%p441_p9), %s3723_s30, 4  ;;  %s3728_s27 = int_to_ptr.hbm [resolvable:$true] %s3727_s27 }
  0x19   : > { %v4774_v0 = vld [vmem:[%s6014_s3 + $0x38] sm:$0xff]  ;;  %v4773_v1 = vld [vmem:[%s6014_s3 + $0x30] sm:$0xff]  ;;  %s488_s25 = scalar_select %p487_p10, %s5153_s22, 1  ;;  %v5050_v2 = vmov 0   ;;  %v4772_v3 = vld [vmem:[%s6014_s3 + $0x28] sm:$0xff]  ;;  %vm645_vm0 = vcmask 1041408  }
  0x1a   : > { %623 = vmatpush.bf16.msra.mxu0 %v4774_v0  ;;  %501 = vst [vmem:[#allocation3] sm:$0x7] %v5050_v2  ;;  %v4976_v5 = vld [vmem:[%s6040_s1] ss:$0 sm:$0xff]  ;;  %v4770_v8 = vld [vmem:[%s6014_s3 + $0x18] sm:$0xff]  ;;  %v4769_v22 = vld [vmem:[%s6014_s3 + $0x10] sm:$0xff] }
  0x1b   : > { %s4766_s26 = sshll.u32 %s488_s25, 3  ;;  %502 = vst [vmem:[#allocation3 + $0x4] sm:$0x7] %v5050_v2  ;;  %v4771_v6 = vld [vmem:[%s6014_s3 + $0x20] sm:$0xff]  ;;  %v519_v9 = vrot.slane %v4976_v5, 4  ;;  %v4768_v31 = vld [vmem:[%s6014_s3 + $0x8] sm:$0xff] }
  0x1c   : > { %s491_s24 = scalar_lea.vmem %s6039_s0, %s4766_s26  ;;  %503 = vst [vmem:[#allocation3 + $0x8] sm:$0x7] %v5050_v2  ;;  %v4977_v7 = vld [vmem:[%s6013_s2] ss:$0 sm:$0xff]  ;;  %vm649_vm1 = vcmask 1043458   ;;  %vm701_vm9 = vcmask 1042432  }
  0x1d   : > { %v493_v4 = vld [vmem:[%s491_s24] sm:$0xff]   ;;  %506 = vst [vmem:[#allocation3 + $0x14] sm:$0x7] %v5050_v2  ;;  %v529_v17 = vrot.slane %v4977_v7, 4  ;;  %vm772_vm2 = vsmask.f32 1280 }
  0x1e   : > { %624 = vmatpush.bf16.msra.mxu0 %v4773_v1  ;;  %497 = vst [vmem:[#allocation2] sm:$0xff] %v493_v4   ;;  %v4767_v33 = vld [vmem:[%s6014_s3] sm:$0xff]  ;;  %vm773_vm3 = vsmask.f32 3336  ;;  %vm775_vm5 = vsmask.f32 5392 }
  0x1f   : > { %504 = vst [vmem:[#allocation3 + $0xc] sm:$0x7] %v5050_v2  ;;  %v4978_v37 = vld [vmem:[%s6015_s4] ss:$0 sm:$0xff]  ;;  %vm774_vm4 = vmor %vm772_vm2, %vm773_vm3  ;;  %vm777_vm7 = vsmask.f32 7448 }
  0x20   : > { %505 = vst [vmem:[#allocation3 + $0x10] sm:$0x7] %v5050_v2  ;;  %vm776_vm6 = vmor %vm774_vm4, %vm775_vm5  ;;  %vm702_vm10 = vsmask.f32 2306  ;;  %vm1038_vm12 = vcmask 1040384   ;;  %vm1039_vm13 = vcmask 1042434  }
  0x21   : > { %v736_v40 = vld [vmem:[#allocation3] sm:$0x7]  ;;  %vm5222_vm8 = vmor %vm776_vm6, %vm777_vm7  ;;  %vm1041_vm14 = vcmask 1044484   ;;  %vm1043_vm2 = vcmask 1046534   ;;  %s485_s24 = sand.u32 1, %s5040_s19   ;;  %s5000_s0 = sshra.s32 %s3728_s27, 4  ;;  %s5001_s0 = int_to_ptr.hbm [resolvable:$true] %s5000_s0 }
  0x22   : > { %625 = vmatpush.bf16.msra.mxu0 %v4772_v3  ;;  %v744_v42 = vrot.slane %v736_v40, 2  ;;  %vm5230_vm11 = vmand %vm701_vm9, %vm702_vm10  ;;  %s486_s23 = scalar_lea.vmem [#allocation4], %s485_s24  ;;  %s3715_s25 = scalar_lea.sflag [#allocation5], %s485_s24 }
  0x23   : > { %vm5345_vm15 = vmor %vm1038_vm12, %vm1039_vm13  ;;  %s3725_s20 = sshll.u32 %s486_s23, 4  ;;  %s5002_s1 = scalar_lea.hbm %s5001_s0, 1  ;;  %s3726_s20 = int_to_ptr.vmem [resolvable:$true] %s3725_s20 }
  0x24   : > { %v750_v44 = vsel %vm645_vm0, %v736_v40, %v744_v42  ;;  %v751_v45 = vsel %vm649_vm1, %v736_v40, %v744_v42  ;;  %vm1042_vm3 = vmor %vm5345_vm15, %vm1041_vm14  ;;  %p5003_p11 = scmp.ne.s32.totalorder %s5001_s0, %s5002_s1  ;;  %s5006_s26 = scalar_lea.hbm %s6026_s15, 2 }
  0x25   : > { %v507_v10 = vld [vmem:[#allocation2] sm:$0x3]  ;;  %v508_v11 = vld [vmem:[#allocation2 + $0x2] sm:$0x3]  ;;  %v509_v12 = vld [vmem:[#allocation2 + $0x4] sm:$0x3]  ;;  %p5007_p0 = scmp.lt.s32.totalorder %s5001_s0, %s6026_s15  ;;  %p5008_p1 = scmp.lt.s32.totalorder %s5006_s26, %s5002_s1 }
  0x26   : > { %626 = vmatpush.bf16.msra.mxu0 %v4771_v6  ;;  %v510_v13 = vld [vmem:[#allocation2 + $0x6] sm:$0x3]  ;;  %v511_v14 = vunpack.c.l.bf16 %v507_v10  ;;  %v512_v15 = vunpack.c.l.bf16 %v508_v11  ;;  %v513_v16 = vunpack.c.l.bf16 %v509_v12  ;;  %v753_v46 = vrot.slane %v751_v45, 2  ;;  %v704_v12 = vld [vmem:[#allocation3 + $0x4] sm:$0x7]  ;;  %vm5380_vm4 = vmor %vm1042_vm3, %vm1043_vm2  ;;  %p5004_p12 = pnand %p5003_p11, %p5170_p5 }
  0x27   : > { %v514_v18 = vunpack.c.l.bf16 %v510_v13  ;;  %v779_v47 = vshrl.u32 %v750_v44, 16  ;;  %v782_v49 = vshll.u32 %v750_v44, 16  ;;  %p5009_p2 = por %p5008_p1, %p5007_p0 }
  0x28   : > { %v521_v19 = vmul.f32 %v4976_v5, %v511_v14  ;;  %v522_v20 = vmul.f32 %v519_v9, %v512_v15  ;;  %v523_v21 = vmul.f32 %v4976_v5, %v513_v16  ;;  %v788_v51 = vshll.u32 %v753_v46, 16  ;;  %v707_v16 = vld [vmem:[#allocation3 + $0x8] sm:$0x7]  ;;  %p5005_p13 = pneg %p5004_p12 }
  0x29   : > { %v524_v23 = vmul.f32 %v519_v9, %v514_v18  ;;  %v781_v50 = vrot.slane %v779_v47, 6  ;;  %v784_v55 = vrot.slane %v782_v49, 7 }
  0x2a   : > { %627 = vmatpush.bf16.msra.mxu0 %v4770_v8  ;;  %v531_v24 = vadd.f32 %v4977_v7, %v521_v19  ;;  %v532_v25 = vadd.f32 %v529_v17, %v522_v20  ;;  %v533_v26 = vadd.f32 %v4977_v7, %v523_v21  ;;  %v790_v61 = vrot.slane %v788_v51, 7  ;;  %p5010_p3 = pnand %p5009_p2, %p5005_p13 }
  0x2b   : > { %v534_v27 = vadd.f32 %v529_v17, %v524_v23  ;;  %v785_v58 = vor.u32 %v784_v55, %v781_v50  ;;  %v4790_v55 = vld [vmem:[%s6016_s5 + $0x78] sm:$0xff] }
  0x2c   : > { %v535_v28 = vmax.f32 %v531_v24, 0.0  ;;  %v536_v29 = vmax.f32 %v532_v25, 0.0  ;;  %v537_v30 = vmax.f32 %v533_v26, 0.0  ;;  %909 = vmatpush.bf16.msra.mxu1 %v4790_v55 }
  0x2d   : > { %v538_v32 = vmax.f32 %v534_v27, 0.0  ;;  %v786_v60 = vrot.slane %v785_v58, 2 }
  0x2e   : > { %628 = vmatpush.bf16.msra.mxu0 %v4769_v22  ;;  %543 = vst [vmem:[#allocation1] ss:$2 sm:$0xff] %v535_v28 }
  0x2f   : > { %545 = vst [vmem:[#allocation1 + $0x1] ss:$2 sm:$0xff] %v536_v29  ;;  %v791_v2 = vsel %vm5222_vm8, %v786_v60, %v790_v61  ;;  %v4782_v61 = vld [vmem:[%s6016_s5 + $0x38] sm:$0xff] }
  0x30   : > { %547 = vst [vmem:[#allocation1 + $0x10] ss:$2 sm:$0xff] %v537_v30  ;;  %984 = vmatpush.bf16.msra.mxu2 %v4782_v61  ;;  %v4822_v61 = vld [vmem:[%s6016_s5 + $0x178] sm:$0xff] }
  0x31   : > { %549 = vst [vmem:[#allocation1 + $0x11] ss:$2 sm:$0xff] %v538_v32 }
  0x32   : > { %629 = vmatpush.bf16.msra.mxu0 %v4768_v31 }
  0x36   : > { %630 = vmatpush.bf16.msra.mxu0 %v4767_v33  ;;  %v550_v34 = vld.sshfl [vmem:[#allocation1] sm:$0xff pattern:$0x75316420] }
  0x38   : > { %v551_v35 = vld.sshfl [vmem:[#allocation1 + $0x10] sm:$0xff pattern:$0x75316420] }
  0x39   : > { %v554_v36 = vpack.c.bf16 %v551_v35, %v550_v34 }
  0x3b   : > { %631 = vmatmul.bf16.vlgmr.msra.gmra.mxu0 %v554_v36 }
  0xb8   : > { %v632_v38 = vpop.f32.mrf.mxu0 }
  0xb9   : > { %v633_v39 = vadd.f32 %v4978_v37, %v632_v38 }
  0xbb   : > { %v637_v41 = vmax.f32 %v633_v39, 0.0 }
  0xbd   : > { %v639_v43 = vpack.c.bf16 %v637_v41, %v637_v41 }
  0xbf   : > { %v643_v48 = vrot.slane %v639_v43, 2 }
  0xc0   : > { %v634_v52 = vpop.f32.mrf.mxu0 }
  0xc1   : > { %v648_v53 = vsel %vm645_vm0, %v639_v43, %v643_v48  ;;  %v650_v54 = vsel %vm649_vm1, %v639_v43, %v643_v48  ;;  %v635_v56 = vadd.f32 %v4978_v37, %v634_v52  ;;  %v710_v43 = vld [vmem:[#allocation3 + $0xc] sm:$0x7] }
  0xc2   : > { %v652_v57 = vrot.slane %v650_v54, 2  ;;  %659 = vst [vmem:[#allocation1] ss:$2 sm:$0xff] %v648_v53 }
  0xc3   : > { %v638_v59 = vmax.f32 %v635_v56, 0.0 }
  0xc4   : > { %663 = vst [vmem:[#allocation1 + $0x10] ss:$2 sm:$0xff] %v652_v57  ;;  %v4789_v57 = vld [vmem:[%s6016_s5 + $0x70] sm:$0xff] }
  0xc5   : > { %v640_v62 = vpack.c.bf16 %v638_v59, %v638_v59  ;;  %910 = vmatpush.bf16.msra.mxu1 %v4789_v57  ;;  %v4788_v59 = vld [vmem:[%s6016_s5 + $0x68] sm:$0xff]  ;;  %v4802_v57 = vld [vmem:[%s6016_s5 + $0xd8] sm:$0xff] }
  0xc7   : > { %v644_v63 = vrot.slane %v640_v62, 2 }
  0xc9   : > { %v660_v1 = vld.sshfl [vmem:[#allocation1] sm:$0xff pattern:$0x75643120]  ;;  %v655_v3 = vsel %vm645_vm0, %v640_v62, %v644_v63  ;;  %v656_v4 = vsel %vm649_vm1, %v640_v62, %v644_v63  ;;  %911 = vmatpush.bf16.msra.mxu1 %v4788_v59 }
  0xca   : > { %v672_v5 = vshrl.u32 %v660_v1, 16  ;;  %v658_v6 = vrot.slane %v656_v4, 2  ;;  %666 = vst [vmem:[#allocation1 + $0x20] ss:$2 sm:$0xff] %v655_v3  ;;  %v675_v9 = vshll.u32 %v660_v1, 16  ;;  %v4787_v63 = vld [vmem:[%s6016_s5 + $0x60] sm:$0xff] }
  0xcb   : > { %v664_v7 = vld.sshfl [vmem:[#allocation1 + $0x10] sm:$0xff pattern:$0x75643120]  ;;  %v713_v3 = vld [vmem:[#allocation3 + $0x10] sm:$0x7] }
  0xcc   : > { %v674_v8 = vrot.slane %v672_v5, 7  ;;  %v678_v10 = vshrl.u32 %v664_v7, 16  ;;  %849 = vst [vmem:[#allocation1] ss:$4 sm:$0xff] %v791_v2  ;;  %v681_v15 = vshll.u32 %v664_v7, 16  ;;  %v4781_v1 = vld [vmem:[%s6016_s5 + $0x30] sm:$0xff] }
  0xcd   : > { %670 = vst [vmem:[#allocation1 + $0x30] ss:$2 sm:$0xff] %v658_v6  ;;  %912 = vmatpush.bf16.msra.mxu1 %v4787_v63  ;;  %v4786_v5 = vld [vmem:[%s6016_s5 + $0x58] sm:$0xff]  ;;  %985 = vmatpush.bf16.msra.mxu2 %v4781_v1  ;;  %v4780_v7 = vld [vmem:[%s6016_s5 + $0x28] sm:$0xff] }
  0xce   : > { %v677_v13 = vor.u32 %v675_v9, %v674_v8  ;;  %v680_v14 = vrot.slane %v678_v10, 7  ;;  %v4798_v6 = vld [vmem:[%s6016_s5 + $0xb8] sm:$0xff]  ;;  %v4785_v10 = vld [vmem:[%s6016_s5 + $0x50] sm:$0xff] }
  0xcf   : > { %1139 = vmatpush.bf16.msra.mxu3 %v4798_v6 }
  0xd0   : > { %v683_v17 = vor.u32 %v681_v15, %v680_v14  ;;  %v705_v18 = vsel %vm5230_vm11, %v677_v13, %v704_v12  ;;  %v4779_v14 = vld [vmem:[%s6016_s5 + $0x20] sm:$0xff]  ;;  %v4797_v15 = vld [vmem:[%s6016_s5 + $0xb0] sm:$0xff] }
  0xd1   : > { %706 = vst [vmem:[#allocation3 + $0x4] sm:$0x7] %v705_v18  ;;  %v667_v20 = vld.sshfl [vmem:[#allocation1 + $0x20] sm:$0xff pattern:$0x75643120]  ;;  %913 = vmatpush.bf16.msra.mxu1 %v4786_v5  ;;  %986 = vmatpush.bf16.msra.mxu2 %v4780_v7 }
  0xd2   : > { %v708_v19 = vsel %vm5230_vm11, %v683_v17, %v707_v16  ;;  %v684_v21 = vshrl.u32 %v667_v20, 16  ;;  %v687_v34 = vshll.u32 %v667_v20, 16  ;;  %v4796_v20 = vld [vmem:[%s6016_s5 + $0xa8] sm:$0xff]  ;;  %v4811_v5 = vld [vmem:[%s6016_s5 + $0x120] sm:$0xff] }
  0xd3   : > { %709 = vst [vmem:[#allocation3 + $0x8] sm:$0x7] %v708_v19  ;;  %1140 = vmatpush.bf16.msra.mxu3 %v4797_v15  ;;  %v4784_v19 = vld [vmem:[%s6016_s5 + $0x48] sm:$0xff] }
  0xd4   : > { %v686_v28 = vrot.slane %v684_v21, 7  ;;  %v671_v56 = vld.sshfl [vmem:[#allocation1 + $0x30] sm:$0xff pattern:$0x75643120] }
  0xd5   : > { %v690_v58 = vshrl.u32 %v671_v56, 16  ;;  %v693_v62 = vshll.u32 %v671_v56, 16  ;;  %914 = vmatpush.bf16.msra.mxu1 %v4785_v10  ;;  %987 = vmatpush.bf16.msra.mxu2 %v4779_v14 }
  0xd6   : > { %v689_v41 = vor.u32 %v687_v34, %v686_v28  ;;  %v4777_v28 = vld [vmem:[%s6016_s5 + $0x10] sm:$0xff]  ;;  %v4794_v34 = vld [vmem:[%s6016_s5 + $0x98] sm:$0xff] }
  0xd7   : > { %v692_v60 = vrot.slane %v690_v58, 7  ;;  %1141 = vmatpush.bf16.msra.mxu3 %v4796_v20 }
  0xd8   : > { %v737_v22 = vld [vmem:[#allocation3 + $0x4] sm:$0x7]  ;;  %v711_v50 = vsel %vm5230_vm11, %v689_v41, %v710_v43  ;;  %v4803_v41 = vld [vmem:[%s6016_s5 + $0xe0] sm:$0xff]  ;;  %v716_v43 = vld [vmem:[#allocation3] sm:$0x3] }
  0xd9   : > { %v745_v23 = vrot.slane %v737_v22, 2  ;;  %712 = vst [vmem:[#allocation3 + $0xc] sm:$0x7] %v711_v50  ;;  %v695_v2 = vor.u32 %v693_v62, %v692_v60  ;;  %915 = vmatpush.bf16.msra.mxu1 %v4784_v19  ;;  %v4812_v60 = vld [vmem:[%s6016_s5 + $0x128] sm:$0xff]  ;;  %v4791_v62 = vld [vmem:[%s6016_s5 + $0x80] sm:$0xff] }
  0xda   : > { %v738_v24 = vld [vmem:[#allocation3 + $0x8] sm:$0x7]  ;;  %v1155_v56 = vld [vmem:[#allocation3 + $0x4] sm:$0x3] }
  0xdb   : > { %v746_v25 = vrot.slane %v738_v24, 2  ;;  %v756_v26 = vsel %vm645_vm0, %v737_v22, %v745_v23  ;;  %v757_v27 = vsel %vm649_vm1, %v737_v22, %v745_v23  ;;  %v714_v8 = vsel %vm5230_vm11, %v695_v2, %v713_v3  ;;  %v4778_v22 = vld [vmem:[%s6016_s5 + $0x18] sm:$0xff] }
  0xdc   : > { %v759_v29 = vrot.slane %v757_v27, 2  ;;  %v792_v30 = vshrl.u32 %v756_v26, 16  ;;  %v795_v31 = vshll.u32 %v756_v26, 16  ;;  %715 = vst [vmem:[#allocation3 + $0x10] sm:$0x7] %v714_v8  ;;  %v4806_v23 = vld [vmem:[%s6016_s5 + $0xf8] sm:$0xff]  ;;  %988 = vmatpush.bf16.msra.mxu2 %v4778_v22 }
  0xdd   : > { %v762_v32 = vsel %vm645_vm0, %v738_v24, %v746_v25  ;;  %v763_v33 = vsel %vm649_vm1, %v738_v24, %v746_v25  ;;  %1237 = vmatpush.bf16.msrb.mxu0 %v4806_v23  ;;  %v4783_v27 = vld [vmem:[%s6016_s5 + $0x40] sm:$0xff]  ;;  %v4821_v8 = vld [vmem:[%s6016_s5 + $0x170] sm:$0xff]  ;;  %v4810_v22 = vld [vmem:[%s6016_s5 + $0x118] sm:$0xff] }
  0xde   : > { %v765_v35 = vrot.slane %v763_v33, 2  ;;  %v794_v36 = vrot.slane %v792_v30, 6  ;;  %v797_v37 = vrot.slane %v795_v31, 7  ;;  %v801_v38 = vshll.u32 %v759_v29, 16  ;;  %v4795_v29 = vld [vmem:[%s6016_s5 + $0xa0] sm:$0xff]  ;;  %916 = vmatpush.bf16.msra.mxu1 %v4783_v27  ;;  %v4830_v23 = vld [vmem:[%s6016_s5 + $0x1b8] sm:$0xff] }
  0xdf   : > { %v805_v39 = vshrl.u32 %v762_v32, 16  ;;  %v808_v40 = vshll.u32 %v762_v32, 16  ;;  %v4805_v32 = vld [vmem:[%s6016_s5 + $0xf0] sm:$0xff]  ;;  %1142 = vmatpush.bf16.msra.mxu3 %v4795_v29 }
  0xe0   : > { %v798_v42 = vor.u32 %v797_v37, %v794_v36  ;;  %v814_v46 = vshll.u32 %v765_v35, 16  ;;  %v803_v48 = vrot.slane %v801_v38, 7  ;;  %v739_v4 = vld [vmem:[#allocation3 + $0xc] sm:$0x7]  ;;  %v4804_v35 = vld [vmem:[%s6016_s5 + $0xe8] sm:$0xff]  ;;  %989 = vmatpush.bf16.msra.mxu2 %v4777_v28 }
  0xe1   : > { %v807_v44 = vrot.slane %v805_v39, 6  ;;  %v810_v45 = vrot.slane %v808_v40, 7  ;;  %v747_v9 = vrot.slane %v739_v4, 2  ;;  %1238 = vmatpush.bf16.msrb.mxu0 %v4805_v32  ;;  %v4776_v36 = vld [vmem:[%s6016_s5 + $0x8] sm:$0xff]  ;;  %v4814_v37 = vld [vmem:[%s6016_s5 + $0x138] sm:$0xff]  ;;  %v4793_v39 = vld [vmem:[%s6016_s5 + $0x90] sm:$0xff] }
  0xe2   : > { %v799_v47 = vrot.slane %v798_v42, 2  ;;  %v816_v53 = vrot.slane %v814_v46, 7  ;;  %v998_v38 = vld [vmem:[#allocation3] sm:$0x6]  ;;  %1419 = vmatpush.bf16.msrb.mxu1 %v4814_v37  ;;  %v4775_v40 = vld [vmem:[%s6016_s5] sm:$0xff]  ;;  %v4820_v28 = vld [vmem:[%s6016_s5 + $0x168] sm:$0xff] }
  0xe3   : > { %v811_v49 = vor.u32 %v810_v45, %v807_v44  ;;  %v768_v12 = vsel %vm645_vm0, %v739_v4, %v747_v9  ;;  %v769_v13 = vsel %vm649_vm1, %v739_v4, %v747_v9  ;;  %1143 = vmatpush.bf16.msra.mxu3 %v4794_v34  ;;  %v4813_v42 = vld [vmem:[%s6016_s5 + $0x130] sm:$0xff]  ;;  %v1006_v45 = vrot.slane %v998_v38, 2  ;;  %v1000_v46 = vld [vmem:[#allocation3 + $0x8] sm:$0x6]  ;;  %v719_v58 = vld [vmem:[#allocation3 + $0xc] sm:$0x3] }
  0xe4   : > { %v804_v51 = vsel %vm5222_vm8, %v799_v47, %v803_v48  ;;  %v771_v16 = vrot.slane %v769_v13, 2  ;;  %v818_v17 = vshrl.u32 %v768_v12, 16  ;;  %v821_v18 = vshll.u32 %v768_v12, 16  ;;  %990 = vmatpush.bf16.msra.mxu2 %v4776_v36  ;;  %v999_v44 = vld [vmem:[#allocation3 + $0x4] sm:$0x6] }
  0xe5   : > { %v812_v52 = vrot.slane %v811_v49, 2  ;;  %852 = vst [vmem:[#allocation1 + $0x1] ss:$4 sm:$0xff] %v804_v51  ;;  %1239 = vmatpush.bf16.msrb.mxu0 %v4804_v35  ;;  %v1001_v48 = vld [vmem:[#allocation3 + $0xc] sm:$0x6]  ;;  %v1007_v50 = vrot.slane %v999_v44, 2  ;;  %v1014_v55 = vsel %vm649_vm1, %v998_v38, %v1006_v45 }
  0xe6   : > { %v820_v21 = vrot.slane %v818_v17, 6  ;;  %v823_v24 = vrot.slane %v821_v18, 7  ;;  %v827_v25 = vshll.u32 %v771_v16, 16  ;;  %1420 = vmatpush.bf16.msrb.mxu1 %v4813_v42  ;;  %v717_v49 = vld [vmem:[#allocation3 + $0x4] sm:$0x3]  ;;  %v4792_v51 = vld [vmem:[%s6016_s5 + $0x88] sm:$0xff] }
  0xe7   : > { %v817_v54 = vsel %vm5222_vm8, %v812_v52, %v816_v53  ;;  %1144 = vmatpush.bf16.msra.mxu3 %v4793_v39  ;;  %v718_v52 = vld [vmem:[#allocation3 + $0x8] sm:$0x3]  ;;  %v1008_v53 = vrot.slane %v1000_v46, 2  ;;  %v1009_v59 = vrot.slane %v1001_v48, 2  ;;  %v1019_v63 = vsel %vm645_vm0, %v999_v44, %v1007_v50  ;;  %v4801_v4 = vld [vmem:[%s6016_s5 + $0xd0] sm:$0xff]  ;;  %v4800_v17 = vld [vmem:[%s6016_s5 + $0xc8] sm:$0xff] }
  0xe8   : > { %855 = vst [vmem:[#allocation1 + $0x2] ss:$4 sm:$0xff] %v817_v54  ;;  %v824_v26 = vor.u32 %v823_v24, %v820_v21  ;;  %v829_v31 = vrot.slane %v827_v25, 7  ;;  %991 = vmatpush.bf16.msra.mxu2 %v4775_v40  ;;  %v1012_v54 = vsel %vm645_vm0, %v998_v38, %v1006_v45  ;;  %v1021_v1 = vsel %vm649_vm1, %v999_v44, %v1007_v50  ;;  %v1253_v9 = vld [vmem:[#allocation3 + $0x4] sm:$0x7]  ;;  %v4819_v40 = vld [vmem:[%s6016_s5 + $0x160] sm:$0xff] }
  0xe9   : > { %1240 = vmatpush.bf16.msrb.mxu0 %v4803_v41  ;;  %v3900_v2 = vrot.slane %v1012_v54, 9  ;;  %v3901_v3 = vrot.slane %v1014_v55, 9  ;;  %v1026_v6 = vsel %vm645_vm0, %v1000_v46, %v1008_v53  ;;  %v1028_v7 = vsel %vm649_vm1, %v1000_v46, %v1008_v53  ;;  %v1254_v16 = vld [vmem:[#allocation3 + $0x8] sm:$0x7]  ;;  %v5389_v21 = vld [vmem:[#allocation3 + $0xc] sm:$0x7] }
  0xea   : > { %v825_v30 = vrot.slane %v824_v26, 2  ;;  %1421 = vmatpush.bf16.msrb.mxu1 %v4812_v60  ;;  %v1033_v10 = vsel %vm645_vm0, %v1001_v48, %v1009_v59  ;;  %v1035_v12 = vsel %vm649_vm1, %v1001_v48, %v1009_v59  ;;  %v3902_v14 = vrot.slane %v1019_v63, 9  ;;  %v5397_v27 = vld [vmem:[#allocation3 + $0x10] sm:$0x7]  ;;  %v4809_v36 = vld [vmem:[%s6016_s5 + $0x110] sm:$0xff]  ;;  %v4838_v48 = vld [vmem:[%s6016_s5 + $0x1f8] sm:$0xff] }
  0xeb   : > { %1145 = vmatpush.bf16.msra.mxu3 %v4792_v51  ;;  %v3903_v15 = vrot.slane %v1021_v1, 9  ;;  %v1048_v18 = vsel %vm5380_vm4, %v3900_v2, %v3901_v3  ;;  %v3904_v19 = vrot.slane %v1026_v6, 9  ;;  %v3905_v20 = vrot.slane %v1028_v7, 9  ;;  %v4829_v37 = vld [vmem:[%s6016_s5 + $0x1b0] sm:$0xff]  ;;  %v4818_v53 = vld [vmem:[%s6016_s5 + $0x158] sm:$0xff]  ;;  %v4827_v59 = vld [vmem:[%s6016_s5 + $0x1a0] sm:$0xff] }
  0xec   : > { %v830_v33 = vsel %vm5222_vm8, %v825_v30, %v829_v31  ;;  %1569 = vmatpush.bf16.msrb.mxu2 %v4822_v61  ;;  %v1261_v24 = vrot.slane %v1253_v9, 2  ;;  %v3906_v25 = vrot.slane %v1033_v10, 9  ;;  %v3907_v26 = vrot.slane %v1035_v12, 9  ;;  %v1156_v60 = vld [vmem:[#allocation3 + $0x8] sm:$0x3]  ;;  %v4807_v2 = vld [vmem:[%s6016_s5 + $0x100] sm:$0xff] }
  0xed   : > { %858 = vst [vmem:[#allocation1 + $0x3] ss:$4 sm:$0xff] %v830_v33  ;;  %1241 = vmatpush.bf16.msrb.mxu0 %v4802_v57  ;;  %v1262_v29 = vrot.slane %v1254_v16, 2  ;;  %v1052_v31 = vsel %vm5380_vm4, %v3902_v14, %v3903_v15  ;;  %v1263_v32 = vrot.slane %v5389_v21, 2  ;;  %v4799_v33 = vld [vmem:[%s6016_s5 + $0xc0] sm:$0xff]  ;;  %v1056_v34 = vsel %vm5380_vm4, %v3904_v19, %v3905_v20  ;;  %v4837_v3 = vld [vmem:[%s6016_s5 + $0x1f0] sm:$0xff] }
  0xee   : > { %1422 = vmatpush.bf16.msrb.mxu1 %v4811_v5  ;;  %v1264_v35 = vrot.slane %v5397_v27, 2  ;;  %v1267_v38 = vsel %vm645_vm0, %v1253_v9, %v1261_v24  ;;  %v1060_v39 = vsel %vm5380_vm4, %v3906_v25, %v3907_v26  ;;  %v1158_v20 = vld [vmem:[#allocation3 + $0x10] sm:$0x3]  ;;  %v4816_v25 = vld [vmem:[%s6016_s5 + $0x148] sm:$0xff] }
  0xef   : > { %1146 = vmatpush.bf16.msra.mxu3 %v4791_v62  ;;  %v1273_v41 = vsel %vm645_vm0, %v1254_v16, %v1262_v29  ;;  %v1279_v42 = vsel %vm645_vm0, %v5389_v21, %v1263_v32  ;;  %v1289_v44 = vshrl.u32 %v1267_v38, 16  ;;  %v1292_v45 = vshll.u32 %v1267_v38, 16  ;;  %v4815_v38 = vld [vmem:[%s6016_s5 + $0x140] sm:$0xff] }
  0xf0   : > { %1570 = vmatpush.bf16.msrb.mxu2 %v4821_v8  ;;  %v1285_v46 = vsel %vm645_vm0, %v5397_v27, %v1264_v35  ;;  %v1274_v50 = vsel %vm649_vm1, %v1254_v16, %v1262_v29  ;;  %v1302_v51 = vshrl.u32 %v1273_v41, 16  ;;  %v1315_v54 = vshrl.u32 %v1279_v42, 16  ;;  %v4817_v8 = vld [vmem:[%s6016_s5 + $0x150] sm:$0xff] }
  0xf1   : > { %1242 = vmatpush.bf16.msrb.mxu0 %v4801_v4  ;;  %v1318_v55 = vshll.u32 %v1279_v42, 16  ;;  %v1328_v57 = vshrl.u32 %v1285_v46, 16  ;;  %v1276_v62 = vrot.slane %v1274_v50, 2  ;;  %v1291_v63 = vrot.slane %v1289_v44, 6  ;;  %v1437_v42 = vld [vmem:[#allocation3 + $0xc] sm:$0x6] }
  0xf2   : > { %1423 = vmatpush.bf16.msrb.mxu1 %v4810_v22  ;;  %v1294_v1 = vrot.slane %v1292_v45, 7  ;;  %v1304_v4 = vrot.slane %v1302_v51, 6  ;;  %v1280_v7 = vsel %vm649_vm1, %v5389_v21, %v1263_v32  ;;  %v1286_v10 = vsel %vm649_vm1, %v5397_v27, %v1264_v35  ;;  %v4846_v22 = vld [vmem:[%s6016_s5 + $0x238] sm:$0xff]  ;;  %v4845_v35 = vld [vmem:[%s6016_s5 + $0x230] sm:$0xff] }
  0xf3   : > { %1668 = vmatpush.bf16.msrb.mxu3 %v4830_v23  ;;  %v1317_v12 = vrot.slane %v1315_v54, 6  ;;  %v1320_v14 = vrot.slane %v1318_v55, 7  ;;  %v1330_v15 = vrot.slane %v1328_v57, 6  ;;  %v1282_v21 = vrot.slane %v1280_v7, 2 }
  0xf4   : > { %v859_v47 = vld.sshfl [vmem:[#allocation1] sm:$0xff pattern:$0x73625140]  ;;  %1571 = vmatpush.bf16.msrb.mxu2 %v4820_v28  ;;  %v1295_v19 = vor.u32 %v1294_v1, %v1291_v63  ;;  %v1311_v28 = vshll.u32 %v1276_v62, 16  ;;  %v1445_v57 = vrot.slane %v1437_v42, 2 }
  0xf5   : > { %924 = vst [vmem:[#allocation1] ss:$4 sm:$0xff] %v716_v43  ;;  %917 = vmatmul.bf16.vlgmr.msra.gmra.mxu1 %v859_v47  ;;  %1243 = vmatpush.bf16.msrb.mxu0 %v4800_v17  ;;  %v4828_v43 = vld [vmem:[%s6016_s5 + $0x1a8] sm:$0xff]  ;;  %v4826_v17 = vld [vmem:[%s6016_s5 + $0x198] sm:$0xff]  ;;  %v1321_v27 = vor.u32 %v1320_v14, %v1317_v12  ;;  %v4843_v62 = vld [vmem:[%s6016_s5 + $0x220] sm:$0xff] }
  0xf6   : > { %927 = vst [vmem:[#allocation1 + $0x1] ss:$4 sm:$0xff] %v717_v49  ;;  %1424 = vmatpush.bf16.msrb.mxu1 %v4809_v36  ;;  %v4808_v47 = vld [vmem:[%s6016_s5 + $0x108] sm:$0xff]  ;;  %v1268_v49 = vsel %vm649_vm1, %v1253_v9, %v1261_v24  ;;  %v1157_v9 = vld [vmem:[#allocation3 + $0xc] sm:$0x3]  ;;  %v1288_v24 = vrot.slane %v1286_v10, 2 }
  0xf7   : > { %930 = vst [vmem:[#allocation1 + $0x2] ss:$4 sm:$0xff] %v718_v52  ;;  %1669 = vmatpush.bf16.msrb.mxu3 %v4829_v37  ;;  %v1305_v52 = vshll.u32 %v1273_v41, 16  ;;  %v1270_v61 = vrot.slane %v1268_v49, 2  ;;  %v1296_v32 = vrot.slane %v1295_v19, 2  ;;  %v1322_v41 = vrot.slane %v1321_v27, 2 }
  0xf8   : > { %933 = vst [vmem:[#allocation1 + $0x3] ss:$4 sm:$0xff] %v719_v58  ;;  %1572 = vmatpush.bf16.msrb.mxu2 %v4819_v40  ;;  %v1331_v58 = vshll.u32 %v1285_v46, 16  ;;  %v1337_v37 = vshll.u32 %v1288_v24, 16  ;;  %v1436_v40 = vld [vmem:[#allocation3 + $0x8] sm:$0x6] }
  0xf9   : > { %1244 = vmatpush.bf16.msrb.mxu0 %v4799_v33  ;;  %v1307_v5 = vrot.slane %v1305_v52, 7  ;;  %v1298_v26 = vshll.u32 %v1270_v61, 16  ;;  %v1435_v33 = vld [vmem:[#allocation3 + $0x4] sm:$0x6]  ;;  %v4824_v46 = vld [vmem:[%s6016_s5 + $0x188] sm:$0xff]  ;;  %v1444_v54 = vrot.slane %v1436_v40, 2 }
  0xfa   : > { %1425 = vmatpush.bf16.msrb.mxu1 %v4808_v47  ;;  %v1333_v16 = vrot.slane %v1331_v58, 7  ;;  %v1443_v44 = vrot.slane %v1435_v33, 2  ;;  %v4834_v47 = vld [vmem:[%s6016_s5 + $0x1d8] sm:$0xff]  ;;  %v1438_v52 = vld [vmem:[#allocation3 + $0x10] sm:$0x6]  ;;  %v1339_v55 = vrot.slane %v1337_v37, 7 }
  0xfb   : > { %1670 = vmatpush.bf16.msrb.mxu3 %v4828_v43  ;;  %v1308_v23 = vor.u32 %v1307_v5, %v1304_v4  ;;  %v1313_v43 = vrot.slane %v1311_v28, 7  ;;  %v4833_v61 = vld [vmem:[%s6016_s5 + $0x1d0] sm:$0xff]  ;;  %v1687_v4 = vld [vmem:[#allocation3 + $0x14] sm:$0x7]  ;;  %v1463_v5 = vsel %vm645_vm0, %v1437_v42, %v1445_v57  ;;  %v4832_v14 = vld [vmem:[%s6016_s5 + $0x1c8] sm:$0xff] }
  0xfc   : > { %1573 = vmatpush.bf16.msrb.mxu2 %v4818_v53  ;;  %v1334_v29 = vor.u32 %v1333_v16, %v1330_v15  ;;  %v1449_v63 = vsel %vm645_vm0, %v1435_v33, %v1443_v44  ;;  %v1451_v1 = vsel %vm649_vm1, %v1435_v33, %v1443_v44  ;;  %v4842_v15 = vld [vmem:[%s6016_s5 + $0x218] sm:$0xff]  ;;  %v1695_v19 = vrot.slane %v1687_v4, 2 }
  0xfd   : > { %1850 = vmatpush.bf16.msra.mxu0 %v4838_v48  ;;  %v1309_v36 = vrot.slane %v1308_v23, 2  ;;  %v4844_v48 = vld [vmem:[%s6016_s5 + $0x228] sm:$0xff]  ;;  %v4052_v7 = vrot.slane %v1449_v63, 9 }
  0xfe   : > { %1426 = vmatpush.bf16.msrb.mxu1 %v4807_v2  ;;  %v1335_v45 = vrot.slane %v1334_v29, 2  ;;  %v1456_v2 = vsel %vm645_vm0, %v1436_v40, %v1444_v54  ;;  %v4831_v29 = vld [vmem:[%s6016_s5 + $0x1c0] sm:$0xff]  ;;  %v1716_v33 = vsel %vm645_vm0, %v1687_v4, %v1695_v19 }
  0xff   : > { %v934_v30 = vld.sshfl [vmem:[#allocation1] sm:$0xff pattern:$0x73625140]  ;;  %1671 = vmatpush.bf16.msrb.mxu3 %v4827_v59  ;;  %v1314_v53 = vsel %vm5222_vm8, %v1309_v36, %v1313_v43  ;;  %v1446_v59 = vrot.slane %v1438_v52, 2  ;;  %v4054_v16 = vrot.slane %v1456_v2, 9  ;;  %v1762_v44 = vshll.u32 %v1716_v33, 16 }
 0x100   : > { %1079 = vst [vmem:[#allocation1] ss:$4 sm:$0xff] %v1048_v18  ;;  %992 = vmatmul.bf16.vlgmr.msra.gmra.mxu2 %v934_v30  ;;  %v4836_v18 = vld [vmem:[%s6016_s5 + $0x1e8] sm:$0xff]  ;;  %v4825_v30 = vld [vmem:[%s6016_s5 + $0x190] sm:$0xff]  ;;  %v1340_v58 = vsel %vm5222_vm8, %v1335_v45, %v1339_v55 }
 0x101   : > { %1082 = vst [vmem:[#allocation1 + $0x1] ss:$4 sm:$0xff] %v1052_v31  ;;  %1851 = vmatpush.bf16.msra.mxu0 %v4837_v3  ;;  %1574 = vmatpush.bf16.msrb.mxu2 %v4817_v8  ;;  %v4835_v31 = vld [vmem:[%s6016_s5 + $0x1e0] sm:$0xff]  ;;  %v1458_v3 = vsel %vm649_vm1, %v1436_v40, %v1444_v54  ;;  %v4053_v8 = vrot.slane %v1451_v1, 9  ;;  %v1470_v10 = vsel %vm645_vm0, %v1438_v52, %v1446_v59  ;;  %v1587_v1 = vld [vmem:[#allocation3 + $0xc] sm:$0x3] }
 0x102   : > { %1085 = vst [vmem:[#allocation1 + $0x2] ss:$4 sm:$0xff] %v1056_v34  ;;  %2000 = vmatpush.bf16.msra.mxu1 %v4846_v22  ;;  %v1324_v34 = vshll.u32 %v1282_v21, 16  ;;  %v1472_v12 = vsel %vm649_vm1, %v1438_v52, %v1446_v59  ;;  %v1686_v22 = vld [vmem:[#allocation3 + $0x10] sm:$0x7]  ;;  %v4058_v24 = vrot.slane %v1470_v10, 9 }
 0x103   : > { %1088 = vst [vmem:[#allocation1 + $0x3] ss:$4 sm:$0xff] %v1060_v39  ;;  %1672 = vmatpush.bf16.msrb.mxu3 %v4826_v17  ;;  %v1300_v39 = vrot.slane %v1298_v26, 7  ;;  %v4055_v17 = vrot.slane %v1458_v3, 9  ;;  %v1478_v26 = vsel %vm5380_vm4, %v4052_v7, %v4053_v8  ;;  %v1589_v54 = vld [vmem:[#allocation3 + $0x14] sm:$0x3] }
 0x104   : > { %v1326_v51 = vrot.slane %v1324_v34, 7 }
 0x105   : > { %1852 = vmatpush.bf16.msra.mxu0 %v4836_v18  ;;  %1575 = vmatpush.bf16.msrb.mxu2 %v4816_v25  ;;  %v1301_v49 = vsel %vm5222_vm8, %v1296_v32, %v1300_v39  ;;  %v1685_v18 = vld [vmem:[#allocation3 + $0xc] sm:$0x7]  ;;  %v4059_v25 = vrot.slane %v1472_v12, 9  ;;  %v1694_v32 = vrot.slane %v1686_v22, 2  ;;  %v1759_v39 = vshrl.u32 %v1716_v33, 16 }
 0x106   : > { %2001 = vmatpush.bf16.msra.mxu1 %v4845_v35  ;;  %v1693_v28 = vrot.slane %v1685_v18, 2 }
 0x107   : > { %1673 = vmatpush.bf16.msrb.mxu3 %v4825_v30  ;;  %v4841_v30 = vld [vmem:[%s6016_s5 + $0x210] sm:$0xff]  ;;  %v1490_v36 = vsel %vm5380_vm4, %v4058_v24, %v4059_v25  ;;  %v1710_v40 = vsel %vm645_vm0, %v1686_v22, %v1694_v32  ;;  %v1761_v52 = vrot.slane %v1759_v39, 6  ;;  %v1867_v25 = vld [vmem:[#allocation3 + $0xc] sm:$0x6] }
 0x108   : > { %v1704_v37 = vsel %vm645_vm0, %v1685_v18, %v1693_v28 }
 0x109   : > { %1853 = vmatpush.bf16.msra.mxu0 %v4835_v31  ;;  %1576 = vmatpush.bf16.msrb.mxu2 %v4815_v38  ;;  %v1482_v31 = vsel %vm5380_vm4, %v4054_v16, %v4055_v17  ;;  %v4840_v38 = vld [vmem:[%s6016_s5 + $0x208] sm:$0xff]  ;;  %v1733_v45 = vshrl.u32 %v1704_v37, 16 }
 0x10a   : > { %v1089_v6 = vld.sshfl [vmem:[#allocation1] sm:$0xff pattern:$0x73625140]  ;;  %2002 = vmatpush.bf16.msra.mxu1 %v4844_v48  ;;  %v1746_v48 = vshrl.u32 %v1710_v40, 16 }
 0x10b   : > { %1177 = vst [vmem:[#allocation1] ss:$4 sm:$0xff] %v1155_v56  ;;  %1147 = vmatmul.bf16.vlgmr.msra.gmra.mxu3 %v1089_v6  ;;  %v1327_v56 = vsel %vm5222_vm8, %v1322_v41, %v1326_v51  ;;  %v1465_v6 = vsel %vm649_vm1, %v1437_v42, %v1445_v57  ;;  %v1717_v41 = vsel %vm649_vm1, %v1687_v4, %v1695_v19  ;;  %v1764_v57 = vrot.slane %v1762_v44, 7  ;;  %v1588_v4 = vld [vmem:[#allocation3 + $0x10] sm:$0x3] }
 0x10c   : > { %1180 = vst [vmem:[#allocation1 + $0x1] ss:$4 sm:$0xff] %v1156_v60  ;;  %1674 = vmatpush.bf16.msrb.mxu3 %v4824_v46  ;;  %v4823_v60 = vld [vmem:[%s6016_s5 + $0x180] sm:$0xff]  ;;  %v4057_v21 = vrot.slane %v1465_v6, 9  ;;  %v1736_v46 = vshll.u32 %v1704_v37, 16  ;;  %v1719_v51 = vrot.slane %v1717_v41, 2 }
 0x10d   : > { %1183 = vst [vmem:[#allocation1 + $0x2] ss:$4 sm:$0xff] %v1157_v9  ;;  %1854 = vmatpush.bf16.msra.mxu0 %v4834_v47  ;;  %v1684_v9 = vld [vmem:[#allocation3 + $0x8] sm:$0x7]  ;;  %v1748_v2 = vrot.slane %v1746_v48, 6  ;;  %v1765_v8 = vor.u32 %v1764_v57, %v1761_v52 }
 0x10e   : > { %1186 = vst [vmem:[#allocation1 + $0x3] ss:$4 sm:$0xff] %v1158_v20  ;;  %2003 = vmatpush.bf16.msra.mxu1 %v4843_v62  ;;  %v4056_v20 = vrot.slane %v1463_v5, 9  ;;  %v1692_v23 = vrot.slane %v1684_v9, 2  ;;  %v1735_v62 = vrot.slane %v1733_v45, 6  ;;  %v1738_v63 = vrot.slane %v1736_v46, 7 }
 0x110   : > { %1675 = vmatpush.bf16.msrb.mxu3 %v4823_v60  ;;  %v1486_v34 = vsel %vm5380_vm4, %v4056_v20, %v4057_v21  ;;  %v1698_v35 = vsel %vm645_vm0, %v1684_v9, %v1692_v23  ;;  %v1699_v47 = vsel %vm649_vm1, %v1684_v9, %v1692_v23  ;;  %v1768_v9 = vshll.u32 %v1719_v51, 16  ;;  %v1866_v20 = vld [vmem:[#allocation3 + $0x8] sm:$0x6]  ;;  %v1869_v23 = vld [vmem:[#allocation3 + $0x14] sm:$0x6] }
 0x111   : > { %1855 = vmatpush.bf16.msra.mxu0 %v4833_v61  ;;  %v1720_v42 = vshrl.u32 %v1698_v35, 16  ;;  %v1723_v43 = vshll.u32 %v1698_v35, 16  ;;  %v1701_v59 = vrot.slane %v1699_v47, 2  ;;  %v1711_v61 = vsel %vm649_vm1, %v1686_v22, %v1694_v32 }
 0x112   : > { %2004 = vmatpush.bf16.msra.mxu1 %v4842_v15  ;;  %v1713_v7 = vrot.slane %v1711_v61, 2  ;;  %v1739_v10 = vor.u32 %v1738_v63, %v1735_v62  ;;  %v1770_v19 = vrot.slane %v1768_v9, 7  ;;  %v1877_v33 = vrot.slane %v1869_v23, 2  ;;  %v4853_v9 = vld [vmem:[%s6019_s8 + $0x30] sm:$0xff] }
 0x113   : > { %v1722_v55 = vrot.slane %v1720_v42, 6  ;;  %v1729_v12 = vshll.u32 %v1701_v59, 16  ;;  %v1875_v35 = vrot.slane %v1867_v25, 2 }
 0x114   : > { %v1755_v17 = vshll.u32 %v1713_v7, 16  ;;  %v1740_v21 = vrot.slane %v1739_v10, 2  ;;  %v1903_v41 = vsel %vm649_vm1, %v1869_v23, %v1877_v33 }
 0x115   : > { %v1187_v50 = vld.sshfl [vmem:[#allocation1] sm:$0xff pattern:$0x73625140]  ;;  %1856 = vmatpush.bf16.msra.mxu0 %v4832_v14  ;;  %v1731_v22 = vrot.slane %v1729_v12, 7  ;;  %v1887_v42 = vsel %vm645_vm0, %v1867_v25, %v1875_v35 }
 0x116   : > { %1359 = vst [vmem:[#allocation1] ss:$4 sm:$0xff] %v1301_v49  ;;  %1245 = vmatmul.bf16.vlgmr.msrb.gmra.mxu0 %v1187_v50  ;;  %2005 = vmatpush.bf16.msra.mxu1 %v4841_v30  ;;  %v1749_v49 = vshll.u32 %v1710_v40, 16  ;;  %v4839_v50 = vld [vmem:[%s6016_s5 + $0x200] sm:$0xff]  ;;  %v1901_v40 = vsel %vm645_vm0, %v1869_v23, %v1877_v33 }
 0x117   : > { %1362 = vst [vmem:[#allocation1 + $0x1] ss:$4 sm:$0xff] %v1314_v53  ;;  %v1586_v53 = vld [vmem:[#allocation3 + $0x8] sm:$0x3]  ;;  %v4210_v48 = vrot.slane %v1901_v40, 9 }
 0x118   : > { %1365 = vst [vmem:[#allocation1 + $0x2] ss:$4 sm:$0xff] %v1327_v56  ;;  %v1725_v56 = vrot.slane %v1723_v43, 7  ;;  %v1751_v3 = vrot.slane %v1749_v49, 7  ;;  %v1889_v43 = vsel %vm649_vm1, %v1867_v25, %v1875_v35  ;;  %v4211_v49 = vrot.slane %v1903_v41, 9  ;;  %v4849_v35 = vld [vmem:[%s6019_s8 + $0x10] sm:$0xff] }
 0x119   : > { %1368 = vst [vmem:[#allocation1 + $0x3] ss:$4 sm:$0xff] %v1340_v58  ;;  %1857 = vmatpush.bf16.msra.mxu0 %v4831_v29  ;;  %v1705_v58 = vsel %vm649_vm1, %v1685_v18, %v1693_v28  ;;  %v1766_v18 = vrot.slane %v1765_v8, 2  ;;  %v1874_v29 = vrot.slane %v1866_v20, 2  ;;  %v4207_v51 = vrot.slane %v1889_v43, 9 }
 0x11a   : > { %2006 = vmatpush.bf16.msra.mxu1 %v4840_v38  ;;  %v1707_v5 = vrot.slane %v1705_v58, 2  ;;  %v1726_v6 = vor.u32 %v1725_v56, %v1722_v55  ;;  %v1752_v14 = vor.u32 %v1751_v3, %v1748_v2  ;;  %v1921_v56 = vsel %vm5380_vm4, %v4210_v48, %v4211_v49  ;;  %v2018_v49 = vld [vmem:[#allocation2 + $0x4] sm:$0x3] }
 0x11b   : > { %v1771_v32 = vsel %vm5222_vm8, %v1766_v18, %v1770_v19  ;;  %v1880_v38 = vsel %vm645_vm0, %v1866_v20, %v1874_v29  ;;  %v1882_v39 = vsel %vm649_vm1, %v1866_v20, %v1874_v29 }
 0x11c   : > { %v1742_v15 = vshll.u32 %v1707_v5, 16  ;;  %v1727_v16 = vrot.slane %v1726_v6, 2  ;;  %v1753_v24 = vrot.slane %v1752_v14, 2  ;;  %v4204_v46 = vrot.slane %v1880_v38, 9  ;;  %v4854_v5 = vld [vmem:[%s6019_s8 + $0x38] sm:$0xff] }
 0x11d   : > { %v4205_v47 = vrot.slane %v1882_v39, 9  ;;  %2166 = vmatpush.bf16.msra.mxu2 %v4854_v5 }
 0x11e   : > { %2007 = vmatpush.bf16.msra.mxu1 %v4839_v50  ;;  %v1732_v28 = vsel %vm5222_vm8, %v1727_v16, %v1731_v22  ;;  %v4206_v50 = vrot.slane %v1887_v42, 9  ;;  %v4851_v22 = vld [vmem:[%s6019_s8 + $0x20] sm:$0xff] }
 0x120   : > { %v1369_v27 = vld.sshfl [vmem:[#allocation1] sm:$0xff pattern:$0x73625140]  ;;  %v1913_v57 = vsel %vm5380_vm4, %v4206_v50, %v4207_v51 }
 0x121   : > { %1509 = vst [vmem:[#allocation1] ss:$4 sm:$0xff] %v1478_v26  ;;  %1427 = vmatmul.bf16.vlgmr.msrb.gmra.mxu1 %v1369_v27  ;;  %v1744_v26 = vrot.slane %v1742_v15, 7  ;;  %v1868_v27 = vld [vmem:[#allocation3 + $0x10] sm:$0x6]  ;;  %2167 = vmatpush.bf16.msra.mxu2 %v4853_v9  ;;  %v4852_v15 = vld [vmem:[%s6019_s8 + $0x28] sm:$0xff] }
 0x122   : > { %1512 = vst [vmem:[#allocation1 + $0x1] ss:$4 sm:$0xff] %v1482_v31  ;;  %v1757_v31 = vrot.slane %v1755_v17, 7  ;;  %v1876_v37 = vrot.slane %v1868_v27, 2 }
 0x123   : > { %1515 = vst [vmem:[#allocation1 + $0x2] ss:$4 sm:$0xff] %v1486_v34  ;;  %v1745_v34 = vsel %vm5222_vm8, %v1740_v21, %v1744_v26  ;;  %v4850_v26 = vld [vmem:[%s6019_s8 + $0x18] sm:$0xff] }
 0x124   : > { %1518 = vst [vmem:[#allocation1 + $0x3] ss:$4 sm:$0xff] %v1490_v36  ;;  %v1758_v36 = vsel %vm5222_vm8, %v1753_v24, %v1757_v31  ;;  %v1894_v44 = vsel %vm645_vm0, %v1868_v27, %v1876_v37  ;;  %v1896_v45 = vsel %vm649_vm1, %v1868_v27, %v1876_v37  ;;  %v2016_v31 = vld [vmem:[#allocation2] sm:$0x3] }
 0x125   : > { %v4208_v52 = vrot.slane %v1894_v44, 9  ;;  %2168 = vmatpush.bf16.msra.mxu2 %v4852_v15  ;;  %v2030_v39 = vunpack.c.l.bf16 %v2016_v31  ;;  %v4848_v44 = vld [vmem:[%s6019_s8 + $0x8] sm:$0xff] }
 0x129   : > { %2169 = vmatpush.bf16.msra.mxu2 %v4851_v22 }
 0x12b   : > { %v1519_v60 = vld.sshfl [vmem:[#allocation1] sm:$0xff pattern:$0x73625140] }
 0x12c   : > { %1608 = vst [vmem:[#allocation1] ss:$4 sm:$0xff] %v1586_v53  ;;  %1577 = vmatmul.bf16.vlgmr.msrb.gmra.mxu2 %v1519_v60  ;;  %v4209_v53 = vrot.slane %v1896_v45, 9 }
 0x12d   : > { %1611 = vst [vmem:[#allocation1 + $0x1] ss:$4 sm:$0xff] %v1587_v1  ;;  %2170 = vmatpush.bf16.msra.mxu2 %v4850_v26 }
 0x12e   : > { %1614 = vst [vmem:[#allocation1 + $0x2] ss:$4 sm:$0xff] %v1588_v4  ;;  %v1917_v58 = vsel %vm5380_vm4, %v4208_v52, %v4209_v53  ;;  %v2019_v53 = vld [vmem:[#allocation2 + $0x6] sm:$0x3] }
 0x12f   : > { %1617 = vst [vmem:[#allocation1 + $0x3] ss:$4 sm:$0xff] %v1589_v54  ;;  %v1909_v54 = vsel %vm5380_vm4, %v4204_v46, %v4205_v47 }
 0x131   : > { %2171 = vmatpush.bf16.msra.mxu2 %v4849_v35  ;;  %v4981_v35 = vld [vmem:[%s6020_s9] ss:$0 sm:$0xff] }
 0x135   : > { %2172 = vmatpush.bf16.msra.mxu2 %v4848_v44 }
 0x136   : > { %v1618_v30 = vld.sshfl [vmem:[#allocation1] sm:$0xff pattern:$0x73625140] }
 0x137   : > { %1790 = vst [vmem:[#allocation1] ss:$4 sm:$0xff] %v1732_v28  ;;  %1676 = vmatmul.bf16.vlgmr.msrb.gmra.mxu3 %v1618_v30 }
 0x138   : > { %1793 = vst [vmem:[#allocation1 + $0x1] ss:$4 sm:$0xff] %v1745_v34  ;;  %v2017_v34 = vld [vmem:[#allocation2 + $0x2] sm:$0x3] }
 0x139   : > { %1796 = vst [vmem:[#allocation1 + $0x2] ss:$4 sm:$0xff] %v1758_v36  ;;  %v2031_v42 = vunpack.c.l.bf16 %v2017_v34 }
 0x13a   : > { %1799 = vst [vmem:[#allocation1 + $0x3] ss:$4 sm:$0xff] %v1771_v32 }
 0x141   : > { %v1800_v55 = vld.sshfl [vmem:[#allocation1] sm:$0xff pattern:$0x73625140] }
 0x142   : > { %1940 = vst [vmem:[#allocation1] ss:$4 sm:$0xff] %v1909_v54  ;;  %1858 = vmatmul.bf16.vlgmr.msra.gmra.mxu0 %v1800_v55  ;;  %v4847_v54 = vld [vmem:[%s6019_s8] sm:$0xff] }
 0x143   : > { %1943 = vst [vmem:[#allocation1 + $0x1] ss:$4 sm:$0xff] %v1913_v57  ;;  %2173 = vmatpush.bf16.msra.mxu2 %v4847_v54 }
 0x144   : > { %1946 = vst [vmem:[#allocation1 + $0x2] ss:$4 sm:$0xff] %v1917_v58  ;;  %v2032_v58 = vunpack.c.l.bf16 %v2018_v49 }
 0x145   : > { %1949 = vst [vmem:[#allocation1 + $0x3] ss:$4 sm:$0xff] %v1921_v56 }
 0x14c   : > { %v1950_v59 = vld.sshfl [vmem:[#allocation1] sm:$0xff pattern:$0x73625140] }
 0x14d   : > { %2008 = vmatmul.bf16.vlgmr.msra.gmra.mxu1 %v1950_v59 }
 0x172   : > { %v918_v60 = vpop.f32.mrf.mxu1 }
 0x17a   : > { %v920_v63 = vpop.f32.mrf.mxu1 }
 0x183   : > { %v993_v61 = vpop.f32.mrf.mxu2 }
 0x184   : > { %v994_v6 = vadd.f32 %v993_v61, %v918_v60  ;;  %v2033_v60 = vunpack.c.l.bf16 %v2019_v53 }
 0x18b   : > { %v995_v2 = vpop.f32.mrf.mxu2 }
 0x18c   : > { %v996_v16 = vadd.f32 %v995_v2, %v920_v63  ;;  %v4980_v2 = vld [vmem:[%s6018_s7] ss:$0 sm:$0xff] }
 0x18e   : > { %v1148_v62 = vpop.f32.mrf.mxu3 }
 0x18f   : > { %v1153_v7 = vadd.f32 %v1148_v62, %v994_v6  ;;  %v4979_v62 = vld [vmem:[%s6017_s6] ss:$0 sm:$0xff] }
 0x193   : > { %v1246_v1 = vpop.f32.mrf.mxu0 }
 0x194   : > { %v1251_v12 = vadd.f32 %v1246_v1, %v1153_v7  ;;  %v2062_v7 = vrot.slane %v4979_v62, 4 }
 0x196   : > { %v1150_v3 = vpop.f32.mrf.mxu3 }
 0x197   : > { %v1154_v19 = vadd.f32 %v1150_v3, %v996_v16 }
 0x19b   : > { %v1248_v8 = vpop.f32.mrf.mxu0 }
 0x19c   : > { %v1252_v24 = vadd.f32 %v1248_v8, %v1154_v19 }
 0x19e   : > { %v1428_v4 = vpop.f32.mrf.mxu1 }
 0x19f   : > { %v1433_v17 = vadd.f32 %v1428_v4, %v1251_v12 }
 0x1a6   : > { %v1430_v18 = vpop.f32.mrf.mxu1 }
 0x1a7   : > { %v1434_v27 = vadd.f32 %v1430_v18, %v1252_v24 }
 0x1af   : > { %v1578_v10 = vpop.f32.mrf.mxu2 }
 0x1b0   : > { %v1583_v20 = vadd.f32 %v1578_v10, %v1433_v17 }
 0x1b7   : > { %v1580_v25 = vpop.f32.mrf.mxu2 }
 0x1b8   : > { %v1584_v32 = vadd.f32 %v1580_v25, %v1434_v27 }
 0x1ba   : > { %v1677_v14 = vpop.f32.mrf.mxu3 }
 0x1bb   : > { %v1682_v23 = vadd.f32 %v1677_v14, %v1583_v20  ;;  %v2072_v14 = vrot.slane %v4980_v2, 4 }
 0x1bf   : > { %v1859_v21 = vpop.f32.mrf.mxu0 }
 0x1c0   : > { %v1864_v28 = vadd.f32 %v1859_v21, %v1682_v23 }
 0x1c2   : > { %v1679_v29 = vpop.f32.mrf.mxu3 }
 0x1c3   : > { %v1683_v36 = vadd.f32 %v1679_v29, %v1584_v32 }
 0x1c7   : > { %v1861_v40 = vpop.f32.mrf.mxu0 }
 0x1c8   : > { %v1865_v45 = vadd.f32 %v1861_v40, %v1683_v36 }
 0x1ca   : > { %v2009_v30 = vpop.f32.mrf.mxu1 }
 0x1cb   : > { %v2014_v33 = vadd.f32 %v2009_v30, %v1864_v28 }
 0x1cd   : > { %v2022_v37 = vrot.slane %v2014_v33, 4  ;;  %v2026_v38 = vpack.c.bf16 %v2014_v33, %v2014_v33  ;;  %v2273_v33 = vld [vmem:[#allocation3] sm:$0x7] }
 0x1ce   : > { %v2281_v34 = vrot.slane %v2273_v33, 2 }
 0x1cf   : > { %v2027_v41 = vpack.c.bf16 %v2022_v37, %v2022_v37  ;;  %v2034_v43 = vunpack.c.l.bf16 %v2026_v38 }
 0x1d0   : > { %v2287_v36 = vsel %vm645_vm0, %v2273_v33, %v2281_v34  ;;  %v2288_v38 = vsel %vm649_vm1, %v2273_v33, %v2281_v34  ;;  %v2250_v33 = vld [vmem:[#allocation3 + $0x10] sm:$0x7] }
 0x1d1   : > { %v2035_v46 = vunpack.c.l.bf16 %v2027_v41  ;;  %v2038_v47 = vadd.f32 %v2034_v43, %v2030_v39  ;;  %v2309_v39 = vshrl.u32 %v2287_v36, 16  ;;  %v2312_v40 = vshll.u32 %v2287_v36, 16 }
 0x1d2   : > { %v2011_v48 = vpop.f32.mrf.mxu1  ;;  %v2290_v43 = vrot.slane %v2288_v38, 2  ;;  %v4869_v38 = vld [vmem:[%s6021_s10 + $0x70] sm:$0xff] }
 0x1d3   : > { %v2039_v50 = vadd.f32 %v2035_v46, %v2031_v42  ;;  %v2042_v51 = vpack.c.bf16 %v2038_v47, %v2038_v47  ;;  %v2015_v52 = vadd.f32 %v2011_v48, %v1865_v45  ;;  %v2311_v44 = vrot.slane %v2309_v39, 6 }
 0x1d4   : > { %v2314_v45 = vrot.slane %v2312_v40, 7  ;;  %v2318_v48 = vshll.u32 %v2290_v43, 16 }
 0x1d5   : > { %v2043_v55 = vpack.c.bf16 %v2039_v50, %v2039_v50  ;;  %2046 = vst [vmem:[#allocation2] sm:$0x3] %v2042_v51  ;;  %v2023_v56 = vrot.slane %v2015_v52, 4  ;;  %v2028_v57 = vpack.c.bf16 %v2015_v52, %v2015_v52 }
 0x1d6   : > { %v2315_v50 = vor.u32 %v2314_v45, %v2311_v44 }
 0x1d7   : > { %2047 = vst [vmem:[#allocation2 + $0x2] sm:$0x3] %v2043_v55  ;;  %v2029_v59 = vpack.c.bf16 %v2023_v56, %v2023_v56  ;;  %v2036_v61 = vunpack.c.l.bf16 %v2028_v57  ;;  %v2320_v57 = vrot.slane %v2318_v48, 7 }
 0x1d8   : > { %v2316_v56 = vrot.slane %v2315_v50, 2 }
 0x1d9   : > { %v2037_v63 = vunpack.c.l.bf16 %v2029_v59  ;;  %v2040_v1 = vadd.f32 %v2036_v61, %v2032_v58 }
 0x1db   : > { %v2041_v3 = vadd.f32 %v2037_v63, %v2033_v60  ;;  %v2044_v4 = vpack.c.bf16 %v2040_v1, %v2040_v1  ;;  %v2321_v60 = vsel %vm5222_vm8, %v2316_v56, %v2320_v57 }
 0x1dc   : > { %v2050_v5 = vld [vmem:[#allocation2] sm:$0x3] }
 0x1dd   : > { %v2054_v6 = vunpack.c.l.bf16 %v2050_v5  ;;  %v2045_v8 = vpack.c.bf16 %v2041_v3, %v2041_v3  ;;  %2048 = vst [vmem:[#allocation2 + $0x4] sm:$0x3] %v2044_v4 }
 0x1de   : > { %v2051_v9 = vld [vmem:[#allocation2 + $0x2] sm:$0x3] }
 0x1df   : > { %v2055_v10 = vunpack.c.l.bf16 %v2051_v9  ;;  %v2064_v12 = vmul.f32 %v4979_v62, %v2054_v6  ;;  %2049 = vst [vmem:[#allocation2 + $0x6] sm:$0x3] %v2045_v8 }
 0x1e1   : > { %v2065_v15 = vmul.f32 %v2062_v7, %v2055_v10  ;;  %v2074_v16 = vadd.f32 %v4980_v2, %v2064_v12  ;;  %v2241_v10 = vld [vmem:[#allocation3 + $0x4] sm:$0x7]  ;;  %v2244_v12 = vld [vmem:[#allocation3 + $0x8] sm:$0x7] }
 0x1e3   : > { %v2075_v17 = vadd.f32 %v2072_v14, %v2065_v15  ;;  %v2078_v18 = vmax.f32 %v2074_v16, 0.0 }
 0x1e4   : > { %v2052_v19 = vld [vmem:[#allocation2 + $0x4] sm:$0x3] }
 0x1e5   : > { %v2079_v20 = vmax.f32 %v2075_v17, 0.0  ;;  %2086 = vst [vmem:[#allocation1] ss:$2 sm:$0xff] %v2078_v18  ;;  %v2056_v21 = vunpack.c.l.bf16 %v2052_v19  ;;  %v4870_v19 = vld [vmem:[%s6021_s10 + $0x78] sm:$0xff] }
 0x1e6   : > { %v2053_v22 = vld [vmem:[#allocation2 + $0x6] sm:$0x3]  ;;  %2439 = vmatpush.bf16.msra.mxu3 %v4870_v19  ;;  %v4878_v19 = vld [vmem:[%s6021_s10 + $0xb8] sm:$0xff] }
 0x1e7   : > { %2088 = vst [vmem:[#allocation1 + $0x1] ss:$2 sm:$0xff] %v2079_v20  ;;  %v2057_v23 = vunpack.c.l.bf16 %v2053_v22  ;;  %v2066_v24 = vmul.f32 %v4979_v62, %v2056_v21  ;;  %2662 = vmatpush.bf16.msrb.mxu1 %v4878_v19  ;;  %v4872_v19 = vld [vmem:[%s6021_s10 + $0x88] sm:$0xff] }
 0x1e9   : > { %v2067_v25 = vmul.f32 %v2062_v7, %v2057_v23  ;;  %v2076_v26 = vadd.f32 %v4980_v2, %v2066_v24 }
 0x1ea   : > { %2440 = vmatpush.bf16.msra.mxu3 %v4869_v38 }
 0x1eb   : > { %v2077_v27 = vadd.f32 %v2072_v14, %v2067_v25  ;;  %v2080_v28 = vmax.f32 %v2076_v26, 0.0 }
 0x1ed   : > { %v2081_v29 = vmax.f32 %v2077_v27, 0.0  ;;  %2090 = vst [vmem:[#allocation1 + $0x10] ss:$2 sm:$0xff] %v2080_v28  ;;  %v2247_v27 = vld [vmem:[#allocation3 + $0xc] sm:$0x7] }
 0x1ee   : > { %v2093_v30 = vld.sshfl [vmem:[#allocation1] sm:$0xff pattern:$0x75316420] }
 0x1ef   : > { %2092 = vst [vmem:[#allocation1 + $0x11] ss:$2 sm:$0xff] %v2081_v29 }
 0x1f6   : > { %v2094_v31 = vld.sshfl [vmem:[#allocation1 + $0x10] sm:$0xff pattern:$0x75316420] }
 0x1f7   : > { %v2097_v32 = vpack.c.bf16 %v2094_v31, %v2093_v30 }
 0x1f9   : > { %2174 = vmatmul.bf16.vlgmr.msra.gmra.mxu2 %v2097_v32 }
 0x27c   : > { %v2175_v37 = vpop.f32.mrf.mxu2 }
 0x27d   : > { %v2176_v41 = vadd.f32 %v4981_v35, %v2175_v37 }
 0x27f   : > { %v2180_v42 = vmax.f32 %v2176_v41, 0.0 }
 0x281   : > { %v2182_v46 = vpack.c.bf16 %v2180_v42, %v2180_v42 }
 0x283   : > { %v2186_v47 = vrot.slane %v2182_v46, 2 }
 0x284   : > { %v2177_v49 = vpop.f32.mrf.mxu2 }
 0x285   : > { %v2190_v51 = vsel %vm645_vm0, %v2182_v46, %v2186_v47  ;;  %v2191_v52 = vsel %vm649_vm1, %v2182_v46, %v2186_v47  ;;  %v2178_v53 = vadd.f32 %v4981_v35, %v2177_v49 }
 0x286   : > { %v2193_v54 = vrot.slane %v2191_v52, 2  ;;  %2200 = vst [vmem:[#allocation1] ss:$2 sm:$0xff] %v2190_v51 }
 0x287   : > { %v2181_v55 = vmax.f32 %v2178_v53, 0.0 }
 0x288   : > { %2204 = vst [vmem:[#allocation1 + $0x10] ss:$2 sm:$0xff] %v2193_v54 }
 0x289   : > { %v2183_v58 = vpack.c.bf16 %v2181_v55, %v2181_v55 }
 0x28b   : > { %v2187_v59 = vrot.slane %v2183_v58, 2 }
 0x28d   : > { %v2201_v61 = vld.sshfl [vmem:[#allocation1] sm:$0xff pattern:$0x75643120]  ;;  %v2196_v62 = vsel %vm645_vm0, %v2183_v58, %v2187_v59  ;;  %v2197_v63 = vsel %vm649_vm1, %v2183_v58, %v2187_v59 }
 0x28e   : > { %v2213_v1 = vshrl.u32 %v2201_v61, 16  ;;  %v2199_v2 = vrot.slane %v2197_v63, 2  ;;  %2207 = vst [vmem:[#allocation1 + $0x20] ss:$2 sm:$0xff] %v2196_v62  ;;  %v2216_v5 = vshll.u32 %v2201_v61, 16 }
 0x28f   : > { %v2205_v3 = vld.sshfl [vmem:[#allocation1 + $0x10] sm:$0xff pattern:$0x75643120] }
 0x290   : > { %v2219_v4 = vshrl.u32 %v2205_v3, 16  ;;  %2379 = vst [vmem:[#allocation1] ss:$4 sm:$0xff] %v2321_v60  ;;  %v2215_v6 = vrot.slane %v2213_v1, 7  ;;  %v2222_v8 = vshll.u32 %v2205_v3, 16 }
 0x291   : > { %2211 = vst [vmem:[#allocation1 + $0x30] ss:$2 sm:$0xff] %v2199_v2  ;;  %v4868_v2 = vld [vmem:[%s6021_s10 + $0x68] sm:$0xff] }
 0x292   : > { %v2221_v7 = vrot.slane %v2219_v4, 7  ;;  %v2218_v9 = vor.u32 %v2216_v5, %v2215_v6  ;;  %v4862_v5 = vld [vmem:[%s6021_s10 + $0x38] sm:$0xff]  ;;  %2441 = vmatpush.bf16.msra.mxu3 %v4868_v2 }
 0x293   : > { %2514 = vmatpush.bf16.msrb.mxu0 %v4862_v5  ;;  %v4855_v5 = vld [vmem:[%s6021_s10] sm:$0xff] }
 0x294   : > { %v2224_v14 = vor.u32 %v2222_v8, %v2221_v7  ;;  %v2242_v15 = vsel %vm5230_vm11, %v2218_v9, %v2241_v10  ;;  %v4867_v10 = vld [vmem:[%s6021_s10 + $0x60] sm:$0xff] }
 0x295   : > { %v2208_v16 = vld.sshfl [vmem:[#allocation1 + $0x20] sm:$0xff pattern:$0x75643120]  ;;  %2243 = vst [vmem:[#allocation3 + $0x4] sm:$0x7] %v2242_v15 }
 0x296   : > { %v2245_v17 = vsel %vm5230_vm11, %v2224_v14, %v2244_v12  ;;  %v2225_v18 = vshrl.u32 %v2208_v16, 16  ;;  %v2228_v22 = vshll.u32 %v2208_v16, 16  ;;  %v4861_v12 = vld [vmem:[%s6021_s10 + $0x30] sm:$0xff]  ;;  %2442 = vmatpush.bf16.msra.mxu3 %v4867_v10  ;;  %v4866_v16 = vld [vmem:[%s6021_s10 + $0x58] sm:$0xff] }
 0x297   : > { %2246 = vst [vmem:[#allocation3 + $0x8] sm:$0x7] %v2245_v17  ;;  %2515 = vmatpush.bf16.msrb.mxu0 %v4861_v12  ;;  %v4902_v10 = vld [vmem:[%s6021_s10 + $0x178] sm:$0xff] }
 0x298   : > { %v2212_v20 = vld.sshfl [vmem:[#allocation1 + $0x30] sm:$0xff pattern:$0x75643120]  ;;  %v2227_v21 = vrot.slane %v2225_v18, 7  ;;  %v4860_v18 = vld [vmem:[%s6021_s10 + $0x28] sm:$0xff] }
 0x299   : > { %v2231_v23 = vshrl.u32 %v2212_v20, 16  ;;  %v2234_v26 = vshll.u32 %v2212_v20, 16  ;;  %v4877_v20 = vld [vmem:[%s6021_s10 + $0xb0] sm:$0xff] }
 0x29a   : > { %v2230_v24 = vor.u32 %v2228_v22, %v2227_v21  ;;  %v4886_v21 = vld [vmem:[%s6021_s10 + $0xf8] sm:$0xff]  ;;  %v2528_v22 = vld [vmem:[#allocation3] sm:$0x6]  ;;  %2443 = vmatpush.bf16.msra.mxu3 %v4866_v16  ;;  %2663 = vmatpush.bf16.msrb.mxu1 %v4877_v20 }
 0x29b   : > { %v2233_v25 = vrot.slane %v2231_v23, 7  ;;  %2516 = vmatpush.bf16.msrb.mxu0 %v4860_v18  ;;  %v4865_v23 = vld [vmem:[%s6021_s10 + $0x50] sm:$0xff]  ;;  %2760 = vmatpush.bf16.msrb.mxu2 %v4886_v21 }
 0x29c   : > { %v2248_v28 = vsel %vm5230_vm11, %v2230_v24, %v2247_v27  ;;  %v2274_v29 = vld [vmem:[#allocation3 + $0x4] sm:$0x7]  ;;  %v4859_v24 = vld [vmem:[%s6021_s10 + $0x20] sm:$0xff]  ;;  %v2536_v27 = vrot.slane %v2528_v22, 2 }
 0x29d   : > { %v2236_v30 = vor.u32 %v2234_v26, %v2233_v25  ;;  %2249 = vst [vmem:[#allocation3 + $0xc] sm:$0x7] %v2248_v28  ;;  %v2282_v31 = vrot.slane %v2274_v29, 2  ;;  %v4885_v25 = vld [vmem:[%s6021_s10 + $0xf0] sm:$0xff] }
 0x29e   : > { %v2275_v32 = vld [vmem:[#allocation3 + $0x8] sm:$0x7]  ;;  %v2253_v26 = vld [vmem:[#allocation3] sm:$0x3]  ;;  %2444 = vmatpush.bf16.msra.mxu3 %v4865_v23  ;;  %v2542_v38 = vsel %vm645_vm0, %v2528_v22, %v2536_v27  ;;  %v5729_v2 = vld [vmem:[#allocation3 + $0x4] sm:$0x7] }
 0x29f   : > { %v2283_v34 = vrot.slane %v2275_v32, 2  ;;  %v2251_v35 = vsel %vm5230_vm11, %v2236_v30, %v2250_v33  ;;  %v2293_v36 = vsel %vm645_vm0, %v2274_v29, %v2282_v31  ;;  %v2294_v37 = vsel %vm649_vm1, %v2274_v29, %v2282_v31  ;;  %v4876_v29 = vld [vmem:[%s6021_s10 + $0xa8] sm:$0xff]  ;;  %v2530_v30 = vld [vmem:[#allocation3 + $0x8] sm:$0x6]  ;;  %2517 = vmatpush.bf16.msrb.mxu0 %v4859_v24  ;;  %2761 = vmatpush.bf16.msrb.mxu2 %v4885_v25  ;;  %v4891_v23 = vld [vmem:[%s6021_s10 + $0x120] sm:$0xff] }
 0x2a0   : > { %2252 = vst [vmem:[#allocation3 + $0x10] sm:$0x7] %v2251_v35  ;;  %v2296_v41 = vrot.slane %v2294_v37, 2  ;;  %v2322_v42 = vshrl.u32 %v2293_v36, 16  ;;  %v2325_v45 = vshll.u32 %v2293_v36, 16  ;;  %v4864_v31 = vld [vmem:[%s6021_s10 + $0x48] sm:$0xff]  ;;  %2664 = vmatpush.bf16.msrb.mxu1 %v4876_v29 }
 0x2a1   : > { %v2299_v39 = vsel %vm645_vm0, %v2275_v32, %v2283_v34  ;;  %v2300_v40 = vsel %vm649_vm1, %v2275_v32, %v2283_v34  ;;  %v4858_v32 = vld [vmem:[%s6021_s10 + $0x18] sm:$0xff]  ;;  %v4884_v35 = vld [vmem:[%s6021_s10 + $0xe8] sm:$0xff]  ;;  %v2254_v37 = vld [vmem:[#allocation3 + $0x4] sm:$0x3] }
 0x2a2   : > { %v2302_v43 = vrot.slane %v2300_v40, 2  ;;  %v2335_v44 = vshrl.u32 %v2299_v39, 16  ;;  %v2338_v11 = vshll.u32 %v2299_v39, 16  ;;  %v2324_v46 = vrot.slane %v2322_v42, 6  ;;  %v2255_v40 = vld [vmem:[#allocation3 + $0x8] sm:$0x3]  ;;  %2445 = vmatpush.bf16.msra.mxu3 %v4864_v31 }
 0x2a3   : > { %v2331_v47 = vshll.u32 %v2296_v41, 16  ;;  %v2327_v51 = vrot.slane %v2325_v45, 7  ;;  %v2544_v39 = vsel %vm649_vm1, %v2528_v22, %v2536_v27  ;;  %v4875_v41 = vld [vmem:[%s6021_s10 + $0xa0] sm:$0xff]  ;;  %v2538_v42 = vrot.slane %v2530_v30, 2  ;;  %2518 = vmatpush.bf16.msrb.mxu0 %v4858_v32  ;;  %2762 = vmatpush.bf16.msrb.mxu2 %v4884_v35  ;;  %v4894_v45 = vld [vmem:[%s6021_s10 + $0x138] sm:$0xff]  ;;  %v4901_v24 = vld [vmem:[%s6021_s10 + $0x170] sm:$0xff] }
 0x2a4   : > { %v2337_v48 = vrot.slane %v2335_v44, 6  ;;  %v2340_v49 = vrot.slane %v2338_v11, 7  ;;  %v2344_v50 = vshll.u32 %v2302_v43, 16  ;;  %v2276_v52 = vld [vmem:[#allocation3 + $0xc] sm:$0x7]  ;;  %v4863_v43 = vld [vmem:[%s6021_s10 + $0x40] sm:$0xff]  ;;  %2665 = vmatpush.bf16.msrb.mxu1 %v4875_v41 }
 0x2a5   : > { %v2284_v54 = vrot.slane %v2276_v52, 2  ;;  %v2328_v55 = vor.u32 %v2327_v51, %v2324_v46  ;;  %v2333_v57 = vrot.slane %v2331_v47, 7  ;;  %v2531_v28 = vld [vmem:[#allocation3 + $0xc] sm:$0x6]  ;;  %v4857_v44 = vld [vmem:[%s6021_s10 + $0x10] sm:$0xff]  ;;  %v4372_v46 = vrot.slane %v2542_v38, 9 }
 0x2a6   : > { %v2341_v53 = vor.u32 %v2340_v49, %v2337_v48  ;;  %v2346_v56 = vrot.slane %v2344_v50, 7  ;;  %v2256_v33 = vld [vmem:[#allocation3 + $0xc] sm:$0x3]  ;;  %v2539_v36 = vrot.slane %v2531_v28, 2  ;;  %v2529_v11 = vld [vmem:[#allocation3 + $0x4] sm:$0x6]  ;;  %2446 = vmatpush.bf16.msra.mxu3 %v4863_v43 }
 0x2a7   : > { %v2305_v59 = vsel %vm645_vm0, %v2276_v52, %v2284_v54  ;;  %v2306_v60 = vsel %vm649_vm1, %v2276_v52, %v2284_v54  ;;  %v2329_v61 = vrot.slane %v2328_v55, 2  ;;  %v4373_v47 = vrot.slane %v2544_v39, 9  ;;  %v4883_v50 = vld [vmem:[%s6021_s10 + $0xe0] sm:$0xff]  ;;  %v4874_v51 = vld [vmem:[%s6021_s10 + $0x98] sm:$0xff]  ;;  %2519 = vmatpush.bf16.msrb.mxu0 %v4857_v44  ;;  %v4856_v55 = vld [vmem:[%s6021_s10 + $0x8] sm:$0xff] }
 0x2a8   : > { %v2342_v58 = vrot.slane %v2341_v53, 2  ;;  %v2308_v62 = vrot.slane %v2306_v60, 2  ;;  %v2348_v63 = vshrl.u32 %v2305_v59, 16  ;;  %v2351_v1 = vshll.u32 %v2305_v59, 16  ;;  %2763 = vmatpush.bf16.msrb.mxu2 %v4883_v50  ;;  %v4882_v60 = vld [vmem:[%s6021_s10 + $0xd8] sm:$0xff]  ;;  %2666 = vmatpush.bf16.msrb.mxu1 %v4874_v51  ;;  %v4880_v25 = vld [vmem:[%s6021_s10 + $0xc8] sm:$0xff] }
 0x2a9   : > { %v2334_v4 = vsel %vm5222_vm8, %v2329_v61, %v2333_v57  ;;  %v2563_v48 = vsel %vm645_vm0, %v2531_v28, %v2539_v36  ;;  %v2565_v49 = vsel %vm649_vm1, %v2531_v28, %v2539_v36  ;;  %v2537_v52 = vrot.slane %v2529_v11, 2  ;;  %v5724_v61 = vld [vmem:[#allocation3 + $0x8] sm:$0x7]  ;;  %v5744_v12 = vld [vmem:[#allocation3 + $0x10] sm:$0x7] }
 0x2aa   : > { %v2347_v3 = vsel %vm5222_vm8, %v2342_v58, %v2346_v56  ;;  %v2350_v6 = vrot.slane %v2348_v63, 6  ;;  %v2353_v7 = vrot.slane %v2351_v1, 7  ;;  %v2357_v8 = vshll.u32 %v2308_v62, 16  ;;  %2382 = vst [vmem:[#allocation1 + $0x1] ss:$4 sm:$0xff] %v2334_v4  ;;  %2942 = vmatpush.bf16.msrb.mxu3 %v4894_v45  ;;  %v4893_v58 = vld [vmem:[%s6021_s10 + $0x130] sm:$0xff] }
 0x2ab   : > { %2385 = vst [vmem:[#allocation1 + $0x2] ss:$4 sm:$0xff] %v2347_v3  ;;  %v2556_v53 = vsel %vm645_vm0, %v2530_v30, %v2538_v42  ;;  %v2558_v54 = vsel %vm649_vm1, %v2530_v30, %v2538_v42  ;;  %v4378_v56 = vrot.slane %v2563_v48, 9  ;;  %v4379_v57 = vrot.slane %v2565_v49, 9  ;;  %v4873_v1 = vld [vmem:[%s6021_s10 + $0x90] sm:$0xff]  ;;  %2520 = vmatpush.bf16.msrb.mxu0 %v4856_v55  ;;  %v4871_v28 = vld [vmem:[%s6021_s10 + $0x80] sm:$0xff] }
 0x2ac   : > { %v2354_v9 = vor.u32 %v2353_v7, %v2350_v6  ;;  %v2359_v15 = vrot.slane %v2357_v8, 7  ;;  %v2571_v59 = vsel %vm5380_vm4, %v4372_v46, %v4373_v47  ;;  %v4376_v62 = vrot.slane %v2556_v53, 9  ;;  %v2778_v8 = vld [vmem:[#allocation3 + $0xc] sm:$0x7]  ;;  %2764 = vmatpush.bf16.msrb.mxu2 %v4882_v60  ;;  %2667 = vmatpush.bf16.msrb.mxu1 %v4873_v1  ;;  %v2678_v45 = vld [vmem:[#allocation3 + $0x4] sm:$0x3] }
 0x2ad   : > { %v4377_v63 = vrot.slane %v2558_v54, 9  ;;  %v2549_v3 = vsel %vm645_vm0, %v2529_v11, %v2537_v52  ;;  %v2551_v4 = vsel %vm649_vm1, %v2529_v11, %v2537_v52  ;;  %v2583_v7 = vsel %vm5380_vm4, %v4378_v56, %v4379_v57  ;;  %v4910_v30 = vld [vmem:[%s6021_s10 + $0x1b8] sm:$0xff]  ;;  %v4889_v47 = vld [vmem:[%s6021_s10 + $0x110] sm:$0xff]  ;;  %v4899_v48 = vld [vmem:[%s6021_s10 + $0x160] sm:$0xff] }
 0x2ae   : > { %v2355_v14 = vrot.slane %v2354_v9, 2  ;;  %2943 = vmatpush.bf16.msrb.mxu3 %v4893_v58  ;;  %v4892_v9 = vld [vmem:[%s6021_s10 + $0x128] sm:$0xff]  ;;  %v4374_v16 = vrot.slane %v2549_v3, 9  ;;  %v2785_v20 = vrot.slane %v5724_v61, 2  ;;  %v2786_v21 = vrot.slane %v2778_v8, 2  ;;  %v4918_v41 = vld [vmem:[%s6021_s10 + $0x1f8] sm:$0xff] }
 0x2af   : > { %v2579_v18 = vsel %vm5380_vm4, %v4376_v62, %v4377_v63  ;;  %2521 = vmatpush.bf16.msrb.mxu0 %v4855_v5  ;;  %v2787_v22 = vrot.slane %v5744_v12, 2  ;;  %v2679_v49 = vld [vmem:[#allocation3 + $0x8] sm:$0x3]  ;;  %v4909_v54 = vld [vmem:[%s6021_s10 + $0x1b0] sm:$0xff]  ;;  %v2680_v55 = vld [vmem:[#allocation3 + $0xc] sm:$0x3] }
 0x2b0   : > { %v2360_v17 = vsel %vm5222_vm8, %v2355_v14, %v2359_v15  ;;  %v4881_v14 = vld [vmem:[%s6021_s10 + $0xd0] sm:$0xff]  ;;  %v2784_v15 = vrot.slane %v5729_v2, 2  ;;  %2668 = vmatpush.bf16.msrb.mxu1 %v4872_v19  ;;  %v2796_v29 = vsel %vm645_vm0, %v5724_v61, %v2785_v20  ;;  %v2802_v31 = vsel %vm645_vm0, %v2778_v8, %v2786_v21  ;;  %v4898_v5 = vld [vmem:[%s6021_s10 + $0x158] sm:$0xff]  ;;  %v4887_v19 = vld [vmem:[%s6021_s10 + $0x100] sm:$0xff] }
 0x2b1   : > { %2388 = vst [vmem:[#allocation1 + $0x3] ss:$4 sm:$0xff] %v2360_v17  ;;  %v4375_v17 = vrot.slane %v2551_v4, 9  ;;  %2765 = vmatpush.bf16.msrb.mxu2 %v4881_v14  ;;  %v2808_v32 = vsel %vm645_vm0, %v5744_v12, %v2787_v22  ;;  %v2803_v38 = vsel %vm649_vm1, %v2778_v8, %v2786_v21  ;;  %v2825_v39 = vshrl.u32 %v2796_v29, 16  ;;  %v4917_v60 = vld [vmem:[%s6021_s10 + $0x1f0] sm:$0xff]  ;;  %v4888_v4 = vld [vmem:[%s6021_s10 + $0x108] sm:$0xff] }
 0x2b2   : > { %2944 = vmatpush.bf16.msrb.mxu3 %v4892_v9  ;;  %v2838_v42 = vshrl.u32 %v2802_v31, 16  ;;  %v2841_v43 = vshll.u32 %v2802_v31, 16  ;;  %v2851_v44 = vshrl.u32 %v2808_v32, 16  ;;  %v2854_v11 = vshll.u32 %v2808_v32, 16  ;;  %v4908_v8 = vld [vmem:[%s6021_s10 + $0x1a8] sm:$0xff]  ;;  %v4915_v31 = vld [vmem:[%s6021_s10 + $0x1e0] sm:$0xff] }
 0x2b3   : > { %3092 = vmatpush.bf16.msra.mxu0 %v4902_v10  ;;  %v2575_v27 = vsel %vm5380_vm4, %v4374_v16, %v4375_v17  ;;  %v2791_v46 = vsel %vm649_vm1, %v5729_v2, %v2784_v15  ;;  %v2805_v50 = vrot.slane %v2803_v38, 2  ;;  %v2797_v51 = vsel %vm649_vm1, %v5724_v61, %v2785_v20  ;;  %v4897_v20 = vld [vmem:[%s6021_s10 + $0x150] sm:$0xff] }
 0x2b4   : > { %2669 = vmatpush.bf16.msrb.mxu1 %v4871_v28  ;;  %v2809_v56 = vsel %vm649_vm1, %v5744_v12, %v2787_v22  ;;  %v2827_v57 = vrot.slane %v2825_v39, 6  ;;  %v2840_v61 = vrot.slane %v2838_v42, 6  ;;  %v2843_v62 = vrot.slane %v2841_v43, 7  ;;  %v4916_v12 = vld [vmem:[%s6021_s10 + $0x1e8] sm:$0xff]  ;;  %v4907_v22 = vld [vmem:[%s6021_s10 + $0x1a0] sm:$0xff] }
 0x2b5   : > { %2766 = vmatpush.bf16.msrb.mxu2 %v4880_v25  ;;  %v2853_v63 = vrot.slane %v2851_v44, 6  ;;  %v2793_v1 = vrot.slane %v2791_v46, 2  ;;  %v2799_v3 = vrot.slane %v2797_v51, 2  ;;  %v2811_v9 = vrot.slane %v2809_v56, 2  ;;  %v4914_v46 = vld [vmem:[%s6021_s10 + $0x1d8] sm:$0xff] }
 0x2b6   : > { %2945 = vmatpush.bf16.msrb.mxu3 %v4891_v23  ;;  %v2844_v14 = vor.u32 %v2843_v62, %v2840_v61  ;;  %v2847_v16 = vshll.u32 %v2805_v50, 16  ;;  %v4926_v23 = vld [vmem:[%s6021_s10 + $0x238] sm:$0xff] }
 0x2b7   : > { %3093 = vmatpush.bf16.msra.mxu0 %v4901_v24  ;;  %v2959_v24 = vld [vmem:[#allocation3 + $0x8] sm:$0x6]  ;;  %v2860_v25 = vshll.u32 %v2811_v9, 16  ;;  %v4923_v9 = vld [vmem:[%s6021_s10 + $0x220] sm:$0xff] }
 0x2b8   : > { %v2389_v34 = vld.sshfl [vmem:[#allocation1] sm:$0xff pattern:$0x73625140]  ;;  %3190 = vmatpush.bf16.msra.mxu1 %v4910_v30  ;;  %v2845_v28 = vrot.slane %v2844_v14, 2  ;;  %v2849_v32 = vrot.slane %v2847_v16, 7  ;;  %v2967_v43 = vrot.slane %v2959_v24, 2 }
 0x2b9   : > { %2463 = vst [vmem:[#allocation1 + $0x3] ss:$4 sm:$0xff] %v2256_v33  ;;  %2447 = vmatmul.bf16.vlgmr.msra.gmra.mxu3 %v2389_v34  ;;  %v4890_v33 = vld [vmem:[%s6021_s10 + $0x118] sm:$0xff]  ;;  %v4900_v34 = vld [vmem:[%s6021_s10 + $0x168] sm:$0xff]  ;;  %v2862_v42 = vrot.slane %v2860_v25, 7 }
 0x2ba   : > { %2454 = vst [vmem:[#allocation1] ss:$4 sm:$0xff] %v2253_v26  ;;  %v2790_v26 = vsel %vm645_vm0, %v5729_v2, %v2784_v15  ;;  %2946 = vmatpush.bf16.msrb.mxu3 %v4890_v33  ;;  %v2856_v2 = vrot.slane %v2854_v11, 7  ;;  %v2821_v15 = vshll.u32 %v2793_v1, 16  ;;  %v2850_v11 = vsel %vm5222_vm8, %v2845_v28, %v2849_v32  ;;  %v4912_v16 = vld [vmem:[%s6021_s10 + $0x1c8] sm:$0xff]  ;;  %v4911_v28 = vld [vmem:[%s6021_s10 + $0x1c0] sm:$0xff] }
 0x2bb   : > { %2460 = vst [vmem:[#allocation1 + $0x2] ss:$4 sm:$0xff] %v2255_v40  ;;  %v2812_v35 = vshrl.u32 %v2790_v26, 16  ;;  %v2815_v36 = vshll.u32 %v2790_v26, 16  ;;  %v2828_v40 = vshll.u32 %v2796_v29, 16  ;;  %3094 = vmatpush.bf16.msra.mxu0 %v4900_v34 }
 0x2bc   : > { %2457 = vst [vmem:[#allocation1 + $0x1] ss:$4 sm:$0xff] %v2254_v37  ;;  %v4879_v37 = vld [vmem:[%s6021_s10 + $0xc0] sm:$0xff]  ;;  %3191 = vmatpush.bf16.msra.mxu1 %v4909_v54  ;;  %v2857_v17 = vor.u32 %v2856_v2, %v2853_v63  ;;  %v2958_v26 = vld [vmem:[#allocation3 + $0x4] sm:$0x6]  ;;  %v2823_v30 = vrot.slane %v2821_v15, 7  ;;  %v2979_v54 = vsel %vm645_vm0, %v2959_v24, %v2967_v43 }
 0x2bd   : > { %v2814_v52 = vrot.slane %v2812_v35, 6  ;;  %v2817_v53 = vrot.slane %v2815_v36, 7  ;;  %2767 = vmatpush.bf16.msrb.mxu2 %v4879_v37  ;;  %v2830_v58 = vrot.slane %v2828_v40, 7  ;;  %v2960_v29 = vld [vmem:[#allocation3 + $0xc] sm:$0x6]  ;;  %v4896_v36 = vld [vmem:[%s6021_s10 + $0x148] sm:$0xff] }
 0x2be   : > { %2947 = vmatpush.bf16.msrb.mxu3 %v4889_v47  ;;  %v2858_v33 = vrot.slane %v2857_v17, 2  ;;  %v2961_v34 = vld [vmem:[#allocation3 + $0x10] sm:$0x6]  ;;  %v2966_v37 = vrot.slane %v2958_v26, 2  ;;  %v4906_v40 = vld [vmem:[%s6021_s10 + $0x198] sm:$0xff] }
 0x2bf   : > { %3095 = vmatpush.bf16.msra.mxu0 %v4899_v48  ;;  %v2831_v10 = vor.u32 %v2830_v58, %v2827_v57  ;;  %v2969_v48 = vrot.slane %v2961_v34, 2  ;;  %v4913_v58 = vld [vmem:[%s6021_s10 + $0x1d0] sm:$0xff]  ;;  %v3207_v2 = vld [vmem:[#allocation3 + $0xc] sm:$0x7] }
 0x2c0   : > { %3192 = vmatpush.bf16.msra.mxu1 %v4908_v8  ;;  %v2863_v47 = vsel %vm5222_vm8, %v2858_v33, %v2862_v42  ;;  %v2972_v50 = vsel %vm645_vm0, %v2958_v26, %v2966_v37  ;;  %v2974_v51 = vsel %vm649_vm1, %v2958_v26, %v2966_v37  ;;  %v3208_v8 = vld [vmem:[#allocation3 + $0x10] sm:$0x7]  ;;  %v3215_v17 = vrot.slane %v3207_v2, 2  ;;  %v3108_v42 = vld [vmem:[#allocation3 + $0x8] sm:$0x3] }
 0x2c1   : > { %3372 = vmatpush.bf16.msra.mxu2 %v4918_v41  ;;  %v4925_v41 = vld [vmem:[%s6021_s10 + $0x230] sm:$0xff]  ;;  %v2993_v61 = vsel %vm645_vm0, %v2961_v34, %v2969_v48  ;;  %v2995_v62 = vsel %vm649_vm1, %v2961_v34, %v2969_v48  ;;  %v4524_v63 = vrot.slane %v2972_v50, 9  ;;  %v4525_v1 = vrot.slane %v2974_v51, 9 }
 0x2c2   : > { %2948 = vmatpush.bf16.msrb.mxu3 %v4888_v4  ;;  %v4531_v14 = vrot.slane %v2995_v62, 9  ;;  %v4919_v62 = vld [vmem:[%s6021_s10 + $0x200] sm:$0xff] }
 0x2c3   : > { %v2464_v6 = vld.sshfl [vmem:[#allocation1] sm:$0xff pattern:$0x73625140]  ;;  %3096 = vmatpush.bf16.msra.mxu0 %v4898_v5  ;;  %v4904_v5 = vld [vmem:[%s6021_s10 + $0x188] sm:$0xff] }
 0x2c4   : > { %2602 = vst [vmem:[#allocation1] ss:$4 sm:$0xff] %v2571_v59  ;;  %2522 = vmatmul.bf16.vlgmr.msrb.gmra.mxu0 %v2464_v6  ;;  %v2681_v6 = vld [vmem:[#allocation3 + $0x10] sm:$0x3]  ;;  %3193 = vmatpush.bf16.msra.mxu1 %v4907_v22 }
 0x2c5   : > { %2611 = vst [vmem:[#allocation1 + $0x3] ss:$4 sm:$0xff] %v2583_v7  ;;  %v2818_v7 = vor.u32 %v2817_v53, %v2814_v52  ;;  %3373 = vmatpush.bf16.msra.mxu2 %v4917_v60  ;;  %v4905_v52 = vld [vmem:[%s6021_s10 + $0x190] sm:$0xff]  ;;  %v4924_v53 = vld [vmem:[%s6021_s10 + $0x228] sm:$0xff]  ;;  %v3206_v60 = vld [vmem:[#allocation3 + $0x8] sm:$0x7] }
 0x2c6   : > { %2608 = vst [vmem:[#allocation1 + $0x2] ss:$4 sm:$0xff] %v2579_v18  ;;  %v2834_v18 = vshll.u32 %v2799_v3, 16  ;;  %2949 = vmatpush.bf16.msrb.mxu3 %v4887_v19  ;;  %v4526_v3 = vrot.slane %v2979_v54, 9  ;;  %v3214_v15 = vrot.slane %v3206_v60, 2  ;;  %v4903_v22 = vld [vmem:[%s6021_s10 + $0x180] sm:$0xff] }
 0x2c7   : > { %2605 = vst [vmem:[#allocation1 + $0x1] ss:$4 sm:$0xff] %v2575_v27  ;;  %v2819_v21 = vrot.slane %v2818_v7, 2  ;;  %v2832_v27 = vrot.slane %v2831_v10, 2  ;;  %3097 = vmatpush.bf16.msra.mxu0 %v4897_v20  ;;  %v3216_v20 = vrot.slane %v3208_v8, 2 }
 0x2c8   : > { %v2836_v35 = vrot.slane %v2834_v18, 7  ;;  %3194 = vmatpush.bf16.msra.mxu1 %v4906_v40  ;;  %v3001_v18 = vsel %vm5380_vm4, %v4524_v63, %v4525_v1 }
 0x2c9   : > { %3374 = vmatpush.bf16.msra.mxu2 %v4916_v12  ;;  %v2824_v38 = vsel %vm5222_vm8, %v2819_v21, %v2823_v30  ;;  %v4530_v12 = vrot.slane %v2993_v61, 9  ;;  %v3232_v30 = vsel %vm645_vm0, %v3208_v8, %v3216_v20  ;;  %v3233_v51 = vsel %vm649_vm1, %v3208_v8, %v3216_v20 }
 0x2ca   : > { %3522 = vmatpush.bf16.msra.mxu3 %v4926_v23  ;;  %v2837_v44 = vsel %vm5222_vm8, %v2832_v27, %v2836_v35  ;;  %v3220_v27 = vsel %vm645_vm0, %v3206_v60, %v3214_v15  ;;  %v4921_v35 = vld [vmem:[%s6021_s10 + $0x210] sm:$0xff]  ;;  %v3271_v40 = vshll.u32 %v3232_v30, 16 }
 0x2cb   : > { %3098 = vmatpush.bf16.msra.mxu0 %v4896_v36  ;;  %v3013_v26 = vsel %vm5380_vm4, %v4530_v12, %v4531_v14  ;;  %v3242_v33 = vshrl.u32 %v3220_v27, 16  ;;  %v3245_v34 = vshll.u32 %v3220_v27, 16  ;;  %v3391_v14 = vld [vmem:[#allocation3 + $0x14] sm:$0x6] }
 0x2cc   : > { %3195 = vmatpush.bf16.msra.mxu1 %v4905_v52 }
 0x2cd   : > { %3375 = vmatpush.bf16.msra.mxu2 %v4915_v31  ;;  %v3247_v48 = vrot.slane %v3245_v34, 7 }
 0x2ce   : > { %v2612_v59 = vld.sshfl [vmem:[#allocation1] sm:$0xff pattern:$0x73625140]  ;;  %3523 = vmatpush.bf16.msra.mxu3 %v4925_v41 }
 0x2cf   : > { %2670 = vmatmul.bf16.vlgmr.msrb.gmra.mxu1 %v2612_v59  ;;  %2700 = vst [vmem:[#allocation1] ss:$4 sm:$0xff] %v2678_v45  ;;  %v2968_v45 = vrot.slane %v2960_v29, 2  ;;  %v3209_v59 = vld [vmem:[#allocation3 + $0x14] sm:$0x7] }
 0x2d0   : > { %2703 = vst [vmem:[#allocation1 + $0x1] ss:$4 sm:$0xff] %v2679_v49  ;;  %v4895_v49 = vld [vmem:[%s6021_s10 + $0x140] sm:$0xff]  ;;  %v3217_v10 = vrot.slane %v3209_v59, 2  ;;  %3196 = vmatpush.bf16.msra.mxu1 %v4904_v5 }
 0x2d1   : > { %2706 = vst [vmem:[#allocation1 + $0x2] ss:$4 sm:$0xff] %v2680_v55  ;;  %v2981_v55 = vsel %vm649_vm1, %v2959_v24, %v2967_v43  ;;  %v2986_v56 = vsel %vm645_vm0, %v2960_v29, %v2968_v45  ;;  %v2988_v57 = vsel %vm649_vm1, %v2960_v29, %v2968_v45  ;;  %3376 = vmatpush.bf16.msra.mxu2 %v4914_v46  ;;  %v4922_v24 = vld [vmem:[%s6021_s10 + $0x218] sm:$0xff] }
 0x2d2   : > { %2709 = vst [vmem:[#allocation1 + $0x3] ss:$4 sm:$0xff] %v2681_v6  ;;  %3099 = vmatpush.bf16.msra.mxu0 %v4895_v49  ;;  %v4527_v4 = vrot.slane %v2981_v55, 9  ;;  %3524 = vmatpush.bf16.msra.mxu3 %v4924_v53  ;;  %v4528_v6 = vrot.slane %v2986_v56, 9  ;;  %v4529_v7 = vrot.slane %v2988_v57, 9  ;;  %v3238_v25 = vsel %vm645_vm0, %v3209_v59, %v3217_v10  ;;  %v4920_v49 = vld [vmem:[%s6021_s10 + $0x208] sm:$0xff] }
 0x2d3   : > { %v3226_v29 = vsel %vm645_vm0, %v3207_v2, %v3215_v17  ;;  %v3239_v31 = vsel %vm649_vm1, %v3209_v59, %v3217_v10  ;;  %v3281_v32 = vshrl.u32 %v3238_v25, 16  ;;  %v3284_v36 = vshll.u32 %v3238_v25, 16  ;;  %v3109_v45 = vld [vmem:[#allocation3 + $0xc] sm:$0x3]  ;;  %v3388_v10 = vld [vmem:[#allocation3 + $0x8] sm:$0x6] }
 0x2d4   : > { %v3005_v21 = vsel %vm5380_vm4, %v4526_v3, %v4527_v4  ;;  %v3009_v23 = vsel %vm5380_vm4, %v4528_v6, %v4529_v7  ;;  %3197 = vmatpush.bf16.msra.mxu1 %v4903_v22  ;;  %v3255_v37 = vshrl.u32 %v3226_v29, 16  ;;  %v3241_v41 = vrot.slane %v3239_v31, 2 }
 0x2d5   : > { %3377 = vmatpush.bf16.msra.mxu2 %v4913_v58  ;;  %v3221_v43 = vsel %vm649_vm1, %v3206_v60, %v3214_v15  ;;  %v3227_v46 = vsel %vm649_vm1, %v3207_v2, %v3215_v17  ;;  %v3286_v50 = vrot.slane %v3284_v36, 7  ;;  %v3273_v56 = vrot.slane %v3271_v40, 7  ;;  %v3110_v58 = vld [vmem:[#allocation3 + $0x10] sm:$0x3] }
 0x2d6   : > { %3525 = vmatpush.bf16.msra.mxu3 %v4923_v9  ;;  %v3257_v52 = vrot.slane %v3255_v37, 6  ;;  %v3223_v57 = vrot.slane %v3221_v43, 2  ;;  %v3229_v59 = vrot.slane %v3227_v46, 2  ;;  %v3235_v60 = vrot.slane %v3233_v51, 2 }
 0x2d7   : > { %v3290_v1 = vshll.u32 %v3241_v41, 16  ;;  %v3399_v25 = vrot.slane %v3391_v14, 2 }
 0x2d8   : > { %v3251_v4 = vshll.u32 %v3223_v57, 16  ;;  %v3264_v5 = vshll.u32 %v3229_v59, 16  ;;  %v3277_v6 = vshll.u32 %v3235_v60, 16 }
 0x2d9   : > { %v2710_v39 = vld.sshfl [vmem:[#allocation1] sm:$0xff pattern:$0x73625140]  ;;  %3378 = vmatpush.bf16.msra.mxu2 %v4912_v16  ;;  %v3292_v9 = vrot.slane %v3290_v1, 7  ;;  %v3389_v16 = vld [vmem:[#allocation3 + $0xc] sm:$0x6] }
 0x2da   : > { %2768 = vmatmul.bf16.vlgmr.msrb.gmra.mxu2 %v2710_v39  ;;  %2882 = vst [vmem:[#allocation1] ss:$4 sm:$0xff] %v2824_v38  ;;  %3526 = vmatpush.bf16.msra.mxu3 %v4922_v24  ;;  %v3258_v38 = vshll.u32 %v3226_v29, 16  ;;  %v3268_v39 = vshrl.u32 %v3232_v30, 16  ;;  %v3253_v17 = vrot.slane %v3251_v4, 7  ;;  %v3279_v20 = vrot.slane %v3277_v6, 7 }
 0x2db   : > { %2885 = vst [vmem:[#allocation1 + $0x1] ss:$4 sm:$0xff] %v2837_v44  ;;  %v3111_v44 = vld [vmem:[#allocation3 + $0x14] sm:$0x3]  ;;  %v3397_v27 = vrot.slane %v3389_v16, 2 }
 0x2dc   : > { %2888 = vst [vmem:[#allocation1 + $0x2] ss:$4 sm:$0xff] %v2850_v11  ;;  %v3283_v11 = vrot.slane %v3281_v32, 6  ;;  %v3260_v53 = vrot.slane %v3258_v38, 7  ;;  %v3270_v55 = vrot.slane %v3268_v39, 6  ;;  %v3423_v32 = vsel %vm645_vm0, %v3391_v14, %v3399_v25 }
 0x2dd   : > { %2891 = vst [vmem:[#allocation1 + $0x3] ss:$4 sm:$0xff] %v2863_v47  ;;  %3379 = vmatpush.bf16.msra.mxu2 %v4911_v28  ;;  %v3244_v47 = vrot.slane %v3242_v33, 6  ;;  %v3425_v33 = vsel %vm649_vm1, %v3391_v14, %v3399_v25  ;;  %v3409_v34 = vsel %vm645_vm0, %v3389_v16, %v3397_v27  ;;  %v4682_v39 = vrot.slane %v3423_v32, 9 }
 0x2de   : > { %3527 = vmatpush.bf16.msra.mxu3 %v4921_v35  ;;  %v3287_v63 = vor.u32 %v3286_v50, %v3283_v11  ;;  %v3261_v2 = vor.u32 %v3260_v53, %v3257_v52  ;;  %v3274_v3 = vor.u32 %v3273_v56, %v3270_v55  ;;  %v3411_v35 = vsel %vm649_vm1, %v3389_v16, %v3397_v27  ;;  %v3538_v16 = vld [vmem:[#allocation2] sm:$0x3] }
 0x2df   : > { %v3248_v61 = vor.u32 %v3247_v48, %v3244_v47  ;;  %v4683_v40 = vrot.slane %v3425_v33, 9  ;;  %v4678_v41 = vrot.slane %v3409_v34, 9 }
 0x2e0   : > { %v3288_v8 = vrot.slane %v3287_v63, 2  ;;  %v3262_v12 = vrot.slane %v3261_v2, 2  ;;  %v3275_v15 = vrot.slane %v3274_v3, 2 }
 0x2e1   : > { %v3249_v7 = vrot.slane %v3248_v61, 2  ;;  %v3443_v46 = vsel %vm5380_vm4, %v4682_v39, %v4683_v40  ;;  %v4932_v39 = vld [vmem:[%s6024_s13 + $0x28] sm:$0xff] }
 0x2e2   : > { %3528 = vmatpush.bf16.msra.mxu3 %v4920_v49  ;;  %v3293_v24 = vsel %vm5222_vm8, %v3288_v8, %v3292_v9  ;;  %v3280_v28 = vsel %vm5222_vm8, %v3275_v15, %v3279_v20  ;;  %v3541_v40 = vld [vmem:[#allocation2 + $0x6] sm:$0x3] }
 0x2e3   : > { %v3254_v22 = vsel %vm5222_vm8, %v3249_v7, %v3253_v17 }
 0x2e4   : > { %v2892_v19 = vld.sshfl [vmem:[#allocation1] sm:$0xff pattern:$0x73625140] }
 0x2e5   : > { %2950 = vmatmul.bf16.vlgmr.msrb.gmra.mxu3 %v2892_v19  ;;  %3032 = vst [vmem:[#allocation1] ss:$4 sm:$0xff] %v3001_v18  ;;  %v3266_v18 = vrot.slane %v3264_v5, 7  ;;  %v3390_v19 = vld [vmem:[#allocation3 + $0x10] sm:$0x6] }
 0x2e6   : > { %3035 = vst [vmem:[#allocation1 + $0x1] ss:$4 sm:$0xff] %v3005_v21  ;;  %3529 = vmatpush.bf16.msra.mxu3 %v4919_v62  ;;  %v3396_v21 = vrot.slane %v3388_v10, 2  ;;  %v3398_v29 = vrot.slane %v3390_v19, 2 }
 0x2e7   : > { %3038 = vst [vmem:[#allocation1 + $0x2] ss:$4 sm:$0xff] %v3009_v23 }
 0x2e8   : > { %3041 = vst [vmem:[#allocation1 + $0x3] ss:$4 sm:$0xff] %v3013_v26  ;;  %v3267_v26 = vsel %vm5222_vm8, %v3262_v12, %v3266_v18  ;;  %v3402_v30 = vsel %vm645_vm0, %v3388_v10, %v3396_v21  ;;  %v3404_v31 = vsel %vm649_vm1, %v3388_v10, %v3396_v21  ;;  %v3416_v36 = vsel %vm645_vm0, %v3390_v19, %v3398_v29  ;;  %v3539_v21 = vld [vmem:[#allocation2 + $0x2] sm:$0x3] }
 0x2e9   : > { %v3418_v0 = vsel %vm649_vm1, %v3390_v19, %v3398_v29  ;;  %v4676_v37 = vrot.slane %v3402_v30, 9  ;;  %v4677_v38 = vrot.slane %v3404_v31, 9  ;;  %v4680_v43 = vrot.slane %v3416_v36, 9  ;;  %v4933_v31 = vld [vmem:[%s6024_s13 + $0x30] sm:$0xff]  ;;  %v3540_v36 = vld [vmem:[#allocation2 + $0x4] sm:$0x3] }
 0x2eb   : > { %v3431_v11 = vsel %vm5380_vm4, %v4676_v37, %v4677_v38 }
 0x2ef   : > { %v3042_v54 = vld.sshfl [vmem:[#allocation1] sm:$0xff pattern:$0x73625140] }
 0x2f0   : > { %3100 = vmatmul.bf16.vlgmr.msra.gmra.mxu0 %v3042_v54  ;;  %3130 = vst [vmem:[#allocation1] ss:$4 sm:$0xff] %v3108_v42  ;;  %v4679_v42 = vrot.slane %v3411_v35, 9 }
 0x2f1   : > { %3133 = vst [vmem:[#allocation1 + $0x1] ss:$4 sm:$0xff] %v3109_v45 }
 0x2f2   : > { %3136 = vst [vmem:[#allocation1 + $0x2] ss:$4 sm:$0xff] %v3110_v58  ;;  %v3435_v47 = vsel %vm5380_vm4, %v4678_v41, %v4679_v42  ;;  %v3554_v42 = vunpack.c.l.bf16 %v3540_v36 }
 0x2f3   : > { %3139 = vst [vmem:[#allocation1 + $0x3] ss:$4 sm:$0xff] %v3111_v44  ;;  %v4681_v44 = vrot.slane %v3418_v0, 9 }
 0x2f5   : > { %v3439_v48 = vsel %vm5380_vm4, %v4680_v43, %v4681_v44  ;;  %v4982_v44 = vld [vmem:[%s6022_s11] ss:$0 sm:$0xff] }
 0x2fa   : > { %v3140_v23 = vld.sshfl [vmem:[#allocation1] sm:$0xff pattern:$0x73625140] }
 0x2fb   : > { %3198 = vmatmul.bf16.vlgmr.msra.gmra.mxu1 %v3140_v23  ;;  %3312 = vst [vmem:[#allocation1] ss:$4 sm:$0xff] %v3254_v22 }
 0x2fc   : > { %3315 = vst [vmem:[#allocation1 + $0x1] ss:$4 sm:$0xff] %v3267_v26  ;;  %v4934_v26 = vld [vmem:[%s6024_s13 + $0x38] sm:$0xff] }
 0x2fd   : > { %3318 = vst [vmem:[#allocation1 + $0x2] ss:$4 sm:$0xff] %v3280_v28  ;;  %v3553_v28 = vunpack.c.l.bf16 %v3539_v21  ;;  %3700 = vmatpush.bf16.msrb.mxu0 %v4934_v26 }
 0x2fe   : > { %3321 = vst [vmem:[#allocation1 + $0x3] ss:$4 sm:$0xff] %v3293_v24  ;;  %v3552_v24 = vunpack.c.l.bf16 %v3538_v16 }
 0x301   : > { %3701 = vmatpush.bf16.msrb.mxu0 %v4933_v31 }
 0x305   : > { %v3322_v45 = vld.sshfl [vmem:[#allocation1] sm:$0xff pattern:$0x73625140]  ;;  %3702 = vmatpush.bf16.msrb.mxu0 %v4932_v39 }
 0x306   : > { %3380 = vmatmul.bf16.vlgmr.msra.gmra.mxu2 %v3322_v45  ;;  %3462 = vst [vmem:[#allocation1] ss:$4 sm:$0xff] %v3431_v11  ;;  %v3555_v11 = vunpack.c.l.bf16 %v3541_v40 }
 0x307   : > { %3465 = vst [vmem:[#allocation1 + $0x1] ss:$4 sm:$0xff] %v3435_v47  ;;  %v4931_v47 = vld [vmem:[%s6024_s13 + $0x20] sm:$0xff] }
 0x308   : > { %3468 = vst [vmem:[#allocation1 + $0x2] ss:$4 sm:$0xff] %v3439_v48  ;;  %v4983_v48 = vld [vmem:[%s6023_s12] ss:$0 sm:$0xff] }
 0x309   : > { %3471 = vst [vmem:[#allocation1 + $0x3] ss:$4 sm:$0xff] %v3443_v46  ;;  %3703 = vmatpush.bf16.msrb.mxu0 %v4931_v47 }
 0x310   : > { %v3472_v49 = vld.sshfl [vmem:[#allocation1] sm:$0xff pattern:$0x73625140] }
 0x311   : > { %3530 = vmatmul.bf16.vlgmr.msra.gmra.mxu3 %v3472_v49 }
 0x33c   : > { %v2448_v50 = vpop.f32.mrf.mxu3 }
 0x341   : > { %v2523_v51 = vpop.f32.mrf.mxu0 }
 0x342   : > { %v2524_v58 = vadd.f32 %v2523_v51, %v2448_v50 }
 0x344   : > { %v2450_v52 = vpop.f32.mrf.mxu3 }
 0x349   : > { %v2525_v55 = vpop.f32.mrf.mxu0 }
 0x34a   : > { %v2526_v2 = vadd.f32 %v2525_v55, %v2450_v52  ;;  %v4930_v55 = vld [vmem:[%s6024_s13 + $0x18] sm:$0xff] }
 0x34b   : > { %3704 = vmatpush.bf16.msrb.mxu0 %v4930_v55 }
 0x34c   : > { %v2671_v53 = vpop.f32.mrf.mxu1 }
 0x34d   : > { %v2676_v60 = vadd.f32 %v2671_v53, %v2524_v58  ;;  %v3584_v53 = vrot.slane %v4982_v44, 4 }
 0x354   : > { %v2673_v57 = vpop.f32.mrf.mxu1 }
 0x355   : > { %v2677_v4 = vadd.f32 %v2673_v57, %v2526_v2 }
 0x35d   : > { %v2769_v54 = vpop.f32.mrf.mxu2 }
 0x35e   : > { %v2774_v61 = vadd.f32 %v2769_v54, %v2676_v60 }
 0x365   : > { %v2771_v59 = vpop.f32.mrf.mxu2 }
 0x366   : > { %v2775_v6 = vadd.f32 %v2771_v59, %v2677_v4  ;;  %v3594_v59 = vrot.slane %v4983_v48, 4  ;;  %v4928_v4 = vld [vmem:[%s6024_s13 + $0x8] sm:$0xff] }
 0x368   : > { %v2951_v56 = vpop.f32.mrf.mxu3 }
 0x369   : > { %v2956_v13 = vadd.f32 %v2951_v56, %v2774_v61 }
 0x36d   : > { %v3101_v62 = vpop.f32.mrf.mxu0 }
 0x36e   : > { %v3106_v5 = vadd.f32 %v3101_v62, %v2956_v13  ;;  %v4929_v62 = vld [vmem:[%s6024_s13 + $0x10] sm:$0xff] }
 0x36f   : > { %3705 = vmatpush.bf16.msrb.mxu0 %v4929_v62 }
 0x370   : > { %v2953_v63 = vpop.f32.mrf.mxu3 }
 0x371   : > { %v2957_v8 = vadd.f32 %v2953_v63, %v2775_v6 }
 0x373   : > { %3706 = vmatpush.bf16.msrb.mxu0 %v4928_v4 }
 0x375   : > { %v3103_v10 = vpop.f32.mrf.mxu0 }
 0x376   : > { %v3107_v17 = vadd.f32 %v3103_v10, %v2957_v8  ;;  %v5051_v8 = vmov 16.0  }
 0x377   : > { %4984 = vrcp.f32 %v5051_v8 }
 0x378   : > { %v3199_v1 = vpop.f32.mrf.mxu1 }
 0x379   : > { %v3204_v7 = vadd.f32 %v3199_v1, %v3106_v5 }
 0x380   : > { %v3201_v15 = vpop.f32.mrf.mxu1 }
 0x381   : > { %v3205_v22 = vadd.f32 %v3201_v15, %v3107_v17  ;;  %v4985_v17 = vpop.eup %4984 }
 0x382   : > { %vm3631_vm0 = vweird.f32 %v4985_v17 }
 0x389   : > { %v3381_v3 = vpop.f32.mrf.mxu2 }
 0x38a   : > { %v3386_v9 = vadd.f32 %v3381_v3, %v3204_v7 }
 0x391   : > { %v3383_v20 = vpop.f32.mrf.mxu2 }
 0x392   : > { %v3387_v27 = vadd.f32 %v3383_v20, %v3205_v22 }
 0x394   : > { %v3531_v12 = vpop.f32.mrf.mxu3 }
 0x395   : > { %v3536_v14 = vadd.f32 %v3531_v12, %v3386_v9  ;;  %v4927_v12 = vld [vmem:[%s6024_s13] sm:$0xff] }
 0x396   : > { %3707 = vmatpush.bf16.msrb.mxu0 %v4927_v12 }
 0x397   : > { %v3544_v18 = vrot.slane %v3536_v14, 4  ;;  %v3548_v19 = vpack.c.bf16 %v3536_v14, %v3536_v14 }
 0x399   : > { %v3549_v23 = vpack.c.bf16 %v3544_v18, %v3544_v18  ;;  %v3556_v25 = vunpack.c.l.bf16 %v3548_v19  ;;  %v3627_v18 = vmul.f32 16.0, %v4985_v17 }
 0x39b   : > { %v3557_v29 = vunpack.c.l.bf16 %v3549_v23  ;;  %v3560_v30 = vadd.f32 %v3556_v25, %v3552_v24  ;;  %v3628_v19 = vsub.f32 1.0, %v3627_v18 }
 0x39c   : > { %v3533_v32 = vpop.f32.mrf.mxu3 }
 0x39d   : > { %v3561_v33 = vadd.f32 %v3557_v29, %v3553_v28  ;;  %v3564_v34 = vpack.c.bf16 %v3560_v30, %v3560_v30  ;;  %v3537_v35 = vadd.f32 %v3533_v32, %v3387_v27  ;;  %v3629_v24 = vmul.f32 %v4985_v17, %v3628_v19 }
 0x39f   : > { %v3565_v0 = vpack.c.bf16 %v3561_v33, %v3561_v33  ;;  %3568 = vst [vmem:[#allocation2] sm:$0x3] %v3564_v34  ;;  %v3545_v37 = vrot.slane %v3537_v35, 4  ;;  %v3550_v38 = vpack.c.bf16 %v3537_v35, %v3537_v35  ;;  %v3630_v27 = vadd.f32 %v4985_v17, %v3629_v24  ;;  %v3651_v34 = vld [vmem:[%s6025_s14] sm:$0x1] }
 0x3a1   : > { %3569 = vst [vmem:[#allocation2 + $0x2] sm:$0x3] %v3565_v0  ;;  %v3551_v41 = vpack.c.bf16 %v3545_v37, %v3545_v37  ;;  %v3558_v43 = vunpack.c.l.bf16 %v3550_v38  ;;  %v3632_v30 = vsel %vm3631_vm0, %v4985_v17, %v3630_v27 }
 0x3a3   : > { %v3559_v45 = vunpack.c.l.bf16 %v3551_v41  ;;  %v3562_v46 = vadd.f32 %v3558_v43, %v3554_v42 }
 0x3a5   : > { %v3563_v49 = vadd.f32 %v3559_v45, %v3555_v11  ;;  %v3566_v50 = vpack.c.bf16 %v3562_v46, %v3562_v46 }
 0x3a6   : > { %v3572_v51 = vld [vmem:[#allocation2] sm:$0x3] }
 0x3a7   : > { %v3576_v52 = vunpack.c.l.bf16 %v3572_v51  ;;  %v3567_v54 = vpack.c.bf16 %v3563_v49, %v3563_v49  ;;  %3570 = vst [vmem:[#allocation2 + $0x4] sm:$0x3] %v3566_v50 }
 0x3a8   : > { %v3573_v56 = vld [vmem:[#allocation2 + $0x2] sm:$0x3] }
 0x3a9   : > { %v3577_v57 = vunpack.c.l.bf16 %v3573_v56  ;;  %v3586_v58 = vmul.f32 %v4982_v44, %v3576_v52  ;;  %3571 = vst [vmem:[#allocation2 + $0x6] sm:$0x3] %v3567_v54 }
 0x3ab   : > { %v3587_v60 = vmul.f32 %v3584_v53, %v3577_v57  ;;  %v3596_v61 = vadd.f32 %v4983_v48, %v3586_v58 }
 0x3ad   : > { %v3597_v13 = vadd.f32 %v3594_v59, %v3587_v60  ;;  %v3600_v63 = vmax.f32 %v3596_v61, 0.0 }
 0x3ae   : > { %v3574_v1 = vld [vmem:[#allocation2 + $0x4] sm:$0x3] }
 0x3af   : > { %v3601_v2 = vmax.f32 %v3597_v13, 0.0  ;;  %3608 = vst [vmem:[#allocation1] ss:$2 sm:$0xff] %v3600_v63  ;;  %v3578_v3 = vunpack.c.l.bf16 %v3574_v1 }
 0x3b0   : > { %v3575_v5 = vld [vmem:[#allocation2 + $0x6] sm:$0x3] }
 0x3b1   : > { %3610 = vst [vmem:[#allocation1 + $0x1] ss:$2 sm:$0xff] %v3601_v2  ;;  %v3579_v6 = vunpack.c.l.bf16 %v3575_v5  ;;  %v3588_v7 = vmul.f32 %v4982_v44, %v3578_v3 }
 0x3b3   : > { %v3589_v9 = vmul.f32 %v3584_v53, %v3579_v6  ;;  %v3598_v10 = vadd.f32 %v4983_v48, %v3588_v7 }
 0x3b5   : > { %v3599_v14 = vadd.f32 %v3594_v59, %v3589_v9  ;;  %v3602_v15 = vmax.f32 %v3598_v10, 0.0 }
 0x3b7   : > { %v3603_v16 = vmax.f32 %v3599_v14, 0.0  ;;  %3612 = vst [vmem:[#allocation1 + $0x10] ss:$2 sm:$0xff] %v3602_v15 }
 0x3b8   : > { %v3615_v20 = vld.sshfl [vmem:[#allocation1] sm:$0xff pattern:$0x75316420] }
 0x3b9   : > { %3614 = vst [vmem:[#allocation1 + $0x11] ss:$2 sm:$0xff] %v3603_v16 }
 0x3c0   : > { %v3616_v21 = vld.sshfl [vmem:[#allocation1 + $0x10] sm:$0xff pattern:$0x75316420] }
 0x3c1   : > { %v3619_v22 = vadd.f32 %v3616_v21, %v3615_v20 }
 0x3c3   : > { %v3620_v23 = vrot.slane %v3619_v22, 4 }
 0x3c5   : > { %v3621_v25 = vadd.f32 %v3620_v23, %v3619_v22 }
 0x3c7   : > { %v3622_v26 = vrot.slane %v3621_v25, 2 }
 0x3c9   : > { %v3623_v28 = vadd.f32 %v3622_v26, %v3621_v25 }
 0x3cb   : > { %v3624_v29 = vrot.slane %v3623_v28, 1 }
 0x3cd   : > { %v3625_v31 = vadd.f32 %v3624_v29, %v3623_v28 }
 0x3cf   : > { %v3633_v32 = vmul.f32 %v3632_v30, %v3625_v31 }
 0x3d1   : > { %v3634_v33 = vpack.c.bf16 %v3633_v32, %v3633_v32 }
 0x3d3   : > { %3708 = vmatmul.bf16.vlgmr.msrb.gmra.mxu0 %v3634_v33 }
 0x450   : > { %v3709_v35 = vpop.f32.mrf.mxu0 }
 0x451   : > { %v3710_v36 = vadd.f32 %v3709_v35, %v3651_v34 }
 0x453   : > { %3713 = vst [vmem:[%s486_s23] sm:$0x1] %v3710_v36 }
 0x454   : > { %5013 = shalt.err (!%p5010_p3)
}
 0x455   : > { %4935 = dma.vmem_to_hbm [thread:$0]  (%p5170_p5), %s3726_s20, 16, %s3728_s27, %s3715_s25  }
 0x458   : > { %v3711_v0 = vpop.f32.mrf.mxu0 }
 0x459 PF: > { %p4941_p4 = scmp.ge.s32.totalorder %s5048_s21, 2  ;;  %s3739_s30 = sand.u32 1, %s5036_s18  }
 0x45a   : > { %s3740_s23 = scalar_lea.sflag [#allocation5], %s3739_s30 }
 0x45b   : > { %p4938_p7 = pnand %p4941_p4, %p5174_p6 }
 0x45d   : > { %p4939_p8 = pneg %p4938_p7 }
 0x45f   : > { %5031 = dma.done.wait (%p4939_p8), %s3740_s23, 16  }
 0x460   : > { %5033 = vsyncadd (%p4939_p8), %s3740_s23, 4294967280  ;;  %s6050_s21 = sld [smem:[#allocation8_spill]]  ;;  %s6053_s18 = smov %s5040_s19 }
 0x461   : > { %s6051_s0 = sld [smem:[#allocation7_spill]] }
 0x462   : > { %s6052_s20 = sld [smem:[#allocation9_spill]] }
 0x466   : > { %p25_p9 = scmp.ge.s32.totalorder %s6050_s21, 4  }
 0x467   : > { %s6054_s19 = smov %s6051_s0 }
 0x468   :  { %27 = sbr.rel (!%p25_p9) target bundleno = 6 (0x6), region = 202 }
 0x46d   :  { %3745 = vsyncpa [#allocation5], 1 }
 0x46e   :  { %3747 = vsyncpa [#allocation5 + $0x1], 1 }

// kernel: forward.3
= control target key start
LH: loop header
LB: loop body
LE: loop exit
PB: predicated region body
PF: predicated region fallthrough
CT: control target
= control target key end

     0   :  { %s8215_s27 = smov 0   ;;  %s10248_s0 = inlined_call_operand.vmem [shape: bf16[2,19,16,32], index: 0, kind: input, shape index: {}]   ;;  %s10249_s1 = inlined_call_operand.vmem [shape: bf16[2,19,16,24], index: 1, kind: input, shape index: {}]   ;;  %s10250_s2 = inlined_call_operand.vmem [shape: bf16[2,19,16,32], index: 2, kind: input, shape index: {}]   ;;  %s10251_s3 = inlined_call_operand.vmem [shape: bf16[2,19,16,24], index: 3, kind: input, shape index: {}]   ;;  %s10252_s4 = inlined_call_operand.vmem [shape: bf16[7,32,128], index: 4, kind: input, shape index: {}]   ;;  %s10253_s5 = inlined_call_operand.vmem [shape: bf16[7,24,128], index: 5, kind: input, shape index: {}]   ;;  %s10254_s6 = inlined_call_operand.vmem [shape: f32[1,128], index: 6, kind: input, shape index: {}]   ;;  %s10255_s7 = inlined_call_operand.vmem [shape: bf16[64,256], index: 7, kind: input, shape index: {}]   ;;  %s10256_s8 = inlined_call_operand.vmem [shape: bf16[2,8,8,128], index: 8, kind: output, shape index: {}]  }
   0x1 LB: > { %s6213_s28 = sadd.s32 4294967295, %s8167_s27   ;;  %p6217_p0 = scmp.ge.s32.totalorder %s8167_s27, 1  ;;  %s8167_s27 = sphi %s8215_s27, %s18_s27  }
   0x2   : > { %p292_p1 = scmp.lt.s32.totalorder %s8167_s27, 3 }
   0x4   : > { %p293_p2 = pnand %p6217_p0, %p292_p1 }
   0x6   : > { %296 = sbr.rel (%p293_p2) target bundleno = 1340 (0x53c), region = 52 }
   0xb   : > { %v7858_v0 = vld [vmem:[%s10252_s4 + $0x8] sm:$0xff]  ;;  %p341_p3 = scmp.lt.s32.totalorder %s6213_s28, 1  ;;  %vm576_vm0 = vcmask 1043456   ;;  %v7857_v4 = vld [vmem:[%s10252_s4] sm:$0xff]  ;;  %vm761_vm1 = vcmask 261120   ;;  %vm527_vm2 = vcmask 195584  }
   0xc   : > { %v437_v1 = vld [vmem:[%s10253_s5 + $0x8] sm:$0xf]  ;;  %816 = vmatpush.bf16.msra.mxu1 %v7858_v0  ;;  %8147 = vmatpush.bf16.msra.mxu3 %v7858_v0  ;;  %v7859_v6 = vld [vmem:[%s10253_s5] sm:$0xff]  ;;  %v7893_v23 = vld [vmem:[%s10252_s4 + $0x18] sm:$0xff]  ;;  %vm4958_vm3 = vsmask.f32 7938 }
   0xd   : > { %v523_v2 = vunpack.c.l.b16 %v437_v1  ;;  %s10282_s28 = smov (!%p341_p3, %s6213_s28), 1  ;;  %v6490_v24 = vld [vmem:[%s10253_s5 + $0x14] sm:$0xf]  ;;  %v7894_v33 = vld [vmem:[%s10253_s5 + $0xc] sm:$0xff]  ;;  %v6733_v46 = vld [vmem:[%s10253_s5 + $0x20] sm:$0xf] }
   0xe   : > { %s8236_s13 = smul.u32 152, %s10282_s28  ;;  %v1318_v25 = vunpack.c.l.b16 %v6490_v24  ;;  %v7892_v32 = vld [vmem:[%s10252_s4 + $0x10] sm:$0xff]  ;;  %v1915_v47 = vunpack.c.l.b16 %v6733_v46  ;;  %v7928_v50 = vld [vmem:[%s10252_s4 + $0x28] sm:$0xff]  ;;  %v7929_v51 = vld [vmem:[%s10253_s5 + $0x18] sm:$0xff]  ;;  %vm4633_vm5 = vsmask.f32 256 }
   0xf   : > { %v525_v3 = vpack.c.b16 %v523_v2, %v523_v2  ;;  %v7927_v58 = vld [vmem:[%s10252_s4 + $0x20] sm:$0xff]  ;;  %vm9287_vm4 = vmand %vm576_vm0, %vm4958_vm3  ;;  %vm4634_vm6 = vsmask.f32 4368  ;;  %vm4964_vm8 = vcmask 1040384   ;;  %vm5518_vm10 = vcmask 1046528   ;;  %s7824_s22 = sshll.u32 %s10282_s28, 5 }
  0x10   : > { %817 = vmatpush.bf16.msra.mxu1 %v7857_v4  ;;  %s8245_s18 = scalar_lea.vmem %s10248_s0, %s8236_s13  ;;  %8148 = vmatpush.bf16.msra.mxu3 %v7857_v4  ;;  %s8251_s21 = scalar_lea.vmem %s10249_s1, %s8236_s13  ;;  %v1320_v26 = vpack.c.b16 %v1318_v25, %v1318_v25  ;;  %v1917_v48 = vpack.c.b16 %v1915_v47, %v1915_v47  ;;  %vm9320_vm7 = vmor %vm4633_vm5, %vm4634_vm6  ;;  %vm5727_vm11 = vcmask 1045504  }
  0x11   : > { %v578_v5 = vsel %vm576_vm0, %v525_v3, 0  ;;  %v7825_v7 = vld [vmem:[%s8245_s18] sm:$0xff]  ;;  %v7851_v9 = vld [vmem:[%s8251_s21 + $0x50] sm:$0xff]  ;;  %v7826_v11 = vld [vmem:[%s8245_s18 + $0x8] sm:$0xff]  ;;  %s8318_s12 = scalar_lea.vmem %s10251_s3, %s8236_s13  ;;  %s8324_s16 = scalar_lea.vmem %s10250_s2, %s8236_s13 }
  0x12   : > { %586 = vmatpush.bf16.msra.mxu0 %v578_v5  ;;  %8145 = vmatpush.bf16.msra.mxu2 %v578_v5  ;;  %v7841_v8 = vld [vmem:[%s8251_s21] sm:$0xff]  ;;  %v7835_v10 = vld [vmem:[%s8245_s18 + $0x50] sm:$0xff]  ;;  %v7836_v12 = vld [vmem:[%s8245_s18 + $0x58] sm:$0xff]  ;;  %v1371_v27 = vsel %vm576_vm0, %v1320_v26, 0  ;;  %v1968_v49 = vsel %vm576_vm0, %v1917_v48, 0  ;;  %s365_s25 = scalar_lea.vmem %s10256_s8, %s7824_s22 }
  0x13   : > { %6380 = vmatmul.msk.bf16.vlgmr.msra.gmra.mxu1 %vm761_vm1, %v7825_v7  ;;  %6390 = vmatmul.msk.bf16.vlgmr.msra.gmra.mxu3 %vm761_vm1, %v7835_v10  ;;  %v7842_v13 = vld [vmem:[%s8251_s21 + $0x8] sm:$0xff]  ;;  %v7852_v14 = vld [vmem:[%s8251_s21 + $0x58] sm:$0xff]  ;;  %v7827_v15 = vld [vmem:[%s8245_s18 + $0x10] sm:$0xff] }
  0x14   : > { %v7837_v16 = vld [vmem:[%s8245_s18 + $0x60] sm:$0xff]  ;;  %v7843_v17 = vld [vmem:[%s8251_s21 + $0x10] sm:$0xff]  ;;  %v7828_v19 = vld [vmem:[%s8245_s18 + $0x18] sm:$0xff]  ;;  %1379 = vmatpush.bf16.msrb.mxu3 %v1371_v27  ;;  %1976 = vmatpush.bf16.msrb.mxu1 %v1968_v49 }
  0x15   : > { %v7853_v18 = vld [vmem:[%s8251_s21 + $0x60] sm:$0xff]  ;;  %v7838_v20 = vld [vmem:[%s8245_s18 + $0x68] sm:$0xff]  ;;  %v7844_v21 = vld [vmem:[%s8251_s21 + $0x18] sm:$0xff] }
  0x16   : > { %587 = vmatpush.bf16.msra.mxu0 %v7859_v6  ;;  %8146 = vmatpush.bf16.msra.mxu2 %v7859_v6  ;;  %v7854_v22 = vld [vmem:[%s8251_s21 + $0x68] sm:$0xff]  ;;  %v7829_v28 = vld [vmem:[%s8245_s18 + $0x20] sm:$0xff]  ;;  %v7839_v29 = vld [vmem:[%s8245_s18 + $0x70] sm:$0xff] }
  0x17   : > { %v7845_v30 = vld [vmem:[%s8251_s21 + $0x20] sm:$0xff]  ;;  %v7855_v31 = vld [vmem:[%s8251_s21 + $0x70] sm:$0xff]  ;;  %v7830_v34 = vld [vmem:[%s8245_s18 + $0x28] sm:$0xff] }
  0x18   : > { %1380 = vmatpush.bf16.msrb.mxu3 %v7894_v33  ;;  %v7840_v35 = vld [vmem:[%s8245_s18 + $0x78] sm:$0xff]  ;;  %v7846_v36 = vld [vmem:[%s8251_s21 + $0x28] sm:$0xff]  ;;  %v7831_v38 = vld [vmem:[%s8245_s18 + $0x30] sm:$0xff]  ;;  %1977 = vmatpush.bf16.msrb.mxu1 %v7929_v51 }
  0x19   : > { %6292 = vmatmul.msk.bf16.vlgmr.msra.gmra.mxu0 %vm527_vm2, %v7841_v8  ;;  %6302 = vmatmul.msk.bf16.vlgmr.msra.gmra.mxu2 %vm527_vm2, %v7851_v9  ;;  %v7856_v37 = vld [vmem:[%s8251_s21 + $0x78] sm:$0xff]  ;;  %v7876_v39 = vld [vmem:[%s8318_s12] sm:$0xff]  ;;  %v7847_v40 = vld [vmem:[%s8251_s21 + $0x30] sm:$0xff] }
  0x1a   : > { %1114 = vmatpush.bf16.msrb.mxu2 %v7893_v23  ;;  %v7860_v41 = vld [vmem:[%s8324_s16] sm:$0xff]  ;;  %v7832_v42 = vld [vmem:[%s8245_s18 + $0x38] sm:$0xff]  ;;  %v7877_v43 = vld [vmem:[%s8318_s12 + $0x8] sm:$0xff]  ;;  %1711 = vmatpush.bf16.msrb.mxu0 %v7928_v50 }
  0x1b   : > { %v7848_v44 = vld [vmem:[%s8251_s21 + $0x38] sm:$0xff]  ;;  %v7861_v45 = vld [vmem:[%s8324_s16 + $0x8] sm:$0xff]  ;;  %v7833_v52 = vld [vmem:[%s8245_s18 + $0x40] sm:$0xff] }
  0x1c   : > { %v7878_v53 = vld [vmem:[%s8318_s12 + $0x10] sm:$0xff]  ;;  %v7849_v55 = vld [vmem:[%s8251_s21 + $0x40] sm:$0xff]  ;;  %v7834_v3 = vld [vmem:[%s8245_s18 + $0x48] sm:$0xff] }
  0x1d   : > { %v7862_v56 = vld [vmem:[%s8324_s16 + $0x10] sm:$0xff]  ;;  %v7879_v4 = vld [vmem:[%s8318_s12 + $0x18] sm:$0xff]  ;;  %v7850_v8 = vld [vmem:[%s8251_s21 + $0x48] sm:$0xff] }
  0x1e   : > { %1115 = vmatpush.bf16.msrb.mxu2 %v7892_v32  ;;  %1712 = vmatpush.bf16.msrb.mxu0 %v7927_v58  ;;  %v7863_v9 = vld [vmem:[%s8324_s16 + $0x18] sm:$0xff]  ;;  %v7864_v24 = vld [vmem:[%s8324_s16 + $0x20] sm:$0xff]  ;;  %v7895_v25 = vld [vmem:[%s8245_s18 + $0x8] sm:$0xff] }
  0x1f   : > { %v7913_v51 = vld [vmem:[%s8251_s21 + $0x18] sm:$0xff]  ;;  %vm9334_vm9 = vmand %vm4964_vm8, %vm4633_vm5 }
  0x23   : > { %6381 = vmatmul.msk.bf16.gmra.mxu1 %vm761_vm1, %v7826_v11  ;;  %6391 = vmatmul.msk.bf16.gmra.mxu3 %vm761_vm1, %v7836_v12 }
  0x29   : > { %6293 = vmatmul.msk.bf16.gmra.mxu0 %vm527_vm2, %v7842_v13  ;;  %6303 = vmatmul.msk.bf16.gmra.mxu2 %vm527_vm2, %v7852_v14 }
  0x33   : > { %6382 = vmatmul.msk.bf16.gmra.mxu1 %vm761_vm1, %v7827_v15  ;;  %6392 = vmatmul.msk.bf16.gmra.mxu3 %vm761_vm1, %v7837_v16 }
  0x39   : > { %6294 = vmatmul.msk.bf16.gmra.mxu0 %vm527_vm2, %v7843_v17  ;;  %6304 = vmatmul.msk.bf16.gmra.mxu2 %vm527_vm2, %v7853_v18 }
  0x43   : > { %6383 = vmatmul.msk.bf16.gmra.mxu1 %vm761_vm1, %v7828_v19  ;;  %6393 = vmatmul.msk.bf16.gmra.mxu3 %vm761_vm1, %v7838_v20  ;;  %v7911_v19 = vld [vmem:[%s8251_s21 + $0x8] sm:$0xff]  ;;  %v7880_v20 = vld [vmem:[%s8318_s12 + $0x20] sm:$0xff] }
  0x49   : > { %6295 = vmatmul.msk.bf16.gmra.mxu0 %vm527_vm2, %v7844_v21  ;;  %6305 = vmatmul.msk.bf16.gmra.mxu2 %vm527_vm2, %v7854_v22 }
  0x53   : > { %6384 = vmatmul.msk.bf16.gmra.mxu1 %vm761_vm1, %v7829_v28  ;;  %6394 = vmatmul.msk.bf16.gmra.mxu3 %vm761_vm1, %v7839_v29 }
  0x59   : > { %6296 = vmatmul.msk.bf16.gmra.mxu0 %vm527_vm2, %v7845_v30  ;;  %6306 = vmatmul.msk.bf16.gmra.mxu2 %vm527_vm2, %v7855_v31 }
  0x63   : > { %6385 = vmatmul.msk.bf16.gmra.mxu1 %vm761_vm1, %v7830_v34  ;;  %6395 = vmatmul.msk.bf16.gmra.mxu3 %vm761_vm1, %v7840_v35  ;;  %v7912_v35 = vld [vmem:[%s8251_s21 + $0x10] sm:$0xff] }
  0x69   : > { %6297 = vmatmul.msk.bf16.gmra.mxu0 %vm527_vm2, %v7846_v36  ;;  %6307 = vmatmul.msk.bf16.gmra.mxu2 %vm527_vm2, %v7856_v37  ;;  %v7881_v36 = vld [vmem:[%s8318_s12 + $0x28] sm:$0xff] }
  0x73   : > { %6386 = vmatmul.msk.bf16.gmra.mxu1 %vm761_vm1, %v7831_v38  ;;  %6559 = vmatmul.msk.bf16.vlgmr.msrb.gmra.mxu3 %vm527_vm2, %v7876_v39 }
  0x79   : > { %6298 = vmatmul.msk.bf16.gmra.mxu0 %vm527_vm2, %v7847_v40  ;;  %6472 = vmatmul.msk.bf16.vlgmr.msrb.gmra.mxu2 %vm761_vm1, %v7860_v41  ;;  %v7865_v40 = vld [vmem:[%s8324_s16 + $0x28] sm:$0xff]  ;;  %v7896_v41 = vld [vmem:[%s8245_s18 + $0x10] sm:$0xff] }
  0x83   : > { %6387 = vmatmul.msk.bf16.gmra.mxu1 %vm761_vm1, %v7832_v42  ;;  %6560 = vmatmul.msk.bf16.gmra.mxu3 %vm527_vm2, %v7877_v43 }
  0x89   : > { %6299 = vmatmul.msk.bf16.gmra.mxu0 %vm527_vm2, %v7848_v44  ;;  %6473 = vmatmul.msk.bf16.gmra.mxu2 %vm761_vm1, %v7861_v45 }
  0x90   : > { %v819_v54 = vpop.f32.mrf.mxu1 }
  0x93   : > { %6388 = vmatmul.msk.bf16.gmra.mxu1 %vm761_vm1, %v7833_v52  ;;  %6561 = vmatmul.msk.bf16.gmra.mxu3 %vm527_vm2, %v7878_v53  ;;  %v7882_v52 = vld [vmem:[%s8318_s12 + $0x30] sm:$0xff] }
  0x96   : > { %v589_v57 = vpop.f32.mrf.mxu0  ;;  %v869_v60 = vpop.f32.mrf.mxu3 }
  0x97   : > { %v8359_v59 = vadd.f32 %v819_v54, %v589_v57  ;;  %v7897_v57 = vld [vmem:[%s8245_s18 + $0x18] sm:$0xff] }
  0x98   : > { %v821_v61 = vpop.f32.mrf.mxu1 }
  0x99   : > { %6300 = vmatmul.msk.bf16.gmra.mxu0 %vm527_vm2, %v7849_v55  ;;  %6474 = vmatmul.msk.bf16.gmra.mxu2 %vm761_vm1, %v7862_v56  ;;  %v7866_v56 = vld [vmem:[%s8324_s16 + $0x30] sm:$0xff] }
  0x9c   : > { %v639_v62 = vpop.f32.mrf.mxu2 }
  0x9d   : > { %v8365_v63 = vadd.f32 %v869_v60, %v639_v62 }
  0x9e   : > { %v591_v0 = vpop.f32.mrf.mxu0  ;;  %v871_v2 = vpop.f32.mrf.mxu3 }
  0x9f   : > { %v8367_v1 = vadd.f32 %v821_v61, %v591_v0 }
  0xa0   : > { %v824_v5 = vpop.f32.mrf.mxu1 }
  0xa3   : > { %6389 = vmatmul.msk.bf16.gmra.mxu1 %vm761_vm1, %v7834_v3  ;;  %6562 = vmatmul.msk.bf16.gmra.mxu3 %vm527_vm2, %v7879_v4 }
  0xa4   : > { %v641_v6 = vpop.f32.mrf.mxu2 }
  0xa5   : > { %v8371_v7 = vadd.f32 %v871_v2, %v641_v6  ;;  %v7914_v6 = vld [vmem:[%s8251_s21 + $0x20] sm:$0xff] }
  0xa6   : > { %v594_v10 = vpop.f32.mrf.mxu0  ;;  %v874_v12 = vpop.f32.mrf.mxu3 }
  0xa7   : > { %v8375_v11 = vadd.f32 %v824_v5, %v594_v10 }
  0xa8   : > { %v826_v13 = vpop.f32.mrf.mxu1 }
  0xa9   : > { %6301 = vmatmul.msk.bf16.gmra.mxu0 %vm527_vm2, %v7850_v8  ;;  %6475 = vmatmul.msk.bf16.gmra.mxu2 %vm761_vm1, %v7863_v9  ;;  %v7883_v8 = vld [vmem:[%s8318_s12 + $0x38] sm:$0xff] }
  0xac   : > { %v644_v14 = vpop.f32.mrf.mxu2 }
  0xad   : > { %v8381_v15 = vadd.f32 %v874_v12, %v644_v14  ;;  %v7898_v14 = vld [vmem:[%s8245_s18 + $0x20] sm:$0xff] }
  0xae   : > { %v596_v16 = vpop.f32.mrf.mxu0  ;;  %v876_v18 = vpop.f32.mrf.mxu3 }
  0xaf   : > { %v8383_v17 = vadd.f32 %v826_v13, %v596_v16  ;;  %v7867_v13 = vld [vmem:[%s8324_s16 + $0x38] sm:$0xff] }
  0xb0   : > { %v829_v21 = vpop.f32.mrf.mxu1 }
  0xb3   : > { %6802 = vmatmul.msk.bf16.vlgmr.msrb.gmra.mxu1 %vm527_vm2, %v7911_v19  ;;  %6563 = vmatmul.msk.bf16.gmra.mxu3 %vm527_vm2, %v7880_v20 }
  0xb4   : > { %v646_v22 = vpop.f32.mrf.mxu2 }
  0xb5   : > { %v8387_v23 = vadd.f32 %v876_v18, %v646_v22 }
  0xb6   : > { %v599_v26 = vpop.f32.mrf.mxu0  ;;  %v879_v28 = vpop.f32.mrf.mxu3 }
  0xb7   : > { %v8391_v27 = vadd.f32 %v829_v21, %v599_v26 }
  0xb8   : > { %v831_v29 = vpop.f32.mrf.mxu1 }
  0xb9   : > { %6476 = vmatmul.msk.bf16.gmra.mxu2 %vm761_vm1, %v7864_v24  ;;  %6715 = vmatmul.msk.bf16.vlgmr.msrb.gmra.mxu0 %vm761_vm1, %v7895_v25 }
  0xbc   : > { %v649_v30 = vpop.f32.mrf.mxu2 }
  0xbd   : > { %v8397_v31 = vadd.f32 %v879_v28, %v649_v30  ;;  %v7915_v28 = vld [vmem:[%s8251_s21 + $0x28] sm:$0xff] }
  0xbe   : > { %v601_v32 = vpop.f32.mrf.mxu0  ;;  %v881_v34 = vpop.f32.mrf.mxu3 }
  0xbf   : > { %v8399_v33 = vadd.f32 %v831_v29, %v601_v32  ;;  %v7884_v29 = vld [vmem:[%s8318_s12 + $0x40] sm:$0xff] }
  0xc0   : > { %v834_v37 = vpop.f32.mrf.mxu1 }
  0xc3   : > { %6803 = vmatmul.msk.bf16.gmra.mxu1 %vm527_vm2, %v7912_v35  ;;  %6564 = vmatmul.msk.bf16.gmra.mxu3 %vm527_vm2, %v7881_v36  ;;  %v7868_v35 = vld [vmem:[%s8324_s16 + $0x40] sm:$0xff]  ;;  %v7899_v36 = vld [vmem:[%s8245_s18 + $0x28] sm:$0xff] }
  0xc4   : > { %v651_v38 = vpop.f32.mrf.mxu2 }
  0xc5   : > { %v8403_v39 = vadd.f32 %v881_v34, %v651_v38 }
  0xc6   : > { %v604_v42 = vpop.f32.mrf.mxu0  ;;  %v884_v44 = vpop.f32.mrf.mxu3 }
  0xc7   : > { %v8407_v43 = vadd.f32 %v834_v37, %v604_v42 }
  0xc8   : > { %v836_v45 = vpop.f32.mrf.mxu1 }
  0xc9   : > { %6477 = vmatmul.msk.bf16.gmra.mxu2 %vm761_vm1, %v7865_v40  ;;  %6716 = vmatmul.msk.bf16.gmra.mxu0 %vm761_vm1, %v7896_v41 }
  0xcc   : > { %v654_v46 = vpop.f32.mrf.mxu2 }
  0xcd   : > { %v8413_v47 = vadd.f32 %v884_v44, %v654_v46 }
  0xce   : > { %v606_v48 = vpop.f32.mrf.mxu0  ;;  %v886_v50 = vpop.f32.mrf.mxu3 }
  0xcf   : > { %v8415_v49 = vadd.f32 %v836_v45, %v606_v48 }
  0xd0   : > { %v839_v53 = vpop.f32.mrf.mxu1 }
  0xd3   : > { %6804 = vmatmul.msk.bf16.gmra.mxu1 %vm527_vm2, %v7913_v51  ;;  %6565 = vmatmul.msk.bf16.gmra.mxu3 %vm527_vm2, %v7882_v52  ;;  %v7916_v51 = vld [vmem:[%s8251_s21 + $0x30] sm:$0xff]  ;;  %v7885_v52 = vld [vmem:[%s8318_s12 + $0x48] sm:$0xff] }
  0xd4   : > { %v656_v54 = vpop.f32.mrf.mxu2 }
  0xd5   : > { %v8419_v55 = vadd.f32 %v886_v50, %v656_v54 }
  0xd6   : > { %v609_v58 = vpop.f32.mrf.mxu0  ;;  %v889_v61 = vpop.f32.mrf.mxu3 }
  0xd7   : > { %v8423_v60 = vadd.f32 %v839_v53, %v609_v58  ;;  %v7900_v58 = vld [vmem:[%s8245_s18 + $0x30] sm:$0xff] }
  0xd8   : > { %v841_v62 = vpop.f32.mrf.mxu1 }
  0xd9   : > { %6478 = vmatmul.msk.bf16.gmra.mxu2 %vm761_vm1, %v7866_v56  ;;  %6717 = vmatmul.msk.bf16.gmra.mxu0 %vm761_vm1, %v7897_v57  ;;  %v7869_v57 = vld [vmem:[%s8324_s16 + $0x48] sm:$0xff] }
  0xdc   : > { %v659_v0 = vpop.f32.mrf.mxu2 }
  0xdd   : > { %v8429_v2 = vadd.f32 %v889_v61, %v659_v0 }
  0xde   : > { %v611_v3 = vpop.f32.mrf.mxu0  ;;  %v891_v5 = vpop.f32.mrf.mxu3 }
  0xdf   : > { %v8431_v4 = vadd.f32 %v841_v62, %v611_v3 }
  0xe0   : > { %v844_v9 = vpop.f32.mrf.mxu1 }
  0xe3   : > { %6805 = vmatmul.msk.bf16.gmra.mxu1 %vm527_vm2, %v7914_v6  ;;  %6566 = vmatmul.msk.bf16.gmra.mxu3 %vm527_vm2, %v7883_v8 }
  0xe4   : > { %v661_v10 = vpop.f32.mrf.mxu2 }
  0xe5   : > { %v8435_v12 = vadd.f32 %v891_v5, %v661_v10 }
  0xe6   : > { %v614_v16 = vpop.f32.mrf.mxu0  ;;  %v894_v19 = vpop.f32.mrf.mxu3 }
  0xe7   : > { %v8439_v18 = vadd.f32 %v844_v9, %v614_v16 }
  0xe8   : > { %v846_v20 = vpop.f32.mrf.mxu1 }
  0xe9   : > { %6479 = vmatmul.msk.bf16.gmra.mxu2 %vm761_vm1, %v7867_v13  ;;  %6718 = vmatmul.msk.bf16.gmra.mxu0 %vm761_vm1, %v7898_v14  ;;  %v7917_v13 = vld [vmem:[%s8251_s21 + $0x38] sm:$0xff]  ;;  %v7886_v14 = vld [vmem:[%s8318_s12 + $0x50] sm:$0xff] }
  0xec   : > { %v664_v21 = vpop.f32.mrf.mxu2 }
  0xed   : > { %v8445_v22 = vadd.f32 %v894_v19, %v664_v21  ;;  %v7870_v21 = vld [vmem:[%s8324_s16 + $0x50] sm:$0xff] }
  0xee   : > { %v616_v24 = vpop.f32.mrf.mxu0  ;;  %v896_v26 = vpop.f32.mrf.mxu3 }
  0xef   : > { %v8447_v25 = vadd.f32 %v846_v20, %v616_v24  ;;  %v7901_v24 = vld [vmem:[%s8245_s18 + $0x38] sm:$0xff] }
  0xf0   : > { %v849_v30 = vpop.f32.mrf.mxu1 }
  0xf3   : > { %6806 = vmatmul.msk.bf16.gmra.mxu1 %vm527_vm2, %v7915_v28  ;;  %6567 = vmatmul.msk.bf16.gmra.mxu3 %vm527_vm2, %v7884_v29 }
  0xf4   : > { %v666_v32 = vpop.f32.mrf.mxu2 }
  0xf5   : > { %v8451_v34 = vadd.f32 %v896_v26, %v666_v32 }
  0xf6   : > { %v619_v37 = vpop.f32.mrf.mxu0  ;;  %v1382_v40 = vpop.f32.mrf.mxu3 }
  0xf7   : > { %v8455_v38 = vadd.f32 %v849_v30, %v619_v37 }
  0xf8   : > { %v851_v41 = vpop.f32.mrf.mxu1 }
  0xf9   : > { %6480 = vmatmul.msk.bf16.gmra.mxu2 %vm761_vm1, %v7868_v35  ;;  %6719 = vmatmul.msk.bf16.gmra.mxu0 %vm761_vm1, %v7899_v36 }
  0xfc   : > { %v1117_v42 = vpop.f32.mrf.mxu2 }
  0xfd   : > { %v1197_v44 = vadd.f32 %v1117_v42, %v8359_v59  ;;  %v7887_v42 = vld [vmem:[%s8318_s12 + $0x58] sm:$0xff] }
  0xfe   : > { %v621_v45 = vpop.f32.mrf.mxu0  ;;  %v1384_v50 = vpop.f32.mrf.mxu3 }
  0xff   : > { %v8462_v46 = vadd.f32 %v851_v41, %v621_v45  ;;  %v8464_v48 = vadd.f32 %v1382_v40, %v1197_v44  ;;  %v7918_v41 = vld [vmem:[%s8251_s21 + $0x40] sm:$0xff] }
 0x100   : > { %v854_v53 = vpop.f32.mrf.mxu1 }
 0x103   : > { %6807 = vmatmul.msk.bf16.gmra.mxu1 %vm527_vm2, %v7916_v51  ;;  %6568 = vmatmul.msk.bf16.gmra.mxu3 %vm527_vm2, %v7885_v52  ;;  %v7871_v51 = vld [vmem:[%s8324_s16 + $0x58] sm:$0xff]  ;;  %v7902_v52 = vld [vmem:[%s8245_s18 + $0x40] sm:$0xff] }
 0x104   : > { %v1119_v54 = vpop.f32.mrf.mxu2 }
 0x105   : > { %v1198_v56 = vadd.f32 %v1119_v54, %v8367_v1 }
 0x106   : > { %v624_v61 = vpop.f32.mrf.mxu0  ;;  %v1387_v1 = vpop.f32.mrf.mxu3 }
 0x107   : > { %v8471_v62 = vadd.f32 %v854_v53, %v624_v61  ;;  %v8473_v59 = vadd.f32 %v1384_v50, %v1198_v56 }
 0x108   : > { %v856_v0 = vpop.f32.mrf.mxu1 }
 0x109   : > { %6481 = vmatmul.msk.bf16.gmra.mxu2 %vm761_vm1, %v7869_v57  ;;  %6720 = vmatmul.msk.bf16.gmra.mxu0 %vm761_vm1, %v7900_v58 }
 0x10c   : > { %v1122_v3 = vpop.f32.mrf.mxu2 }
 0x10d   : > { %v1199_v5 = vadd.f32 %v1122_v3, %v8375_v11 }
 0x10e   : > { %v626_v6 = vpop.f32.mrf.mxu0  ;;  %v1389_v10 = vpop.f32.mrf.mxu3 }
 0x10f   : > { %v8480_v8 = vadd.f32 %v856_v0, %v626_v6  ;;  %v8482_v9 = vadd.f32 %v1387_v1, %v1199_v5  ;;  %v7919_v5 = vld [vmem:[%s8251_s21 + $0x48] sm:$0xff]  ;;  %v7888_v6 = vld [vmem:[%s8318_s12 + $0x60] sm:$0xff] }
 0x110   : > { %v859_v16 = vpop.f32.mrf.mxu1 }
 0x113   : > { %6808 = vmatmul.msk.bf16.gmra.mxu1 %vm527_vm2, %v7917_v13  ;;  %6569 = vmatmul.msk.bf16.gmra.mxu3 %vm527_vm2, %v7886_v14 }
 0x114   : > { %v1124_v19 = vpop.f32.mrf.mxu2 }
 0x115   : > { %v1200_v20 = vadd.f32 %v1124_v19, %v8383_v17  ;;  %v7903_v19 = vld [vmem:[%s8245_s18 + $0x48] sm:$0xff] }
 0x116   : > { %v629_v26 = vpop.f32.mrf.mxu0  ;;  %v1392_v17 = vpop.f32.mrf.mxu3 }
 0x117   : > { %v8489_v28 = vadd.f32 %v859_v16, %v629_v26  ;;  %v8491_v11 = vadd.f32 %v1389_v10, %v1200_v20  ;;  %v7872_v16 = vld [vmem:[%s8324_s16 + $0x60] sm:$0xff] }
 0x118   : > { %v861_v29 = vpop.f32.mrf.mxu1 }
 0x119   : > { %6482 = vmatmul.msk.bf16.gmra.mxu2 %vm761_vm1, %v7870_v21  ;;  %6721 = vmatmul.msk.bf16.gmra.mxu0 %vm761_vm1, %v7901_v24 }
 0x11c   : > { %v1127_v30 = vpop.f32.mrf.mxu2 }
 0x11d   : > { %v1201_v32 = vadd.f32 %v1127_v30, %v8391_v27 }
 0x11e   : > { %v631_v35 = vpop.f32.mrf.mxu0  ;;  %v1394_v40 = vpop.f32.mrf.mxu3 }
 0x11f   : > { %v8498_v36 = vadd.f32 %v861_v29, %v631_v35  ;;  %v8500_v37 = vadd.f32 %v1392_v17, %v1201_v32 }
 0x120   : > { %v864_v44 = vpop.f32.mrf.mxu1 }
 0x123   : > { %6809 = vmatmul.msk.bf16.gmra.mxu1 %vm527_vm2, %v7918_v41  ;;  %6570 = vmatmul.msk.bf16.gmra.mxu3 %vm527_vm2, %v7887_v42  ;;  %v7920_v41 = vld [vmem:[%s8251_s21 + $0x50] sm:$0xff]  ;;  %v7889_v42 = vld [vmem:[%s8318_s12 + $0x68] sm:$0xff] }
 0x124   : > { %v1129_v45 = vpop.f32.mrf.mxu2 }
 0x125   : > { %v1202_v50 = vadd.f32 %v1129_v45, %v8399_v33 }
 0x126   : > { %v634_v53 = vpop.f32.mrf.mxu0  ;;  %v1397_v33 = vpop.f32.mrf.mxu3 }
 0x127   : > { %v8507_v54 = vadd.f32 %v864_v44, %v634_v53  ;;  %v8509_v27 = vadd.f32 %v1394_v40, %v1202_v50 }
 0x128   : > { %v866_v56 = vpop.f32.mrf.mxu1 }
 0x129   : > { %6483 = vmatmul.msk.bf16.gmra.mxu2 %vm761_vm1, %v7871_v51  ;;  %6722 = vmatmul.msk.bf16.gmra.mxu0 %vm761_vm1, %v7902_v52  ;;  %v7873_v51 = vld [vmem:[%s8324_s16 + $0x68] sm:$0xff]  ;;  %v7904_v52 = vld [vmem:[%s8245_s18 + $0x50] sm:$0xff] }
 0x12c   : > { %v1132_v57 = vpop.f32.mrf.mxu2 }
 0x12d   : > { %v1203_v58 = vadd.f32 %v1132_v57, %v8407_v43 }
 0x12e   : > { %v636_v61 = vpop.f32.mrf.mxu0  ;;  %v1399_v3 = vpop.f32.mrf.mxu3 }
 0x12f   : > { %v8516_v1 = vadd.f32 %v866_v56, %v636_v61  ;;  %v8518_v0 = vadd.f32 %v1397_v33, %v1203_v58 }
 0x130   : > { %v1979_v10 = vpop.f32.mrf.mxu1 }
 0x133   : > { %6810 = vmatmul.msk.bf16.gmra.mxu1 %vm527_vm2, %v7919_v5  ;;  %6571 = vmatmul.msk.bf16.gmra.mxu3 %vm527_vm2, %v7888_v6  ;;  %v7963_v5 = vld [vmem:[%s10252_s4 + $0x38] sm:$0xff]  ;;  %v6976_v6 = vld [vmem:[%s10253_s5 + $0x2c] sm:$0xf] }
 0x134   : > { %v1134_v13 = vpop.f32.mrf.mxu2  ;;  %2308 = vmatpush.bf16.msra.mxu2 %v7963_v5  ;;  %v7906_v5 = vld [vmem:[%s8245_s18 + $0x60] sm:$0xff] }
 0x135   : > { %v1204_v14 = vadd.f32 %v1134_v13, %v8415_v49 }
 0x136   : > { %v1714_v20 = vpop.f32.mrf.mxu0  ;;  %v1402_v49 = vpop.f32.mrf.mxu3 }
 0x137   : > { %v8525_v21 = vadd.f32 %v1399_v3, %v1204_v14  ;;  %v1794_v43 = vadd.f32 %v1714_v20, %v8464_v48  ;;  %v7921_v14 = vld [vmem:[%s8251_s21 + $0x58] sm:$0xff] }
 0x138   : > { %v1981_v26 = vpop.f32.mrf.mxu1 }
 0x139   : > { %6484 = vmatmul.msk.bf16.gmra.mxu2 %vm761_vm1, %v7872_v16  ;;  %6723 = vmatmul.msk.bf16.gmra.mxu0 %vm761_vm1, %v7903_v19  ;;  %v8532_v24 = vadd.f32 %v1979_v10, %v1794_v43  ;;  %v2512_v10 = vunpack.c.l.b16 %v6976_v6  ;;  %v7890_v16 = vld [vmem:[%s8318_s12 + $0x70] sm:$0xff] }
 0x13b   : > { %v2514_v19 = vpack.c.b16 %v2512_v10, %v2512_v10 }
 0x13c   : > { %v1137_v17 = vpop.f32.mrf.mxu2 }
 0x13d   : > { %v1205_v29 = vadd.f32 %v1137_v17, %v8423_v60  ;;  %v2565_v17 = vsel %vm576_vm0, %v2514_v19, 0 }
 0x13e   : > { %v1716_v30 = vpop.f32.mrf.mxu0  ;;  %v1404_v40 = vpop.f32.mrf.mxu3  ;;  %2573 = vmatpush.bf16.msra.mxu3 %v2565_v17 }
 0x13f   : > { %v8535_v48 = vadd.f32 %v1402_v49, %v1205_v29  ;;  %v1795_v32 = vadd.f32 %v1716_v30, %v8473_v59  ;;  %v7874_v49 = vld [vmem:[%s8324_s16 + $0x70] sm:$0xff] }
 0x140   : > { %v1984_v44 = vpop.f32.mrf.mxu1  ;;  %v7962_v30 = vld [vmem:[%s10252_s4 + $0x30] sm:$0xff] }
 0x141   : > { %v8538_v35 = vadd.f32 %v1981_v26, %v1795_v32  ;;  %v7905_v26 = vld [vmem:[%s8245_s18 + $0x58] sm:$0xff]  ;;  %2309 = vmatpush.bf16.msra.mxu2 %v7962_v30 }
 0x143   : > { %6811 = vmatmul.msk.bf16.gmra.mxu1 %vm527_vm2, %v7920_v41  ;;  %6572 = vmatmul.msk.bf16.gmra.mxu3 %vm527_vm2, %v7889_v42 }
 0x144   : > { %v1139_v45 = vpop.f32.mrf.mxu2 }
 0x145   : > { %v1206_v50 = vadd.f32 %v1139_v45, %v8431_v4 }
 0x146   : > { %v1719_v53 = vpop.f32.mrf.mxu0  ;;  %v1407_v4 = vpop.f32.mrf.mxu3 }
 0x147   : > { %v8545_v33 = vadd.f32 %v1404_v40, %v1206_v50  ;;  %v1796_v60 = vadd.f32 %v1719_v53, %v8482_v9 }
 0x148   : > { %v1986_v56 = vpop.f32.mrf.mxu1 }
 0x149   : > { %6485 = vmatmul.msk.bf16.gmra.mxu2 %vm761_vm1, %v7873_v51  ;;  %6724 = vmatmul.msk.bf16.gmra.mxu0 %vm761_vm1, %v7904_v52  ;;  %v8552_v59 = vadd.f32 %v1984_v44, %v1796_v60 }
 0x14c   : > { %v1142_v57 = vpop.f32.mrf.mxu2 }
 0x14d   : > { %v1207_v58 = vadd.f32 %v1142_v57, %v8439_v18 }
 0x14e   : > { %v1721_v61 = vpop.f32.mrf.mxu0  ;;  %v1409_v18 = vpop.f32.mrf.mxu3 }
 0x14f   : > { %v8555_v9 = vadd.f32 %v1407_v4, %v1207_v58  ;;  %v1797_v3 = vadd.f32 %v1721_v61, %v8491_v11  ;;  %v7922_v4 = vld [vmem:[%s8251_s21 + $0x60] sm:$0xff] }
 0x150   : > { %v1989_v20 = vpop.f32.mrf.mxu1 }
 0x151   : > { %v8564_v13 = vadd.f32 %v1986_v56, %v1797_v3  ;;  %v7891_v56 = vld [vmem:[%s8318_s12 + $0x78] sm:$0xff] }
 0x152   : > { %v7875_v3 = vld [vmem:[%s8324_s16 + $0x78] sm:$0xff] }
 0x153   : > { %6812 = vmatmul.msk.bf16.gmra.mxu1 %vm527_vm2, %v7921_v14  ;;  %6573 = vmatmul.msk.bf16.gmra.mxu3 %vm527_vm2, %v7890_v16 }
 0x154   : > { %v1144_v43 = vpop.f32.mrf.mxu2 }
 0x155   : > { %v1208_v11 = vadd.f32 %v1144_v43, %v8447_v25  ;;  %v7964_v25 = vld [vmem:[%s10253_s5 + $0x24] sm:$0xff] }
 0x156   : > { %v1724_v29 = vpop.f32.mrf.mxu0  ;;  %v1412_v42 = vpop.f32.mrf.mxu3  ;;  %2574 = vmatpush.bf16.msra.mxu3 %v7964_v25  ;;  %v7930_v25 = vld [vmem:[%s8324_s16 + $0x8] sm:$0xff] }
 0x157   : > { %v8575_v32 = vadd.f32 %v1409_v18, %v1208_v11  ;;  %v1798_v40 = vadd.f32 %v1724_v29, %v8500_v37 }
 0x158   : > { %v1991_v37 = vpop.f32.mrf.mxu1 }
 0x159   : > { %6486 = vmatmul.msk.bf16.gmra.mxu2 %vm761_vm1, %v7874_v49  ;;  %6725 = vmatmul.msk.bf16.gmra.mxu0 %vm761_vm1, %v7905_v26  ;;  %v8585_v41 = vadd.f32 %v1989_v20, %v1798_v40  ;;  %v7923_v49 = vld [vmem:[%s8251_s21 + $0x68] sm:$0xff] }
 0x15a   : > { %v7946_v26 = vld [vmem:[%s8318_s12 + $0x8] sm:$0xff] }
 0x15b   : > { %v7907_v40 = vld [vmem:[%s8245_s18 + $0x68] sm:$0xff] }
 0x15c   : > { %v1147_v44 = vpop.f32.mrf.mxu2 }
 0x15d   : > { %v1209_v45 = vadd.f32 %v1147_v44, %v8455_v38 }
 0x15e   : > { %v1726_v50 = vpop.f32.mrf.mxu0  ;;  %v1414_v60 = vpop.f32.mrf.mxu3 }
 0x15f   : > { %v8588_v51 = vadd.f32 %v1412_v42, %v1209_v45  ;;  %v1799_v52 = vadd.f32 %v1726_v50, %v8509_v27 }
 0x160   : > { %v1994_v57 = vpop.f32.mrf.mxu1 }
 0x161   : > { %v8591_v53 = vadd.f32 %v1991_v37, %v1799_v52  ;;  %v7219_v52 = vld [vmem:[%s10253_s5 + $0x38] sm:$0xf] }
 0x163   : > { %6813 = vmatmul.msk.bf16.gmra.mxu1 %vm527_vm2, %v7922_v4  ;;  %6574 = vmatmul.msk.bf16.gmra.mxu3 %vm527_vm2, %v7891_v56  ;;  %v3109_v4 = vunpack.c.l.b16 %v7219_v52 }
 0x164   : > { %v1149_v58 = vpop.f32.mrf.mxu2 }
 0x165   : > { %v1210_v61 = vadd.f32 %v1149_v58, %v8462_v46  ;;  %v3111_v58 = vpack.c.b16 %v3109_v4, %v3109_v4 }
 0x166   : > { %v1729_v6 = vpop.f32.mrf.mxu0  ;;  %v1417_v46 = vpop.f32.mrf.mxu3 }
 0x167   : > { %v8598_v10 = vadd.f32 %v1414_v60, %v1210_v61  ;;  %v1800_v38 = vadd.f32 %v1729_v6, %v8518_v0  ;;  %v7924_v6 = vld [vmem:[%s8251_s21 + $0x70] sm:$0xff] }
 0x168   : > { %v1996_v18 = vpop.f32.mrf.mxu1 }
 0x169   : > { %6487 = vmatmul.msk.bf16.gmra.mxu2 %vm761_vm1, %v7875_v3  ;;  %6726 = vmatmul.msk.bf16.gmra.mxu0 %vm761_vm1, %v7906_v5  ;;  %v8605_v27 = vadd.f32 %v1994_v57, %v1800_v38  ;;  %v3162_v5 = vsel %vm576_vm0, %v3111_v58, 0 }
 0x16a   : > { %3170 = vmatpush.bf16.msra.mxu1 %v3162_v5 }
 0x16c   : > { %v1152_v14 = vpop.f32.mrf.mxu2 }
 0x16d   : > { %v1211_v16 = vadd.f32 %v1152_v14, %v8471_v62  ;;  %v7908_v14 = vld [vmem:[%s8245_s18 + $0x70] sm:$0xff] }
 0x16e   : > { %v1731_v19 = vpop.f32.mrf.mxu0  ;;  %v1419_v11 = vpop.f32.mrf.mxu3 }
 0x16f   : > { %v8608_v0 = vadd.f32 %v1417_v46, %v1211_v16  ;;  %v1801_v20 = vadd.f32 %v1731_v19, %v8525_v21  ;;  %v7998_v21 = vld [vmem:[%s10252_s4 + $0x48] sm:$0xff]  ;;  %v7931_v16 = vld [vmem:[%s8324_s16 + $0x10] sm:$0xff] }
 0x170   : > { %v1999_v17 = vpop.f32.mrf.mxu1  ;;  %2905 = vmatpush.bf16.msra.mxu0 %v7998_v21  ;;  %v7948_v21 = vld [vmem:[%s8318_s12 + $0x18] sm:$0xff] }
 0x171   : > { %v8611_v43 = vadd.f32 %v1996_v18, %v1801_v20 }
 0x173   : > { %6814 = vmatmul.msk.bf16.gmra.mxu1 %vm527_vm2, %v7923_v49  ;;  %7045 = vmatmul.msk.bf16.vlgmr.msra.gmra.mxu3 %vm527_vm2, %v7946_v26 }
 0x174   : > { %v1154_v29 = vpop.f32.mrf.mxu2 }
 0x175   : > { %v1212_v30 = vadd.f32 %v1154_v29, %v8480_v8 }
 0x176   : > { %v1734_v42 = vpop.f32.mrf.mxu0  ;;  %v1422_v44 = vpop.f32.mrf.mxu3 }
 0x177   : > { %v8618_v37 = vadd.f32 %v1419_v11, %v1212_v30  ;;  %v1802_v62 = vadd.f32 %v1734_v42, %v8535_v48  ;;  %v7999_v42 = vld [vmem:[%s10253_s5 + $0x30] sm:$0xff] }
 0x178   : > { %v2001_v45 = vpop.f32.mrf.mxu1  ;;  %3171 = vmatpush.bf16.msra.mxu1 %v7999_v42 }
 0x179   : > { %6727 = vmatmul.msk.bf16.gmra.mxu0 %vm761_vm1, %v7907_v40  ;;  %6958 = vmatmul.msk.bf16.vlgmr.msra.gmra.mxu2 %vm761_vm1, %v7930_v25  ;;  %v8628_v8 = vadd.f32 %v1999_v17, %v1802_v62  ;;  %v7925_v62 = vld [vmem:[%s8251_s21 + $0x78] sm:$0xff] }
 0x17c   : > { %v1157_v48 = vpop.f32.mrf.mxu2 }
 0x17d   : > { %v1213_v50 = vadd.f32 %v1157_v48, %v8489_v28  ;;  %v7947_v28 = vld [vmem:[%s8318_s12 + $0x10] sm:$0xff] }
 0x17e   : > { %v1736_v60 = vpop.f32.mrf.mxu0  ;;  %v1424_v3 = vpop.f32.mrf.mxu3 }
 0x17f   : > { %v8634_v56 = vadd.f32 %v1422_v44, %v1213_v50  ;;  %v1803_v57 = vadd.f32 %v1736_v60, %v8545_v33  ;;  %v7932_v50 = vld [vmem:[%s8324_s16 + $0x18] sm:$0xff] }
 0x180   : > { %v2004_v38 = vpop.f32.mrf.mxu1 }
 0x181   : > { %v8637_v61 = vadd.f32 %v2001_v45, %v1803_v57 }
 0x183   : > { %6815 = vmatmul.msk.bf16.gmra.mxu1 %vm527_vm2, %v7924_v6  ;;  %7046 = vmatmul.msk.bf16.gmra.mxu3 %vm527_vm2, %v7947_v28 }
 0x184   : > { %v1159_v46 = vpop.f32.mrf.mxu2 }
 0x185   : > { %v1214_v18 = vadd.f32 %v1159_v46, %v8498_v36 }
 0x186   : > { %v1739_v19 = vpop.f32.mrf.mxu0  ;;  %v1427_v36 = vpop.f32.mrf.mxu3 }
 0x187   : > { %v8645_v20 = vadd.f32 %v1424_v3, %v1214_v18  ;;  %v1804_v33 = vadd.f32 %v1739_v19, %v8555_v9  ;;  %v7926_v18 = vld [vmem:[%s8251_s21 + $0x80] sm:$0xff] }
 0x188   : > { %v2006_v49 = vpop.f32.mrf.mxu1 }
 0x189   : > { %6728 = vmatmul.msk.bf16.gmra.mxu0 %vm761_vm1, %v7908_v14  ;;  %6959 = vmatmul.msk.bf16.gmra.mxu2 %vm761_vm1, %v7931_v16  ;;  %v8652_v11 = vadd.f32 %v2004_v38, %v1804_v33  ;;  %v7949_v14 = vld [vmem:[%s8318_s12 + $0x20] sm:$0xff] }
 0x18c   : > { %v1162_v26 = vpop.f32.mrf.mxu2 }
 0x18d   : > { %v1215_v17 = vadd.f32 %v1162_v26, %v8507_v54  ;;  %v7909_v54 = vld [vmem:[%s8245_s18 + $0x78] sm:$0xff] }
 0x18e   : > { %v1741_v9 = vpop.f32.mrf.mxu0  ;;  %v1429_v25 = vpop.f32.mrf.mxu3 }
 0x18f   : > { %v8655_v29 = vadd.f32 %v1427_v36, %v1215_v17  ;;  %v1805_v30 = vadd.f32 %v1741_v9, %v8575_v32  ;;  %v7997_v32 = vld [vmem:[%s10252_s4 + $0x40] sm:$0xff] }
 0x190   : > { %v2009_v44 = vpop.f32.mrf.mxu1  ;;  %2906 = vmatpush.bf16.msra.mxu0 %v7997_v32  ;;  %v7910_v36 = vld [vmem:[%s8245_s18 + $0x80] sm:$0xff]  ;;  %v7934_v32 = vld [vmem:[%s8324_s16 + $0x28] sm:$0xff] }
 0x191   : > { %v8658_v40 = vadd.f32 %v2006_v49, %v1805_v30  ;;  %v7933_v49 = vld [vmem:[%s8324_s16 + $0x20] sm:$0xff] }
 0x193   : > { %6816 = vmatmul.msk.bf16.gmra.mxu1 %vm527_vm2, %v7925_v62  ;;  %7047 = vmatmul.msk.bf16.gmra.mxu3 %vm527_vm2, %v7948_v21 }
 0x194   : > { %v1164_v45 = vpop.f32.mrf.mxu2 }
 0x195   : > { %v1216_v48 = vadd.f32 %v1164_v45, %v8516_v1  ;;  %v7981_v45 = vld [vmem:[%s8251_s21 + $0x10] sm:$0xff] }
 0x196   : > { %v1744_v52 = vpop.f32.mrf.mxu0  ;;  %v1432_v57 = vpop.f32.mrf.mxu3 }
 0x197   : > { %v8671_v60 = vadd.f32 %v1429_v25, %v1216_v48  ;;  %v1806_v4 = vadd.f32 %v1744_v52, %v8588_v51  ;;  %v7950_v48 = vld [vmem:[%s8318_s12 + $0x28] sm:$0xff] }
 0x198   : > { %v2011_v58 = vpop.f32.mrf.mxu1 }
 0x199   : > { %6729 = vmatmul.msk.bf16.gmra.mxu0 %vm761_vm1, %v7909_v54  ;;  %6960 = vmatmul.msk.bf16.gmra.mxu2 %vm761_vm1, %v7932_v50  ;;  %v8678_v1 = vadd.f32 %v2009_v44, %v1806_v4  ;;  %v7965_v4 = vld [vmem:[%s8245_s18 + $0x10] sm:$0xff] }
 0x19c   : > { %v1167_v3 = vpop.f32.mrf.mxu2 }
 0x19d   : > { %v1217_v51 = vadd.f32 %v1167_v3, %v8365_v63 }
 0x19e   : > { %v1746_v5 = vpop.f32.mrf.mxu0  ;;  %v1434_v46 = vpop.f32.mrf.mxu3 }
 0x19f   : > { %v8681_v6 = vadd.f32 %v1432_v57, %v1217_v51  ;;  %v1807_v28 = vadd.f32 %v1746_v5, %v8598_v10 }
 0x1a0   : > { %v2014_v16 = vpop.f32.mrf.mxu1 }
 0x1a1   : > { %v8684_v38 = vadd.f32 %v2011_v58, %v1807_v28 }
 0x1a3   : > { %6817 = vmatmul.msk.bf16.gmra.mxu1 %vm527_vm2, %v7926_v18  ;;  %7048 = vmatmul.msk.bf16.gmra.mxu3 %vm527_vm2, %v7949_v14 }
 0x1a4   : > { %v1169_v19 = vpop.f32.mrf.mxu2 }
 0x1a5   : > { %v1218_v33 = vadd.f32 %v1169_v19, %v8371_v7  ;;  %v7951_v19 = vld [vmem:[%s8318_s12 + $0x30] sm:$0xff] }
 0x1a6   : > { %v1749_v26 = vpop.f32.mrf.mxu0  ;;  %v1437_v7 = vpop.f32.mrf.mxu3 }
 0x1a7   : > { %v8691_v17 = vadd.f32 %v1434_v46, %v1218_v33  ;;  %v1808_v63 = vadd.f32 %v1749_v26, %v8608_v0  ;;  %v7935_v26 = vld [vmem:[%s8324_s16 + $0x30] sm:$0xff] }
 0x1a8   : > { %v2016_v9 = vpop.f32.mrf.mxu1 }
 0x1a9   : > { %6730 = vmatmul.msk.bf16.gmra.mxu0 %vm761_vm1, %v7910_v36  ;;  %6961 = vmatmul.msk.bf16.gmra.mxu2 %vm761_vm1, %v7933_v49  ;;  %v8698_v10 = vadd.f32 %v2014_v16, %v1808_v63  ;;  %v7982_v16 = vld [vmem:[%s8251_s21 + $0x18] sm:$0xff] }
 0x1aa   : > { %v7966_v63 = vld [vmem:[%s8245_s18 + $0x18] sm:$0xff] }
 0x1ac   : > { %v1172_v30 = vpop.f32.mrf.mxu2 }
 0x1ad   : > { %v1219_v25 = vadd.f32 %v1172_v30, %v8381_v15 }
 0x1ae   : > { %v1751_v42 = vpop.f32.mrf.mxu0  ;;  %v1439_v44 = vpop.f32.mrf.mxu3 }
 0x1af   : > { %v8701_v0 = vadd.f32 %v1437_v7, %v1219_v25  ;;  %v1809_v62 = vadd.f32 %v1751_v42, %v8618_v37 }
 0x1b0   : > { %v2019_v54 = vpop.f32.mrf.mxu1 }
 0x1b1   : > { %v8704_v21 = vadd.f32 %v2016_v9, %v1809_v62 }
 0x1b3   : > { %7288 = vmatmul.msk.bf16.vlgmr.msra.gmra.mxu1 %vm527_vm2, %v7981_v45  ;;  %7049 = vmatmul.msk.bf16.gmra.mxu3 %vm527_vm2, %v7950_v48 }
 0x1b4   : > { %v1174_v50 = vpop.f32.mrf.mxu2 }
 0x1b5   : > { %v1220_v52 = vadd.f32 %v1174_v50, %v8387_v23  ;;  %v7952_v50 = vld [vmem:[%s8318_s12 + $0x38] sm:$0xff] }
 0x1b6   : > { %v1754_v57 = vpop.f32.mrf.mxu0  ;;  %v1442_v23 = vpop.f32.mrf.mxu3 }
 0x1b7   : > { %v8711_v58 = vadd.f32 %v1439_v44, %v1220_v52  ;;  %v1810_v15 = vadd.f32 %v1754_v57, %v8634_v56  ;;  %v7936_v57 = vld [vmem:[%s8324_s16 + $0x38] sm:$0xff] }
 0x1b8   : > { %v2021_v3 = vpop.f32.mrf.mxu1 }
 0x1b9   : > { %6962 = vmatmul.msk.bf16.gmra.mxu2 %vm761_vm1, %v7934_v32  ;;  %7201 = vmatmul.msk.bf16.vlgmr.msra.gmra.mxu0 %vm761_vm1, %v7965_v4  ;;  %v8718_v37 = vadd.f32 %v2019_v54, %v1810_v15  ;;  %v7983_v54 = vld [vmem:[%s8251_s21 + $0x20] sm:$0xff] }
 0x1ba   : > { %v7967_v15 = vld [vmem:[%s8245_s18 + $0x20] sm:$0xff] }
 0x1bc   : > { %v1177_v51 = vpop.f32.mrf.mxu2 }
 0x1bd   : > { %v1221_v5 = vadd.f32 %v1177_v51, %v8397_v31 }
 0x1be   : > { %v1756_v28 = vpop.f32.mrf.mxu0  ;;  %v1444_v14 = vpop.f32.mrf.mxu3 }
 0x1bf   : > { %v8721_v56 = vadd.f32 %v1442_v23, %v1221_v5  ;;  %v1811_v46 = vadd.f32 %v1756_v28, %v8645_v20 }
 0x1c0   : > { %v2024_v33 = vpop.f32.mrf.mxu1 }
 0x1c1   : > { %v8724_v18 = vadd.f32 %v2021_v3, %v1811_v46 }
 0x1c3   : > { %7289 = vmatmul.msk.bf16.gmra.mxu1 %vm527_vm2, %v7982_v16  ;;  %7050 = vmatmul.msk.bf16.gmra.mxu3 %vm527_vm2, %v7951_v19 }
 0x1c4   : > { %v1179_v36 = vpop.f32.mrf.mxu2 }
 0x1c5   : > { %v1222_v49 = vadd.f32 %v1179_v36, %v8403_v39  ;;  %v7953_v36 = vld [vmem:[%s8318_s12 + $0x40] sm:$0xff] }
 0x1c6   : > { %v1759_v7 = vpop.f32.mrf.mxu0  ;;  %v1447_v39 = vpop.f32.mrf.mxu3 }
 0x1c7   : > { %v8731_v9 = vadd.f32 %v1444_v14, %v1222_v49  ;;  %v1812_v31 = vadd.f32 %v1759_v7, %v8655_v29  ;;  %v7937_v7 = vld [vmem:[%s8324_s16 + $0x40] sm:$0xff] }
 0x1c8   : > { %v2026_v30 = vpop.f32.mrf.mxu1 }
 0x1c9   : > { %6963 = vmatmul.msk.bf16.gmra.mxu2 %vm761_vm1, %v7935_v26  ;;  %7202 = vmatmul.msk.bf16.gmra.mxu0 %vm761_vm1, %v7966_v63  ;;  %v8738_v20 = vadd.f32 %v2024_v33, %v1812_v31  ;;  %v7984_v33 = vld [vmem:[%s8251_s21 + $0x28] sm:$0xff] }
 0x1ca   : > { %v7968_v31 = vld [vmem:[%s8245_s18 + $0x28] sm:$0xff] }
 0x1cc   : > { %v1182_v25 = vpop.f32.mrf.mxu2 }
 0x1cd   : > { %v1223_v42 = vadd.f32 %v1182_v25, %v8413_v47 }
 0x1ce   : > { %v1761_v62 = vpop.f32.mrf.mxu0  ;;  %v1449_v48 = vpop.f32.mrf.mxu3 }
 0x1cf   : > { %v8741_v29 = vadd.f32 %v1447_v39, %v1223_v42  ;;  %v1813_v44 = vadd.f32 %v1761_v62, %v8671_v60 }
 0x1d0   : > { %v2029_v52 = vpop.f32.mrf.mxu1 }
 0x1d1   : > { %v8744_v45 = vadd.f32 %v2026_v30, %v1813_v44 }
 0x1d3   : > { %7290 = vmatmul.msk.bf16.gmra.mxu1 %vm527_vm2, %v7983_v54  ;;  %7051 = vmatmul.msk.bf16.gmra.mxu3 %vm527_vm2, %v7952_v50 }
 0x1d4   : > { %v1184_v32 = vpop.f32.mrf.mxu2 }
 0x1d5   : > { %v1224_v4 = vadd.f32 %v1184_v32, %v8419_v55  ;;  %v7954_v32 = vld [vmem:[%s8318_s12 + $0x48] sm:$0xff] }
 0x1d6   : > { %v1764_v23 = vpop.f32.mrf.mxu0  ;;  %v1452_v55 = vpop.f32.mrf.mxu3 }
 0x1d7   : > { %v8751_v3 = vadd.f32 %v1449_v48, %v1224_v4  ;;  %v1814_v47 = vadd.f32 %v1764_v23, %v8681_v6  ;;  %v7938_v23 = vld [vmem:[%s8324_s16 + $0x48] sm:$0xff] }
 0x1d8   : > { %v2031_v51 = vpop.f32.mrf.mxu1 }
 0x1d9   : > { %6964 = vmatmul.msk.bf16.gmra.mxu2 %vm761_vm1, %v7936_v57  ;;  %7203 = vmatmul.msk.bf16.gmra.mxu0 %vm761_vm1, %v7967_v15  ;;  %v8758_v60 = vadd.f32 %v2029_v52, %v1814_v47  ;;  %v7985_v52 = vld [vmem:[%s8251_s21 + $0x30] sm:$0xff] }
 0x1da   : > { %v7969_v47 = vld [vmem:[%s8245_s18 + $0x30] sm:$0xff] }
 0x1dc   : > { %v1187_v5 = vpop.f32.mrf.mxu2 }
 0x1dd   : > { %v1225_v28 = vadd.f32 %v1187_v5, %v8429_v2 }
 0x1de   : > { %v1766_v46 = vpop.f32.mrf.mxu0  ;;  %v1454_v19 = vpop.f32.mrf.mxu3 }
 0x1df   : > { %v8761_v6 = vadd.f32 %v1452_v55, %v1225_v28  ;;  %v1815_v14 = vadd.f32 %v1766_v46, %v8691_v17 }
 0x1e0   : > { %v2034_v49 = vpop.f32.mrf.mxu1 }
 0x1e1   : > { %v8764_v16 = vadd.f32 %v2031_v51, %v1815_v14 }
 0x1e3   : > { %7291 = vmatmul.msk.bf16.gmra.mxu1 %vm527_vm2, %v7984_v33  ;;  %7052 = vmatmul.msk.bf16.gmra.mxu3 %vm527_vm2, %v7953_v36 }
 0x1e4   : > { %v1189_v26 = vpop.f32.mrf.mxu2 }
 0x1e5   : > { %v1226_v63 = vadd.f32 %v1189_v26, %v8435_v12  ;;  %v7955_v26 = vld [vmem:[%s8318_s12 + $0x50] sm:$0xff] }
 0x1e6   : > { %v1769_v39 = vpop.f32.mrf.mxu0  ;;  %v1457_v12 = vpop.f32.mrf.mxu3 }
 0x1e7   : > { %v8771_v30 = vadd.f32 %v1454_v19, %v1226_v63  ;;  %v1816_v2 = vadd.f32 %v1769_v39, %v8701_v0  ;;  %v7939_v39 = vld [vmem:[%s8324_s16 + $0x50] sm:$0xff] }
 0x1e8   : > { %v2036_v25 = vpop.f32.mrf.mxu1 }
 0x1e9   : > { %6965 = vmatmul.msk.bf16.gmra.mxu2 %vm761_vm1, %v7937_v7  ;;  %7204 = vmatmul.msk.bf16.gmra.mxu0 %vm761_vm1, %v7968_v31  ;;  %v8778_v17 = vadd.f32 %v2034_v49, %v1816_v2  ;;  %v7986_v49 = vld [vmem:[%s8251_s21 + $0x38] sm:$0xff] }
 0x1ea   : > { %v7970_v2 = vld [vmem:[%s8245_s18 + $0x38] sm:$0xff] }
 0x1ec   : > { %v1192_v42 = vpop.f32.mrf.mxu2 }
 0x1ed   : > { %v1227_v62 = vadd.f32 %v1192_v42, %v8445_v22 }
 0x1ee   : > { %v1771_v44 = vpop.f32.mrf.mxu0  ;;  %v1459_v50 = vpop.f32.mrf.mxu3 }
 0x1ef   : > { %v8781_v0 = vadd.f32 %v1457_v12, %v1227_v62  ;;  %v1817_v48 = vadd.f32 %v1771_v44, %v8711_v58 }
 0x1f0   : > { %v2039_v4 = vpop.f32.mrf.mxu1 }
 0x1f1   : > { %v8784_v54 = vadd.f32 %v2036_v25, %v1817_v48 }
 0x1f3   : > { %7292 = vmatmul.msk.bf16.gmra.mxu1 %vm527_vm2, %v7985_v52  ;;  %7053 = vmatmul.msk.bf16.gmra.mxu3 %vm527_vm2, %v7954_v32 }
 0x1f4   : > { %v1194_v57 = vpop.f32.mrf.mxu2 }
 0x1f5   : > { %v1228_v15 = vadd.f32 %v1194_v57, %v8451_v34  ;;  %v7956_v57 = vld [vmem:[%s8318_s12 + $0x58] sm:$0xff] }
 0x1f6   : > { %v1774_v55 = vpop.f32.mrf.mxu0  ;;  %v2576_v34 = vpop.f32.mrf.mxu3 }
 0x1f7   : > { %v8791_v51 = vadd.f32 %v1459_v50, %v1228_v15  ;;  %v1818_v22 = vadd.f32 %v1774_v55, %v8721_v56  ;;  %v7940_v55 = vld [vmem:[%s8324_s16 + $0x58] sm:$0xff] }
 0x1f8   : > { %v2041_v5 = vpop.f32.mrf.mxu1 }
 0x1f9   : > { %6966 = vmatmul.msk.bf16.gmra.mxu2 %vm761_vm1, %v7938_v23  ;;  %7205 = vmatmul.msk.bf16.gmra.mxu0 %vm761_vm1, %v7969_v47  ;;  %v8798_v58 = vadd.f32 %v2039_v4, %v1818_v22  ;;  %v7987_v4 = vld [vmem:[%s8251_s21 + $0x40] sm:$0xff] }
 0x1fa   : > { %v7971_v22 = vld [vmem:[%s8245_s18 + $0x40] sm:$0xff] }
 0x1fc   : > { %v2311_v28 = vpop.f32.mrf.mxu2 }
 0x1fd   : > { %v2391_v46 = vadd.f32 %v2311_v28, %v8532_v24 }
 0x1fe   : > { %v1776_v14 = vpop.f32.mrf.mxu0  ;;  %v2578_v36 = vpop.f32.mrf.mxu3 }
 0x1ff   : > { %v1819_v56 = vadd.f32 %v1776_v14, %v8731_v9  ;;  %v8802_v19 = vadd.f32 %v2576_v34, %v2391_v46 }
 0x200   : > { %v2044_v63 = vpop.f32.mrf.mxu1 }
 0x201   : > { %v8804_v33 = vadd.f32 %v2041_v5, %v1819_v56 }
 0x203   : > { %7293 = vmatmul.msk.bf16.gmra.mxu1 %vm527_vm2, %v7986_v49  ;;  %7054 = vmatmul.msk.bf16.gmra.mxu3 %vm527_vm2, %v7955_v26 }
 0x204   : > { %v2313_v7 = vpop.f32.mrf.mxu2 }
 0x205   : > { %v2392_v31 = vadd.f32 %v2313_v7, %v8538_v35  ;;  %v7957_v7 = vld [vmem:[%s8318_s12 + $0x60] sm:$0xff] }
 0x206   : > { %v1779_v12 = vpop.f32.mrf.mxu0  ;;  %v2581_v35 = vpop.f32.mrf.mxu3 }
 0x207   : > { %v1820_v25 = vadd.f32 %v1779_v12, %v8741_v29  ;;  %v8812_v24 = vadd.f32 %v2578_v36, %v2392_v31  ;;  %v7941_v12 = vld [vmem:[%s8324_s16 + $0x60] sm:$0xff] }
 0x208   : > { %v2046_v42 = vpop.f32.mrf.mxu1 }
 0x209   : > { %6967 = vmatmul.msk.bf16.gmra.mxu2 %vm761_vm1, %v7939_v39  ;;  %7206 = vmatmul.msk.bf16.gmra.mxu0 %vm761_vm1, %v7970_v2  ;;  %v8818_v9 = vadd.f32 %v2044_v63, %v1820_v25  ;;  %v7988_v63 = vld [vmem:[%s8251_s21 + $0x48] sm:$0xff] }
 0x20a   : > { %v7972_v25 = vld [vmem:[%s8245_s18 + $0x48] sm:$0xff] }
 0x20c   : > { %v2316_v62 = vpop.f32.mrf.mxu2 }
 0x20d   : > { %v2393_v29 = vadd.f32 %v2316_v62, %v8552_v59 }
 0x20e   : > { %v1781_v44 = vpop.f32.mrf.mxu0  ;;  %v2583_v32 = vpop.f32.mrf.mxu3 }
 0x20f   : > { %v1821_v48 = vadd.f32 %v1781_v44, %v8751_v3  ;;  %v8822_v50 = vadd.f32 %v2581_v35, %v2393_v29 }
 0x210   : > { %v2049_v15 = vpop.f32.mrf.mxu1 }
 0x211   : > { %v8824_v52 = vadd.f32 %v2046_v42, %v1821_v48 }
 0x213   : > { %7294 = vmatmul.msk.bf16.gmra.mxu1 %vm527_vm2, %v7987_v4  ;;  %7055 = vmatmul.msk.bf16.gmra.mxu3 %vm527_vm2, %v7956_v57 }
 0x214   : > { %v2318_v23 = vpop.f32.mrf.mxu2 }
 0x215   : > { %v2394_v47 = vadd.f32 %v2318_v23, %v8564_v13  ;;  %v7958_v23 = vld [vmem:[%s8318_s12 + $0x68] sm:$0xff] }
 0x216   : > { %v1784_v34 = vpop.f32.mrf.mxu0  ;;  %v2586_v13 = vpop.f32.mrf.mxu3 }
 0x217   : > { %v1822_v5 = vadd.f32 %v1784_v34, %v8761_v6  ;;  %v8832_v59 = vadd.f32 %v2583_v32, %v2394_v47  ;;  %v7942_v34 = vld [vmem:[%s8324_s16 + $0x68] sm:$0xff] }
 0x218   : > { %v2051_v28 = vpop.f32.mrf.mxu1 }
 0x219   : > { %6968 = vmatmul.msk.bf16.gmra.mxu2 %vm761_vm1, %v7940_v55  ;;  %7207 = vmatmul.msk.bf16.gmra.mxu0 %vm761_vm1, %v7971_v22  ;;  %v8838_v3 = vadd.f32 %v2049_v15, %v1822_v5  ;;  %v7989_v15 = vld [vmem:[%s8251_s21 + $0x50] sm:$0xff] }
 0x21a   : > { %v7973_v5 = vld [vmem:[%s8245_s18 + $0x50] sm:$0xff] }
 0x21c   : > { %v2321_v46 = vpop.f32.mrf.mxu2 }
 0x21d   : > { %v2395_v6 = vadd.f32 %v2321_v46, %v8585_v41 }
 0x21e   : > { %v1786_v14 = vpop.f32.mrf.mxu0  ;;  %v2588_v26 = vpop.f32.mrf.mxu3 }
 0x21f   : > { %v1823_v56 = vadd.f32 %v1786_v14, %v8771_v30  ;;  %v8842_v36 = vadd.f32 %v2586_v13, %v2395_v6 }
 0x220   : > { %v2054_v31 = vpop.f32.mrf.mxu1 }
 0x221   : > { %v8844_v49 = vadd.f32 %v2051_v28, %v1823_v56 }
 0x223   : > { %7295 = vmatmul.msk.bf16.gmra.mxu1 %vm527_vm2, %v7988_v63  ;;  %7056 = vmatmul.msk.bf16.gmra.mxu3 %vm527_vm2, %v7957_v7 }
 0x224   : > { %v2323_v39 = vpop.f32.mrf.mxu2 }
 0x225   : > { %v2396_v2 = vadd.f32 %v2323_v39, %v8591_v53  ;;  %v7959_v39 = vld [vmem:[%s8318_s12 + $0x70] sm:$0xff] }
 0x226   : > { %v1789_v35 = vpop.f32.mrf.mxu0  ;;  %v2591_v53 = vpop.f32.mrf.mxu3 }
 0x227   : > { %v1824_v42 = vadd.f32 %v1789_v35, %v8781_v0  ;;  %v8852_v41 = vadd.f32 %v2588_v26, %v2396_v2  ;;  %v7943_v35 = vld [vmem:[%s8324_s16 + $0x70] sm:$0xff] }
 0x228   : > { %v2056_v62 = vpop.f32.mrf.mxu1 }
 0x229   : > { %6969 = vmatmul.msk.bf16.gmra.mxu2 %vm761_vm1, %v7941_v12  ;;  %7208 = vmatmul.msk.bf16.gmra.mxu0 %vm761_vm1, %v7972_v25  ;;  %v8858_v30 = vadd.f32 %v2054_v31, %v1824_v42  ;;  %v7990_v31 = vld [vmem:[%s8251_s21 + $0x58] sm:$0xff] }
 0x22a   : > { %v7974_v42 = vld [vmem:[%s8245_s18 + $0x58] sm:$0xff] }
 0x22c   : > { %v2326_v29 = vpop.f32.mrf.mxu2 }
 0x22d   : > { %v2397_v0 = vadd.f32 %v2326_v29, %v8605_v27 }
 0x22e   : > { %v1791_v44 = vpop.f32.mrf.mxu0  ;;  %v2593_v57 = vpop.f32.mrf.mxu3 }
 0x22f   : > { %v1825_v48 = vadd.f32 %v1791_v44, %v8791_v51  ;;  %v8862_v32 = vadd.f32 %v2591_v53, %v2397_v0 }
 0x230   : > { %v3173_v47 = vpop.f32.mrf.mxu1 }
 0x231   : > { %v8864_v4 = vadd.f32 %v2056_v62, %v1825_v48 }
 0x233   : > { %7296 = vmatmul.msk.bf16.gmra.mxu1 %vm527_vm2, %v7989_v15  ;;  %7057 = vmatmul.msk.bf16.gmra.mxu3 %vm527_vm2, %v7958_v23  ;;  %v8033_v15 = vld [vmem:[%s10252_s4 + $0x58] sm:$0xff]  ;;  %v7462_v23 = vld [vmem:[%s10253_s5 + $0x44] sm:$0xf] }
 0x234   : > { %v2328_v55 = vpop.f32.mrf.mxu2  ;;  %3502 = vmatpush.bf16.msrb.mxu2 %v8033_v15  ;;  %v7976_v15 = vld [vmem:[%s8245_s18 + $0x68] sm:$0xff] }
 0x235   : > { %v2398_v22 = vadd.f32 %v2328_v55, %v8611_v43 }
 0x236   : > { %v2908_v13 = vpop.f32.mrf.mxu0  ;;  %v2596_v43 = vpop.f32.mrf.mxu3 }
 0x237   : > { %v8871_v28 = vadd.f32 %v2593_v57, %v2398_v22  ;;  %v2988_v27 = vadd.f32 %v2908_v13, %v8802_v19  ;;  %v7991_v22 = vld [vmem:[%s8251_s21 + $0x60] sm:$0xff] }
 0x238   : > { %v3175_v46 = vpop.f32.mrf.mxu1 }
 0x239   : > { %6970 = vmatmul.msk.bf16.gmra.mxu2 %vm761_vm1, %v7942_v34  ;;  %7209 = vmatmul.msk.bf16.gmra.mxu0 %vm761_vm1, %v7973_v5  ;;  %v8878_v51 = vadd.f32 %v3173_v47, %v2988_v27  ;;  %v3706_v47 = vunpack.c.l.b16 %v7462_v23  ;;  %v7960_v34 = vld [vmem:[%s8318_s12 + $0x78] sm:$0xff] }
 0x23b   : > { %v3708_v5 = vpack.c.b16 %v3706_v47, %v3706_v47 }
 0x23c   : > { %v2331_v6 = vpop.f32.mrf.mxu2 }
 0x23d   : > { %v2399_v14 = vadd.f32 %v2331_v6, %v8628_v8  ;;  %v3759_v6 = vsel %vm576_vm0, %v3708_v5, 0 }
 0x23e   : > { %v2910_v56 = vpop.f32.mrf.mxu0  ;;  %v2598_v7 = vpop.f32.mrf.mxu3  ;;  %3767 = vmatpush.bf16.msrb.mxu3 %v3759_v6 }
 0x23f   : > { %v8881_v19 = vadd.f32 %v2596_v43, %v2399_v14  ;;  %v2989_v26 = vadd.f32 %v2910_v56, %v8812_v24  ;;  %v7944_v43 = vld [vmem:[%s8324_s16 + $0x78] sm:$0xff]  ;;  %v8032_v56 = vld [vmem:[%s10252_s4 + $0x50] sm:$0xff] }
 0x240   : > { %v3178_v2 = vpop.f32.mrf.mxu1  ;;  %3503 = vmatpush.bf16.msrb.mxu2 %v8032_v56 }
 0x241   : > { %v8884_v63 = vadd.f32 %v3175_v46, %v2989_v26  ;;  %v7975_v46 = vld [vmem:[%s8245_s18 + $0x60] sm:$0xff] }
 0x243   : > { %7297 = vmatmul.msk.bf16.gmra.mxu1 %vm527_vm2, %v7990_v31  ;;  %7058 = vmatmul.msk.bf16.gmra.mxu3 %vm527_vm2, %v7959_v39 }
 0x244   : > { %v2333_v12 = vpop.f32.mrf.mxu2 }
 0x245   : > { %v2400_v25 = vadd.f32 %v2333_v12, %v8637_v61 }
 0x246   : > { %v2913_v53 = vpop.f32.mrf.mxu0  ;;  %v2601_v61 = vpop.f32.mrf.mxu3 }
 0x247   : > { %v8891_v62 = vadd.f32 %v2598_v7, %v2400_v25  ;;  %v2990_v8 = vadd.f32 %v2913_v53, %v8822_v50 }
 0x248   : > { %v3180_v29 = vpop.f32.mrf.mxu1 }
 0x249   : > { %6971 = vmatmul.msk.bf16.gmra.mxu2 %vm761_vm1, %v7943_v35  ;;  %7210 = vmatmul.msk.bf16.gmra.mxu0 %vm761_vm1, %v7974_v42  ;;  %v8898_v24 = vadd.f32 %v3178_v2, %v2990_v8 }
 0x24c   : > { %v2336_v0 = vpop.f32.mrf.mxu2 }
 0x24d   : > { %v2401_v44 = vadd.f32 %v2336_v0, %v8652_v11 }
 0x24e   : > { %v2915_v48 = vpop.f32.mrf.mxu0  ;;  %v2603_v11 = vpop.f32.mrf.mxu3 }
 0x24f   : > { %v8901_v50 = vadd.f32 %v2601_v61, %v2401_v44  ;;  %v2991_v57 = vadd.f32 %v2915_v48, %v8832_v59  ;;  %v7992_v61 = vld [vmem:[%s8251_s21 + $0x68] sm:$0xff] }
 0x250   : > { %v3183_v13 = vpop.f32.mrf.mxu1 }
 0x251   : > { %v8910_v55 = vadd.f32 %v3180_v29, %v2991_v57  ;;  %v7961_v29 = vld [vmem:[%s8318_s12 + $0x80] sm:$0xff] }
 0x252   : > { %v7945_v57 = vld [vmem:[%s8324_s16 + $0x80] sm:$0xff] }
 0x253   : > { %7298 = vmatmul.msk.bf16.gmra.mxu1 %vm527_vm2, %v7991_v22  ;;  %7059 = vmatmul.msk.bf16.gmra.mxu3 %vm527_vm2, %v7960_v34 }
 0x254   : > { %v2338_v27 = vpop.f32.mrf.mxu2 }
 0x255   : > { %v2402_v59 = vadd.f32 %v2338_v27, %v8658_v40  ;;  %v8034_v40 = vld [vmem:[%s10253_s5 + $0x3c] sm:$0xff] }
 0x256   : > { %v2918_v14 = vpop.f32.mrf.mxu0  ;;  %v2606_v39 = vpop.f32.mrf.mxu3  ;;  %3768 = vmatpush.bf16.msrb.mxu3 %v8034_v40  ;;  %v8000_v40 = vld [vmem:[%s8324_s16 + $0x10] sm:$0xff] }
 0x257   : > { %v8921_v26 = vadd.f32 %v2603_v11, %v2402_v59  ;;  %v2992_v7 = vadd.f32 %v2918_v14, %v8842_v36 }
 0x258   : > { %v3185_v36 = vpop.f32.mrf.mxu1 }
 0x259   : > { %6972 = vmatmul.msk.bf16.gmra.mxu2 %vm761_vm1, %v7944_v43  ;;  %7211 = vmatmul.msk.bf16.gmra.mxu0 %vm761_vm1, %v7975_v46  ;;  %v8931_v31 = vadd.f32 %v3183_v13, %v2992_v7  ;;  %v7993_v43 = vld [vmem:[%s8251_s21 + $0x70] sm:$0xff] }
 0x25a   : > { %v8016_v46 = vld [vmem:[%s8318_s12 + $0x10] sm:$0xff] }
 0x25b   : > { %v7977_v7 = vld [vmem:[%s8245_s18 + $0x70] sm:$0xff] }
 0x25c   : > { %v2341_v2 = vpop.f32.mrf.mxu2 }
 0x25d   : > { %v2403_v12 = vadd.f32 %v2341_v2, %v8678_v1 }
 0x25e   : > { %v2920_v25 = vpop.f32.mrf.mxu0  ;;  %v2608_v8 = vpop.f32.mrf.mxu3 }
 0x25f   : > { %v8934_v35 = vadd.f32 %v2606_v39, %v2403_v12  ;;  %v2993_v42 = vadd.f32 %v2920_v25, %v8852_v41 }
 0x260   : > { %v3188_v0 = vpop.f32.mrf.mxu1 }
 0x261   : > { %v8937_v53 = vadd.f32 %v3185_v36, %v2993_v42  ;;  %v7705_v42 = vld [vmem:[%s10253_s5 + $0x50] sm:$0xf] }
 0x263   : > { %7299 = vmatmul.msk.bf16.gmra.mxu1 %vm527_vm2, %v7992_v61  ;;  %7060 = vmatmul.msk.bf16.gmra.mxu3 %vm527_vm2, %v7961_v29  ;;  %v4303_v61 = vunpack.c.l.b16 %v7705_v42 }
 0x264   : > { %v2343_v44 = vpop.f32.mrf.mxu2 }
 0x265   : > { %v2404_v48 = vadd.f32 %v2343_v44, %v8684_v38  ;;  %v4305_v44 = vpack.c.b16 %v4303_v61, %v4303_v61 }
 0x266   : > { %v2923_v23 = vpop.f32.mrf.mxu0  ;;  %v2611_v38 = vpop.f32.mrf.mxu3 }
 0x267   : > { %v8944_v47 = vadd.f32 %v2608_v8, %v2404_v48  ;;  %v2994_v1 = vadd.f32 %v2923_v23, %v8862_v32  ;;  %v7994_v23 = vld [vmem:[%s8251_s21 + $0x78] sm:$0xff] }
 0x268   : > { %v3190_v11 = vpop.f32.mrf.mxu1 }
 0x269   : > { %6973 = vmatmul.msk.bf16.gmra.mxu2 %vm761_vm1, %v7945_v57  ;;  %7212 = vmatmul.msk.bf16.gmra.mxu0 %vm761_vm1, %v7976_v15  ;;  %v8951_v41 = vadd.f32 %v3188_v0, %v2994_v1  ;;  %v4356_v15 = vsel %vm576_vm0, %v4305_v44, 0 }
 0x26a   : > { %4364 = vmatpush.bf16.msrb.mxu1 %v4356_v15 }
 0x26c   : > { %v2346_v22 = vpop.f32.mrf.mxu2 }
 0x26d   : > { %v2405_v34 = vadd.f32 %v2346_v22, %v8698_v10  ;;  %v7978_v22 = vld [vmem:[%s8245_s18 + $0x78] sm:$0xff] }
 0x26e   : > { %v2925_v5 = vpop.f32.mrf.mxu0  ;;  %v2613_v59 = vpop.f32.mrf.mxu3 }
 0x26f   : > { %v8954_v32 = vadd.f32 %v2611_v38, %v2405_v34  ;;  %v2995_v13 = vadd.f32 %v2925_v5, %v8871_v28  ;;  %v8068_v28 = vld [vmem:[%s10252_s4 + $0x68] sm:$0xff]  ;;  %v8001_v34 = vld [vmem:[%s8324_s16 + $0x18] sm:$0xff] }
 0x270   : > { %v3193_v6 = vpop.f32.mrf.mxu1  ;;  %4099 = vmatpush.bf16.msrb.mxu0 %v8068_v28  ;;  %v8018_v28 = vld [vmem:[%s8318_s12 + $0x20] sm:$0xff] }
 0x271   : > { %v8957_v27 = vadd.f32 %v3190_v11, %v2995_v13 }
 0x273   : > { %7300 = vmatmul.msk.bf16.gmra.mxu1 %vm527_vm2, %v7993_v43  ;;  %7531 = vmatmul.msk.bf16.vlgmr.msrb.gmra.mxu3 %vm527_vm2, %v8016_v46 }
 0x274   : > { %v2348_v14 = vpop.f32.mrf.mxu2 }
 0x275   : > { %v2406_v56 = vadd.f32 %v2348_v14, %v8704_v21 }
 0x276   : > { %v2928_v39 = vpop.f32.mrf.mxu0  ;;  %v2616_v2 = vpop.f32.mrf.mxu3 }
 0x277   : > { %v8964_v36 = vadd.f32 %v2613_v59, %v2406_v56  ;;  %v2996_v10 = vadd.f32 %v2928_v39, %v8881_v19  ;;  %v8069_v39 = vld [vmem:[%s10253_s5 + $0x48] sm:$0xff] }
 0x278   : > { %v3195_v12 = vpop.f32.mrf.mxu1  ;;  %4365 = vmatpush.bf16.msrb.mxu1 %v8069_v39 }
 0x279   : > { %7213 = vmatmul.msk.bf16.gmra.mxu0 %vm761_vm1, %v7977_v7  ;;  %7444 = vmatmul.msk.bf16.vlgmr.msrb.gmra.mxu2 %vm761_vm1, %v8000_v40  ;;  %v8974_v21 = vadd.f32 %v3193_v6, %v2996_v10  ;;  %v7995_v10 = vld [vmem:[%s8251_s21 + $0x80] sm:$0xff] }
 0x27c   : > { %v2351_v19 = vpop.f32.mrf.mxu2 }
 0x27d   : > { %v2407_v25 = vadd.f32 %v2351_v19, %v8718_v37  ;;  %v8017_v37 = vld [vmem:[%s8318_s12 + $0x18] sm:$0xff] }
 0x27e   : > { %v2930_v8 = vpop.f32.mrf.mxu0  ;;  %v2618_v57 = vpop.f32.mrf.mxu3 }
 0x27f   : > { %v8980_v29 = vadd.f32 %v2616_v2, %v2407_v25  ;;  %v2997_v0 = vadd.f32 %v2930_v8, %v8891_v62  ;;  %v8002_v25 = vld [vmem:[%s8324_s16 + $0x20] sm:$0xff] }
 0x280   : > { %v3198_v1 = vpop.f32.mrf.mxu1 }
 0x281   : > { %v8983_v48 = vadd.f32 %v3195_v12, %v2997_v0 }
 0x283   : > { %7301 = vmatmul.msk.bf16.gmra.mxu1 %vm527_vm2, %v7994_v23  ;;  %7532 = vmatmul.msk.bf16.gmra.mxu3 %vm527_vm2, %v8017_v37 }
 0x284   : > { %v2353_v38 = vpop.f32.mrf.mxu2 }
 0x285   : > { %v2408_v11 = vadd.f32 %v2353_v38, %v8724_v18 }
 0x286   : > { %v2933_v5 = vpop.f32.mrf.mxu0  ;;  %v2621_v18 = vpop.f32.mrf.mxu3 }
 0x287   : > { %v8991_v13 = vadd.f32 %v2618_v57, %v2408_v11  ;;  %v2998_v62 = vadd.f32 %v2933_v5, %v8901_v50  ;;  %v7996_v11 = vld [vmem:[%s8251_s21 + $0x88] sm:$0xff] }
 0x288   : > { %v3200_v43 = vpop.f32.mrf.mxu1 }
 0x289   : > { %7214 = vmatmul.msk.bf16.gmra.mxu0 %vm761_vm1, %v7978_v22  ;;  %7445 = vmatmul.msk.bf16.gmra.mxu2 %vm761_vm1, %v8001_v34  ;;  %v8998_v59 = vadd.f32 %v3198_v1, %v2998_v62  ;;  %v8019_v22 = vld [vmem:[%s8318_s12 + $0x28] sm:$0xff] }
 0x28c   : > { %v2356_v46 = vpop.f32.mrf.mxu2 }
 0x28d   : > { %v2409_v6 = vadd.f32 %v2356_v46, %v8738_v20  ;;  %v7979_v20 = vld [vmem:[%s8245_s18 + $0x80] sm:$0xff] }
 0x28e   : > { %v2935_v50 = vpop.f32.mrf.mxu0  ;;  %v2623_v40 = vpop.f32.mrf.mxu3 }
 0x28f   : > { %v9001_v14 = vadd.f32 %v2621_v18, %v2409_v6  ;;  %v2999_v56 = vadd.f32 %v2935_v50, %v8921_v26  ;;  %v8067_v26 = vld [vmem:[%s10252_s4 + $0x60] sm:$0xff]  ;;  %v7980_v18 = vld [vmem:[%s8245_s18 + $0x88] sm:$0xff] }
 0x290   : > { %v3203_v2 = vpop.f32.mrf.mxu1  ;;  %4100 = vmatpush.bf16.msrb.mxu0 %v8067_v26  ;;  %v8004_v26 = vld [vmem:[%s8324_s16 + $0x30] sm:$0xff] }
 0x291   : > { %v9004_v7 = vadd.f32 %v3200_v43, %v2999_v56  ;;  %v8003_v43 = vld [vmem:[%s8324_s16 + $0x28] sm:$0xff] }
 0x293   : > { %7302 = vmatmul.msk.bf16.gmra.mxu1 %vm527_vm2, %v7995_v10  ;;  %7533 = vmatmul.msk.bf16.gmra.mxu3 %vm527_vm2, %v8018_v28 }
 0x294   : > { %v2358_v12 = vpop.f32.mrf.mxu2 }
 0x295   : > { %v2410_v19 = vadd.f32 %v2358_v12, %v8744_v45  ;;  %v8051_v12 = vld [vmem:[%s8251_s21 + $0x18] sm:$0xff] }
 0x296   : > { %v2938_v42 = vpop.f32.mrf.mxu0  ;;  %v2626_v0 = vpop.f32.mrf.mxu3 }
 0x297   : > { %v9017_v8 = vadd.f32 %v2623_v40, %v2410_v19  ;;  %v3000_v61 = vadd.f32 %v2938_v42, %v8934_v35  ;;  %v8020_v19 = vld [vmem:[%s8318_s12 + $0x30] sm:$0xff] }
 0x298   : > { %v3205_v44 = vpop.f32.mrf.mxu1 }
 0x299   : > { %7215 = vmatmul.msk.bf16.gmra.mxu0 %vm761_vm1, %v7979_v20  ;;  %7446 = vmatmul.msk.bf16.gmra.mxu2 %vm761_vm1, %v8002_v25  ;;  %v9024_v45 = vadd.f32 %v3203_v2, %v3000_v61  ;;  %v8035_v61 = vld [vmem:[%s8245_s18 + $0x18] sm:$0xff] }
 0x29c   : > { %v2361_v57 = vpop.f32.mrf.mxu2 }
 0x29d   : > { %v2411_v35 = vadd.f32 %v2361_v57, %v8758_v60 }
 0x29e   : > { %v2940_v15 = vpop.f32.mrf.mxu0  ;;  %v2628_v38 = vpop.f32.mrf.mxu3 }
 0x29f   : > { %v9027_v23 = vadd.f32 %v2626_v0, %v2411_v35  ;;  %v3001_v37 = vadd.f32 %v2940_v15, %v8944_v47 }
 0x2a0   : > { %v3208_v34 = vpop.f32.mrf.mxu1 }
 0x2a1   : > { %v9030_v1 = vadd.f32 %v3205_v44, %v3001_v37 }
 0x2a3   : > { %7303 = vmatmul.msk.bf16.gmra.mxu1 %vm527_vm2, %v7996_v11  ;;  %7534 = vmatmul.msk.bf16.gmra.mxu3 %vm527_vm2, %v8019_v22 }
 0x2a4   : > { %v2363_v5 = vpop.f32.mrf.mxu2 }
 0x2a5   : > { %v2412_v62 = vadd.f32 %v2363_v5, %v8764_v16  ;;  %v8021_v5 = vld [vmem:[%s8318_s12 + $0x38] sm:$0xff] }
 0x2a6   : > { %v2943_v46 = vpop.f32.mrf.mxu0  ;;  %v2631_v16 = vpop.f32.mrf.mxu3 }
 0x2a7   : > { %v9037_v6 = vadd.f32 %v2628_v38, %v2412_v62  ;;  %v3002_v60 = vadd.f32 %v2943_v46, %v8954_v32  ;;  %v8005_v46 = vld [vmem:[%s8324_s16 + $0x38] sm:$0xff] }
 0x2a8   : > { %v3210_v50 = vpop.f32.mrf.mxu1 }
 0x2a9   : > { %7216 = vmatmul.msk.bf16.gmra.mxu0 %vm761_vm1, %v7980_v18  ;;  %7447 = vmatmul.msk.bf16.gmra.mxu2 %vm761_vm1, %v8003_v43  ;;  %v9044_v47 = vadd.f32 %v3208_v34, %v3002_v60  ;;  %v8052_v34 = vld [vmem:[%s8251_s21 + $0x20] sm:$0xff] }
 0x2aa   : > { %v8036_v60 = vld [vmem:[%s8245_s18 + $0x20] sm:$0xff] }
 0x2ac   : > { %v2366_v56 = vpop.f32.mrf.mxu2 }
 0x2ad   : > { %v2413_v40 = vadd.f32 %v2366_v56, %v8778_v17 }
 0x2ae   : > { %v2945_v39 = vpop.f32.mrf.mxu0  ;;  %v2633_v2 = vpop.f32.mrf.mxu3 }
 0x2af   : > { %v9047_v32 = vadd.f32 %v2631_v16, %v2413_v40  ;;  %v3003_v10 = vadd.f32 %v2945_v39, %v8964_v36 }
 0x2b0   : > { %v3213_v20 = vpop.f32.mrf.mxu1 }
 0x2b1   : > { %v9050_v28 = vadd.f32 %v3210_v50, %v3003_v10 }
 0x2b3   : > { %7774 = vmatmul.msk.bf16.vlgmr.msrb.gmra.mxu1 %vm527_vm2, %v8051_v12  ;;  %7535 = vmatmul.msk.bf16.gmra.mxu3 %vm527_vm2, %v8020_v19 }
 0x2b4   : > { %v2368_v25 = vpop.f32.mrf.mxu2 }
 0x2b5   : > { %v2414_v42 = vadd.f32 %v2368_v25, %v8784_v54  ;;  %v8022_v25 = vld [vmem:[%s8318_s12 + $0x40] sm:$0xff] }
 0x2b6   : > { %v2948_v0 = vpop.f32.mrf.mxu0  ;;  %v2636_v54 = vpop.f32.mrf.mxu3 }
 0x2b7   : > { %v9057_v44 = vadd.f32 %v2633_v2, %v2414_v42  ;;  %v3004_v17 = vadd.f32 %v2948_v0, %v8980_v29  ;;  %v8006_v0 = vld [vmem:[%s8324_s16 + $0x40] sm:$0xff] }
 0x2b8   : > { %v3215_v57 = vpop.f32.mrf.mxu1 }
 0x2b9   : > { %7448 = vmatmul.msk.bf16.gmra.mxu2 %vm761_vm1, %v8004_v26  ;;  %7687 = vmatmul.msk.bf16.vlgmr.msrb.gmra.mxu0 %vm761_vm1, %v8035_v61  ;;  %v9064_v36 = vadd.f32 %v3213_v20, %v3004_v17  ;;  %v8053_v20 = vld [vmem:[%s8251_s21 + $0x28] sm:$0xff] }
 0x2ba   : > { %v8037_v17 = vld [vmem:[%s8245_s18 + $0x28] sm:$0xff] }
 0x2bc   : > { %v2371_v35 = vpop.f32.mrf.mxu2 }
 0x2bd   : > { %v2415_v15 = vadd.f32 %v2371_v35, %v8798_v58 }
 0x2be   : > { %v2950_v37 = vpop.f32.mrf.mxu0  ;;  %v2638_v22 = vpop.f32.mrf.mxu3 }
 0x2bf   : > { %v9067_v29 = vadd.f32 %v2636_v54, %v2415_v15  ;;  %v3005_v38 = vadd.f32 %v2950_v37, %v8991_v13 }
 0x2c0   : > { %v3218_v62 = vpop.f32.mrf.mxu1 }
 0x2c1   : > { %v9070_v11 = vadd.f32 %v3215_v57, %v3005_v38 }
 0x2c3   : > { %7775 = vmatmul.msk.bf16.gmra.mxu1 %vm527_vm2, %v8052_v34  ;;  %7536 = vmatmul.msk.bf16.gmra.mxu3 %vm527_vm2, %v8021_v5 }
 0x2c4   : > { %v2373_v18 = vpop.f32.mrf.mxu2 }
 0x2c5   : > { %v2416_v43 = vadd.f32 %v2373_v18, %v8804_v33  ;;  %v8023_v18 = vld [vmem:[%s8318_s12 + $0x48] sm:$0xff] }
 0x2c6   : > { %v2953_v16 = vpop.f32.mrf.mxu0  ;;  %v2641_v33 = vpop.f32.mrf.mxu3 }
 0x2c7   : > { %v9077_v50 = vadd.f32 %v2638_v22, %v2416_v43  ;;  %v3006_v58 = vadd.f32 %v2953_v16, %v9001_v14  ;;  %v8007_v16 = vld [vmem:[%s8324_s16 + $0x48] sm:$0xff] }
 0x2c8   : > { %v3220_v56 = vpop.f32.mrf.mxu1 }
 0x2c9   : > { %7449 = vmatmul.msk.bf16.gmra.mxu2 %vm761_vm1, %v8005_v46  ;;  %7688 = vmatmul.msk.bf16.gmra.mxu0 %vm761_vm1, %v8036_v60  ;;  %v9084_v13 = vadd.f32 %v3218_v62, %v3006_v58  ;;  %v8054_v62 = vld [vmem:[%s8251_s21 + $0x30] sm:$0xff] }
 0x2ca   : > { %v8038_v58 = vld [vmem:[%s8245_s18 + $0x30] sm:$0xff] }
 0x2cc   : > { %v2376_v40 = vpop.f32.mrf.mxu2 }
 0x2cd   : > { %v2417_v39 = vadd.f32 %v2376_v40, %v8818_v9 }
 0x2ce   : > { %v2955_v10 = vpop.f32.mrf.mxu0  ;;  %v2643_v19 = vpop.f32.mrf.mxu3 }
 0x2cf   : > { %v9087_v14 = vadd.f32 %v2641_v33, %v2417_v39  ;;  %v3007_v2 = vadd.f32 %v2955_v10, %v9017_v8 }
 0x2d0   : > { %v3223_v42 = vpop.f32.mrf.mxu1 }
 0x2d1   : > { %v9090_v12 = vadd.f32 %v3220_v56, %v3007_v2 }
 0x2d3   : > { %7776 = vmatmul.msk.bf16.gmra.mxu1 %vm527_vm2, %v8053_v20  ;;  %7537 = vmatmul.msk.bf16.gmra.mxu3 %vm527_vm2, %v8022_v25 }
 0x2d4   : > { %v2378_v26 = vpop.f32.mrf.mxu2 }
 0x2d5   : > { %v2418_v61 = vadd.f32 %v2378_v26, %v8824_v52  ;;  %v8024_v26 = vld [vmem:[%s8318_s12 + $0x50] sm:$0xff] }
 0x2d6   : > { %v2958_v54 = vpop.f32.mrf.mxu0  ;;  %v2646_v52 = vpop.f32.mrf.mxu3 }
 0x2d7   : > { %v9097_v57 = vadd.f32 %v2643_v19, %v2418_v61  ;;  %v3008_v9 = vadd.f32 %v2958_v54, %v9027_v23  ;;  %v8008_v54 = vld [vmem:[%s8324_s16 + $0x50] sm:$0xff] }
 0x2d8   : > { %v3225_v35 = vpop.f32.mrf.mxu1 }
 0x2d9   : > { %7450 = vmatmul.msk.bf16.gmra.mxu2 %vm761_vm1, %v8006_v0  ;;  %7689 = vmatmul.msk.bf16.gmra.mxu0 %vm761_vm1, %v8037_v17  ;;  %v9104_v8 = vadd.f32 %v3223_v42, %v3008_v9  ;;  %v8055_v42 = vld [vmem:[%s8251_s21 + $0x38] sm:$0xff] }
 0x2da   : > { %v8039_v9 = vld [vmem:[%s8245_s18 + $0x38] sm:$0xff] }
 0x2dc   : > { %v2381_v15 = vpop.f32.mrf.mxu2 }
 0x2dd   : > { %v2419_v37 = vadd.f32 %v2381_v15, %v8838_v3 }
 0x2de   : > { %v2960_v38 = vpop.f32.mrf.mxu0  ;;  %v2648_v5 = vpop.f32.mrf.mxu3 }
 0x2df   : > { %v9107_v23 = vadd.f32 %v2646_v52, %v2419_v37  ;;  %v3009_v22 = vadd.f32 %v2960_v38, %v9037_v6 }
 0x2e0   : > { %v3228_v43 = vpop.f32.mrf.mxu1 }
 0x2e1   : > { %v9110_v34 = vadd.f32 %v3225_v35, %v3009_v22 }
 0x2e3   : > { %7777 = vmatmul.msk.bf16.gmra.mxu1 %vm527_vm2, %v8054_v62  ;;  %7538 = vmatmul.msk.bf16.gmra.mxu3 %vm527_vm2, %v8023_v18  ;;  %v8056_v62 = vld [vmem:[%s8251_s21 + $0x40] sm:$0xff]  ;;  %v8025_v18 = vld [vmem:[%s8318_s12 + $0x58] sm:$0xff] }
 0x2e4   : > { %v2383_v46 = vpop.f32.mrf.mxu2 }
 0x2e5   : > { %v2420_v60 = vadd.f32 %v2383_v46, %v8844_v49 }
 0x2e6   : > { %v2963_v33 = vpop.f32.mrf.mxu0  ;;  %v2651_v49 = vpop.f32.mrf.mxu3 }
 0x2e7   : > { %v9117_v56 = vadd.f32 %v2648_v5, %v2420_v60  ;;  %v3010_v3 = vadd.f32 %v2963_v33, %v9047_v32  ;;  %v8009_v60 = vld [vmem:[%s8324_s16 + $0x58] sm:$0xff] }
 0x2e8   : > { %v3230_v40 = vpop.f32.mrf.mxu1 }
 0x2e9   : > { %7451 = vmatmul.msk.bf16.gmra.mxu2 %vm761_vm1, %v8007_v16  ;;  %7690 = vmatmul.msk.bf16.gmra.mxu0 %vm761_vm1, %v8038_v58  ;;  %v9124_v6 = vadd.f32 %v3228_v43, %v3010_v3  ;;  %v8040_v16 = vld [vmem:[%s8245_s18 + $0x40] sm:$0xff] }
 0x2ec   : > { %v2386_v39 = vpop.f32.mrf.mxu2 }
 0x2ed   : > { %v2421_v10 = vadd.f32 %v2386_v39, %v8858_v30 }
 0x2ee   : > { %v2965_v2 = vpop.f32.mrf.mxu0  ;;  %v2653_v25 = vpop.f32.mrf.mxu3 }
 0x2ef   : > { %v9127_v32 = vadd.f32 %v2651_v49, %v2421_v10  ;;  %v3011_v19 = vadd.f32 %v2965_v2, %v9057_v44 }
 0x2f0   : > { %v3233_v61 = vpop.f32.mrf.mxu1 }
 0x2f1   : > { %v9130_v20 = vadd.f32 %v3230_v40, %v3011_v19  ;;  %v8057_v19 = vld [vmem:[%s8251_s21 + $0x48] sm:$0xff] }
 0x2f3   : > { %7778 = vmatmul.msk.bf16.gmra.mxu1 %vm527_vm2, %v8055_v42  ;;  %7539 = vmatmul.msk.bf16.gmra.mxu3 %vm527_vm2, %v8024_v26 }
 0x2f4   : > { %v2388_v0 = vpop.f32.mrf.mxu2 }
 0x2f5   : > { %v2422_v17 = vadd.f32 %v2388_v0, %v8864_v4  ;;  %v8041_v0 = vld [vmem:[%s8245_s18 + $0x48] sm:$0xff] }
 0x2f6   : > { %v2968_v52 = vpop.f32.mrf.mxu0  ;;  %v9146_v44 = vpop.f32.mrf.mxu3 }
 0x2f7   : > { %v9137_v30 = vadd.f32 %v2653_v25, %v2422_v17  ;;  %v3012_v35 = vadd.f32 %v2968_v52, %v9067_v29  ;;  %v8026_v25 = vld [vmem:[%s8318_s12 + $0x60] sm:$0xff] }
 0x2f8   : > { %v3235_v15 = vpop.f32.mrf.mxu1 }
 0x2f9   : > { %7452 = vmatmul.msk.bf16.gmra.mxu2 %vm761_vm1, %v8008_v54  ;;  %7691 = vmatmul.msk.bf16.gmra.mxu0 %vm761_vm1, %v8039_v9  ;;  %v9144_v4 = vadd.f32 %v3233_v61, %v3012_v35  ;;  %v8010_v61 = vld [vmem:[%s8324_s16 + $0x60] sm:$0xff] }
 0x2fc   : > { %v9148_v37 = vpop.f32.mrf.mxu2 }
 0x2fe   : > { %v2970_v38 = vpop.f32.mrf.mxu0  ;;  %v9153_v5 = vpop.f32.mrf.mxu3 }
 0x2ff   : > { %v3013_v29 = vadd.f32 %v2970_v38, %v9077_v50 }
 0x300   : > { %v3238_v43 = vpop.f32.mrf.mxu1 }
 0x301   : > { %v9151_v22 = vadd.f32 %v3235_v15, %v3013_v29 }
 0x303   : > { %7779 = vmatmul.msk.bf16.gmra.mxu1 %vm527_vm2, %v8056_v62  ;;  %7540 = vmatmul.msk.bf16.gmra.mxu3 %vm527_vm2, %v8025_v18  ;;  %v8058_v18 = vld [vmem:[%s8251_s21 + $0x50] sm:$0xff] }
 0x304   : > { %v9157_v46 = vpop.f32.mrf.mxu2 }
 0x306   : > { %v2973_v58 = vpop.f32.mrf.mxu0  ;;  %v9168_v3 = vpop.f32.mrf.mxu3 }
 0x307   : > { %v3014_v33 = vadd.f32 %v2973_v58, %v9087_v14  ;;  %v8042_v58 = vld [vmem:[%s8245_s18 + $0x50] sm:$0xff] }
 0x308   : > { %v3240_v49 = vpop.f32.mrf.mxu1 }
 0x309   : > { %7453 = vmatmul.msk.bf16.gmra.mxu2 %vm761_vm1, %v8009_v60  ;;  %7692 = vmatmul.msk.bf16.gmra.mxu0 %vm761_vm1, %v8040_v16  ;;  %v9166_v50 = vadd.f32 %v3238_v43, %v3014_v33  ;;  %v8027_v43 = vld [vmem:[%s8318_s12 + $0x68] sm:$0xff] }
 0x30c   : > { %v9170_v40 = vpop.f32.mrf.mxu2 }
 0x30e   : > { %v2975_v39 = vpop.f32.mrf.mxu0  ;;  %v9175_v2 = vpop.f32.mrf.mxu3 }
 0x30f   : > { %v3015_v14 = vadd.f32 %v2975_v39, %v9097_v57 }
 0x310   : > { %v3243_v42 = vpop.f32.mrf.mxu1 }
 0x311   : > { %v9173_v10 = vadd.f32 %v3240_v49, %v3015_v14 }
 0x313   : > { %10257 = vst [vmem:[#allocation3_spill] sm:$0xff] %v9173_v10  ;;  %7780 = vmatmul.msk.bf16.gmra.mxu1 %vm527_vm2, %v8057_v19  ;;  %7541 = vmatmul.msk.bf16.gmra.mxu3 %vm527_vm2, %v8026_v25 }
 0x314   : > { %v9179_v26 = vpop.f32.mrf.mxu2 }
 0x316   : > { %v2978_v17 = vpop.f32.mrf.mxu0  ;;  %v9190_v9 = vpop.f32.mrf.mxu3 }
 0x317   : > { %v3016_v54 = vadd.f32 %v2978_v17, %v9107_v23  ;;  %v8169_v23 = vmov 0  }
 0x318   : > { %v3245_v52 = vpop.f32.mrf.mxu1  ;;  %4550 = vst [vmem:[#allocation2 + $0xc] sm:$0xf] %v8169_v23 }
 0x319   : > { %7454 = vmatmul.msk.bf16.gmra.mxu2 %vm761_vm1, %v8010_v61  ;;  %7693 = vmatmul.msk.bf16.gmra.mxu0 %vm761_vm1, %v8041_v0  ;;  %v9188_v57 = vadd.f32 %v3243_v42, %v3016_v54  ;;  %4547 = vst [vmem:[#allocation2] sm:$0xf] %v8169_v23  ;;  %v3585_v61 = vadd.f32 %v9148_v37, %v8878_v51  ;;  %v8028_v54 = vld [vmem:[%s8318_s12 + $0x70] sm:$0xff]  ;;  %v8043_v37 = vld [vmem:[%s8245_s18 + $0x58] sm:$0xff] }
 0x31a   : > { %4548 = vst [vmem:[#allocation2 + $0x4] sm:$0xf] %v8169_v23  ;;  %v8012_v51 = vld [vmem:[%s8324_s16 + $0x70] sm:$0xff] }
 0x31b   : > { %10258 = vst [vmem:[#allocation4_spill] sm:$0xff] %v9188_v57 }
 0x31c   : > { %v9192_v35 = vpop.f32.mrf.mxu2  ;;  %4549 = vst [vmem:[#allocation2 + $0x8] sm:$0x1] %v8169_v23 }
 0x31d   : > { %4551 = vst [vmem:[#allocation2 + $0x10] sm:$0xf] %v8169_v23 }
 0x31e   : > { %v2980_v15 = vpop.f32.mrf.mxu0  ;;  %v9201_v62 = vpop.f32.mrf.mxu3  ;;  %4552 = vst [vmem:[#allocation2 + $0x14] sm:$0x1] %v8169_v23 }
 0x31f   : > { %v3017_v38 = vadd.f32 %v2980_v15, %v9117_v56  ;;  %4553 = vst [vmem:[#allocation2 + $0x18] sm:$0xf] %v8169_v23  ;;  %v8011_v56 = vld [vmem:[%s8324_s16 + $0x68] sm:$0xff] }
 0x320   : > { %v3248_v60 = vpop.f32.mrf.mxu1  ;;  %4554 = vst [vmem:[#allocation2 + $0x1c] sm:$0xf] %v8169_v23 }
 0x321   : > { %v9199_v29 = vadd.f32 %v3245_v52, %v3017_v38  ;;  %4555 = vst [vmem:[#allocation2 + $0x20] sm:$0x1] %v8169_v23  ;;  %v3850_v38 = vadd.f32 %v9146_v44, %v3585_v61  ;;  %v3586_v44 = vadd.f32 %v9157_v46, %v8884_v63 }
 0x322   : > { %4556 = vst [vmem:[#allocation2 + $0x24] sm:$0xf] %v8169_v23 }
 0x323   : > { %10259 = vst [vmem:[#allocation5_spill] sm:$0xff] %v9199_v29  ;;  %7781 = vmatmul.msk.bf16.gmra.mxu1 %vm527_vm2, %v8058_v18  ;;  %7542 = vmatmul.msk.bf16.gmra.mxu3 %vm527_vm2, %v8027_v43  ;;  %v3851_v63 = vadd.f32 %v9153_v5, %v3586_v44  ;;  %v3587_v5 = vadd.f32 %v9170_v40, %v8898_v24  ;;  %v4960_v24 = vld [vmem:[#allocation2 + $0xc] sm:$0xf]  ;;  %v8029_v44 = vld [vmem:[%s8318_s12 + $0x78] sm:$0xff] }
 0x324   : > { %v9207_v16 = vpop.f32.mrf.mxu2  ;;  %4557 = vst [vmem:[#allocation2 + $0x28] sm:$0xf] %v8169_v23 }
 0x325   : > { %4558 = vst [vmem:[#allocation2 + $0x2c] sm:$0x1] %v8169_v23 }
 0x326   : > { %v2983_v33 = vpop.f32.mrf.mxu0  ;;  %v9224_v14 = vpop.f32.mrf.mxu3  ;;  %4559 = vst [vmem:[#allocation2 + $0x30] sm:$0xf] %v8169_v23 }
 0x327   : > { %v3018_v49 = vadd.f32 %v2983_v33, %v9127_v32  ;;  %4560 = vst [vmem:[#allocation2 + $0x34] sm:$0xf] %v8169_v23 }
 0x328   : > { %v3250_v32 = vpop.f32.mrf.mxu1  ;;  %4561 = vst [vmem:[#allocation2 + $0x38] sm:$0x1] %v8169_v23 }
 0x329   : > { %7455 = vmatmul.msk.bf16.gmra.mxu2 %vm761_vm1, %v8011_v56  ;;  %7694 = vmatmul.msk.bf16.gmra.mxu0 %vm761_vm1, %v8042_v58  ;;  %v9222_v39 = vadd.f32 %v3248_v60, %v3018_v49  ;;  %4562 = vst [vmem:[#allocation2 + $0x3c] sm:$0xf] %v8169_v23  ;;  %v9258_v60 = vld [vmem:[%s10254_s6] ss:$0 sm:$0xff] }
 0x32a   : > { %4563 = vst [vmem:[#allocation2 + $0x40] sm:$0xf] %v8169_v23 }
 0x32b   : > { %10260 = vst [vmem:[#allocation6_spill] sm:$0xff] %v9222_v39 }
 0x32c   : > { %v9228_v19 = vpop.f32.mrf.mxu2  ;;  %4564 = vst [vmem:[#allocation2 + $0x44] sm:$0x1] %v8169_v23 }
 0x32d   : > { %4565 = vst [vmem:[#allocation2 + $0x48] sm:$0xf] %v8169_v23 }
 0x32e   : > { %v2985_v25 = vpop.f32.mrf.mxu0  ;;  %4566 = vst [vmem:[#allocation2 + $0x4c] sm:$0xf] %v8169_v23  ;;  %v9242_v17 = vpop.f32.mrf.mxu3 }
 0x32f   : > { %v3019_v42 = vadd.f32 %v2985_v25, %v9137_v30  ;;  %4567 = vst [vmem:[#allocation2 + $0x50] sm:$0x1] %v8169_v23  ;;  %v8059_v30 = vld [vmem:[%s8251_s21 + $0x58] sm:$0xff] }
 0x330   : > { %4568 = vst [vmem:[#allocation2 + $0x54] sm:$0xf] %v8169_v23  ;;  %v4367_v52 = vpop.f32.mrf.mxu1 }
 0x331   : > { %v9239_v0 = vadd.f32 %v3250_v32, %v3019_v42  ;;  %4569 = vst [vmem:[#allocation2 + $0x58] sm:$0xf] %v8169_v23 }
 0x332   : > { %4570 = vst [vmem:[#allocation2 + $0x5c] sm:$0x1] %v8169_v23 }
 0x333   : > { %10261 = vst [vmem:[#allocation7_spill] sm:$0xff] %v9239_v0  ;;  %7782 = vmatmul.msk.bf16.gmra.mxu1 %vm527_vm2, %v8059_v30  ;;  %7543 = vmatmul.msk.bf16.gmra.mxu3 %vm527_vm2, %v8028_v54  ;;  %v8045_v0 = vld [vmem:[%s8245_s18 + $0x68] sm:$0xff] }
 0x334   : > { %v9247_v15 = vpop.f32.mrf.mxu2  ;;  %4571 = vst [vmem:[#allocation2 + $0x60] sm:$0xf] %v8169_v23 }
 0x335   : > { %4572 = vst [vmem:[#allocation2 + $0x64] sm:$0xf] %v8169_v23 }
 0x336   : > { %v4102_v18 = vpop.f32.mrf.mxu0  ;;  %4573 = vst [vmem:[#allocation2 + $0x68] sm:$0x1] %v8169_v23  ;;  %v9277_v32 = vpop.f32.mrf.mxu3 }
 0x337   : > { %v4182_v43 = vadd.f32 %v4102_v18, %v3850_v38  ;;  %4574 = vst [vmem:[#allocation2 + $0x6c] sm:$0xf] %v8169_v23 }
 0x338   : > { %4575 = vst [vmem:[#allocation2 + $0x70] sm:$0xf] %v8169_v23  ;;  %v4369_v33 = vpop.f32.mrf.mxu1 }
 0x339   : > { %v4447_v56 = vadd.f32 %v4367_v52, %v4182_v43  ;;  %7456 = vmatmul.msk.bf16.gmra.mxu2 %vm761_vm1, %v8012_v51  ;;  %7695 = vmatmul.msk.bf16.gmra.mxu0 %vm761_vm1, %v8043_v37  ;;  %4576 = vst [vmem:[#allocation2 + $0x74] sm:$0x1] %v8169_v23  ;;  %v8060_v43 = vld [vmem:[%s8251_s21 + $0x60] sm:$0xff] }
 0x33a   : > { %4577 = vst [vmem:[#allocation2 + $0x78] sm:$0xf] %v8169_v23 }
 0x33b   : > { %v4483_v58 = vadd.f32 %v9258_v60, %v4447_v56  ;;  %4578 = vst [vmem:[#allocation2 + $0x7c] sm:$0xf] %v8169_v23  ;;  %v3852_v56 = vadd.f32 %v9168_v3, %v3587_v5 }
 0x33c   : > { %v9273_v49 = vpop.f32.mrf.mxu2  ;;  %4579 = vst [vmem:[#allocation2 + $0x80] sm:$0x1] %v8169_v23 }
 0x33d   : > { %v4515_v46 = vmax.f32 %v4483_v58, 0.0  ;;  %4580 = vst [vmem:[#allocation2 + $0x84] sm:$0xf] %v8169_v23 }
 0x33e   : > { %v4104_v25 = vpop.f32.mrf.mxu0  ;;  %4581 = vst [vmem:[#allocation2 + $0x88] sm:$0xf] %v8169_v23 }
 0x33f   : > { %v4601_v42 = vpack.c.bf16 %v4515_v46, %v4515_v46  ;;  %v4183_v61 = vadd.f32 %v4104_v25, %v3851_v63  ;;  %4582 = vst [vmem:[#allocation2 + $0x8c] sm:$0x1] %v8169_v23  ;;  %v8013_v63 = vld [vmem:[%s8324_s16 + $0x78] sm:$0xff]  ;;  %v8044_v46 = vld [vmem:[%s8245_s18 + $0x60] sm:$0xff] }
 0x340   : > { %4583 = vst [vmem:[#allocation2 + $0x90] sm:$0xf] %v8169_v23  ;;  %v4372_v40 = vpop.f32.mrf.mxu1 }
 0x341   : > { %v4637_v30 = vshrl.u32 %v4601_v42, 16  ;;  %v4448_v54 = vadd.f32 %v4369_v33, %v4183_v61  ;;  %v4640_v51 = vshll.u32 %v4601_v42, 16  ;;  %4584 = vst [vmem:[#allocation2 + $0x94] sm:$0xf] %v8169_v23 }
 0x342   : > { %4585 = vst [vmem:[#allocation2 + $0x98] sm:$0x1] %v8169_v23 }
 0x343   : > { %v4639_v38 = vrot.slane %v4637_v30, 7  ;;  %v4484_v37 = vadd.f32 %v9258_v60, %v4448_v54  ;;  %4586 = vst [vmem:[#allocation2 + $0x9c] sm:$0xf] %v8169_v23  ;;  %v9306_v30 = vpop.f32.mrf.mxu3  ;;  %7783 = vmatmul.msk.bf16.gmra.mxu1 %vm527_vm2, %v8060_v43  ;;  %7544 = vmatmul.msk.bf16.gmra.mxu3 %vm527_vm2, %v8029_v44 }
 0x344   : > { %v9294_v18 = vpop.f32.mrf.mxu2  ;;  %4587 = vst [vmem:[#allocation2 + $0xa0] sm:$0xf] %v8169_v23 }
 0x345   : > { %v4642_v58 = vor.u32 %v4640_v51, %v4639_v38  ;;  %v4516_v33 = vmax.f32 %v4484_v37, 0.0  ;;  %4588 = vst [vmem:[#allocation2 + $0xa4] sm:$0x1] %v8169_v23  ;;  %v3588_v51 = vadd.f32 %v9179_v26, %v8910_v55 }
 0x346   : > { %v4107_v25 = vpop.f32.mrf.mxu0  ;;  %4589 = vst [vmem:[#allocation2 + $0xa8] sm:$0xf] %v8169_v23 }
 0x347   : > { %v4961_v42 = vsel %vm9287_vm4, %v4642_v58, %v4960_v24  ;;  %v4602_v61 = vpack.c.bf16 %v4516_v33, %v4516_v33  ;;  %v4184_v54 = vadd.f32 %v4107_v25, %v3852_v56  ;;  %4590 = vst [vmem:[#allocation2 + $0xac] sm:$0xf] %v8169_v23  ;;  %v4643_v58 = vrot.slane %v4639_v38, 4 }
 0x348   : > { %4962 = vst [vmem:[#allocation2 + $0xc] sm:$0xf] %v4961_v42  ;;  %v4374_v44 = vpop.f32.mrf.mxu1  ;;  %v3853_v33 = vadd.f32 %v9175_v2, %v3588_v51 }
 0x349   : > { %v4645_v3 = vshrl.u32 %v4602_v61, 16  ;;  %v4449_v5 = vadd.f32 %v4372_v40, %v4184_v54  ;;  %7457 = vmatmul.msk.bf16.gmra.mxu2 %vm761_vm1, %v8013_v63  ;;  %7696 = vmatmul.msk.bf16.gmra.mxu0 %vm761_vm1, %v8044_v46  ;;  %4591 = vst [vmem:[#allocation2 + $0xb0] sm:$0x1] %v8169_v23  ;;  %v4648_v24 = vshll.u32 %v4602_v61, 16  ;;  %v4966_v61 = vld [vmem:[#allocation2 + $0x14] sm:$0x1]  ;;  %v3589_v54 = vadd.f32 %v9192_v35, %v8931_v31 }
 0x34a   : > { %4592 = vst [vmem:[#allocation2 + $0xb4] sm:$0xf] %v8169_v23  ;;  %v4969_v31 = vld [vmem:[#allocation2 + $0x18] sm:$0xf] }
 0x34b   : > { %v4647_v37 = vrot.slane %v4645_v3, 7  ;;  %v4485_v43 = vadd.f32 %v9258_v60, %v4449_v5  ;;  %4593 = vst [vmem:[#allocation2 + $0xb8] sm:$0xf] %v8169_v23  ;;  %v9341_v5 = vpop.f32.mrf.mxu3 }
 0x34c   : > { %v9324_v56 = vpop.f32.mrf.mxu2  ;;  %4594 = vst [vmem:[#allocation2 + $0xbc] sm:$0x1] %v8169_v23 }
 0x34d   : > { %v4650_v55 = vor.u32 %v4648_v24, %v4647_v37  ;;  %v4517_v26 = vmax.f32 %v4485_v43, 0.0  ;;  %4595 = vst [vmem:[#allocation2 + $0xc0] sm:$0xf] %v8169_v23  ;;  %v4652_v25 = vrot.slane %v4647_v37, 4 }
 0x34e   : > { %v4109_v63 = vpop.f32.mrf.mxu0  ;;  %4596 = vst [vmem:[#allocation2 + $0xc4] sm:$0xf] %v8169_v23 }
 0x34f   : > { %v4651_v46 = vsel %vm9320_vm7, %v4643_v58, %v4650_v55  ;;  %v4603_v42 = vpack.c.bf16 %v4517_v26, %v4517_v26  ;;  %v4185_v2 = vadd.f32 %v4109_v63, %v3853_v33  ;;  %4597 = vst [vmem:[#allocation2 + $0xc8] sm:$0x1] %v8169_v23  ;;  %v4967_v37 = vsel %vm9334_vm9, %v4652_v25, %v4966_v61  ;;  %v8061_v55 = vld [vmem:[%s8251_s21 + $0x68] sm:$0xff]  ;;  %v8030_v26 = vld [vmem:[%s8318_s12 + $0x80] sm:$0xff] }
 0x350   : > { %4598 = vst [vmem:[#allocation2 + $0xcc] sm:$0xf] %v8169_v23  ;;  %v4377_v58 = vpop.f32.mrf.mxu1  ;;  %v3854_v33 = vadd.f32 %v9190_v9, %v3589_v54  ;;  %v3590_v9 = vadd.f32 %v9207_v16, %v8937_v53 }
 0x351   : > { %v4654_v3 = vshrl.u32 %v4603_v42, 16  ;;  %v4450_v51 = vadd.f32 %v4374_v44, %v4185_v2  ;;  %4599 = vst [vmem:[#allocation2 + $0xd0] sm:$0xf] %v8169_v23  ;;  %v4657_v43 = vshll.u32 %v4603_v42, 16  ;;  %v8014_v2 = vld [vmem:[%s8324_s16 + $0x80] sm:$0xff] }
 0x352   : > { %4600 = vst [vmem:[#allocation2 + $0xd4] sm:$0x1] %v8169_v23 }
 0x353   : > { %v4656_v24 = vrot.slane %v4654_v3, 7  ;;  %v4486_v35 = vadd.f32 %v9258_v60, %v4450_v51  ;;  %4963 = vst [vmem:[#allocation2 + $0x10] sm:$0xf] %v4651_v46  ;;  %7784 = vmatmul.msk.bf16.gmra.mxu1 %vm527_vm2, %v8061_v55  ;;  %7545 = vmatmul.msk.bf16.gmra.mxu3 %vm527_vm2, %v8030_v26  ;;  %v9364_v51 = vpop.f32.mrf.mxu3  ;;  %v3855_v55 = vadd.f32 %v9201_v62, %v3590_v9 }
 0x354   : > { %v9352_v63 = vpop.f32.mrf.mxu2  ;;  %4968 = vst [vmem:[#allocation2 + $0x14] sm:$0x1] %v4967_v37  ;;  %v3591_v62 = vadd.f32 %v9228_v19, %v8951_v41  ;;  %v8015_v19 = vld [vmem:[%s8324_s16 + $0x88] sm:$0xff] }
 0x355   : > { %v4659_v44 = vor.u32 %v4657_v43, %v4656_v24  ;;  %v4518_v25 = vmax.f32 %v4486_v35, 0.0 }
 0x356   : > { %v4112_v61 = vpop.f32.mrf.mxu0 }
 0x357   : > { %v4970_v23 = vsel %vm9287_vm4, %v4659_v44, %v4969_v31  ;;  %v4186_v42 = vadd.f32 %v4112_v61, %v3854_v33  ;;  %v4604_v3 = vpack.c.bf16 %v4518_v25, %v4518_v25  ;;  %v4973_v33 = vld [vmem:[#allocation2 + $0x20] sm:$0x1]  ;;  %v4660_v44 = vrot.slane %v4656_v24, 4 }
 0x358   : > { %4971 = vst [vmem:[#allocation2 + $0x18] sm:$0xf] %v4970_v23  ;;  %v4379_v35 = vpop.f32.mrf.mxu1 }
 0x359   : > { %v4451_v46 = vadd.f32 %v4377_v58, %v4186_v42  ;;  %7458 = vmatmul.msk.bf16.gmra.mxu2 %vm761_vm1, %v8014_v2  ;;  %7697 = vmatmul.msk.bf16.gmra.mxu0 %vm761_vm1, %v8045_v0  ;;  %v4662_v54 = vshrl.u32 %v4604_v3, 16  ;;  %v4665_v31 = vshll.u32 %v4604_v3, 16 }
 0x35b   : > { %v4487_v37 = vadd.f32 %v9258_v60, %v4451_v46  ;;  %v4664_v43 = vrot.slane %v4662_v54, 7  ;;  %v4976_v54 = vld [vmem:[#allocation2 + $0x24] sm:$0xf] }
 0x35c   : > { %v9368_v0 = vpop.f32.mrf.mxu2 }
 0x35d   : > { %v4519_v26 = vmax.f32 %v4487_v37, 0.0  ;;  %v4667_v25 = vor.u32 %v4665_v31, %v4664_v43  ;;  %v4669_v53 = vrot.slane %v4664_v43, 4  ;;  %v8062_v43 = vld [vmem:[%s8251_s21 + $0x70] sm:$0xff]  ;;  %v8031_v31 = vld [vmem:[%s8318_s12 + $0x88] sm:$0xff] }
 0x35e   : > { %v4114_v16 = vpop.f32.mrf.mxu0 }
 0x35f   : > { %v4605_v58 = vpack.c.bf16 %v4519_v26, %v4519_v26  ;;  %v4187_v2 = vadd.f32 %v4114_v16, %v3855_v55  ;;  %v4668_v61 = vsel %vm9320_vm7, %v4660_v44, %v4667_v25  ;;  %v4974_v23 = vsel %vm9334_vm9, %v4669_v53, %v4973_v33  ;;  %v9380_v26 = vpop.f32.mrf.mxu3  ;;  %v8046_v44 = vld [vmem:[%s8245_s18 + $0x70] sm:$0xff] }
 0x360   : > { %4972 = vst [vmem:[#allocation2 + $0x1c] sm:$0xf] %v4668_v61  ;;  %v4382_v37 = vpop.f32.mrf.mxu1  ;;  %v3856_v55 = vadd.f32 %v9224_v14, %v3591_v62  ;;  %v3592_v61 = vadd.f32 %v9247_v15, %v8957_v27 }
 0x361   : > { %v4671_v24 = vshrl.u32 %v4605_v58, 16  ;;  %v4452_v42 = vadd.f32 %v4379_v35, %v4187_v2  ;;  %4975 = vst [vmem:[#allocation2 + $0x20] sm:$0x1] %v4974_v23  ;;  %v4674_v9 = vshll.u32 %v4605_v58, 16 }
 0x363   : > { %v4673_v3 = vrot.slane %v4671_v24, 7  ;;  %v4488_v46 = vadd.f32 %v9258_v60, %v4452_v42  ;;  %7785 = vmatmul.msk.bf16.gmra.mxu1 %vm527_vm2, %v8062_v43  ;;  %7546 = vmatmul.msk.bf16.gmra.mxu3 %vm527_vm2, %v8031_v31  ;;  %v4980_v42 = vld [vmem:[#allocation2 + $0x2c] sm:$0x1] }
 0x364   : > { %v9388_v2 = vpop.f32.mrf.mxu2 }
 0x365   : > { %v4676_v33 = vor.u32 %v4674_v9, %v4673_v3  ;;  %v4520_v41 = vmax.f32 %v4488_v46, 0.0  ;;  %v4677_v46 = vrot.slane %v4673_v3, 4  ;;  %v3593_v3 = vadd.f32 %v9273_v49, %v8974_v21 }
 0x366   : > { %v4117_v25 = vpop.f32.mrf.mxu0 }
 0x367   : > { %v4977_v35 = vsel %vm9287_vm4, %v4676_v33, %v4976_v54  ;;  %v4606_v53 = vpack.c.bf16 %v4520_v41, %v4520_v41  ;;  %v4188_v16 = vadd.f32 %v4117_v25, %v3856_v55  ;;  %v3857_v55 = vadd.f32 %v9242_v17, %v3592_v61  ;;  %v9400_v15 = vpop.f32.mrf.mxu3  ;;  %v8063_v61 = vld [vmem:[%s8251_s21 + $0x78] sm:$0xff] }
 0x368   : > { %4978 = vst [vmem:[#allocation2 + $0x24] sm:$0xf] %v4977_v35  ;;  %v4384_v9 = vpop.f32.mrf.mxu1 }
 0x369   : > { %v4679_v58 = vshrl.u32 %v4606_v53, 16  ;;  %v4453_v14 = vadd.f32 %v4382_v37, %v4188_v16  ;;  %7459 = vmatmul.msk.bf16.gmra.mxu2 %vm761_vm1, %v8015_v19  ;;  %7698 = vmatmul.msk.bf16.gmra.mxu0 %vm761_vm1, %v8046_v44  ;;  %v4682_v62 = vshll.u32 %v4606_v53, 16  ;;  %v4983_v16 = vld [vmem:[#allocation2 + $0x30] sm:$0xf] }
 0x36b   : > { %v4681_v23 = vrot.slane %v4679_v58, 7  ;;  %v4489_v24 = vadd.f32 %v9258_v60, %v4453_v14 }
 0x36c   : > { %v9404_v53 = vpop.f32.mrf.mxu2 }
 0x36d   : > { %v4684_v54 = vor.u32 %v4682_v62, %v4681_v23  ;;  %v4686_v43 = vrot.slane %v4681_v23, 4  ;;  %v4521_v31 = vmax.f32 %v4489_v24, 0.0  ;;  %v3858_v23 = vadd.f32 %v9277_v32, %v3593_v3  ;;  %v8047_v24 = vld [vmem:[%s8245_s18 + $0x78] sm:$0xff] }
 0x36e   : > { %v4119_v37 = vpop.f32.mrf.mxu0 }
 0x36f   : > { %v4685_v33 = vsel %vm9320_vm7, %v4677_v46, %v4684_v54  ;;  %v4981_v27 = vsel %vm9334_vm9, %v4686_v43, %v4980_v42  ;;  %v4607_v41 = vpack.c.bf16 %v4521_v31, %v4521_v31  ;;  %v4189_v19 = vadd.f32 %v4119_v37, %v3857_v55  ;;  %v9415_v43 = vpop.f32.mrf.mxu3 }
 0x370   : > { %4979 = vst [vmem:[#allocation2 + $0x28] sm:$0xf] %v4685_v33  ;;  %v4387_v14 = vpop.f32.mrf.mxu1  ;;  %v3594_v54 = vadd.f32 %v9294_v18, %v8983_v48 }
 0x371   : > { %4982 = vst [vmem:[#allocation2 + $0x2c] sm:$0x1] %v4981_v27  ;;  %v4688_v44 = vshrl.u32 %v4607_v41, 16  ;;  %v4454_v17 = vadd.f32 %v4384_v9, %v4189_v19  ;;  %v4691_v35 = vshll.u32 %v4607_v41, 16  ;;  %v4987_v19 = vld [vmem:[#allocation2 + $0x38] sm:$0x1] }
 0x372   : > { %v3859_v41 = vadd.f32 %v9306_v30, %v3594_v54  ;;  %v3595_v30 = vadd.f32 %v9324_v56, %v8998_v59  ;;  %v4990_v56 = vld [vmem:[#allocation2 + $0x3c] sm:$0xf] }
 0x373   : > { %v4690_v25 = vrot.slane %v4688_v44, 7  ;;  %v4490_v58 = vadd.f32 %v9258_v60, %v4454_v17  ;;  %7786 = vmatmul.msk.bf16.gmra.mxu1 %vm527_vm2, %v8063_v61 }
 0x374   : > { %v9420_v3 = vpop.f32.mrf.mxu2 }
 0x375   : > { %v4693_v62 = vor.u32 %v4691_v35, %v4690_v25  ;;  %v4522_v42 = vmax.f32 %v4490_v58, 0.0  ;;  %v4694_v17 = vrot.slane %v4690_v25, 4 }
 0x376   : > { %v4122_v46 = vpop.f32.mrf.mxu0 }
 0x377   : > { %v4984_v21 = vsel %vm9287_vm4, %v4693_v62, %v4983_v16  ;;  %v4190_v49 = vadd.f32 %v4122_v46, %v3858_v23  ;;  %v4608_v9 = vpack.c.bf16 %v4522_v42, %v4522_v42  ;;  %v5076_v62 = vld [vmem:[#allocation2 + $0x8] sm:$0x1]  ;;  %v9428_v42 = vld [vmem:[#allocation2 + $0xc] sm:$0xff]   ;;  %v9430_v46 = vld [vmem:[#allocation2 + $0x14] sm:$0x1] }
 0x378   : > { %4985 = vst [vmem:[#allocation2 + $0x30] sm:$0xf] %v4984_v21  ;;  %v4389_v27 = vpop.f32.mrf.mxu1 }
 0x379   : > { %v4455_v31 = vadd.f32 %v4387_v14, %v4190_v49  ;;  %7699 = vmatmul.msk.bf16.gmra.mxu0 %vm761_vm1, %v8047_v24  ;;  %v4696_v32 = vshrl.u32 %v4608_v9, 16  ;;  %v4699_v33 = vshll.u32 %v4608_v9, 16  ;;  %v8079_v14 = vld [vmem:[#allocation2] sm:$0xff]   ;;  %v9432_v49 = vpop.f32.mrf.mxu3 }
 0x37a   : > { %v8080_v21 = vunpack.c.l.bf16 %v8079_v14  ;;  %v8081_v59 = vunpack.c.h.bf16 %v8079_v14 }
 0x37b   : > { %v4491_v55 = vadd.f32 %v9258_v60, %v4455_v31  ;;  %v4698_v37 = vrot.slane %v4696_v32, 7  ;;  %v8134_v32 = vld [vmem:[#allocation2 + $0x18] sm:$0xff]  }
 0x37d   : > { %v4523_v44 = vmax.f32 %v4491_v55, 0.0  ;;  %v4701_v35 = vor.u32 %v4699_v33, %v4698_v37  ;;  %v4703_v48 = vrot.slane %v4698_v37, 4  ;;  %v5082_v55 = vld [vmem:[#allocation2 + $0x20] sm:$0x1] }
 0x37e   : > { %v4124_v18 = vpop.f32.mrf.mxu0  ;;  %v8064_v33 = vld [vmem:[%s8251_s21 + $0x80] sm:$0xff]  ;;  %v9445_v14 = vunpack.c.l.bf16 %v5082_v55  ;;  %v3596_v55 = vadd.f32 %v9352_v63, %v9004_v7 }
 0x37f   : > { %v4609_v16 = vpack.c.bf16 %v4523_v44, %v4523_v44  ;;  %v4191_v58 = vadd.f32 %v4124_v18, %v3859_v41  ;;  %v4702_v61 = vsel %vm9320_vm7, %v4694_v17, %v4701_v35  ;;  %v4988_v23 = vsel %vm9334_vm9, %v4703_v48, %v4987_v19  ;;  %v8048_v18 = vld [vmem:[%s8245_s18 + $0x80] sm:$0xff] }
 0x380   : > { %4986 = vst [vmem:[#allocation2 + $0x34] sm:$0xf] %v4702_v61  ;;  %v4392_v37 = vpop.f32.mrf.mxu1  ;;  %v5132_v41 = vunpack.c.h.bf16 %v9428_v42  ;;  %v5130_v44 = vunpack.c.l.bf16 %v5076_v62  ;;  %v3860_v17 = vadd.f32 %v9341_v5, %v3595_v30  ;;  %v9443_v61 = vunpack.c.h.bf16 %v8134_v32 }
 0x381   : > { %v4705_v24 = vshrl.u32 %v4609_v16, 16  ;;  %v4456_v25 = vadd.f32 %v4389_v27, %v4191_v58  ;;  %4989 = vst [vmem:[#allocation2 + $0x38] sm:$0x1] %v4988_v23  ;;  %v4708_v54 = vshll.u32 %v4609_v16, 16  ;;  %v5131_v27 = vunpack.c.l.bf16 %v9428_v42  ;;  %v9473_v7 = vpop.f32.mrf.mxu3 }
 0x382   : > { %v9441_v58 = vunpack.c.l.bf16 %v8134_v32  ;;  %v5180_v62 = vmax.f32 %v8081_v59, %v5132_v41  ;;  %v10268_v30 = vunpack.c.l.bf16 %v9430_v46 }
 0x383   : > { %v4707_v9 = vrot.slane %v4705_v24, 7  ;;  %v4492_v31 = vadd.f32 %v9258_v60, %v4456_v25  ;;  %v9449_v24 = vpop.f32.mrf.mxu2  ;;  %7787 = vmatmul.msk.bf16.gmra.mxu1 %vm527_vm2, %v8064_v33  ;;  %v5179_v5 = vmax.f32 %v8080_v21, %v5131_v27 }
 0x384   : > { %v9465_v33 = vmax.f32 %v5180_v62, %v9443_v61 }
 0x385   : > { %v4710_v35 = vor.u32 %v4708_v54, %v4707_v9  ;;  %v4524_v48 = vmax.f32 %v4492_v31, 0.0  ;;  %v5181_v54 = vmax.f32 %v5130_v44, %v10268_v30 }
 0x386   : > { %v4127_v16 = vpop.f32.mrf.mxu0 }
 0x387   : > { %v4991_v23 = vsel %vm9287_vm4, %v4710_v35, %v4990_v56  ;;  %v4610_v25 = vpack.c.bf16 %v4524_v48, %v4524_v48  ;;  %v4192_v19 = vadd.f32 %v4127_v16, %v3860_v17  ;;  %v9462_v56 = vmax.f32 %v5179_v5, %v9441_v58 }
 0x388   : > { %4992 = vst [vmem:[#allocation2 + $0x3c] sm:$0xf] %v4991_v23  ;;  %v9468_v21 = vmax.f32 %v5181_v54, %v9445_v14  ;;  %v4394_v35 = vpop.f32.mrf.mxu1  ;;  %v4711_v48 = vrot.slane %v4707_v9, 4  ;;  %v3861_v23 = vadd.f32 %v9364_v51, %v3596_v55 }
 0x389   : > { %v4713_v31 = vshrl.u32 %v4610_v25, 16  ;;  %v4457_v32 = vadd.f32 %v4392_v37, %v4192_v19  ;;  %7700 = vmatmul.msk.bf16.gmra.mxu0 %vm761_vm1, %v8048_v18  ;;  %v4716_v17 = vshll.u32 %v4610_v25, 16  ;;  %v3597_v37 = vadd.f32 %v9368_v0, %v9024_v45  ;;  %v4994_v19 = vld [vmem:[#allocation2 + $0x44] sm:$0x1]  ;;  %v9518_v39 = vpop.f32.mrf.mxu3 }
 0x38a   : > { %v5519_v62 = vrot.slane %v9462_v56, 1  ;;  %v5520_v25 = vrot.slane %v9465_v33, 1  ;;  %v5522_v30 = vrot.slane %v9468_v21, 1 }
 0x38b   : > { %v4715_v59 = vrot.slane %v4713_v31, 7  ;;  %v4493_v44 = vadd.f32 %v9258_v60, %v4457_v32  ;;  %v5083_v31 = vld [vmem:[#allocation2 + $0x24] sm:$0xff]   ;;  %v3862_v51 = vadd.f32 %v9380_v26, %v3597_v37  ;;  %v3598_v32 = vadd.f32 %v9388_v2, %v9030_v1  ;;  %v9486_v55 = vpop.f32.mrf.mxu2 }
 0x38c   : > { %v9493_v37 = vunpack.c.l.bf16 %v5083_v31  ;;  %v5729_v1 = vrot.slane %v9465_v33, 2  ;;  %v4997_v2 = vld [vmem:[#allocation2 + $0x48] sm:$0xf] }
 0x38d   : > { %v4718_v63 = vor.u32 %v4716_v17, %v4715_v59  ;;  %v4720_v18 = vrot.slane %v4715_v59, 4  ;;  %v4525_v16 = vmax.f32 %v4493_v44, 0.0  ;;  %v5085_v17 = vld [vmem:[#allocation2 + $0x2c] sm:$0x1] }
 0x38e   : > { %v4129_v5 = vpop.f32.mrf.mxu0 }
 0x38f   : > { %v4719_v45 = vsel %vm9320_vm7, %v4711_v48, %v4718_v63  ;;  %v4995_v0 = vsel %vm9334_vm9, %v4720_v18, %v4994_v19  ;;  %v4611_v9 = vpack.c.bf16 %v4525_v16, %v4525_v16  ;;  %v4193_v54 = vadd.f32 %v4129_v5, %v3861_v23  ;;  %v8065_v5 = vld [vmem:[%s8251_s21 + $0x88] sm:$0xff] }
 0x390   : > { %4993 = vst [vmem:[#allocation2 + $0x40] sm:$0xf] %v4719_v45  ;;  %v5521_v19 = vsel %vm5518_vm10, %v5519_v62, %v5520_v25  ;;  %v5523_v48 = vsel %vm5518_vm10, %v5520_v25, %v5522_v30  ;;  %v5728_v63 = vrot.slane %v9462_v56, 2  ;;  %v4397_v23 = vpop.f32.mrf.mxu1  ;;  %v9500_v45 = vunpack.c.l.bf16 %v5085_v17  ;;  %v8049_v30 = vld [vmem:[%s8245_s18 + $0x88] sm:$0xff] }
 0x391   : > { %4996 = vst [vmem:[#allocation2 + $0x44] sm:$0x1] %v4995_v0  ;;  %v4722_v59 = vshrl.u32 %v4611_v9, 16  ;;  %v4458_v44 = vadd.f32 %v4394_v35, %v4193_v54  ;;  %v4725_v26 = vshll.u32 %v4611_v9, 16  ;;  %v9498_v35 = vunpack.c.h.bf16 %v5083_v31 }
 0x392   : > { %v5182_v62 = vmax.f32 %v5131_v27, %v9441_v58  ;;  %v5183_v0 = vmax.f32 %v5132_v41, %v9443_v61  ;;  %v10269_v9 = vunpack.c.l.bf16 %v9430_v46  ;;  %v5631_v31 = vmax.f32 %v9462_v56, %v5521_v19 }
 0x393   : > { %v9491_v18 = vrot.slane %v4722_v59, 7  ;;  %v4494_v16 = vadd.f32 %v9258_v60, %v4458_v44  ;;  %v3599_v59 = vadd.f32 %v9404_v53, %v9044_v47  ;;  %v5632_v27 = vmax.f32 %v9465_v33, %v5523_v48  ;;  %7788 = vmatmul.msk.bf16.gmra.mxu1 %vm527_vm2, %v8065_v5 }
 0x394   : > { %v5184_v54 = vmax.f32 %v10269_v9, %v9445_v14  ;;  %v9523_v46 = vmax.f32 %v5182_v62, %v9493_v37  ;;  %v5730_v56 = vsel %vm5727_vm11, %v5728_v63, %v5729_v1  ;;  %v9528_v47 = vmax.f32 %v5183_v0, %v9498_v35  ;;  %v9543_v62 = vpop.f32.mrf.mxu2  ;;  %v5001_v9 = vld [vmem:[#allocation2 + $0x50] sm:$0x1] }
 0x395   : > { %v4727_v25 = vor.u32 %v4725_v26, %v9491_v18  ;;  %v4526_v17 = vmax.f32 %v4494_v16, 0.0  ;;  %v5731_v26 = vrot.slane %v9468_v21, 2  ;;  %v9534_v21 = vmax.f32 %v5631_v31, %v5730_v56  ;;  %v5088_v56 = vld [vmem:[#allocation2 + $0x38] sm:$0x1] }
 0x396   : > { %v4132_v44 = vpop.f32.mrf.mxu0  ;;  %v9531_v53 = vmax.f32 %v5184_v54, %v9500_v45  ;;  %v3600_v48 = vadd.f32 %v9420_v3, %v9050_v28  ;;  %v9541_v5 = vadd.f32 %v9415_v43, %v3599_v59  ;;  %v5525_v28 = vrot.slane %v9528_v47, 1 }
 0x397   : > { %v4998_v42 = vsel %vm9287_vm4, %v4727_v25, %v4997_v2  ;;  %v4194_v41 = vadd.f32 %v4132_v44, %v3862_v51  ;;  %v4612_v19 = vpack.c.bf16 %v4526_v17, %v4526_v17  ;;  %v3863_v51 = vadd.f32 %v9400_v15, %v3598_v32  ;;  %v8135_v2 = vld [vmem:[#allocation2 + $0x30] sm:$0xff]  }
 0x398   : > { %4999 = vst [vmem:[#allocation2 + $0x48] sm:$0xf] %v4998_v42  ;;  %v5732_v16 = vsel %vm5727_vm11, %v5729_v1, %v5731_v26  ;;  %v5524_v25 = vrot.slane %v9523_v46, 1  ;;  %v4399_v32 = vpop.f32.mrf.mxu1  ;;  %v5527_v3 = vrot.slane %v9531_v53, 1  ;;  %v9551_v54 = vunpack.c.l.bf16 %v8135_v2 }
 0x399   : > { %v4459_v33 = vadd.f32 %v4397_v23, %v4194_v41  ;;  %7701 = vmatmul.msk.bf16.gmra.mxu0 %vm761_vm1, %v8049_v30  ;;  %v4730_v63 = vshrl.u32 %v4612_v19, 16  ;;  %v9547_v30 = vmax.f32 %v5632_v27, %v5732_v16  ;;  %v4733_v15 = vshll.u32 %v4612_v19, 16 }
 0x39a   : > { %v9553_v43 = vunpack.c.h.bf16 %v8135_v2  ;;  %v5872_v31 = vpack.c.bf16 %v9534_v21, %v9534_v21  ;;  %v9558_v59 = vadd.f32 %v9432_v49, %v3600_v48  ;;  %v4728_v17 = vrot.slane %v9491_v18, 4 }
 0x39b   : > { %v4495_v23 = vadd.f32 %v9258_v60, %v4459_v33  ;;  %v4732_v0 = vrot.slane %v4730_v63, 7  ;;  %v5185_v19 = vmax.f32 %v9441_v58, %v9493_v37  ;;  %v5186_v33 = vmax.f32 %v9443_v61, %v9498_v35  ;;  %v9571_v63 = vpop.f32.mrf.mxu3 }
 0x39c   : > { %v5526_v18 = vsel %vm5518_vm10, %v5524_v25, %v5525_v28  ;;  %v5528_v48 = vsel %vm5518_vm10, %v5525_v28, %v5527_v3  ;;  %v3601_v16 = vadd.f32 %v9449_v24, %v9064_v36  ;;  %v5733_v25 = vrot.slane %v9523_v46, 2 }
 0x39d   : > { %v4527_v1 = vmax.f32 %v4495_v23, 0.0  ;;  %v4735_v44 = vor.u32 %v4733_v15, %v4732_v0  ;;  %v4737_v27 = vrot.slane %v4732_v0, 4  ;;  %v9574_v58 = vmax.f32 %v5185_v19, %v9551_v54 }
 0x39e   : > { %v4134_v26 = vpop.f32.mrf.mxu0  ;;  %v9577_v61 = vmax.f32 %v5186_v33, %v9553_v43  ;;  %v9581_v23 = vunpack.c.l.bf16 %v5088_v56  ;;  %v5734_v0 = vrot.slane %v9528_v47, 2  ;;  %v5736_v3 = vrot.slane %v9531_v53, 2  ;;  %v8050_v56 = vld [vmem:[%s8245_s18 + $0x90] sm:$0xff] }
 0x39f   : > { %v4613_v42 = vpack.c.bf16 %v4527_v1, %v4527_v1  ;;  %v4195_v41 = vadd.f32 %v4134_v26, %v3863_v51  ;;  %v4736_v21 = vsel %vm9320_vm7, %v4728_v17, %v4735_v44  ;;  %v5002_v49 = vsel %vm9334_vm9, %v4737_v27, %v5001_v9  ;;  %v5004_v9 = vld [vmem:[#allocation2 + $0x54] sm:$0xf]  ;;  %v3552_v26 = vpop.f32.mrf.mxu2 }
 0x3a0   : > { %5000 = vst [vmem:[#allocation2 + $0x4c] sm:$0xf] %v4736_v21  ;;  %v4402_v1 = vpop.f32.mrf.mxu1  ;;  %v8066_v17 = vld [vmem:[%s8251_s21 + $0x90] sm:$0xff]  ;;  %v5187_v36 = vmax.f32 %v9445_v14, %v9500_v45  ;;  %v5633_v24 = vmax.f32 %v9523_v46, %v5526_v18  ;;  %v5634_v44 = vmax.f32 %v9528_v47, %v5528_v48  ;;  %v5873_v27 = vpack.c.bf16 %v9547_v30, %v9547_v30  ;;  %v5089_v48 = vld [vmem:[#allocation2 + $0x3c] sm:$0xff]  }
 0x3a1   : > { %v4739_v51 = vshrl.u32 %v4613_v42, 16  ;;  %v4460_v2 = vadd.f32 %v4399_v32, %v4195_v41  ;;  %5003 = vst [vmem:[#allocation2 + $0x50] sm:$0x1] %v5002_v49  ;;  %v4742_v32 = vshll.u32 %v4613_v42, 16  ;;  %v5529_v53 = vrot.slane %v9574_v58, 1 }
 0x3a2   : > { %v5530_v19 = vrot.slane %v9577_v61, 1  ;;  %v9601_v33 = vadd.f32 %v9473_v7, %v3601_v16  ;;  %v9604_v46 = vmax.f32 %v5187_v36, %v9581_v23  ;;  %v5735_v47 = vsel %vm5727_vm11, %v5733_v25, %v5734_v0 }
 0x3a3   : > { %v9585_v15 = vrot.slane %v4739_v51, 7  ;;  %v4496_v28 = vadd.f32 %v9258_v60, %v4460_v2  ;;  %v9607_v21 = vunpack.c.l.b16 %v5872_v31  ;;  %v5091_v51 = vld [vmem:[#allocation2 + $0x44] sm:$0x1]  ;;  %v5737_v2 = vsel %vm5727_vm11, %v5734_v0, %v5736_v3  ;;  %7789 = vmatmul.msk.bf16.gmra.mxu1 %vm527_vm2, %v8066_v17  ;;  %v3817_v17 = vpop.f32.mrf.mxu3 }
 0x3a4   : > { %v3602_v7 = vadd.f32 %v9486_v55, %v9070_v11  ;;  %v5842_v16 = vmax.f32 %v5633_v24, %v5735_v47  ;;  %v9616_v25 = vmax.f32 %v5634_v44, %v5737_v2  ;;  %v9618_v31 = vunpack.c.l.b16 %v5873_v27  ;;  %v5008_v27 = vld [vmem:[#allocation2 + $0x5c] sm:$0x1] }
 0x3a5   : > { %v4744_v42 = vor.u32 %v4742_v32, %v9585_v15  ;;  %v4528_v41 = vmax.f32 %v4496_v28, 0.0  ;;  %v5531_v0 = vsel %vm5518_vm10, %v5529_v53, %v5530_v19  ;;  %v9624_v3 = vunpack.c.l.bf16 %v5089_v48 }
 0x3a6   : > { %v4137_v14 = vpop.f32.mrf.mxu0  ;;  %v9626_v11 = vunpack.c.h.bf16 %v5089_v48  ;;  %v9628_v55 = vunpack.c.l.bf16 %v5091_v51  ;;  %v5189_v44 = vmax.f32 %v9498_v35, %v9553_v43  ;;  %v5739_v53 = vrot.slane %v9577_v61, 2 }
 0x3a7   : > { %v5005_v30 = vsel %vm9287_vm4, %v4744_v42, %v5004_v9  ;;  %v4614_v49 = vpack.c.bf16 %v4528_v41, %v4528_v41  ;;  %v4196_v18 = vadd.f32 %v4137_v14, %v9541_v5  ;;  %v5188_v5 = vmax.f32 %v9493_v37, %v9551_v54 }
 0x3a8   : > { %5006 = vst [vmem:[#allocation2 + $0x54] sm:$0xf] %v5005_v30  ;;  %v5532_v9 = vrot.slane %v9604_v46, 1  ;;  %v4404_v37 = vpop.f32.mrf.mxu1  ;;  %v5190_v42 = vmax.f32 %v9500_v45, %v9581_v23  ;;  %v5635_v41 = vmax.f32 %v9574_v58, %v5531_v0  ;;  %v4745_v14 = vrot.slane %v9585_v15, 4 }
 0x3a9   : > { %v4747_v32 = vshrl.u32 %v4614_v49, 16  ;;  %v4461_v28 = vadd.f32 %v4402_v1, %v4196_v18  ;;  %7702 = vmatmul.msk.bf16.gmra.mxu0 %vm761_vm1, %v8050_v56  ;;  %v4750_v24 = vshll.u32 %v4614_v49, 16  ;;  %v5738_v56 = vrot.slane %v9574_v58, 2  ;;  %v3555_v58 = vpop.f32.mrf.mxu2 }
 0x3aa   : > { %v9641_v48 = vmax.f32 %v5188_v5, %v9624_v3  ;;  %v9644_v35 = vmax.f32 %v5189_v44, %v9626_v11  ;;  %v9647_v45 = vmax.f32 %v5190_v42, %v9628_v55  ;;  %v5533_v51 = vsel %vm5518_vm10, %v5530_v19, %v5532_v9 }
 0x3ab   : > { %v4749_v36 = vrot.slane %v4747_v32, 7  ;;  %v4497_v1 = vadd.f32 %v9258_v60, %v4461_v28  ;;  %v5874_v28 = vpack.c.bf16 %v5842_v16, %v5842_v16  ;;  %v3603_v5 = vadd.f32 %v9543_v62, %v9084_v13 }
 0x3ac   : > { %v3604_v19 = vadd.f32 %v3552_v26, %v9090_v12  ;;  %v5534_v16 = vrot.slane %v9641_v48, 1  ;;  %v5535_v13 = vrot.slane %v9644_v35, 1  ;;  %v5537_v62 = vrot.slane %v9647_v45, 1 }
 0x3ad   : > { %v4752_v47 = vor.u32 %v4750_v24, %v4749_v36  ;;  %v4754_v30 = vrot.slane %v4749_v36, 4  ;;  %v4529_v49 = vmax.f32 %v4497_v1, 0.0  ;;  %v5740_v36 = vsel %vm5727_vm11, %v5738_v56, %v5739_v53  ;;  %v8136_v56 = vld [vmem:[#allocation2 + $0x48] sm:$0xff]  }
 0x3ae   : > { %v4139_v18 = vpop.f32.mrf.mxu0  ;;  %v5741_v24 = vrot.slane %v9604_v46, 2  ;;  %v5636_v1 = vmax.f32 %v9577_v61, %v5533_v51  ;;  %v9661_v44 = vmax.f32 %v5635_v41, %v5740_v36  ;;  %v9672_v26 = vadd.f32 %v9571_v63, %v3603_v5  ;;  %v5011_v61 = vld [vmem:[#allocation2 + $0x60] sm:$0xf] }
 0x3af   : > { %v4753_v2 = vsel %vm9320_vm7, %v4745_v14, %v4752_v47  ;;  %v5009_v15 = vsel %vm9334_vm9, %v4754_v30, %v5008_v27  ;;  %v4615_v32 = vpack.c.bf16 %v4529_v49, %v4529_v49  ;;  %v4197_v0 = vadd.f32 %v4139_v18, %v9558_v59  ;;  %v5094_v49 = vld [vmem:[#allocation2 + $0x50] sm:$0x1] }
 0x3b0   : > { %5007 = vst [vmem:[#allocation2 + $0x58] sm:$0xf] %v4753_v2  ;;  %v3867_v59 = vadd.f32 %v9518_v39, %v3602_v7  ;;  %v4407_v41 = vpop.f32.mrf.mxu1  ;;  %v5742_v14 = vsel %vm5727_vm11, %v5739_v53, %v5741_v24  ;;  %v9676_v47 = vunpack.c.l.b16 %v5874_v28  ;;  %v9678_v30 = vadd.f32 %v3817_v17, %v3604_v19  ;;  %v3820_v39 = vpop.f32.mrf.mxu3 }
 0x3b1   : > { %5010 = vst [vmem:[#allocation2 + $0x5c] sm:$0x1] %v5009_v15  ;;  %v4756_v9 = vshrl.u32 %v4615_v32, 16  ;;  %v4462_v27 = vadd.f32 %v4404_v37, %v4197_v0  ;;  %v4759_v46 = vshll.u32 %v4615_v32, 16  ;;  %v5845_v18 = vmax.f32 %v5636_v1, %v5742_v14  ;;  %v3557_v19 = vpop.f32.mrf.mxu2 }
 0x3b2   : > { %v5876_v63 = vpack.c.bf16 %v9661_v44, %v9661_v44  ;;  %v5536_v15 = vsel %vm5518_vm10, %v5534_v16, %v5535_v13  ;;  %v5538_v53 = vsel %vm5518_vm10, %v5535_v13, %v5537_v62  ;;  %v9690_v28 = vunpack.c.l.bf16 %v8136_v56 }
 0x3b3   : > { %v9667_v42 = vrot.slane %v4756_v9, 7  ;;  %v4498_v37 = vadd.f32 %v9258_v60, %v4462_v27  ;;  %v5191_v60 = vmax.f32 %v9551_v54, %v9624_v3  ;;  %v9692_v5 = vunpack.c.h.bf16 %v8136_v56  ;;  %v5015_v56 = vld [vmem:[#allocation2 + $0x68] sm:$0x1] }
 0x3b4   : > { %v9694_v36 = vunpack.c.l.bf16 %v5094_v49  ;;  %v5743_v24 = vrot.slane %v9641_v48, 2  ;;  %v5744_v54 = vrot.slane %v9644_v35, 2  ;;  %v5192_v1 = vmax.f32 %v9553_v43, %v9626_v11 }
 0x3b5   : > { %v4761_v7 = vor.u32 %v4759_v46, %v9667_v42  ;;  %v4530_v51 = vmax.f32 %v4498_v37, 0.0  ;;  %v5637_v44 = vmax.f32 %v9641_v48, %v5536_v15  ;;  %v5193_v16 = vmax.f32 %v9581_v23, %v9628_v55 }
 0x3b6   : > { %v4142_v2 = vpop.f32.mrf.mxu0  ;;  %v5638_v13 = vmax.f32 %v9644_v35, %v5538_v53  ;;  %v5877_v62 = vpack.c.bf16 %v5845_v18, %v5845_v18  ;;  %v3605_v46 = vadd.f32 %v3555_v58, %v9104_v8  ;;  %v9713_v48 = vmax.f32 %v5191_v60, %v9690_v28 }
 0x3b7   : > { %v5012_v17 = vsel %vm9287_vm4, %v4761_v7, %v5011_v61  ;;  %v4198_v32 = vadd.f32 %v4142_v2, %v9601_v33  ;;  %v4616_v0 = vpack.c.bf16 %v4530_v51, %v4530_v51  ;;  %v5746_v33 = vrot.slane %v9647_v45, 2  ;;  %v9709_v61 = vld [vmem:[%s10254_s6] ss:$0 sm:$0xff] }
 0x3b8   : > { %5013 = vst [vmem:[#allocation2 + $0x60] sm:$0xf] %v5012_v17  ;;  %v9716_v45 = vmax.f32 %v5192_v1, %v9692_v5  ;;  %v9719_v35 = vmax.f32 %v5193_v16, %v9694_v36  ;;  %v5745_v8 = vsel %vm5727_vm11, %v5743_v24, %v5744_v54  ;;  %v3606_v58 = vadd.f32 %v3557_v19, %v9110_v34  ;;  %v3822_v53 = vpop.f32.mrf.mxu3 }
 0x3b9   : > { %v4463_v9 = vadd.f32 %v4407_v41, %v4198_v32  ;;  %v4764_v27 = vshrl.u32 %v4616_v0, 16  ;;  %v4767_v23 = vshll.u32 %v4616_v0, 16  ;;  %v4409_v41 = vpop.f32.mrf.mxu1  ;;  %v5747_v7 = vsel %vm5727_vm11, %v5744_v54, %v5746_v33  ;;  %v5097_v33 = vld [vmem:[#allocation2 + $0x5c] sm:$0x1] }
 0x3ba   : > { %v9724_v49 = vmax.f32 %v5637_v44, %v5745_v8  ;;  %v4762_v18 = vrot.slane %v9667_v42, 4  ;;  %v9727_v15 = vmax.f32 %v5638_v13, %v5747_v7  ;;  %v5539_v0 = vrot.slane %v9713_v48, 1 }
 0x3bb   : > { %v4499_v43 = vadd.f32 %v9709_v61, %v4463_v9  ;;  %v4766_v37 = vrot.slane %v4764_v27, 7  ;;  %v5540_v34 = vrot.slane %v9716_v45, 1  ;;  %v5542_v42 = vrot.slane %v9719_v35, 1 }
 0x3bc   : > { %v9736_v19 = vunpack.c.l.b16 %v5876_v63  ;;  %v9738_v9 = vadd.f32 %v3820_v39, %v3605_v46  ;;  %v9740_v27 = vunpack.c.l.b16 %v5877_v62  ;;  %v9742_v16 = vadd.f32 %v3822_v53, %v3606_v58  ;;  %v3560_v63 = vpop.f32.mrf.mxu2 }
 0x3bd   : > { %v4531_v14 = vmax.f32 %v4499_v43, 0.0  ;;  %v4769_v51 = vor.u32 %v4767_v23, %v4766_v37  ;;  %v4771_v2 = vrot.slane %v4766_v37, 4  ;;  %v5194_v13 = vmax.f32 %v9624_v3, %v9690_v28 }
 0x3be   : > { %v4144_v60 = vpop.f32.mrf.mxu0  ;;  %v5541_v62 = vsel %vm5518_vm10, %v5539_v0, %v5540_v34  ;;  %v9759_v3 = vsel %vm5518_vm10, %v5540_v34, %v5542_v42  ;;  %v5749_v0 = vrot.slane %v9716_v45, 2 }
 0x3bf   : > { %v4617_v17 = vpack.c.bf16 %v4531_v14, %v4531_v14  ;;  %v4199_v32 = vadd.f32 %v4144_v60, %v3867_v59  ;;  %v4770_v24 = vsel %vm9320_vm7, %v4762_v18, %v4769_v51  ;;  %v5016_v54 = vsel %vm9334_vm9, %v4771_v2, %v5015_v56  ;;  %v5095_v59 = vld [vmem:[#allocation2 + $0x54] sm:$0xff]  }
 0x3c0   : > { %5014 = vst [vmem:[#allocation2 + $0x64] sm:$0xf] %v4770_v24  ;;  %v9752_v8 = vunpack.c.l.bf16 %v5095_v59  ;;  %v9754_v58 = vunpack.c.h.bf16 %v5095_v59  ;;  %v9756_v56 = vunpack.c.l.bf16 %v5097_v33  ;;  %v5195_v51 = vmax.f32 %v9626_v11, %v9692_v5 }
 0x3c1   : > { %v4773_v1 = vshrl.u32 %v4617_v17, 16  ;;  %v4464_v44 = vadd.f32 %v4409_v41, %v4199_v32  ;;  %5017 = vst [vmem:[#allocation2 + $0x68] sm:$0x1] %v5016_v54  ;;  %v4776_v37 = vshll.u32 %v4617_v17, 16  ;;  %v5018_v41 = vld [vmem:[#allocation2 + $0x6c] sm:$0xf]  ;;  %v4412_v18 = vpop.f32.mrf.mxu1  ;;  %v5196_v2 = vmax.f32 %v9628_v55, %v9694_v36 }
 0x3c2   : > { %v9766_v60 = vadd.f32 %v3560_v63, %v9124_v6  ;;  %v5639_v17 = vmax.f32 %v9713_v48, %v5541_v62  ;;  %v5748_v32 = vrot.slane %v9713_v48, 2  ;;  %v5640_v11 = vmax.f32 %v9716_v45, %v9759_v3 }
 0x3c3   : > { %v4775_v46 = vrot.slane %v4773_v1, 7  ;;  %v4500_v23 = vadd.f32 %v9709_v61, %v4464_v44  ;;  %v9777_v6 = vmax.f32 %v5194_v13, %v9752_v8  ;;  %v9780_v42 = vmax.f32 %v5195_v51, %v9754_v58 }
 0x3c4   : > { %v9783_v48 = vmax.f32 %v5196_v2, %v9756_v56  ;;  %v5751_v1 = vrot.slane %v9719_v35, 2  ;;  %v5197_v45 = vmax.f32 %v9690_v28, %v9752_v8 }
 0x3c5   : > { %v4778_v14 = vor.u32 %v4776_v37, %v4775_v46  ;;  %v4532_v7 = vmax.f32 %v4500_v23, 0.0  ;;  %v5198_v37 = vmax.f32 %v9692_v5, %v9754_v58  ;;  %v5199_v23 = vmax.f32 %v9694_v36, %v9756_v56 }
 0x3c6   : > { %v4147_v53 = vpop.f32.mrf.mxu0  ;;  %v5547_v5 = vrot.slane %v9783_v48, 1  ;;  %v4779_v51 = vrot.slane %v4775_v46, 4  ;;  %v5752_v39 = vsel %vm5727_vm11, %v5749_v0, %v5751_v1 }
 0x3c7   : > { %v5019_v34 = vsel %vm9287_vm4, %v4778_v14, %v5018_v41  ;;  %v4618_v24 = vpack.c.bf16 %v4532_v7, %v4532_v7  ;;  %v4200_v54 = vadd.f32 %v4147_v53, %v9672_v26  ;;  %v8137_v55 = vld [vmem:[#allocation2 + $0x60] sm:$0xff]   ;;  %v5022_v14 = vld [vmem:[#allocation2 + $0x74] sm:$0x1]  ;;  %v5544_v7 = vrot.slane %v9777_v6, 1 }
 0x3c8   : > { %5020 = vst [vmem:[#allocation2 + $0x6c] sm:$0xf] %v5019_v34  ;;  %v9786_v33 = vunpack.c.l.bf16 %v8137_v55  ;;  %v5100_v26 = vld [vmem:[#allocation2 + $0x68] sm:$0x1]  ;;  %v9790_v63 = vunpack.c.h.bf16 %v8137_v55 }
 0x3c9   : > { %v4781_v44 = vshrl.u32 %v4618_v24, 16  ;;  %v4465_v59 = vadd.f32 %v4412_v18, %v4200_v54  ;;  %v9792_v13 = vunpack.c.l.bf16 %v5100_v26  ;;  %v4784_v35 = vshll.u32 %v4618_v24, 16  ;;  %v4414_v34 = vpop.f32.mrf.mxu1  ;;  %v9814_v26 = vpop.f32.mrf.mxu3 }
 0x3ca   : > { %v9800_v3 = vmax.f32 %v5197_v45, %v9786_v33  ;;  %v9803_v28 = vmax.f32 %v5198_v37, %v9790_v63  ;;  %v5545_v18 = vrot.slane %v9780_v42, 1  ;;  %v3562_v45 = vpop.f32.mrf.mxu2 }
 0x3cb   : > { %v4783_v62 = vrot.slane %v4781_v44, 7  ;;  %v4501_v41 = vadd.f32 %v9709_v61, %v4465_v59  ;;  %v9809_v54 = vmax.f32 %v5199_v23, %v9792_v13  ;;  %v5750_v59 = vsel %vm5727_vm11, %v5748_v32, %v5749_v0 }
 0x3cc   : > { %v5549_v55 = vrot.slane %v9800_v3, 1  ;;  %v5550_v44 = vrot.slane %v9803_v28, 1  ;;  %v5753_v32 = vrot.slane %v9777_v6, 2 }
 0x3cd   : > { %v4786_v2 = vor.u32 %v4784_v35, %v4783_v62  ;;  %v4788_v36 = vrot.slane %v4783_v62, 4  ;;  %v4533_v53 = vmax.f32 %v4501_v41, 0.0  ;;  %v9820_v35 = vmax.f32 %v5639_v17, %v5750_v59 }
 0x3ce   : > { %v4149_v24 = vpop.f32.mrf.mxu0  ;;  %v9824_v41 = vsel %vm5518_vm10, %v5544_v7, %v5545_v18  ;;  %v5756_v17 = vrot.slane %v9783_v48, 2  ;;  %v5551_v7 = vsel %vm5518_vm10, %v5549_v55, %v5550_v44  ;;  %v5758_v48 = vrot.slane %v9800_v3, 2 }
 0x3cf   : > { %v4787_v46 = vsel %vm9320_vm7, %v4779_v51, %v4786_v2  ;;  %v5023_v37 = vsel %vm9334_vm9, %v4788_v36, %v5022_v14  ;;  %v4619_v62 = vpack.c.bf16 %v4533_v53, %v4533_v53  ;;  %v4201_v23 = vadd.f32 %v4149_v24, %v9678_v30 }
 0x3d0   : > { %5021 = vst [vmem:[#allocation2 + $0x70] sm:$0xf] %v4787_v46  ;;  %v9829_v51 = vsel %vm5518_vm10, %v5545_v18, %v5547_v5  ;;  %v5754_v14 = vrot.slane %v9780_v42, 2  ;;  %v9834_v2 = vadd.f32 %v3562_v45, %v9130_v20  ;;  %v5552_v36 = vrot.slane %v9809_v54, 1  ;;  %v5025_v5 = vld [vmem:[#allocation2 + $0x78] sm:$0xf] }
 0x3d1   : > { %5024 = vst [vmem:[#allocation2 + $0x74] sm:$0x1] %v5023_v37  ;;  %v4790_v43 = vshrl.u32 %v4619_v62, 16  ;;  %v4466_v30 = vadd.f32 %v4414_v34, %v4201_v23  ;;  %v4793_v0 = vshll.u32 %v4619_v62, 16  ;;  %v9842_v18 = vmax.f32 %v5640_v11, %v5752_v39 }
 0x3d2   : > { %v5759_v20 = vrot.slane %v9803_v28, 2  ;;  %v5643_v59 = vmax.f32 %v9800_v3, %v5551_v7  ;;  %v5755_v45 = vsel %vm5727_vm11, %v5753_v32, %v5754_v14  ;;  %v9853_v39 = vsel %vm5727_vm11, %v5754_v14, %v5756_v17 }
 0x3d3   : > { %v9838_v53 = vrot.slane %v4790_v43, 7  ;;  %v4502_v24 = vadd.f32 %v9709_v61, %v4466_v30  ;;  %v4417_v43 = vpop.f32.mrf.mxu1  ;;  %v5200_v37 = vmax.f32 %v9752_v8, %v9786_v33  ;;  %v5553_v62 = vsel %vm5518_vm10, %v5550_v44, %v5552_v36  ;;  %v3827_v36 = vpop.f32.mrf.mxu3 }
 0x3d4   : > { %v5761_v23 = vrot.slane %v9809_v54, 2  ;;  %v5201_v32 = vmax.f32 %v9754_v58, %v9790_v63  ;;  %v5202_v14 = vmax.f32 %v9756_v56, %v9792_v13  ;;  %v5760_v54 = vsel %vm5727_vm11, %v5758_v48, %v5759_v20 }
 0x3d5   : > { %v4795_v55 = vor.u32 %v4793_v0, %v9838_v53  ;;  %v4534_v11 = vmax.f32 %v4502_v24, 0.0 }
 0x3d6   : > { %v4152_v46 = vpop.f32.mrf.mxu0 }
 0x3d7   : > { %v5026_v30 = vsel %vm9287_vm4, %v4795_v55, %v5025_v5  ;;  %v4202_v0 = vadd.f32 %v4152_v46, %v9738_v9  ;;  %v5101_v3 = vld [vmem:[#allocation2 + $0x6c] sm:$0xff]   ;;  %v4620_v17 = vpack.c.bf16 %v4534_v11, %v4534_v11  ;;  %v5644_v9 = vmax.f32 %v9803_v28, %v5553_v62 }
 0x3d8   : > { %5027 = vst [vmem:[#allocation2 + $0x78] sm:$0xf] %v5026_v30  ;;  %v5103_v7 = vld [vmem:[#allocation2 + $0x74] sm:$0x1]  ;;  %v9866_v8 = vunpack.c.l.bf16 %v5101_v3  ;;  %v9868_v44 = vunpack.c.h.bf16 %v5101_v3  ;;  %v9874_v55 = vmax.f32 %v5643_v59, %v5760_v54  ;;  %v5762_v46 = vsel %vm5727_vm11, %v5759_v20, %v5761_v23 }
 0x3d9   : > { %v4467_v5 = vadd.f32 %v4417_v43, %v4202_v0  ;;  %v9871_v24 = vunpack.c.l.bf16 %v5103_v7  ;;  %v4798_v58 = vshrl.u32 %v4620_v17, 16  ;;  %v4796_v30 = vrot.slane %v9838_v53, 4  ;;  %v5029_v7 = vld [vmem:[#allocation2 + $0x80] sm:$0x1] }
 0x3da   : > { %v5347_v56 = vmax.f32 %v5200_v37, %v9866_v8  ;;  %v5348_v11 = vmax.f32 %v5201_v32, %v9868_v44  ;;  %v4801_v28 = vshll.u32 %v4620_v17, 16  ;;  %v5853_v43 = vmax.f32 %v5644_v9, %v5762_v46 }
 0x3db   : > { %v4503_v3 = vadd.f32 %v9709_v61, %v4467_v5  ;;  %v5349_v48 = vmax.f32 %v5202_v14, %v9871_v24  ;;  %v4800_v0 = vrot.slane %v4798_v58, 7  ;;  %v4419_v37 = vpop.f32.mrf.mxu1  ;;  %v9885_v14 = vpop.f32.mrf.mxu2  ;;  %v5204_v46 = vmax.f32 %v9790_v63, %v9868_v44 }
 0x3dc   : > { %v5554_v59 = vrot.slane %v5347_v56, 1  ;;  %v5555_v62 = vrot.slane %v5348_v11, 1  ;;  %v5763_v32 = vrot.slane %v5347_v56, 2  ;;  %v5764_v34 = vrot.slane %v5348_v11, 2 }
 0x3dd   : > { %v4535_v54 = vmax.f32 %v4503_v3, 0.0  ;;  %v5557_v12 = vrot.slane %v5349_v48, 1  ;;  %v4803_v20 = vor.u32 %v4801_v28, %v4800_v0  ;;  %v4805_v23 = vrot.slane %v4800_v0, 4 }
 0x3de   : > { %v4154_v53 = vpop.f32.mrf.mxu0  ;;  %v5556_v5 = vsel %vm5518_vm10, %v5554_v59, %v5555_v62  ;;  %v5766_v1 = vrot.slane %v5349_v48, 2  ;;  %v5765_v48 = vsel %vm5727_vm11, %v5763_v32, %v5764_v34  ;;  %v5032_v32 = vld [vmem:[#allocation2 + $0x84] sm:$0xf]  ;;  %v10271_v63 = vmax.f32 %v9780_v42, %v9829_v51 }
 0x3df   : > { %v4621_v29 = vpack.c.bf16 %v4535_v54, %v4535_v54  ;;  %v4203_v58 = vadd.f32 %v4154_v53, %v9742_v16  ;;  %v5558_v17 = vsel %vm5518_vm10, %v5555_v62, %v5557_v12  ;;  %v4804_v3 = vsel %vm9320_vm7, %v4796_v30, %v4803_v20 }
 0x3e0   : > { %v5030_v57 = vsel %vm9334_vm9, %v4805_v23, %v5029_v7  ;;  %v5645_v28 = vmax.f32 %v5347_v56, %v5556_v5  ;;  %v5646_v0 = vmax.f32 %v5348_v11, %v5558_v17  ;;  %5028 = vst [vmem:[#allocation2 + $0x7c] sm:$0xf] %v4804_v3  ;;  %v10270_v54 = vmax.f32 %v9777_v6, %v9824_v41  ;;  %v9902_v11 = vpop.f32.mrf.mxu3 }
 0x3e1   : > { %v4807_v10 = vshrl.u32 %v4621_v29, 16  ;;  %v4468_v59 = vadd.f32 %v4419_v37, %v4203_v58  ;;  %5031 = vst [vmem:[#allocation2 + $0x80] sm:$0x1] %v5030_v57  ;;  %v5767_v12 = vsel %vm5727_vm11, %v5764_v34, %v5766_v1  ;;  %v5205_v56 = vmax.f32 %v9792_v13, %v9871_v24 }
 0x3e2   : > { %v5850_v16 = vmax.f32 %v10270_v54, %v5755_v45  ;;  %v5854_v9 = vmax.f32 %v5645_v28, %v5765_v48  ;;  %v4810_v62 = vshll.u32 %v4621_v29, 16  ;;  %v5855_v37 = vmax.f32 %v5646_v0, %v5767_v12 }
 0x3e3   : > { %v4809_v30 = vrot.slane %v4807_v10, 7  ;;  %v4504_v7 = vadd.f32 %v9709_v61, %v4468_v59  ;;  %v5884_v57 = vpack.c.bf16 %v9874_v55, %v9874_v55  ;;  %v5885_v41 = vpack.c.bf16 %v5853_v43, %v5853_v43  ;;  %v4422_v29 = vpop.f32.mrf.mxu1  ;;  %v9920_v3 = vpop.f32.mrf.mxu2 }
 0x3e4   : > { %v5886_v6 = vpack.c.bf16 %v5854_v9, %v5854_v9  ;;  %v5851_v1 = vmax.f32 %v10271_v63, %v9853_v39  ;;  %v3872_v13 = vadd.f32 %v9814_v26, %v9766_v60  ;;  %v5880_v45 = vpack.c.bf16 %v9820_v35, %v9820_v35 }
 0x3e5   : > { %v4812_v34 = vor.u32 %v4810_v62, %v4809_v30  ;;  %v4536_v10 = vmax.f32 %v4504_v7, 0.0  ;;  %v3873_v20 = vadd.f32 %v3827_v36, %v9834_v2  ;;  %v5887_v53 = vpack.c.bf16 %v5855_v37, %v5855_v37 }
 0x3e6   : > { %v4157_v23 = vpop.f32.mrf.mxu0  ;;  %v5998_v55 = vunpack.c.l.b16 %v5886_v6  ;;  %v5882_v43 = vpack.c.bf16 %v5850_v16, %v5850_v16  ;;  %v5881_v60 = vpack.c.bf16 %v9842_v18, %v9842_v18  ;;  %v5996_v39 = vunpack.c.l.b16 %v5884_v57 }
 0x3e7   : > { %v5033_v5 = vsel %vm9287_vm4, %v4812_v34, %v5032_v32  ;;  %v4622_v42 = vpack.c.bf16 %v4536_v10, %v4536_v10  ;;  %v4204_v51 = vadd.f32 %v4157_v23, %v3872_v13  ;;  %v5999_v26 = vunpack.c.l.b16 %v5887_v53  ;;  %v8138_v35 = vld [vmem:[#allocation2 + $0x78] sm:$0xff]   ;;  %v5036_v32 = vld [vmem:[#allocation2 + $0x8c] sm:$0x1] }
 0x3e8   : > { %5034 = vst [vmem:[#allocation2 + $0x84] sm:$0xf] %v5033_v5  ;;  %v5997_v58 = vunpack.c.l.b16 %v5885_v41  ;;  %v5883_v17 = vpack.c.bf16 %v5851_v1, %v5851_v1  ;;  %v9922_v28 = vunpack.c.l.b16 %v5880_v45  ;;  %v9924_v0 = vunpack.c.l.bf16 %v8138_v35  ;;  %v5106_v59 = vld [vmem:[#allocation2 + $0x80] sm:$0x1]  ;;  %v9937_v1 = vpop.f32.mrf.mxu3 }
 0x3e9   : > { %v4815_v2 = vshrl.u32 %v4622_v42, 16  ;;  %v4469_v36 = vadd.f32 %v4422_v29, %v4204_v51  ;;  %v6023_v48 = vpack.c.b16 %v5999_v26, %v5998_v55  ;;  %v5994_v54 = vunpack.c.l.b16 %v5882_v43 }
 0x3ea   : > { %v9926_v16 = vunpack.c.h.bf16 %v8138_v35  ;;  %v9928_v18 = vunpack.c.l.bf16 %v5106_v59  ;;  %v4818_v9 = vshll.u32 %v4622_v42, 16  ;;  %v10272_v7 = vmax.f32 %v9786_v33, %v9866_v8 }
 0x3eb   : > { %v4817_v12 = vrot.slane %v4815_v2, 7  ;;  %v4505_v62 = vadd.f32 %v9709_v61, %v4469_v36  ;;  %6048 = vmatpush.bf16.msra.mxu2 %v6023_v48  ;;  %v6022_v6 = vpack.c.b16 %v5997_v58, %v5996_v39  ;;  %v5995_v57 = vunpack.c.l.b16 %v5883_v17  ;;  %v4424_v45 = vpop.f32.mrf.mxu1 }
 0x3ec   : > { %v5350_v37 = vmax.f32 %v10272_v7, %v9924_v0  ;;  %v5351_v41 = vmax.f32 %v5204_v46, %v9926_v16  ;;  %v5352_v63 = vmax.f32 %v5205_v56, %v9928_v18  ;;  %v4813_v13 = vrot.slane %v4809_v30, 4 }
 0x3ed   : > { %v4820_v34 = vor.u32 %v4818_v9, %v4817_v12  ;;  %v4822_v10 = vrot.slane %v4817_v12, 4  ;;  %v4537_v29 = vmax.f32 %v4505_v62, 0.0  ;;  %v5993_v56 = vunpack.c.l.b16 %v5881_v60  ;;  %v9948_v12 = vpop.f32.mrf.mxu2 }
 0x3ee   : > { %v4159_v23 = vpop.f32.mrf.mxu0  ;;  %v5559_v53 = vrot.slane %v5350_v37, 1  ;;  %v5560_v55 = vrot.slane %v5351_v41, 1  ;;  %v5562_v33 = vrot.slane %v5352_v63, 1  ;;  %v5768_v43 = vrot.slane %v5350_v37, 2 }
 0x3ef   : > { %v4821_v5 = vsel %vm9320_vm7, %v4813_v13, %v4820_v34  ;;  %v5037_v46 = vsel %vm9334_vm9, %v4822_v10, %v5036_v32  ;;  %v4623_v42 = vpack.c.bf16 %v4537_v29, %v4537_v29  ;;  %6049 = vmatpush.bf16.msra.mxu2 %v6022_v6  ;;  %v4205_v30 = vadd.f32 %v4159_v23, %v3873_v20 }
 0x3f0   : > { %5035 = vst [vmem:[#allocation2 + $0x88] sm:$0xf] %v4821_v5  ;;  %v5561_v51 = vsel %vm5518_vm10, %v5559_v53, %v5560_v55  ;;  %v5563_v26 = vsel %vm5518_vm10, %v5560_v55, %v5562_v33  ;;  %v5769_v39 = vrot.slane %v5351_v41, 2  ;;  %v3609_v58 = vadd.f32 %v9885_v14, %v9144_v4  ;;  %v5039_v14 = vld [vmem:[#allocation2 + $0x90] sm:$0xf] }
 0x3f1   : > { %5038 = vst [vmem:[#allocation2 + $0x8c] sm:$0x1] %v5037_v46  ;;  %v4824_v17 = vshrl.u32 %v4623_v42, 16  ;;  %v5647_v35 = vmax.f32 %v5350_v37, %v5561_v51  ;;  %v5648_v2 = vmax.f32 %v5351_v41, %v5563_v26  ;;  %v4470_v36 = vadd.f32 %v4424_v45, %v4205_v30 }
 0x3f2   : > { %v6021_v59 = vpack.c.b16 %v5995_v57, %v5994_v54  ;;  %v5770_v48 = vsel %vm5727_vm11, %v5768_v43, %v5769_v39  ;;  %v5771_v60 = vrot.slane %v5352_v63, 2  ;;  %v4827_v9 = vshll.u32 %v4623_v42, 16 }
 0x3f3   : > { %v9950_v20 = vrot.slane %v4824_v17, 7  ;;  %v10273_v62 = vpack.c.bf16 %v9616_v25, %v9616_v25  ;;  %v5856_v4 = vmax.f32 %v5647_v35, %v5770_v48  ;;  %v4506_v37 = vadd.f32 %v9709_v61, %v4470_v36  ;;  %v4427_v63 = vpop.f32.mrf.mxu1 }
 0x3f4   : > { %6050 = vmatpush.bf16.msra.mxu2 %v6021_v59  ;;  %v10274_v54 = vpack.c.bf16 %v9724_v49, %v9724_v49  ;;  %v6018_v6 = vpack.c.b16 %v9740_v27, %v9736_v19  ;;  %v5772_v57 = vsel %vm5727_vm11, %v5769_v39, %v5771_v60  ;;  %v3874_v41 = vadd.f32 %v9902_v11, %v3609_v58  ;;  %v9972_v27 = vpop.f32.mrf.mxu3  ;;  %v5043_v60 = vld [vmem:[#allocation2 + $0x98] sm:$0x1] }
 0x3f5   : > { %v9955_v7 = vunpack.c.l.b16 %v10273_v62  ;;  %v4829_v25 = vor.u32 %v4827_v9, %v9950_v20  ;;  %v10275_v13 = vpack.c.bf16 %v9727_v15, %v9727_v15  ;;  %v5857_v10 = vmax.f32 %v5648_v2, %v5772_v57  ;;  %v3572_v48 = vpop.f32.mrf.mxu2 }
 0x3f6   : > { %v5990_v32 = vunpack.c.l.b16 %v10274_v54  ;;  %v3610_v29 = vadd.f32 %v9920_v3, %v9151_v22  ;;  %v4538_v49 = vmax.f32 %v4506_v37, 0.0  ;;  %v6020_v45 = vpack.c.b16 %v5993_v56, %v9922_v28  ;;  %v4162_v23 = vpop.f32.mrf.mxu0 }
 0x3f7   : > { %v5991_v34 = vunpack.c.l.b16 %v10275_v13  ;;  %v5888_v19 = vpack.c.bf16 %v5856_v4, %v5856_v4  ;;  %v5040_v11 = vsel %vm9287_vm4, %v4829_v25, %v5039_v14  ;;  %v4206_v53 = vadd.f32 %v4162_v23, %v3874_v41  ;;  %v5107_v55 = vld [vmem:[#allocation2 + $0x84] sm:$0xff]  }
 0x3f8   : > { %v5206_v15 = vmax.f32 %v9866_v8, %v9924_v0  ;;  %v5889_v33 = vpack.c.bf16 %v5857_v10, %v5857_v10  ;;  %5041 = vst [vmem:[#allocation2 + $0x90] sm:$0xf] %v5040_v11  ;;  %v4624_v43 = vpack.c.bf16 %v4538_v49, %v4538_v49  ;;  %6051 = vmatpush.bf16.msra.mxu2 %v6020_v45  ;;  %v5109_v22 = vld [vmem:[#allocation2 + $0x8c] sm:$0x1]  ;;  %v9978_v3 = vunpack.c.l.bf16 %v5107_v55 }
 0x3f9   : > { %v9980_v28 = vunpack.c.h.bf16 %v5107_v55  ;;  %v9982_v5 = vunpack.c.l.b16 %v5888_v19  ;;  %v4471_v46 = vadd.f32 %v4427_v63, %v4206_v53  ;;  %v9984_v42 = vunpack.c.l.bf16 %v5109_v22 }
 0x3fa   : > { %v5207_v56 = vmax.f32 %v9868_v44, %v9926_v16  ;;  %v9988_v30 = vunpack.c.l.b16 %v5889_v33  ;;  %v3875_v8 = vadd.f32 %v9937_v1, %v3610_v29  ;;  %v4832_v51 = vshrl.u32 %v4624_v43, 16 }
 0x3fb   : > { %v6019_v26 = vpack.c.b16 %v5991_v34, %v5990_v32  ;;  %v5208_v39 = vmax.f32 %v9871_v24, %v9928_v18  ;;  %v4830_v58 = vrot.slane %v9950_v20, 4  ;;  %v4507_v17 = vadd.f32 %v9709_v61, %v4471_v46  ;;  %v4429_v24 = vpop.f32.mrf.mxu1 }
 0x3fc   : > { %v5353_v35 = vmax.f32 %v5206_v15, %v9978_v3  ;;  %v5354_v2 = vmax.f32 %v5207_v56, %v9980_v28  ;;  %v4834_v36 = vrot.slane %v4832_v51, 7  ;;  %v4835_v59 = vshll.u32 %v4624_v43, 16  ;;  %v3837_v23 = vpop.f32.mrf.mxu3 }
 0x3fd   : > { %6052 = vmatpush.bf16.msra.mxu2 %v6019_v26  ;;  %v5355_v44 = vmax.f32 %v5208_v39, %v9984_v42  ;;  %v6024_v1 = vpack.c.b16 %v9988_v30, %v9982_v5  ;;  %v4539_v9 = vmax.f32 %v4507_v17, 0.0  ;;  %v3611_v45 = vadd.f32 %v9948_v12, %v9166_v50  ;;  %v5046_v50 = vld [vmem:[#allocation2 + $0x9c] sm:$0xf]  ;;  %v3575_v17 = vpop.f32.mrf.mxu2 }
 0x3fe   : > { %v5564_v62 = vrot.slane %v5353_v35, 1  ;;  %v5565_v20 = vrot.slane %v5354_v2, 1  ;;  %v5773_v4 = vrot.slane %v5353_v35, 2  ;;  %v4837_v14 = vor.u32 %v4835_v59, %v4834_v36  ;;  %v4164_v54 = vpop.f32.mrf.mxu0 }
 0x3ff   : > { %v4839_v37 = vrot.slane %v4834_v36, 4  ;;  %v5567_v32 = vrot.slane %v5355_v44, 1  ;;  %v5774_v57 = vrot.slane %v5354_v2, 2  ;;  %v4625_v41 = vpack.c.bf16 %v4539_v9, %v4539_v9 }
 0x400   : > { %v4207_v25 = vadd.f32 %v4164_v54, %v3875_v8  ;;  %v5566_v63 = vsel %vm5518_vm10, %v5564_v62, %v5565_v20  ;;  %v5776_v13 = vrot.slane %v5355_v44, 2  ;;  %v4838_v34 = vsel %vm9320_vm7, %v4830_v58, %v4837_v14  ;;  %v10276_v44 = vld [vmem:[#allocation3_spill] sm:$0xff] }
 0x401   : > { %v5044_v10 = vsel %vm9334_vm9, %v4839_v37, %v5043_v60  ;;  %6053 = vmatpush.bf16.msra.mxu2 %v6018_v6  ;;  %v5568_v29 = vsel %vm5518_vm10, %v5565_v20, %v5567_v32  ;;  %v5649_v49 = vmax.f32 %v5353_v35, %v5566_v63  ;;  %5042 = vst [vmem:[#allocation2 + $0x94] sm:$0xf] %v4838_v34  ;;  %v4841_v19 = vshrl.u32 %v4625_v41, 16  ;;  %v5050_v37 = vld [vmem:[#allocation2 + $0xa4] sm:$0x1] }
 0x402   : > { %v4472_v11 = vadd.f32 %v4429_v24, %v4207_v25  ;;  %v5650_v53 = vmax.f32 %v5354_v2, %v5568_v29  ;;  %5045 = vst [vmem:[#allocation2 + $0x98] sm:$0x1] %v5044_v10  ;;  %v4844_v55 = vshll.u32 %v4625_v41, 16  ;;  %v6017_v15 = vpack.c.b16 %v9955_v7, %v9676_v47  ;;  %v10277_v29 = vld [vmem:[#allocation4_spill] sm:$0xff] }
 0x403   : > { %v5775_v33 = vsel %vm5727_vm11, %v5773_v4, %v5774_v57  ;;  %v5777_v6 = vsel %vm5727_vm11, %v5774_v57, %v5776_v13  ;;  %v4843_v43 = vrot.slane %v4841_v19, 7  ;;  %v3876_v12 = vadd.f32 %v9972_v27, %v3611_v45  ;;  %v4432_v26 = vpop.f32.mrf.mxu1 }
 0x404   : > { %v4508_v22 = vadd.f32 %v9709_v61, %v4472_v11  ;;  %v5858_v46 = vmax.f32 %v5649_v49, %v5775_v33  ;;  %v5859_v56 = vmax.f32 %v5650_v53, %v5777_v6  ;;  %v6016_v47 = vpack.c.b16 %v9618_v31, %v9607_v21  ;;  %v3840_v31 = vpop.f32.mrf.mxu3 }
 0x405   : > { %6054 = vmatpush.bf16.msra.mxu2 %v6017_v15  ;;  %v4846_v8 = vor.u32 %v4844_v55, %v4843_v43  ;;  %v3612_v60 = vadd.f32 %v3572_v48, %v10276_v44  ;;  %v4847_v54 = vrot.slane %v4843_v43, 4  ;;  %v3613_v49 = vadd.f32 %v3575_v17, %v10277_v29  ;;  %v3577_v45 = vpop.f32.mrf.mxu2  ;;  %v5053_v15 = vld [vmem:[#allocation2 + $0xa8] sm:$0xf] }
 0x406   : > { %v4540_v51 = vmax.f32 %v4508_v22, 0.0  ;;  %v5890_v39 = vpack.c.bf16 %v5858_v46, %v5858_v46  ;;  %v4167_v7 = vpop.f32.mrf.mxu0  ;;  %v5891_v58 = vpack.c.bf16 %v5859_v56, %v5859_v56 }
 0x407   : > { %v5047_v35 = vsel %vm9287_vm4, %v4846_v8, %v5046_v50  ;;  %v4208_v36 = vadd.f32 %v4167_v7, %v3876_v12  ;;  %v3877_v14 = vadd.f32 %v3837_v23, %v3612_v60  ;;  %v3878_v33 = vadd.f32 %v3840_v31, %v3613_v49 }
 0x408   : > { %v4626_v2 = vpack.c.bf16 %v4540_v51, %v4540_v51  ;;  %v10018_v59 = vunpack.c.l.b16 %v5890_v39  ;;  %5048 = vst [vmem:[#allocation2 + $0x9c] sm:$0xf] %v5047_v35  ;;  %v10021_v27 = vunpack.c.l.b16 %v5891_v58  ;;  %v10278_v51 = vld [vmem:[#allocation5_spill] sm:$0xff] }
 0x409   : > { %6055 = vmatpush.bf16.msra.mxu2 %v6016_v47  ;;  %v4473_v24 = vadd.f32 %v4432_v26, %v4208_v36  ;;  %v3614_v26 = vadd.f32 %v3577_v45, %v10278_v51  ;;  %v5057_v36 = vld [vmem:[#allocation2 + $0xb0] sm:$0x1] }
 0x40a   : > { %v4849_v9 = vshrl.u32 %v4626_v2, 16  ;;  %v6025_v21 = vpack.c.b16 %v10021_v27, %v10018_v59  ;;  %v4852_v20 = vshll.u32 %v4626_v2, 16  ;;  %v8072_v59 = vld [vmem:[%s10255_s7 + $0x14] sm:$0xf]  ;;  %v7802_v27 = vld [vmem:[%s10255_s7 + $0x18] sm:$0xf0] }
 0x40b   : > { %v4509_v4 = vadd.f32 %v9709_v61, %v4473_v24  ;;  %v4434_v41 = vpop.f32.mrf.mxu1  ;;  %v7805_v5 = vor.u32 %v8072_v59, %v7802_v27 }
 0x40c   : > { %v4851_v62 = vrot.slane %v4849_v9, 7  ;;  %v3842_v6 = vpop.f32.mrf.mxu3 }
 0x40d   : > { %v4541_v48 = vmax.f32 %v4509_v4, 0.0  ;;  %v3580_v7 = vpop.f32.mrf.mxu2  ;;  %v3879_v2 = vadd.f32 %v3842_v6, %v3614_v26 }
 0x40e   : > { %v4854_v32 = vor.u32 %v4852_v20, %v4851_v62  ;;  %v4856_v57 = vrot.slane %v4851_v62, 4  ;;  %v4169_v25 = vpop.f32.mrf.mxu0 }
 0x40f   : > { %v4627_v34 = vpack.c.bf16 %v4541_v48, %v4541_v48  ;;  %v4209_v10 = vadd.f32 %v4169_v25, %v3877_v14 }
 0x410   : > { %v4855_v63 = vsel %vm9320_vm7, %v4847_v54, %v4854_v32  ;;  %v5051_v13 = vsel %vm9334_vm9, %v4856_v57, %v5050_v37  ;;  %v10279_v32 = vld [vmem:[#allocation6_spill] sm:$0xff] }
 0x411   : > { %5049 = vst [vmem:[#allocation2 + $0xa0] sm:$0xf] %v4855_v63  ;;  %v4858_v23 = vshrl.u32 %v4627_v34, 16  ;;  %v4474_v19 = vadd.f32 %v4434_v41, %v4209_v10  ;;  %v4861_v53 = vshll.u32 %v4627_v34, 16  ;;  %v3615_v57 = vadd.f32 %v3580_v7, %v10279_v32  ;;  %v5060_v34 = vld [vmem:[#allocation2 + $0xb4] sm:$0xf] }
 0x412   : > { %5052 = vst [vmem:[#allocation2 + $0xa4] sm:$0x1] %v5051_v13 }
 0x413   : > { %v4860_v11 = vrot.slane %v4858_v23, 7  ;;  %v4510_v55 = vadd.f32 %v9709_v61, %v4474_v19  ;;  %v4437_v46 = vpop.f32.mrf.mxu1 }
 0x414   : > { %v3845_v20 = vpop.f32.mrf.mxu3 }
 0x415   : > { %v4863_v43 = vor.u32 %v4861_v53, %v4860_v11  ;;  %v4542_v22 = vmax.f32 %v4510_v55, 0.0  ;;  %v4864_v44 = vrot.slane %v4860_v11, 4  ;;  %v3880_v10 = vadd.f32 %v3845_v20, %v3615_v57  ;;  %v3582_v29 = vpop.f32.mrf.mxu2 }
 0x416   : > { %v4172_v56 = vpop.f32.mrf.mxu0 }
 0x417   : > { %v5054_v50 = vsel %vm9287_vm4, %v4863_v43, %v5053_v15  ;;  %v4628_v12 = vpack.c.bf16 %v4542_v22, %v4542_v22  ;;  %v4210_v8 = vadd.f32 %v4172_v56, %v3878_v33  ;;  %v10280_v15 = vld [vmem:[#allocation7_spill] sm:$0xff] }
 0x418   : > { %5055 = vst [vmem:[#allocation2 + $0xa8] sm:$0xf] %v5054_v50  ;;  %v3616_v33 = vadd.f32 %v3582_v29, %v10280_v15 }
 0x419   : > { %v4866_v39 = vshrl.u32 %v4628_v12, 16  ;;  %v4475_v47 = vadd.f32 %v4437_v46, %v4210_v8  ;;  %v4869_v17 = vshll.u32 %v4628_v12, 16  ;;  %v5064_v8 = vld [vmem:[#allocation2 + $0xbc] sm:$0x1] }
 0x41b   : > { %v4868_v58 = vrot.slane %v4866_v39, 7  ;;  %v4511_v35 = vadd.f32 %v9709_v61, %v4475_v47  ;;  %v4439_v31 = vpop.f32.mrf.mxu1 }
 0x41c   : > { %v3847_v6 = vpop.f32.mrf.mxu3 }
 0x41d   : > { %v4871_v60 = vor.u32 %v4869_v17, %v4868_v58  ;;  %v4873_v9 = vrot.slane %v4868_v58, 4  ;;  %v4543_v24 = vmax.f32 %v4511_v35, 0.0  ;;  %v3881_v12 = vadd.f32 %v3847_v6, %v3616_v33 }
 0x41e   : > { %v4174_v62 = vpop.f32.mrf.mxu0 }
 0x41f   : > { %v4872_v4 = vsel %vm9320_vm7, %v4864_v44, %v4871_v60  ;;  %v5058_v14 = vsel %vm9334_vm9, %v4873_v9, %v5057_v36  ;;  %v4629_v37 = vpack.c.bf16 %v4543_v24, %v4543_v24  ;;  %v4211_v54 = vadd.f32 %v4174_v62, %v3879_v2  ;;  %v8139_v44 = vld [vmem:[#allocation2 + $0x90] sm:$0xff]   ;;  %v5112_v24 = vld [vmem:[#allocation2 + $0x98] sm:$0x1] }
 0x420   : > { %5056 = vst [vmem:[#allocation2 + $0xac] sm:$0xf] %v4872_v4  ;;  %v8104_v4 = vunpack.c.l.bf16 %v8139_v44 }
 0x421   : > { %5059 = vst [vmem:[#allocation2 + $0xb0] sm:$0x1] %v5058_v14  ;;  %v4875_v48 = vshrl.u32 %v4629_v37, 16  ;;  %v4476_v41 = vadd.f32 %v4439_v31, %v4211_v54  ;;  %v4878_v63 = vshll.u32 %v4629_v37, 16  ;;  %v5067_v14 = vld [vmem:[#allocation2 + $0xc0] sm:$0xf]  ;;  %v5209_v54 = vmax.f32 %v9924_v0, %v9978_v3 }
 0x422   : > { %v5113_v37 = vld [vmem:[#allocation2 + $0x9c] sm:$0xff]  }
 0x423   : > { %v4877_v25 = vrot.slane %v4875_v48, 7  ;;  %v4512_v13 = vadd.f32 %v9709_v61, %v4476_v41  ;;  %v4442_v23 = vpop.f32.mrf.mxu1  ;;  %v5115_v48 = vld [vmem:[#allocation2 + $0xa4] sm:$0x1]  ;;  %v8105_v41 = vunpack.c.h.bf16 %v8139_v44  ;;  %v5167_v29 = vunpack.c.l.bf16 %v5113_v37 }
 0x424   : > { %v5169_v0 = vunpack.c.l.bf16 %v5115_v48 }
 0x425   : > { %v4880_v49 = vor.u32 %v4878_v63, %v4877_v25  ;;  %v4544_v45 = vmax.f32 %v4512_v13, 0.0  ;;  %v4881_v51 = vrot.slane %v4877_v25, 4  ;;  %v5166_v25 = vunpack.c.l.bf16 %v5112_v24 }
 0x426   : > { %v4177_v19 = vpop.f32.mrf.mxu0  ;;  %v5210_v63 = vmax.f32 %v9926_v16, %v9980_v28  ;;  %v5213_v16 = vmax.f32 %v9980_v28, %v8105_v41 }
 0x427   : > { %v5061_v11 = vsel %vm9287_vm4, %v4880_v49, %v5060_v34  ;;  %v4630_v53 = vpack.c.bf16 %v4544_v45, %v4544_v45  ;;  %v4212_v55 = vadd.f32 %v4177_v19, %v3880_v10  ;;  %v8140_v10 = vld [vmem:[#allocation2 + $0xa8] sm:$0xff]   ;;  %v10057_v49 = vmax.f32 %v5209_v54, %v8104_v4 }
 0x428   : > { %5062 = vst [vmem:[#allocation2 + $0xb4] sm:$0xf] %v5061_v11  ;;  %v5168_v45 = vunpack.c.h.bf16 %v5113_v37  ;;  %v5211_v19 = vmax.f32 %v9928_v18, %v9984_v42  ;;  %v5214_v52 = vmax.f32 %v9984_v42, %v5166_v25  ;;  %v10068_v15 = vunpack.c.h.bf16 %v8140_v10  ;;  %v5127_v37 = vld [vmem:[#allocation2 + $0xd4] sm:$0x1] }
 0x429   : > { %v4883_v43 = vshrl.u32 %v4630_v53, 16  ;;  %v4477_v22 = vadd.f32 %v4442_v23, %v4212_v55  ;;  %v4886_v56 = vshll.u32 %v4630_v53, 16  ;;  %v5212_v23 = vmax.f32 %v9978_v3, %v8104_v4 }
 0x42a   : > { %v10064_v53 = vmax.f32 %v5210_v63, %v8105_v41  ;;  %v10066_v55 = vunpack.c.l.bf16 %v8140_v10  ;;  %v10072_v6 = vmax.f32 %v5211_v19, %v5166_v25  ;;  %v5569_v18 = vrot.slane %v10057_v49, 1 }
 0x42b   : > { %v4885_v46 = vrot.slane %v4883_v43, 7  ;;  %v4513_v50 = vadd.f32 %v9709_v61, %v4477_v22  ;;  %v4444_v36 = vpop.f32.mrf.mxu1  ;;  %v5217_v42 = vmax.f32 %v5166_v25, %v5169_v0  ;;  %v5219_v40 = vmax.f32 %v5168_v45, %v10068_v15 }
 0x42d   : > { %v4888_v26 = vor.u32 %v4886_v56, %v4885_v46  ;;  %v4890_v39 = vrot.slane %v4885_v46, 4  ;;  %v4545_v47 = vmax.f32 %v4513_v50, 0.0  ;;  %v5215_v46 = vmax.f32 %v8104_v4, %v5167_v29  ;;  %v5071_v56 = vld [vmem:[#allocation2 + $0xc8] sm:$0x1] }
 0x42e   : > { %v4179_v7 = vpop.f32.mrf.mxu0  ;;  %v5216_v50 = vmax.f32 %v8105_v41, %v5168_v45 }
 0x42f   : > { %v4889_v58 = vsel %vm9320_vm7, %v4881_v51, %v4888_v26  ;;  %v5065_v17 = vsel %vm9334_vm9, %v4890_v39, %v5064_v8  ;;  %v4631_v35 = vpack.c.bf16 %v4545_v47, %v4545_v47  ;;  %v4213_v2 = vadd.f32 %v4179_v7, %v3881_v12 }
 0x430   : > { %5063 = vst [vmem:[#allocation2 + $0xb8] sm:$0xf] %v4889_v58  ;;  %v10075_v12 = vmax.f32 %v5212_v23, %v5167_v29  ;;  %v10077_v8 = vmax.f32 %v5213_v16, %v5168_v45  ;;  %v10079_v47 = vmax.f32 %v5214_v52, %v5169_v0  ;;  %v10082_v58 = vmax.f32 %v5215_v46, %v10066_v55 }
 0x431   : > { %5066 = vst [vmem:[#allocation2 + $0xbc] sm:$0x1] %v5065_v17  ;;  %v4892_v60 = vshrl.u32 %v4631_v35, 16  ;;  %v4478_v9 = vadd.f32 %v4444_v36, %v4213_v2  ;;  %v4895_v62 = vshll.u32 %v4631_v35, 16  ;;  %v10085_v17 = vmax.f32 %v5216_v50, %v10068_v15 }
 0x432   : > { %v5575_v24 = vrot.slane %v10077_v8, 1  ;;  %v5577_v38 = vrot.slane %v10079_v47, 1  ;;  %v5579_v54 = vrot.slane %v10082_v58, 1  ;;  %v5325_v45 = vunpack.c.l.bf16 %v5127_v37 }
 0x433   : > { %v4894_v31 = vrot.slane %v4892_v60, 7  ;;  %v4514_v20 = vadd.f32 %v9709_v61, %v4478_v9  ;;  %v5118_v61 = vld [vmem:[#allocation2 + $0xb0] sm:$0x1]  ;;  %v5574_v9 = vrot.slane %v10075_v12, 1  ;;  %v5789_v16 = vrot.slane %v10085_v17, 2 }
 0x434   : > { %v10070_v33 = vunpack.c.l.bf16 %v5118_v61 }
 0x435   : > { %v4897_v32 = vor.u32 %v4895_v62, %v4894_v31  ;;  %v4546_v57 = vmax.f32 %v4514_v20, 0.0  ;;  %v4898_v51 = vrot.slane %v4894_v31, 4  ;;  %v5570_v31 = vrot.slane %v10064_v53, 1 }
 0x436   : > { %v10088_v35 = vmax.f32 %v5217_v42, %v10070_v33  ;;  %v5572_v62 = vrot.slane %v10072_v6, 1  ;;  %v5218_v20 = vmax.f32 %v5167_v29, %v10066_v55  ;;  %v5220_v4 = vmax.f32 %v5169_v0, %v10070_v33 }
 0x437   : > { %v5068_v13 = vsel %vm9287_vm4, %v4897_v32, %v5067_v14  ;;  %v4632_v34 = vpack.c.bf16 %v4546_v57, %v4546_v57  ;;  %v5119_v22 = vld [vmem:[#allocation2 + $0xb4] sm:$0xff]   ;;  %v5125_v14 = vld [vmem:[#allocation2 + $0xcc] sm:$0xff]   ;;  %v5580_v32 = vrot.slane %v10085_v17, 1  ;;  %v10112_v63 = vsel %vm5518_vm10, %v5574_v9, %v5575_v24 }
 0x438   : > { %5069 = vst [vmem:[#allocation2 + $0xc0] sm:$0xf] %v5068_v13  ;;  %v5121_v28 = vld [vmem:[#allocation2 + $0xbc] sm:$0x1]  ;;  %v5173_v7 = vunpack.c.l.bf16 %v5119_v22  ;;  %v5174_v44 = vunpack.c.h.bf16 %v5119_v22  ;;  %v5582_v57 = vrot.slane %v10088_v35, 1  ;;  %v5783_v13 = vrot.slane %v10075_v12, 2 }
 0x439   : > { %v4900_v11 = vshrl.u32 %v4632_v34, 16  ;;  %v4903_v3 = vshll.u32 %v4632_v34, 16  ;;  %v5175_v60 = vunpack.c.l.bf16 %v5121_v28  ;;  %v10116_v34 = vsel %vm5518_vm10, %v5569_v18, %v5570_v31 }
 0x43a   : > { %v10105_v48 = vmax.f32 %v5218_v20, %v5173_v7  ;;  %v10107_v41 = vmax.f32 %v5219_v40, %v5174_v44  ;;  %v10119_v10 = vsel %vm5518_vm10, %v5570_v31, %v5572_v62  ;;  %v5323_v61 = vunpack.c.l.bf16 %v5125_v14 }
 0x43b   : > { %v4902_v43 = vrot.slane %v4900_v11, 7  ;;  %v10109_v25 = vmax.f32 %v5220_v4, %v5175_v60  ;;  %v5324_v29 = vunpack.c.h.bf16 %v5125_v14  ;;  %v10122_v0 = vsel %vm5518_vm10, %v5575_v24, %v5577_v38 }
 0x43c   : > { %v10125_v23 = vsel %vm5518_vm10, %v5579_v54, %v5580_v32  ;;  %v10128_v19 = vsel %vm5518_vm10, %v5580_v32, %v5582_v57  ;;  %v5788_v11 = vrot.slane %v10082_v58, 2  ;;  %v5585_v22 = vrot.slane %v10107_v41, 1 }
 0x43d   : > { %v4905_v26 = vor.u32 %v4903_v3, %v4902_v43  ;;  %v4907_v39 = vrot.slane %v4902_v43, 4  ;;  %v5221_v43 = vmax.f32 %v10066_v55, %v5173_v7  ;;  %v5584_v3 = vrot.slane %v10105_v48, 1 }
 0x43e   : > { %v5587_v46 = vrot.slane %v10109_v25, 1  ;;  %v5222_v50 = vmax.f32 %v10068_v15, %v5174_v44  ;;  %v5223_v42 = vmax.f32 %v10070_v33, %v5175_v60  ;;  %v5796_v55 = vrot.slane %v10109_v25, 2 }
 0x43f   : > { %v4906_v2 = vsel %vm9320_vm7, %v4898_v51, %v4905_v26  ;;  %v5072_v36 = vsel %vm9334_vm9, %v4907_v39, %v5071_v56  ;;  %v5793_v26 = vrot.slane %v10105_v48, 2  ;;  %v5794_v39 = vrot.slane %v10107_v41, 2 }
 0x440   : > { %5070 = vst [vmem:[#allocation2 + $0xc4] sm:$0xf] %v4906_v2  ;;  %v5586_v20 = vsel %vm5518_vm10, %v5584_v3, %v5585_v22  ;;  %v5588_v40 = vsel %vm5518_vm10, %v5585_v22, %v5587_v46 }
 0x441   : > { %5073 = vst [vmem:[#allocation2 + $0xc8] sm:$0x1] %v5072_v36 }
 0x447   : > { %v8141_v52 = vld [vmem:[#allocation2 + $0xc0] sm:$0xff]  }
 0x448   : > { %v8112_v18 = vunpack.c.l.bf16 %v8141_v52  ;;  %v8113_v56 = vunpack.c.h.bf16 %v8141_v52  ;;  %v5124_v28 = vld [vmem:[#allocation2 + $0xc8] sm:$0x1] }
 0x449   : > { %v5178_v51 = vunpack.c.l.bf16 %v5124_v28 }
 0x44a   : > { %v5224_v2 = vmax.f32 %v5173_v7, %v8112_v18  ;;  %v5225_v36 = vmax.f32 %v5174_v44, %v8113_v56  ;;  %v5368_v9 = vmax.f32 %v5221_v43, %v8112_v18  ;;  %v5369_v24 = vmax.f32 %v5222_v50, %v8113_v56 }
 0x44b   : > { %v5226_v31 = vmax.f32 %v5175_v60, %v5178_v51  ;;  %v5370_v62 = vmax.f32 %v5223_v42, %v5178_v51 }
 0x44c   : > { %v5371_v15 = vmax.f32 %v5224_v2, %v5323_v61  ;;  %v5372_v4 = vmax.f32 %v5225_v36, %v5324_v29  ;;  %v5589_v33 = vrot.slane %v5368_v9, 1  ;;  %v5590_v38 = vrot.slane %v5369_v24, 1 }
 0x44d   : > { %v5373_v14 = vmax.f32 %v5226_v31, %v5325_v45  ;;  %v5592_v37 = vrot.slane %v5370_v62, 1  ;;  %v5798_v54 = vrot.slane %v5368_v9, 2  ;;  %v5799_v32 = vrot.slane %v5369_v24, 2 }
 0x44e   : > { %v5594_v57 = vrot.slane %v5371_v15, 1  ;;  %v5595_v25 = vrot.slane %v5372_v4, 1  ;;  %v5803_v7 = vrot.slane %v5371_v15, 2  ;;  %v5804_v44 = vrot.slane %v5372_v4, 2 }
 0x44f   : > { %v5597_v52 = vrot.slane %v5373_v14, 1  ;;  %v5806_v43 = vrot.slane %v5373_v14, 2  ;;  %v5591_v60 = vsel %vm5518_vm10, %v5589_v33, %v5590_v38  ;;  %v5593_v3 = vsel %vm5518_vm10, %v5590_v38, %v5592_v37 }
 0x450   : > { %v5596_v22 = vsel %vm5518_vm10, %v5594_v57, %v5595_v25  ;;  %v5659_v61 = vmax.f32 %v5368_v9, %v5591_v60  ;;  %v5657_v29 = vmax.f32 %v10105_v48, %v5586_v20  ;;  %v5658_v45 = vmax.f32 %v10107_v41, %v5588_v40 }
 0x451   : > { %v5598_v46 = vsel %vm5518_vm10, %v5595_v25, %v5597_v52  ;;  %v5661_v18 = vmax.f32 %v5371_v15, %v5596_v22  ;;  %v5660_v56 = vmax.f32 %v5369_v24, %v5593_v3  ;;  %v5800_v28 = vsel %vm5727_vm11, %v5798_v54, %v5799_v32 }
 0x452   : > { %v5662_v50 = vmax.f32 %v5372_v4, %v5598_v46  ;;  %v5805_v42 = vsel %vm5727_vm11, %v5803_v7, %v5804_v44  ;;  %v5801_v51 = vrot.slane %v5370_v62, 2  ;;  %v5868_v2 = vmax.f32 %v5659_v61, %v5800_v28 }
 0x453   : > { %v5807_v36 = vsel %vm5727_vm11, %v5804_v44, %v5806_v43  ;;  %v5870_v31 = vmax.f32 %v5661_v18, %v5805_v42  ;;  %v5655_v9 = vmax.f32 %v10082_v58, %v10125_v23  ;;  %v5791_v48 = vrot.slane %v10088_v35, 2 }
 0x454   : > { %v5871_v41 = vmax.f32 %v5662_v50, %v5807_v36  ;;  %v5802_v20 = vsel %vm5727_vm11, %v5799_v32, %v5801_v51  ;;  %v5795_v24 = vsel %vm5727_vm11, %v5793_v26, %v5794_v39  ;;  %v5656_v40 = vmax.f32 %v10085_v17, %v10128_v19 }
 0x455   : > { %v5902_v15 = vpack.c.bf16 %v5870_v31, %v5870_v31  ;;  %v5869_v4 = vmax.f32 %v5660_v56, %v5802_v20  ;;  %v5797_v62 = vsel %vm5727_vm11, %v5794_v39, %v5796_v55  ;;  %v5866_v33 = vmax.f32 %v5657_v29, %v5795_v24 }
 0x456   : > { %v5903_v38 = vpack.c.bf16 %v5871_v41, %v5871_v41  ;;  %v5900_v14 = vpack.c.bf16 %v5868_v2, %v5868_v2  ;;  %v5867_v37 = vmax.f32 %v5658_v45, %v5797_v62  ;;  %v5784_v23 = vrot.slane %v10077_v8, 2 }
 0x457   : > { %v6014_v54 = vunpack.c.l.b16 %v5902_v15  ;;  %v5901_v35 = vpack.c.bf16 %v5869_v4, %v5869_v4  ;;  %v5653_v32 = vmax.f32 %v10075_v12, %v10112_v63  ;;  %v5786_v26 = vrot.slane %v10079_v47, 2  ;;  %v7792_v63 = vld [vmem:[%s10255_s7] sm:$0xf]  ;;  %v8071_v47 = vld [vmem:[%s10255_s7 + $0x4] sm:$0xf0] }
 0x458   : > { %v6015_v57 = vunpack.c.l.b16 %v5903_v38  ;;  %v5790_v19 = vsel %vm5727_vm11, %v5788_v11, %v5789_v16  ;;  %v5792_v39 = vsel %vm5727_vm11, %v5789_v16, %v5791_v48  ;;  %v5654_v55 = vmax.f32 %v10077_v8, %v10122_v0  ;;  %v7794_v38 = vld [vmem:[%s10255_s7 + $0x8] sm:$0xf0] }
 0x459   : > { %v5898_v25 = vpack.c.bf16 %v5866_v33, %v5866_v33  ;;  %v5864_v7 = vmax.f32 %v5655_v9, %v5790_v19  ;;  %v5865_v58 = vmax.f32 %v5656_v40, %v5792_v39  ;;  %v7793_v44 = vor.u32 %v8071_v47, %v7792_v63  ;;  %v8070_v33 = vld [vmem:[%s10255_s7 + $0x4] sm:$0xf]  ;;  %v7818_v19 = vld [vmem:[%s10255_s7 + $0x38] sm:$0xf0] }
 0x45a   : > { %v6031_v11 = vpack.c.b16 %v6015_v57, %v6014_v54  ;;  %v6012_v52 = vunpack.c.l.b16 %v5900_v14  ;;  %v6013_v17 = vunpack.c.l.b16 %v5901_v35  ;;  %v5899_v43 = vpack.c.bf16 %v5867_v37, %v5867_v37  ;;  %v7808_v14 = vld [vmem:[%s10255_s7 + $0x20] sm:$0xf]  ;;  %v8075_v37 = vld [vmem:[%s10255_s7 + $0x24] sm:$0xf0]  ;;  %v8077_v35 = vld [vmem:[%s10255_s7 + $0x34] sm:$0xf0] }
 0x45b   : > { %v5778_v16 = vrot.slane %v10057_v49, 2  ;;  %v5779_v8 = vrot.slane %v10064_v53, 2  ;;  %6056 = vmatmul.bf16.vlgmr.msra.gmra.mxu2 %v7793_v44  ;;  %v5785_v0 = vsel %vm5727_vm11, %v5783_v13, %v5784_v23  ;;  %v5787_v60 = vsel %vm5727_vm11, %v5784_v23, %v5786_v26  ;;  %v8076_v57 = vld [vmem:[%s10255_s7 + $0x34] sm:$0xf] }
 0x45c   : > { %6077 = vmatpush.bf16.msra.mxu3 %v6031_v11  ;;  %v5651_v3 = vmax.f32 %v10057_v49, %v10116_v34  ;;  %v5781_v22 = vrot.slane %v10072_v6, 2  ;;  %v5896_v61 = vpack.c.bf16 %v5864_v7, %v5864_v7  ;;  %v5862_v29 = vmax.f32 %v5653_v32, %v5785_v0  ;;  %v7810_v32 = vld [vmem:[%s10255_s7 + $0x28] sm:$0xf0] }
 0x45d   : > { %v5863_v45 = vmax.f32 %v5654_v55, %v5787_v60  ;;  %v5652_v46 = vmax.f32 %v10064_v53, %v10119_v10  ;;  %v6030_v18 = vpack.c.b16 %v6013_v17, %v6012_v52  ;;  %v6010_v56 = vunpack.c.l.b16 %v5898_v25  ;;  %v7800_v53 = vld [vmem:[%s10255_s7 + $0x10] sm:$0xf]  ;;  %v8073_v10 = vld [vmem:[%s10255_s7 + $0x14] sm:$0xf0] }
 0x45e   : > { %v6011_v28 = vunpack.c.l.b16 %v5899_v43  ;;  %v5897_v50 = vpack.c.bf16 %v5865_v58, %v5865_v58  ;;  %v5780_v12 = vsel %vm5727_vm11, %v5778_v16, %v5779_v8  ;;  %v5782_v13 = vsel %vm5727_vm11, %v5779_v8, %v5781_v22 }
 0x45f   : > { %v5894_v42 = vpack.c.bf16 %v5862_v29, %v5862_v29  ;;  %v5860_v51 = vmax.f32 %v5651_v3, %v5780_v12  ;;  %v5861_v49 = vmax.f32 %v5652_v46, %v5782_v13  ;;  %v6008_v6 = vunpack.c.l.b16 %v5896_v61 }
 0x460   : > { %6078 = vmatpush.bf16.msra.mxu3 %v6030_v18  ;;  %v6029_v34 = vpack.c.b16 %v6011_v28, %v6010_v56  ;;  %v6009_v2 = vunpack.c.l.b16 %v5897_v50  ;;  %v5895_v36 = vpack.c.bf16 %v5863_v45, %v5863_v45  ;;  %v7801_v24 = vor.u32 %v8073_v10, %v7800_v53 }
 0x461   : > { %v5892_v31 = vpack.c.bf16 %v5860_v51, %v5860_v51  ;;  %v6006_v48 = vunpack.c.l.b16 %v5894_v42  ;;  %v5893_v20 = vpack.c.bf16 %v5861_v49, %v5861_v49  ;;  %v7797_v23 = vor.u32 %v8070_v33, %v7794_v38 }
 0x462   : > { %v6028_v9 = vpack.c.b16 %v6009_v2, %v6008_v6  ;;  %v6007_v41 = vunpack.c.l.b16 %v5895_v36  ;;  %v7809_v54 = vor.u32 %v8075_v37, %v7808_v14  ;;  %v7821_v39 = vor.u32 %v8076_v57, %v7818_v19 }
 0x463   : > { %v6004_v15 = vunpack.c.l.b16 %v5892_v31  ;;  %v6005_v4 = vunpack.c.l.b16 %v5893_v20 }
 0x464   : > { %6079 = vmatpush.bf16.msra.mxu3 %v6029_v34  ;;  %v6027_v40 = vpack.c.b16 %v6007_v41, %v6006_v48 }
 0x465   : > { %v6026_v62 = vpack.c.b16 %v6005_v4, %v6004_v15 }
 0x468   : > { %6080 = vmatpush.bf16.msra.mxu3 %v6028_v9 }
 0x46b   : > { %6061 = vmatmul.bf16.gmra.mxu2 %v7801_v24 }
 0x46c   : > { %6081 = vmatpush.bf16.msra.mxu3 %v6027_v40 }
 0x470   : > { %6082 = vmatpush.bf16.msra.mxu3 %v6026_v62 }
 0x474   : > { %6083 = vmatpush.bf16.msra.mxu3 %v6025_v21  ;;  %v7816_v21 = vld [vmem:[%s10255_s7 + $0x30] sm:$0xf] }
 0x475   : > { %v7817_v30 = vor.u32 %v8077_v35, %v7816_v21 }
 0x478   : > { %6084 = vmatpush.bf16.msra.mxu3 %v6024_v1  ;;  %v8074_v1 = vld [vmem:[%s10255_s7 + $0x24] sm:$0xf] }
 0x479   : > { %v7813_v26 = vor.u32 %v8074_v1, %v7810_v32 }
 0x47b   : > { %6085 = vmatmul.bf16.vlgmr.msra.gmra.mxu3 %v7797_v23  ;;  %6066 = vmatmul.bf16.gmra.mxu2 %v7809_v54 }
 0x48b   : > { %6090 = vmatmul.bf16.gmra.mxu3 %v7805_v5  ;;  %6071 = vmatmul.bf16.gmra.mxu2 %v7817_v30 }
 0x49b   : > { %6095 = vmatmul.bf16.gmra.mxu3 %v7813_v26 }
 0x4ab   : > { %6100 = vmatmul.bf16.gmra.mxu3 %v7821_v39 }
 0x4de   : > { %v6057_v55 = vpop.f32.mrf.mxu2 }
 0x4e6   : > { %v6059_v63 = vpop.f32.mrf.mxu2 }
 0x4ee   : > { %v6062_v25 = vpop.f32.mrf.mxu2 }
 0x4f6   : > { %v6064_v17 = vpop.f32.mrf.mxu2 }
 0x4fe   : > { %v6086_v47 = vpop.f32.mrf.mxu3  ;;  %v6067_v0 = vpop.f32.mrf.mxu2 }
 0x4ff   : > { %v6087_v58 = vadd.f32 %v6086_v47, %v6057_v55 }
 0x506   : > { %v6088_v7 = vpop.f32.mrf.mxu3  ;;  %v6069_v22 = vpop.f32.mrf.mxu2 }
 0x507   : > { %v6089_v44 = vadd.f32 %v6088_v7, %v6059_v63 }
 0x509   : > { %v8117_v11 = vpack.c.bf16 %v6089_v44, %v6087_v58 }
 0x50b   : > { %8118 = vst [vmem:[%s365_s25] sm:$0xff] %v8117_v11  }
 0x50e   : > { %v6091_v52 = vpop.f32.mrf.mxu3  ;;  %v6072_v18 = vpop.f32.mrf.mxu2 }
 0x50f   : > { %v6092_v16 = vadd.f32 %v6091_v52, %v6062_v25 }
 0x516   : > { %v6093_v43 = vpop.f32.mrf.mxu3  ;;  %v6074_v28 = vpop.f32.mrf.mxu2 }
 0x517   : > { %v6094_v8 = vadd.f32 %v6093_v43, %v6064_v17 }
 0x519   : > { %v8122_v60 = vpack.c.bf16 %v6094_v8, %v6092_v16 }
 0x51b   : > { %8142 = vst [vmem:[%s365_s25 + $0x8] sm:$0xff] %v8122_v60  }
 0x51e   : > { %v6096_v3 = vpop.f32.mrf.mxu3 }
 0x51f   : > { %v6097_v29 = vadd.f32 %v6096_v3, %v6067_v0 }
 0x526   : > { %v6098_v61 = vpop.f32.mrf.mxu3 }
 0x527   : > { %v6099_v45 = vadd.f32 %v6098_v61, %v6069_v22 }
 0x529   : > { %v8127_v46 = vpack.c.bf16 %v6099_v45, %v6097_v29 }
 0x52b   : > { %8143 = vst [vmem:[%s365_s25 + $0x10] sm:$0xff] %v8127_v46  }
 0x52e   : > { %v6101_v56 = vpop.f32.mrf.mxu3 }
 0x52f   : > { %v6102_v12 = vadd.f32 %v6101_v56, %v6072_v18 }
 0x536   : > { %v6103_v50 = vpop.f32.mrf.mxu3 }
 0x537   : > { %v6104_v13 = vadd.f32 %v6103_v50, %v6074_v28 }
 0x539   : > { %v8132_v42 = vpack.c.bf16 %v6104_v13, %v6102_v12 }
 0x53b   : > { %8144 = vst [vmem:[%s365_s25 + $0x18] sm:$0xff] %v8132_v42  }
 0x53c PF: > { %s18_s27 = sadd.s32 1, %s8167_s27  }
 0x53d   : > { %p15_p4 = scmp.ge.s32.totalorder %s18_s27, 4  }
 0x53f   :  { %17 = sbr.rel (!%p15_p4) target bundleno = 1 (0x1), region = 114 }

</bundles_post_ra>
